<compile_context>
chip_gen: v7x
topology: tpu7x:2x2x1
jax: 0.10.0
libtpu: 0.0.40
codegen_flags: <defaults>
</compile_context>

<pallas_src>
import jax
import jax.numpy as jnp
from jax.experimental import pallas as pl
from jax.experimental.pallas import tpu as pltpu

# ---- problem sizes (small, consistent with the module) ----
B, D, S, E = 2, 4, 16, 768          # batch, max_doc_len, max_sent_len, sent_rep_size
F = 256                             # filters per conv width; 3*256 = 768 = sent_rep_size
WIDTHS = (2, 3, 4)                  # TextCNN conv widths
VOCAB = 64
LABELS = 16                         # vocab.label_size
OUT_PAD = 128                       # lane-dense padded logits width (sliced outside)
N = B * D                           # sentences per batch
NEG_INF = -1e32

assert D & (D - 1) == 0 and S & (S - 1) == 0, "D and S must be powers of two"
LOG2D = D.bit_length() - 1


def _full_spec(shape):
    nd = len(shape)
    return pl.BlockSpec(shape, lambda *_, _nd=nd: (0,) * _nd)


# ------------- fused kernel: embed-gather + LN + TextCNN + attention + out -------------
def textcnn_fused_kernel(ids_ref, typ_ref, bmask_ref, table_ref, gln_ref, bln_ref,
                         bconv_ref, ba_ref, va_ref, bo_ref,
                         w2_hbm, w3_hbm, w4_hbm, wa_hbm, wo_hbm,
                         out_ref,
                         w2_v, w3_v, w4_v, wa_v, wo_v, sems):
    # ---- 0) kick off ALL weight DMAs up front; each waited on just-in-time below ----
    cps = []
    for i, (src, dst) in enumerate(((w2_hbm, w2_v), (w3_hbm, w3_v), (w4_hbm, w4_v),
                                    (wa_hbm, wa_v), (wo_hbm, wo_v))):
        cp = pltpu.make_async_copy(src, dst, sems.at[i])
        cp.start()
        cps.append(cp)
    cp_conv = cps[:3]
    cp_wa, cp_wo = cps[3], cps[4]

    # ---- 1) fused embedding gather+sum: one-hot (128,128) @ combined table (128,768) ----
    # columns [0,64)=word id, [64,66)=token type, [66,82)=position within sentence.
    lane = jax.lax.broadcasted_iota(jnp.int32, (N * S, 128), 1)
    row = jax.lax.broadcasted_iota(jnp.int32, (N * S, 1), 0)
    pos = jnp.bitwise_and(row, S - 1)
    hot = ((lane == ids_ref[...]) |
           (lane == typ_ref[...] + VOCAB) |
           (lane == pos + VOCAB + 2))
    hot = hot.astype(jnp.float32).astype(jnp.bfloat16)        # 0/1 exact in bf16
    x = jnp.dot(hot, table_ref[...], preferred_element_type=jnp.float32)   # (128,768) f32

    # ---- 2) word-encoder tail: LayerNorm (BERT-style eps=1e-12); pure VPU/XLU work
    #         that overlaps the in-flight conv-weight DMAs ----
    mu = jnp.mean(x, axis=-1, keepdims=True)
    xc = x - mu
    var = jnp.mean(xc * xc, axis=-1, keepdims=True)
    emb = xc * jax.lax.rsqrt(var + 1e-12) * gln_ref[...] + bln_ref[...]
    flat = emb.astype(jnp.bfloat16)                            # bf16 MXU operand

    # sentence masks: batch_masks.bool().any(-1).float()
    m = (jnp.max(jnp.abs(bmask_ref[...]), axis=-1, keepdims=True) > 0.0).astype(jnp.float32)

    # ---- 3) TextCNN: per-width matmul + shift-accumulate (roll) + bias/ReLU + max pool ----
    pos_t = jax.lax.broadcasted_iota(jnp.int32, (S, 1), 0)[None, :, :]     # (1,S,1)
    pooled = []
    for wi, (k, cp, wv) in enumerate(zip(WIDTHS, cp_conv, (w2_v, w3_v, w4_v))):
        cp.wait()                                              # slab k's weights in VMEM
        slab = jnp.dot(flat, wv[...], preferred_element_type=jnp.float32)  # (128, k*F) f32
        acc = slab[:, 0:F]                                     # j = 0 term (no zeros init)
        for j in range(1, k):
            # conv position r needs row r+j of shift-slab j: XLU sublane rotate
            acc = acc + pltpu.roll(slab[:, j * F:(j + 1) * F], shift=N * S - j, axis=0)
        conv = jnp.maximum(acc + bconv_ref[:, wi * F:(wi + 1) * F], 0.0).reshape(N, S, F)
        # zero the k-1 invalid tail positions of each sentence (also kills roll-wrap /
        # cross-sentence rows); correct ONLY because ReLU output >= 0, so 0 never wins max.
        valid = (pos_t <= S - k).astype(jnp.float32)
        pooled.append(jnp.max(conv * valid, axis=1))           # max-over-time -> (N, F)
    reps = jnp.concatenate(pooled, axis=-1)                    # sent_reps (N, 768) f32

    # ---- 4) sentence attention ----
    cp_wa.wait()
    key = jnp.tanh(jnp.dot(reps.astype(jnp.bfloat16), wa_v[...],
                           preferred_element_type=jnp.float32) + ba_ref[...])
    sc = jnp.sum(key * va_ref[...], axis=-1, keepdims=True)    # (N,1) f32 (VPU + lane reduce)
    sc = jnp.where(m > 0.0, sc, NEG_INF)                       # masked_fill(-1e32)

    # doc-wise softmax over the D sentences of each document, vectorized on (N,1) arrays
    rowN = jax.lax.broadcasted_iota(jnp.int32, (N, 1), 0)
    doc_id = jnp.right_shift(rowN, LOG2D)                      # (N,1)
    docmax = sc
    for b in range(B):
        inb = doc_id == b
        mb = jnp.max(jnp.where(inb, sc, NEG_INF), axis=0, keepdims=True)
        docmax = jnp.where(inb, mb, docmax)
    e = jnp.exp(sc - docmax)
    docsum = e
    for b in range(B):
        inb = doc_id == b
        sb = jnp.sum(jnp.where(inb, e, 0.0), axis=0, keepdims=True)
        docsum = jnp.where(inb, sb, docsum)
    attn = e * pl.reciprocal(docsum, approx=True)              # softmax over doc_len
    attn = jnp.where(m > 0.0, attn, 0.0)                       # masked_fill(0) after softmax

    # attention-weighted document sum as ONE tiny (B,N)@(N,768) MXU matmul
    bi = jax.lax.broadcasted_iota(jnp.int32, (B, N), 0)
    si = jax.lax.broadcasted_iota(jnp.int32, (B, N), 1)
    sel = (jnp.right_shift(si, LOG2D) == bi).astype(jnp.float32).astype(jnp.bfloat16)
    doc = jnp.dot(sel, (attn * reps).astype(jnp.bfloat16),
                  preferred_element_type=jnp.float32)          # (B, 768) f32

    # ---- 5) out = nn.Linear(768, label_size), zero-padded to 128 lanes (dense store) ----
    cp_wo.wait()
    out_ref[...] = (jnp.dot(doc.astype(jnp.bfloat16), wo_v[...],
                            preferred_element_type=jnp.float32) + bo_ref[...])


def textcnn_forward_fused(ids, typ, bmask, p):
    vmem_args = (ids, typ, bmask, p["emb_table"], p["ln_g"], p["ln_b"],
                 p["bconv"], p["ba"], p["va"], p["bo_pad"])
    hbm_args = (p["wconv2"], p["wconv3"], p["wconv4"], p["wa"], p["wo_pad"])
    in_specs = ([_full_spec(a.shape) for a in vmem_args] +
                [pl.BlockSpec(memory_space=pl.ANY)] * len(hbm_args))
    return pl.pallas_call(
        textcnn_fused_kernel,
        out_shape=jax.ShapeDtypeStruct((B, OUT_PAD), jnp.float32),
        in_specs=in_specs,
        out_specs=_full_spec((B, OUT_PAD)),
        scratch_shapes=[
            pltpu.VMEM((E, 2 * F), jnp.bfloat16),     # conv width-2 slab
            pltpu.VMEM((E, 3 * F), jnp.bfloat16),     # conv width-3 slab
            pltpu.VMEM((E, 4 * F), jnp.bfloat16),     # conv width-4 slab
            pltpu.VMEM((E, E), jnp.bfloat16),         # attention weight
            pltpu.VMEM((E, OUT_PAD), jnp.bfloat16),   # padded output weight
            pltpu.SemaphoreType.DMA((5,)),
        ],
        compiler_params=pltpu.CompilerParams(vmem_limit_bytes=32 * 1024 * 1024),
    )(*vmem_args, *hbm_args)


# ------------------------------------ params & glue ------------------------------------
def init_params(key):
    ks = jax.random.split(key, 9)
    p = {}
    word_emb = 0.02 * jax.random.normal(ks[0], (VOCAB, E), jnp.float32)
    type_emb = 0.02 * jax.random.normal(ks[1], (2, E), jnp.float32)
    pos_emb = 0.02 * jax.random.normal(ks[2], (S, E), jnp.float32)
    # TODO(synk): WordBertEncoder's pretrained BERT stack cannot be reproduced without a
    # checkpoint; deterministic stand-in = word + token-type + position embeddings with a
    # final LayerNorm (dropout is identity in eval).  Combined in-kernel gather table:
    # rows [0,64)=word, [64,66)=token-type, [66,82)=position, rest zero.
    table = jnp.zeros((128, E), jnp.float32)
    table = table.at[:VOCAB].set(word_emb)
    table = table.at[VOCAB:VOCAB + 2].set(type_emb)
    table = table.at[VOCAB + 2:VOCAB + 2 + S].set(pos_emb)
    p["emb_table"] = table.astype(jnp.bfloat16)
    p["ln_g"] = jnp.ones((1, E), jnp.float32)
    p["ln_b"] = jnp.zeros((1, E), jnp.float32)

    # TextCNNEncoder: widths (2,3,4) x 256 filters.  Per-width shift slabs are
    # concatenated along lanes -> one (768, k*256) bf16 MXU operand per width.
    biases = []
    for i, k in enumerate(WIDTHS):
        wk = 0.05 * jax.random.normal(ks[3 + i], (k, E, F), jnp.float32)
        p[f"wconv{k}"] = jnp.concatenate([wk[j] for j in range(k)],
                                         axis=-1).astype(jnp.bfloat16)       # (E, k*F)
        biases.append(jnp.zeros((1, F), jnp.float32))
    p["bconv"] = jnp.concatenate(biases, axis=-1)                            # (1, 3F) f32

    # Attention(768): weight (bf16 MXU operand), bias, query vector (f32 VPU math)
    p["wa"] = (0.05 * jax.random.normal(ks[6], (E, E), jnp.float32)).astype(jnp.bfloat16)
    p["ba"] = jnp.zeros((1, E), jnp.float32)
    p["va"] = 0.05 * jax.random.normal(ks[7], (1, E), jnp.float32)

    # out = nn.Linear(768, label_size), zero-padded to 128 output lanes (dense stores);
    # padding bytes are fully hidden behind compute by the manual async weight DMA.
    wo = 0.05 * jax.random.normal(ks[8], (E, LABELS), jnp.float32)
    p["wo_pad"] = jnp.zeros((E, OUT_PAD), jnp.float32).at[:, :LABELS].set(wo).astype(jnp.bfloat16)
    p["bo_pad"] = jnp.zeros((1, OUT_PAD), jnp.float32)
    return p


@jax.jit
def forward(batch_inputs1, batch_inputs2, batch_masks, p):
    ids = batch_inputs1.reshape(N * S, 1).astype(jnp.int32)
    typ = batch_inputs2.reshape(N * S, 1).astype(jnp.int32)
    bmask = batch_masks.reshape(N, S).astype(jnp.float32)
    logits = textcnn_forward_fused(ids, typ, bmask, p)                       # (B, 128)
    # TODO(synk): self.sent_encoder (LSTMEncoder) is constructed in __init__ but never
    # used in forward(), so it is intentionally omitted here.
    return logits[:, :LABELS]                                                # (B, label_size)


if __name__ == "__main__":
    key = jax.random.PRNGKey(0)
    kp, ki = jax.random.split(key)
    params = init_params(kp)

    batch_inputs1 = jax.random.randint(ki, (B, D, S), 1, VOCAB, dtype=jnp.int32)
    batch_inputs2 = jnp.zeros((B, D, S), jnp.int32)
    tok = jnp.arange(S)[None, None, :]
    batch_masks = (tok < 12).astype(jnp.float32) * jnp.ones((B, D, 1), jnp.float32)
    batch_masks = batch_masks.at[0, 3, :].set(0.0)   # doc 0: last sentence fully padded

    logits = forward(batch_inputs1, batch_inputs2, batch_masks, params)
    logits = jax.block_until_ready(logits)

    assert logits.shape == (B, LABELS), logits.shape
    assert bool(jnp.all(jnp.isfinite(logits)))
    print("KERNEL_OK")
</pallas_src>

<mosaic_0001>
module attributes {stable_mosaic.version = 11 : i64} {
  func.func @textcnn_fused_kernel(%arg0: memref<128x1xi32, #tpu.memory_space<vmem>>, %arg1: memref<128x1xi32, #tpu.memory_space<vmem>>, %arg2: memref<8x16xf32, #tpu.memory_space<vmem>>, %arg3: memref<128x768xbf16, #tpu.memory_space<vmem>>, %arg4: memref<1x768xf32, #tpu.memory_space<vmem>>, %arg5: memref<1x768xf32, #tpu.memory_space<vmem>>, %arg6: memref<1x768xf32, #tpu.memory_space<vmem>>, %arg7: memref<1x768xf32, #tpu.memory_space<vmem>>, %arg8: memref<1x768xf32, #tpu.memory_space<vmem>>, %arg9: memref<1x128xf32, #tpu.memory_space<vmem>>, %arg10: memref<768x512xbf16, #tpu.memory_space<any>>, %arg11: memref<768x768xbf16, #tpu.memory_space<any>>, %arg12: memref<768x1024xbf16, #tpu.memory_space<any>>, %arg13: memref<768x768xbf16, #tpu.memory_space<any>>, %arg14: memref<768x128xbf16, #tpu.memory_space<any>>, %arg15: memref<2x128xf32, #tpu.memory_space<vmem>>, %arg16: memref<768x512xbf16, #tpu.memory_space<vmem>>, %arg17: memref<768x768xbf16, #tpu.memory_space<vmem>>, %arg18: memref<768x1024xbf16, #tpu.memory_space<vmem>>, %arg19: memref<768x768xbf16, #tpu.memory_space<vmem>>, %arg20: memref<768x128xbf16, #tpu.memory_space<vmem>>, %arg21: memref<5x!tpu.dma_semaphore, #tpu.memory_space<semaphore_mem>>) attributes {dimension_semantics = [], scalar_prefetch = 0 : i64, scratch_operands = 6 : i64, tpu.core_type = #tpu.core_type<tc>} {
    %c0_i32 = arith.constant 0 : i32
    %0 = tpu.memref_slice %arg21[%c0_i32] : memref<5x!tpu.dma_semaphore, #tpu.memory_space<semaphore_mem>> -> memref<1x!tpu.dma_semaphore, #tpu.memory_space<semaphore_mem>>
    %1 = tpu.memref_squeeze %0 : memref<1x!tpu.dma_semaphore, #tpu.memory_space<semaphore_mem>> -> memref<!tpu.dma_semaphore, #tpu.memory_space<semaphore_mem>>
    tpu.enqueue_dma source(%arg10 : memref<768x512xbf16, #tpu.memory_space<any>>) target(%arg16 : memref<768x512xbf16, #tpu.memory_space<vmem>>) target_semaphore(%1 : memref<!tpu.dma_semaphore, #tpu.memory_space<semaphore_mem>>)
    %c1_i32 = arith.constant 1 : i32
    %2 = tpu.memref_slice %arg21[%c1_i32] : memref<5x!tpu.dma_semaphore, #tpu.memory_space<semaphore_mem>> -> memref<1x!tpu.dma_semaphore, #tpu.memory_space<semaphore_mem>>
    %3 = tpu.memref_squeeze %2 : memref<1x!tpu.dma_semaphore, #tpu.memory_space<semaphore_mem>> -> memref<!tpu.dma_semaphore, #tpu.memory_space<semaphore_mem>>
    tpu.enqueue_dma source(%arg11 : memref<768x768xbf16, #tpu.memory_space<any>>) target(%arg17 : memref<768x768xbf16, #tpu.memory_space<vmem>>) target_semaphore(%3 : memref<!tpu.dma_semaphore, #tpu.memory_space<semaphore_mem>>)
    %c2_i32 = arith.constant 2 : i32
    %4 = tpu.memref_slice %arg21[%c2_i32] : memref<5x!tpu.dma_semaphore, #tpu.memory_space<semaphore_mem>> -> memref<1x!tpu.dma_semaphore, #tpu.memory_space<semaphore_mem>>
    %5 = tpu.memref_squeeze %4 : memref<1x!tpu.dma_semaphore, #tpu.memory_space<semaphore_mem>> -> memref<!tpu.dma_semaphore, #tpu.memory_space<semaphore_mem>>
    tpu.enqueue_dma source(%arg12 : memref<768x1024xbf16, #tpu.memory_space<any>>) target(%arg18 : memref<768x1024xbf16, #tpu.memory_space<vmem>>) target_semaphore(%5 : memref<!tpu.dma_semaphore, #tpu.memory_space<semaphore_mem>>)
    %c3_i32 = arith.constant 3 : i32
    %6 = tpu.memref_slice %arg21[%c3_i32] : memref<5x!tpu.dma_semaphore, #tpu.memory_space<semaphore_mem>> -> memref<1x!tpu.dma_semaphore, #tpu.memory_space<semaphore_mem>>
    %7 = tpu.memref_squeeze %6 : memref<1x!tpu.dma_semaphore, #tpu.memory_space<semaphore_mem>> -> memref<!tpu.dma_semaphore, #tpu.memory_space<semaphore_mem>>
    tpu.enqueue_dma source(%arg13 : memref<768x768xbf16, #tpu.memory_space<any>>) target(%arg19 : memref<768x768xbf16, #tpu.memory_space<vmem>>) target_semaphore(%7 : memref<!tpu.dma_semaphore, #tpu.memory_space<semaphore_mem>>)
    %c4_i32 = arith.constant 4 : i32
    %8 = tpu.memref_slice %arg21[%c4_i32] : memref<5x!tpu.dma_semaphore, #tpu.memory_space<semaphore_mem>> -> memref<1x!tpu.dma_semaphore, #tpu.memory_space<semaphore_mem>>
    %9 = tpu.memref_squeeze %8 : memref<1x!tpu.dma_semaphore, #tpu.memory_space<semaphore_mem>> -> memref<!tpu.dma_semaphore, #tpu.memory_space<semaphore_mem>>
    tpu.enqueue_dma source(%arg14 : memref<768x128xbf16, #tpu.memory_space<any>>) target(%arg20 : memref<768x128xbf16, #tpu.memory_space<vmem>>) target_semaphore(%9 : memref<!tpu.dma_semaphore, #tpu.memory_space<semaphore_mem>>)
    %10 = tpu.iota {dimensions = array<i32: 1>} : vector<128x128xi32>
    %11 = tpu.iota {dimensions = array<i32: 0>} : vector<128x1xi32>
    %c15_i32 = arith.constant 15 : i32
    %12 = vector.broadcast %c15_i32 : i32 to vector<128x1xi32>
    %13 = arith.andi %11, %12 : vector<128x1xi32>
    %c0 = arith.constant 0 : index
    %c0_0 = arith.constant 0 : index
    %14 = vector.load %arg0[%c0, %c0_0] : memref<128x1xi32, #tpu.memory_space<vmem>>, vector<128x1xi32>
    %15 = vector.broadcast %14 : vector<128x1xi32> to vector<128x128xi32>
    %16 = arith.cmpi eq, %10, %15 : vector<128x128xi32>
    %c0_1 = arith.constant 0 : index
    %c0_2 = arith.constant 0 : index
    %17 = vector.load %arg1[%c0_1, %c0_2] : memref<128x1xi32, #tpu.memory_space<vmem>>, vector<128x1xi32>
    %c64_i32 = arith.constant 64 : i32
    %18 = vector.broadcast %c64_i32 : i32 to vector<128x1xi32>
    %19 = arith.addi %17, %18 : vector<128x1xi32>
    %20 = vector.broadcast %19 : vector<128x1xi32> to vector<128x128xi32>
    %21 = arith.cmpi eq, %10, %20 : vector<128x128xi32>
    %22 = arith.ori %16, %21 : vector<128x128xi1>
    %c64_i32_3 = arith.constant 64 : i32
    %23 = vector.broadcast %c64_i32_3 : i32 to vector<128x1xi32>
    %24 = arith.addi %13, %23 : vector<128x1xi32>
    %c2_i32_4 = arith.constant 2 : i32
    %25 = vector.broadcast %c2_i32_4 : i32 to vector<128x1xi32>
    %26 = arith.addi %24, %25 : vector<128x1xi32>
    %27 = vector.broadcast %26 : vector<128x1xi32> to vector<128x128xi32>
    %28 = arith.cmpi eq, %10, %27 : vector<128x128xi32>
    %29 = arith.ori %22, %28 : vector<128x128xi1>
    %30 = arith.extui %29 : vector<128x128xi1> to vector<128x128xi32>
    %31 = arith.sitofp %30 : vector<128x128xi32> to vector<128x128xf32>
    %32 = arith.truncf %31 : vector<128x128xf32> to vector<128x128xbf16>
    %c0_5 = arith.constant 0 : index
    %c0_6 = arith.constant 0 : index
    %33 = vector.load %arg3[%c0_5, %c0_6] : memref<128x768xbf16, #tpu.memory_space<vmem>>, vector<128x768xbf16>
    %cst = arith.constant dense<0.000000e+00> : vector<128x768xf32>
    %34 = tpu.matmul %32, %33, %cst {dimension_numbers = #tpu.dot_dimension_numbers<[1], [0], [0], [1], [0, 0, 1, 1], [], []>} : vector<128x128xbf16>, vector<128x768xbf16>, vector<128x768xf32> -> vector<128x768xf32>
    %cst_7 = arith.constant dense<0.000000e+00> : vector<128xf32>
    %35 = vector.multi_reduction <add>, %34, %cst_7 [1] : vector<128x768xf32> to vector<128xf32>
    %36 = vector.shape_cast %35 : vector<128xf32> to vector<128x1xf32>
    %cst_8 = arith.constant 7.680000e+02 : f32
    %37 = vector.broadcast %cst_8 : f32 to vector<128x1xf32>
    %38 = arith.divf %36, %37 : vector<128x1xf32>
    %39 = vector.broadcast %38 : vector<128x1xf32> to vector<128x768xf32>
    %40 = arith.subf %34, %39 : vector<128x768xf32>
    %41 = arith.mulf %40, %40 : vector<128x768xf32>
    %cst_9 = arith.constant dense<0.000000e+00> : vector<128xf32>
    %42 = vector.multi_reduction <add>, %41, %cst_9 [1] : vector<128x768xf32> to vector<128xf32>
    %43 = vector.shape_cast %42 : vector<128xf32> to vector<128x1xf32>
    %cst_10 = arith.constant 7.680000e+02 : f32
    %44 = vector.broadcast %cst_10 : f32 to vector<128x1xf32>
    %45 = arith.divf %43, %44 : vector<128x1xf32>
    %cst_11 = arith.constant 9.99999996E-13 : f32
    %46 = vector.broadcast %cst_11 : f32 to vector<128x1xf32>
    %47 = arith.addf %45, %46 : vector<128x1xf32>
    %48 = math.rsqrt %47 : vector<128x1xf32>
    %49 = vector.broadcast %48 : vector<128x1xf32> to vector<128x768xf32>
    %50 = arith.mulf %40, %49 : vector<128x768xf32>
    %c0_12 = arith.constant 0 : index
    %c0_13 = arith.constant 0 : index
    %51 = vector.load %arg4[%c0_12, %c0_13] : memref<1x768xf32, #tpu.memory_space<vmem>>, vector<1x768xf32>
    %52 = vector.broadcast %51 : vector<1x768xf32> to vector<128x768xf32>
    %53 = arith.mulf %50, %52 : vector<128x768xf32>
    %c0_14 = arith.constant 0 : index
    %c0_15 = arith.constant 0 : index
    %54 = vector.load %arg5[%c0_14, %c0_15] : memref<1x768xf32, #tpu.memory_space<vmem>>, vector<1x768xf32>
    %55 = vector.broadcast %54 : vector<1x768xf32> to vector<128x768xf32>
    %56 = arith.addf %53, %55 : vector<128x768xf32>
    %57 = arith.truncf %56 : vector<128x768xf32> to vector<128x768xbf16>
    %c0_16 = arith.constant 0 : index
    %c0_17 = arith.constant 0 : index
    %58 = vector.load %arg2[%c0_16, %c0_17] : memref<8x16xf32, #tpu.memory_space<vmem>>, vector<8x16xf32>
    %59 = math.absf %58 : vector<8x16xf32>
    %cst_18 = arith.constant dense<0xFF800000> : vector<8xf32>
    %60 = vector.multi_reduction <maximumf>, %59, %cst_18 [1] : vector<8x16xf32> to vector<8xf32>
    %61 = vector.shape_cast %60 : vector<8xf32> to vector<8x1xf32>
    %cst_19 = arith.constant 0.000000e+00 : f32
    %62 = vector.broadcast %cst_19 : f32 to vector<8x1xf32>
    %63 = arith.cmpf ogt, %61, %62 : vector<8x1xf32>
    %64 = arith.extui %63 : vector<8x1xi1> to vector<8x1xi32>
    %65 = arith.sitofp %64 : vector<8x1xi32> to vector<8x1xf32>
    %66 = tpu.iota {dimensions = array<i32: 0>} : vector<16x1xi32>
    %67 = vector.shape_cast %66 : vector<16x1xi32> to vector<1x16x1xi32>
    %c0_i32_20 = arith.constant 0 : i32
    %68 = tpu.memref_slice %arg21[%c0_i32_20] : memref<5x!tpu.dma_semaphore, #tpu.memory_space<semaphore_mem>> -> memref<1x!tpu.dma_semaphore, #tpu.memory_space<semaphore_mem>>
    %69 = tpu.memref_squeeze %68 : memref<1x!tpu.dma_semaphore, #tpu.memory_space<semaphore_mem>> -> memref<!tpu.dma_semaphore, #tpu.memory_space<semaphore_mem>>
    tpu.wait_dma2 semaphore(%69 : memref<!tpu.dma_semaphore, #tpu.memory_space<semaphore_mem>>) src(%arg10 : memref<768x512xbf16, #tpu.memory_space<any>>) dst(%arg16 : memref<768x512xbf16, #tpu.memory_space<vmem>>)
    %c0_21 = arith.constant 0 : index
    %c0_22 = arith.constant 0 : index
    %70 = vector.load %arg16[%c0_21, %c0_22] : memref<768x512xbf16, #tpu.memory_space<vmem>>, vector<768x512xbf16>
    %cst_23 = arith.constant dense<0.000000e+00> : vector<128x512xf32>
    %71 = tpu.matmul %57, %70, %cst_23 {dimension_numbers = #tpu.dot_dimension_numbers<[1], [0], [0], [1], [0, 0, 1, 1], [], []>} : vector<128x768xbf16>, vector<768x512xbf16>, vector<128x512xf32> -> vector<128x512xf32>
    %72 = vector.extract_strided_slice %71 {offsets = [0, 0], sizes = [128, 256], strides = [1, 1]} : vector<128x512xf32> to vector<128x256xf32>
    %73 = vector.extract_strided_slice %71 {offsets = [0, 256], sizes = [128, 256], strides = [1, 1]} : vector<128x512xf32> to vector<128x256xf32>
    %c127_i32 = arith.constant 127 : i32
    %74 = tpu.dynamic_rotate %73 by %c127_i32 dim 0 : vector<128x256xf32>, i32 -> vector<128x256xf32>
    %75 = arith.addf %72, %74 : vector<128x256xf32>
    %c0_24 = arith.constant 0 : index
    %c0_25 = arith.constant 0 : index
    %76 = vector.load %arg6[%c0_24, %c0_25] : memref<1x768xf32, #tpu.memory_space<vmem>>, vector<1x256xf32>
    %77 = vector.broadcast %76 : vector<1x256xf32> to vector<128x256xf32>
    %78 = arith.addf %75, %77 : vector<128x256xf32>
    %cst_26 = arith.constant 0.000000e+00 : f32
    %79 = vector.broadcast %cst_26 : f32 to vector<128x256xf32>
    %80 = arith.maximumf %78, %79 : vector<128x256xf32>
    %81 = vector.shape_cast %80 : vector<128x256xf32> to vector<8x16x256xf32>
    %c14_i32 = arith.constant 14 : i32
    %82 = vector.broadcast %c14_i32 : i32 to vector<1x16x1xi32>
    %83 = arith.cmpi sle, %67, %82 : vector<1x16x1xi32>
    %84 = arith.extui %83 : vector<1x16x1xi1> to vector<1x16x1xi32>
    %85 = arith.sitofp %84 : vector<1x16x1xi32> to vector<1x16x1xf32>
    %86 = vector.broadcast %85 : vector<1x16x1xf32> to vector<8x16x256xf32>
    %87 = arith.mulf %81, %86 : vector<8x16x256xf32>
    %cst_27 = arith.constant dense<0xFF800000> : vector<8x256xf32>
    %88 = vector.multi_reduction <maximumf>, %87, %cst_27 [1] : vector<8x16x256xf32> to vector<8x256xf32>
    %c1_i32_28 = arith.constant 1 : i32
    %89 = tpu.memref_slice %arg21[%c1_i32_28] : memref<5x!tpu.dma_semaphore, #tpu.memory_space<semaphore_mem>> -> memref<1x!tpu.dma_semaphore, #tpu.memory_space<semaphore_mem>>
    %90 = tpu.memref_squeeze %89 : memref<1x!tpu.dma_semaphore, #tpu.memory_space<semaphore_mem>> -> memref<!tpu.dma_semaphore, #tpu.memory_space<semaphore_mem>>
    tpu.wait_dma2 semaphore(%90 : memref<!tpu.dma_semaphore, #tpu.memory_space<semaphore_mem>>) src(%arg11 : memref<768x768xbf16, #tpu.memory_space<any>>) dst(%arg17 : memref<768x768xbf16, #tpu.memory_space<vmem>>)
    %c0_29 = arith.constant 0 : index
    %c0_30 = arith.constant 0 : index
    %91 = vector.load %arg17[%c0_29, %c0_30] : memref<768x768xbf16, #tpu.memory_space<vmem>>, vector<768x768xbf16>
    %cst_31 = arith.constant dense<0.000000e+00> : vector<128x768xf32>
    %92 = tpu.matmul %57, %91, %cst_31 {dimension_numbers = #tpu.dot_dimension_numbers<[1], [0], [0], [1], [0, 0, 1, 1], [], []>} : vector<128x768xbf16>, vector<768x768xbf16>, vector<128x768xf32> -> vector<128x768xf32>
    %93 = vector.extract_strided_slice %92 {offsets = [0, 0], sizes = [128, 256], strides = [1, 1]} : vector<128x768xf32> to vector<128x256xf32>
    %94 = vector.extract_strided_slice %92 {offsets = [0, 256], sizes = [128, 256], strides = [1, 1]} : vector<128x768xf32> to vector<128x256xf32>
    %c127_i32_32 = arith.constant 127 : i32
    %95 = tpu.dynamic_rotate %94 by %c127_i32_32 dim 0 : vector<128x256xf32>, i32 -> vector<128x256xf32>
    %96 = arith.addf %93, %95 : vector<128x256xf32>
    %97 = vector.extract_strided_slice %92 {offsets = [0, 512], sizes = [128, 256], strides = [1, 1]} : vector<128x768xf32> to vector<128x256xf32>
    %c126_i32 = arith.constant 126 : i32
    %98 = tpu.dynamic_rotate %97 by %c126_i32 dim 0 : vector<128x256xf32>, i32 -> vector<128x256xf32>
    %99 = arith.addf %96, %98 : vector<128x256xf32>
    %c0_33 = arith.constant 0 : index
    %c256 = arith.constant 256 : index
    %100 = vector.load %arg6[%c0_33, %c256] : memref<1x768xf32, #tpu.memory_space<vmem>>, vector<1x256xf32>
    %101 = vector.broadcast %100 : vector<1x256xf32> to vector<128x256xf32>
    %102 = arith.addf %99, %101 : vector<128x256xf32>
    %cst_34 = arith.constant 0.000000e+00 : f32
    %103 = vector.broadcast %cst_34 : f32 to vector<128x256xf32>
    %104 = arith.maximumf %102, %103 : vector<128x256xf32>
    %105 = vector.shape_cast %104 : vector<128x256xf32> to vector<8x16x256xf32>
    %c13_i32 = arith.constant 13 : i32
    %106 = vector.broadcast %c13_i32 : i32 to vector<1x16x1xi32>
    %107 = arith.cmpi sle, %67, %106 : vector<1x16x1xi32>
    %108 = arith.extui %107 : vector<1x16x1xi1> to vector<1x16x1xi32>
    %109 = arith.sitofp %108 : vector<1x16x1xi32> to vector<1x16x1xf32>
    %110 = vector.broadcast %109 : vector<1x16x1xf32> to vector<8x16x256xf32>
    %111 = arith.mulf %105, %110 : vector<8x16x256xf32>
    %cst_35 = arith.constant dense<0xFF800000> : vector<8x256xf32>
    %112 = vector.multi_reduction <maximumf>, %111, %cst_35 [1] : vector<8x16x256xf32> to vector<8x256xf32>
    %c2_i32_36 = arith.constant 2 : i32
    %113 = tpu.memref_slice %arg21[%c2_i32_36] : memref<5x!tpu.dma_semaphore, #tpu.memory_space<semaphore_mem>> -> memref<1x!tpu.dma_semaphore, #tpu.memory_space<semaphore_mem>>
    %114 = tpu.memref_squeeze %113 : memref<1x!tpu.dma_semaphore, #tpu.memory_space<semaphore_mem>> -> memref<!tpu.dma_semaphore, #tpu.memory_space<semaphore_mem>>
    tpu.wait_dma2 semaphore(%114 : memref<!tpu.dma_semaphore, #tpu.memory_space<semaphore_mem>>) src(%arg12 : memref<768x1024xbf16, #tpu.memory_space<any>>) dst(%arg18 : memref<768x1024xbf16, #tpu.memory_space<vmem>>)
    %c0_37 = arith.constant 0 : index
    %c0_38 = arith.constant 0 : index
    %115 = vector.load %arg18[%c0_37, %c0_38] : memref<768x1024xbf16, #tpu.memory_space<vmem>>, vector<768x1024xbf16>
    %cst_39 = arith.constant dense<0.000000e+00> : vector<128x1024xf32>
    %116 = tpu.matmul %57, %115, %cst_39 {dimension_numbers = #tpu.dot_dimension_numbers<[1], [0], [0], [1], [0, 0, 1, 1], [], []>} : vector<128x768xbf16>, vector<768x1024xbf16>, vector<128x1024xf32> -> vector<128x1024xf32>
    %117 = vector.extract_strided_slice %116 {offsets = [0, 0], sizes = [128, 256], strides = [1, 1]} : vector<128x1024xf32> to vector<128x256xf32>
    %118 = vector.extract_strided_slice %116 {offsets = [0, 256], sizes = [128, 256], strides = [1, 1]} : vector<128x1024xf32> to vector<128x256xf32>
    %c127_i32_40 = arith.constant 127 : i32
    %119 = tpu.dynamic_rotate %118 by %c127_i32_40 dim 0 : vector<128x256xf32>, i32 -> vector<128x256xf32>
    %120 = arith.addf %117, %119 : vector<128x256xf32>
    %121 = vector.extract_strided_slice %116 {offsets = [0, 512], sizes = [128, 256], strides = [1, 1]} : vector<128x1024xf32> to vector<128x256xf32>
    %c126_i32_41 = arith.constant 126 : i32
    %122 = tpu.dynamic_rotate %121 by %c126_i32_41 dim 0 : vector<128x256xf32>, i32 -> vector<128x256xf32>
    %123 = arith.addf %120, %122 : vector<128x256xf32>
    %124 = vector.extract_strided_slice %116 {offsets = [0, 768], sizes = [128, 256], strides = [1, 1]} : vector<128x1024xf32> to vector<128x256xf32>
    %c125_i32 = arith.constant 125 : i32
    %125 = tpu.dynamic_rotate %124 by %c125_i32 dim 0 : vector<128x256xf32>, i32 -> vector<128x256xf32>
    %126 = arith.addf %123, %125 : vector<128x256xf32>
    %c0_42 = arith.constant 0 : index
    %c512 = arith.constant 512 : index
    %127 = vector.load %arg6[%c0_42, %c512] : memref<1x768xf32, #tpu.memory_space<vmem>>, vector<1x256xf32>
    %128 = vector.broadcast %127 : vector<1x256xf32> to vector<128x256xf32>
    %129 = arith.addf %126, %128 : vector<128x256xf32>
    %cst_43 = arith.constant 0.000000e+00 : f32
    %130 = vector.broadcast %cst_43 : f32 to vector<128x256xf32>
    %131 = arith.maximumf %129, %130 : vector<128x256xf32>
    %132 = vector.shape_cast %131 : vector<128x256xf32> to vector<8x16x256xf32>
    %c12_i32 = arith.constant 12 : i32
    %133 = vector.broadcast %c12_i32 : i32 to vector<1x16x1xi32>
    %134 = arith.cmpi sle, %67, %133 : vector<1x16x1xi32>
    %135 = arith.extui %134 : vector<1x16x1xi1> to vector<1x16x1xi32>
    %136 = arith.sitofp %135 : vector<1x16x1xi32> to vector<1x16x1xf32>
    %137 = vector.broadcast %136 : vector<1x16x1xf32> to vector<8x16x256xf32>
    %138 = arith.mulf %132, %137 : vector<8x16x256xf32>
    %cst_44 = arith.constant dense<0xFF800000> : vector<8x256xf32>
    %139 = vector.multi_reduction <maximumf>, %138, %cst_44 [1] : vector<8x16x256xf32> to vector<8x256xf32>
    %140 = tpu.concatenate %88, %112, %139 in 1 : vector<8x256xf32>, vector<8x256xf32>, vector<8x256xf32> -> vector<8x768xf32>
    %c3_i32_45 = arith.constant 3 : i32
    %141 = tpu.memref_slice %arg21[%c3_i32_45] : memref<5x!tpu.dma_semaphore, #tpu.memory_space<semaphore_mem>> -> memref<1x!tpu.dma_semaphore, #tpu.memory_space<semaphore_mem>>
    %142 = tpu.memref_squeeze %141 : memref<1x!tpu.dma_semaphore, #tpu.memory_space<semaphore_mem>> -> memref<!tpu.dma_semaphore, #tpu.memory_space<semaphore_mem>>
    tpu.wait_dma2 semaphore(%142 : memref<!tpu.dma_semaphore, #tpu.memory_space<semaphore_mem>>) src(%arg13 : memref<768x768xbf16, #tpu.memory_space<any>>) dst(%arg19 : memref<768x768xbf16, #tpu.memory_space<vmem>>)
    %143 = arith.truncf %140 : vector<8x768xf32> to vector<8x768xbf16>
    %c0_46 = arith.constant 0 : index
    %c0_47 = arith.constant 0 : index
    %144 = vector.load %arg19[%c0_46, %c0_47] : memref<768x768xbf16, #tpu.memory_space<vmem>>, vector<768x768xbf16>
    %cst_48 = arith.constant dense<0.000000e+00> : vector<8x768xf32>
    %145 = tpu.matmul %143, %144, %cst_48 {dimension_numbers = #tpu.dot_dimension_numbers<[1], [0], [0], [1], [0, 0, 1, 1], [], []>} : vector<8x768xbf16>, vector<768x768xbf16>, vector<8x768xf32> -> vector<8x768xf32>
    %c0_49 = arith.constant 0 : index
    %c0_50 = arith.constant 0 : index
    %146 = vector.load %arg7[%c0_49, %c0_50] : memref<1x768xf32, #tpu.memory_space<vmem>>, vector<1x768xf32>
    %147 = vector.broadcast %146 : vector<1x768xf32> to vector<8x768xf32>
    %148 = arith.addf %145, %147 : vector<8x768xf32>
    %149 = math.tanh %148 : vector<8x768xf32>
    %c0_51 = arith.constant 0 : index
    %c0_52 = arith.constant 0 : index
    %150 = vector.load %arg8[%c0_51, %c0_52] : memref<1x768xf32, #tpu.memory_space<vmem>>, vector<1x768xf32>
    %151 = vector.broadcast %150 : vector<1x768xf32> to vector<8x768xf32>
    %152 = arith.mulf %149, %151 : vector<8x768xf32>
    %cst_53 = arith.constant dense<0.000000e+00> : vector<8xf32>
    %153 = vector.multi_reduction <add>, %152, %cst_53 [1] : vector<8x768xf32> to vector<8xf32>
    %154 = vector.shape_cast %153 : vector<8xf32> to vector<8x1xf32>
    %cst_54 = arith.constant 0.000000e+00 : f32
    %155 = vector.broadcast %cst_54 : f32 to vector<8x1xf32>
    %156 = arith.cmpf ogt, %65, %155 : vector<8x1xf32>
    %cst_55 = arith.constant -1.000000e+32 : f32
    %157 = vector.broadcast %cst_55 : f32 to vector<8x1xf32>
    %158 = arith.select %156, %154, %157 : vector<8x1xi1>, vector<8x1xf32>
    %159 = tpu.iota {dimensions = array<i32: 0>} : vector<8x1xi32>
    %c2_i32_56 = arith.constant 2 : i32
    %160 = vector.broadcast %c2_i32_56 : i32 to vector<8x1xi32>
    %161 = arith.shrsi %159, %160 : vector<8x1xi32>
    %c0_i32_57 = arith.constant 0 : i32
    %162 = vector.broadcast %c0_i32_57 : i32 to vector<8x1xi32>
    %163 = arith.cmpi eq, %161, %162 : vector<8x1xi32>
    %cst_58 = arith.constant -1.000000e+32 : f32
    %164 = vector.broadcast %cst_58 : f32 to vector<8x1xf32>
    %165 = arith.select %163, %158, %164 : vector<8x1xi1>, vector<8x1xf32>
    %cst_59 = arith.constant dense<0xFF800000> : vector<1xf32>
    %166 = vector.multi_reduction <maximumf>, %165, %cst_59 [0] : vector<8x1xf32> to vector<1xf32>
    %167 = vector.shape_cast %166 : vector<1xf32> to vector<1x1xf32>
    %168 = vector.shape_cast %167 : vector<1x1xf32> to vector<1x1xf32>
    %169 = vector.broadcast %168 : vector<1x1xf32> to vector<8x1xf32>
    %170 = arith.select %163, %169, %158 : vector<8x1xi1>, vector<8x1xf32>
    %c1_i32_60 = arith.constant 1 : i32
    %171 = vector.broadcast %c1_i32_60 : i32 to vector<8x1xi32>
    %172 = arith.cmpi eq, %161, %171 : vector<8x1xi32>
    %cst_61 = arith.constant -1.000000e+32 : f32
    %173 = vector.broadcast %cst_61 : f32 to vector<8x1xf32>
    %174 = arith.select %172, %158, %173 : vector<8x1xi1>, vector<8x1xf32>
    %cst_62 = arith.constant dense<0xFF800000> : vector<1xf32>
    %175 = vector.multi_reduction <maximumf>, %174, %cst_62 [0] : vector<8x1xf32> to vector<1xf32>
    %176 = vector.shape_cast %175 : vector<1xf32> to vector<1x1xf32>
    %177 = vector.shape_cast %176 : vector<1x1xf32> to vector<1x1xf32>
    %178 = vector.broadcast %177 : vector<1x1xf32> to vector<8x1xf32>
    %179 = arith.select %172, %178, %170 : vector<8x1xi1>, vector<8x1xf32>
    %180 = arith.subf %158, %179 : vector<8x1xf32>
    %181 = math.exp %180 : vector<8x1xf32>
    %c0_i32_63 = arith.constant 0 : i32
    %182 = vector.broadcast %c0_i32_63 : i32 to vector<8x1xi32>
    %183 = arith.cmpi eq, %161, %182 : vector<8x1xi32>
    %cst_64 = arith.constant 0.000000e+00 : f32
    %184 = vector.broadcast %cst_64 : f32 to vector<8x1xf32>
    %185 = arith.select %183, %181, %184 : vector<8x1xi1>, vector<8x1xf32>
    %cst_65 = arith.constant dense<0.000000e+00> : vector<1xf32>
    %186 = vector.multi_reduction <add>, %185, %cst_65 [0] : vector<8x1xf32> to vector<1xf32>
    %187 = vector.shape_cast %186 : vector<1xf32> to vector<1x1xf32>
    %188 = vector.shape_cast %187 : vector<1x1xf32> to vector<1x1xf32>
    %189 = vector.broadcast %188 : vector<1x1xf32> to vector<8x1xf32>
    %190 = arith.select %183, %189, %181 : vector<8x1xi1>, vector<8x1xf32>
    %c1_i32_66 = arith.constant 1 : i32
    %191 = vector.broadcast %c1_i32_66 : i32 to vector<8x1xi32>
    %192 = arith.cmpi eq, %161, %191 : vector<8x1xi32>
    %cst_67 = arith.constant 0.000000e+00 : f32
    %193 = vector.broadcast %cst_67 : f32 to vector<8x1xf32>
    %194 = arith.select %192, %181, %193 : vector<8x1xi1>, vector<8x1xf32>
    %cst_68 = arith.constant dense<0.000000e+00> : vector<1xf32>
    %195 = vector.multi_reduction <add>, %194, %cst_68 [0] : vector<8x1xf32> to vector<1xf32>
    %196 = vector.shape_cast %195 : vector<1xf32> to vector<1x1xf32>
    %197 = vector.shape_cast %196 : vector<1x1xf32> to vector<1x1xf32>
    %198 = vector.broadcast %197 : vector<1x1xf32> to vector<8x1xf32>
    %199 = arith.select %192, %198, %190 : vector<8x1xi1>, vector<8x1xf32>
    %200 = tpu.reciprocal %199 {approx = true} : vector<8x1xf32> -> vector<8x1xf32>
    %201 = arith.mulf %181, %200 : vector<8x1xf32>
    %cst_69 = arith.constant 0.000000e+00 : f32
    %202 = vector.broadcast %cst_69 : f32 to vector<8x1xf32>
    %203 = arith.cmpf ogt, %65, %202 : vector<8x1xf32>
    %cst_70 = arith.constant 0.000000e+00 : f32
    %204 = vector.broadcast %cst_70 : f32 to vector<8x1xf32>
    %205 = arith.select %203, %201, %204 : vector<8x1xi1>, vector<8x1xf32>
    %206 = tpu.iota {dimensions = array<i32: 0>} : vector<2x8xi32>
    %207 = tpu.iota {dimensions = array<i32: 1>} : vector<2x8xi32>
    %c2_i32_71 = arith.constant 2 : i32
    %208 = vector.broadcast %c2_i32_71 : i32 to vector<2x8xi32>
    %209 = arith.shrsi %207, %208 : vector<2x8xi32>
    %210 = arith.cmpi eq, %209, %206 : vector<2x8xi32>
    %211 = arith.extui %210 : vector<2x8xi1> to vector<2x8xi32>
    %212 = arith.sitofp %211 : vector<2x8xi32> to vector<2x8xf32>
    %213 = arith.truncf %212 : vector<2x8xf32> to vector<2x8xbf16>
    %214 = vector.broadcast %205 : vector<8x1xf32> to vector<8x768xf32>
    %215 = arith.mulf %214, %140 : vector<8x768xf32>
    %216 = arith.truncf %215 : vector<8x768xf32> to vector<8x768xbf16>
    %cst_72 = arith.constant dense<0.000000e+00> : vector<2x768xf32>
    %217 = tpu.matmul %213, %216, %cst_72 {dimension_numbers = #tpu.dot_dimension_numbers<[1], [0], [0], [1], [0, 0, 1, 1], [], []>} : vector<2x8xbf16>, vector<8x768xbf16>, vector<2x768xf32> -> vector<2x768xf32>
    %c4_i32_73 = arith.constant 4 : i32
    %218 = tpu.memref_slice %arg21[%c4_i32_73] : memref<5x!tpu.dma_semaphore, #tpu.memory_space<semaphore_mem>> -> memref<1x!tpu.dma_semaphore, #tpu.memory_space<semaphore_mem>>
    %219 = tpu.memref_squeeze %218 : memref<1x!tpu.dma_semaphore, #tpu.memory_space<semaphore_mem>> -> memref<!tpu.dma_semaphore, #tpu.memory_space<semaphore_mem>>
    tpu.wait_dma2 semaphore(%219 : memref<!tpu.dma_semaphore, #tpu.memory_space<semaphore_mem>>) src(%arg14 : memref<768x128xbf16, #tpu.memory_space<any>>) dst(%arg20 : memref<768x128xbf16, #tpu.memory_space<vmem>>)
    %220 = arith.truncf %217 : vector<2x768xf32> to vector<2x768xbf16>
    %c0_74 = arith.constant 0 : index
    %c0_75 = arith.constant 0 : index
    %221 = vector.load %arg20[%c0_74, %c0_75] : memref<768x128xbf16, #tpu.memory_space<vmem>>, vector<768x128xbf16>
    %cst_76 = arith.constant dense<0.000000e+00> : vector<2x128xf32>
    %222 = tpu.matmul %220, %221, %cst_76 {dimension_numbers = #tpu.dot_dimension_numbers<[1], [0], [0], [1], [0, 0, 1, 1], [], []>} : vector<2x768xbf16>, vector<768x128xbf16>, vector<2x128xf32> -> vector<2x128xf32>
    %c0_77 = arith.constant 0 : index
    %c0_78 = arith.constant 0 : index
    %223 = vector.load %arg9[%c0_77, %c0_78] : memref<1x128xf32, #tpu.memory_space<vmem>>, vector<1x128xf32>
    %224 = vector.broadcast %223 : vector<1x128xf32> to vector<2x128xf32>
    %225 = arith.addf %222, %224 : vector<2x128xf32>
    %c0_79 = arith.constant 0 : index
    %c0_80 = arith.constant 0 : index
    %226 = vector.load %arg15[%c0_79, %c0_80] : memref<2x128xf32, #tpu.memory_space<vmem>>, vector<2x128xf32>
    tpu.vector_store %arg15[%c0_79, %c0_80], %225 {strides = array<i32>} : memref<2x128xf32, #tpu.memory_space<vmem>>, vector<2x128xf32>,
    return
  }
}

</mosaic_0001>

<bundles_post_ra>
// kernel: forward.1
= control target key start
LH: loop header
LB: loop body
LE: loop exit
PB: predicated region body
PF: predicated region fallthrough
CT: control target
= control target key end

     0   :  { %s13408_s0 = inlined_call_operand.vmem [shape: s32[128,1], index: 0, kind: input, shape index: {}]   ;;  %s13409_s1 = inlined_call_operand.vmem [shape: s32[128,1], index: 1, kind: input, shape index: {}]   ;;  %s13410_s2 = inlined_call_operand.hbm [shape: f32[8,16], index: 2, kind: input, shape index: {}]   ;;  %s13411_s3 = inlined_call_operand.hbm [shape: bf16[128,768], index: 3, kind: input, shape index: {}]   ;;  %s13412_s4 = inlined_call_operand.hbm [shape: f32[1,768], index: 4, kind: input, shape index: {}]   ;;  %s13413_s5 = inlined_call_operand.hbm [shape: f32[1,768], index: 5, kind: input, shape index: {}]   ;;  %s13414_s6 = inlined_call_operand.hbm [shape: f32[1,768], index: 6, kind: input, shape index: {}]   ;;  %s13415_s7 = inlined_call_operand.hbm [shape: f32[1,768], index: 7, kind: input, shape index: {}]   ;;  %s13416_s8 = inlined_call_operand.hbm [shape: f32[1,768], index: 8, kind: input, shape index: {}]   ;;  %s13417_s9 = inlined_call_operand.hbm [shape: f32[1,128], index: 9, kind: input, shape index: {}]   ;;  %s13418_s10 = inlined_call_operand.hbm [shape: bf16[768,512], index: 10, kind: input, shape index: {}]   ;;  %s13419_s11 = inlined_call_operand.hbm [shape: bf16[768,768], index: 11, kind: input, shape index: {}]   ;;  %s13420_s12 = inlined_call_operand.hbm [shape: bf16[768,1024], index: 12, kind: input, shape index: {}]   ;;  %s13421_s13 = inlined_call_operand.hbm [shape: bf16[768,768], index: 13, kind: input, shape index: {}]   ;;  %s13422_s14 = inlined_call_operand.hbm [shape: bf16[768,128], index: 14, kind: input, shape index: {}]   ;;  %s13423_s15 = inlined_call_operand.hbm [shape: f32[2,128], index: 15, kind: output, shape index: {}]  }
   0x1   :  { %13688 = sst [smem:[#allocation126_spill]] %s13423_s15 }
   0x2   :  { %20 = vsyncpa [#allocation9], 0 }
   0x3   :  { %21 = vsyncpa [#allocation12], 0 }
   0x4   :  { %22 = vsyncpa [#allocation15], 0 }
   0x5   :  { %23 = vsyncpa [#allocation18], 0 }
   0x6   :  { %24 = vsyncpa [#allocation21], 0 }
   0x7   :  { %25 = vsyncpa [#allocation10], 0  ;;  %s9824_s18 = smov [#allocation11]   ;;  %s9582_s22 = scalar_lea.hbm %s13411_s3, 6144 }
   0x8   :  { %s45_s19 = sshll.u32 %s9824_s18, 4  ;;  %p9583_p0 = scmp.ne.s32.totalorder %s13411_s3, %s9582_s22  ;;  %s46_s19 = int_to_ptr.vmem [resolvable:$true] %s45_s19 }
   0x9   :  { %p9586_p1 = scmp.lt.u32.totalorder %s9582_s22, %s13411_s3 }
   0xb   :  { %p9588_p2 = pnand %p9586_p1, %p9583_p0 }
   0xd   :  { %9591 = shalt.err (!%p9588_p2)
}
   0xe   :  { %s9592_s27 = scalar_lea.vmem %s46_s19, 6144  ;;  %p9597_p4 = scmp.lt.s32.totalorder %s46_s19, %s46_s19 }
   0xf   :  { %p9593_p3 = scmp.ne.s32.totalorder %s46_s19, %s9592_s27  ;;  %p9598_p5 = scmp.lt.s32.totalorder %s9592_s27, %s9592_s27 }
  0x11   :  { %p9599_p6 = por %p9598_p5, %p9597_p4 }
  0x13   :  { %p9600_p7 = pnand %p9599_p6, %p9593_p3 }
  0x15   :  { %9603 = shalt.err (!%p9600_p7)
}
  0x16   :  { %s9825_s28 = smov 384   ;;  %s9826_s29 = smov 24  }
  0x17   :  { %51 = dma.hbm_to_vmem [thread:$0]  %s13411_s3, 6144, %s46_s19, [#allocation12], %s9825_s28, %s9825_s28, %s9826_s29  }
  0x18   :  { %s9827_s17 = smov [#allocation14]   ;;  %s9828_s20 = smov [#allocation17]  }
  0x19   :  { %s68_s18 = sshll.u32 %s9827_s17, 4  ;;  %s88_s21 = sshll.u32 %s9828_s20, 4  ;;  %s69_s18 = int_to_ptr.vmem [resolvable:$true] %s68_s18  ;;  %s89_s21 = int_to_ptr.vmem [resolvable:$true] %s88_s21 }
  0x1a   :  { %s9604_s24 = scalar_lea.hbm %s13413_s5, 96 }
  0x1b   :  { %p9605_p8 = scmp.ne.s32.totalorder %s13413_s5, %s9604_s24  ;;  %p9608_p9 = scmp.lt.u32.totalorder %s9604_s24, %s13413_s5 }
  0x1d   :  { %p9610_p10 = pnand %p9608_p9, %p9605_p8 }
  0x1f   :  { %9613 = shalt.err (!%p9610_p10)
}
  0x20   :  { %s9614_s3 = scalar_lea.vmem %s69_s18, 96  ;;  %p9619_p12 = scmp.lt.s32.totalorder %s69_s18, %s69_s18 }
  0x21   :  { %p9615_p11 = scmp.ne.s32.totalorder %s69_s18, %s9614_s3  ;;  %p9620_p13 = scmp.lt.s32.totalorder %s9614_s3, %s9614_s3 }
  0x23   :  { %p9621_p0 = por %p9620_p13, %p9619_p12 }
  0x25   :  { %p9622_p1 = pnand %p9621_p0, %p9615_p11 }
  0x27   :  { %9625 = shalt.err (!%p9622_p1)
}
  0x28   :  { %71 = dma.hbm_to_vmem [thread:$0]  %s13413_s5, 96, %s69_s18, [#allocation15]  }
  0x29   :  { %s9626_s17 = scalar_lea.hbm %s13415_s7, 96 }
  0x2a   :  { %p9627_p2 = scmp.ne.s32.totalorder %s13415_s7, %s9626_s17  ;;  %p9630_p3 = scmp.lt.u32.totalorder %s9626_s17, %s13415_s7 }
  0x2c   :  { %p9632_p4 = pnand %p9630_p3, %p9627_p2 }
  0x2e   :  { %9635 = shalt.err (!%p9632_p4)
}
  0x2f   :  { %s9636_s24 = scalar_lea.vmem %s89_s21, 96  ;;  %p9641_p6 = scmp.lt.s32.totalorder %s89_s21, %s89_s21 }
  0x30   :  { %p9637_p5 = scmp.ne.s32.totalorder %s89_s21, %s9636_s24  ;;  %p9642_p7 = scmp.lt.s32.totalorder %s9636_s24, %s9636_s24 }
  0x32   :  { %p9643_p8 = por %p9642_p7, %p9641_p6 }
  0x34   :  { %p9644_p9 = pnand %p9643_p8, %p9637_p5 }
  0x36   :  { %9647 = shalt.err (!%p9644_p9)
}
  0x37   :  { %91 = dma.hbm_to_vmem [thread:$0]  %s13415_s7, 96, %s89_s21, [#allocation18]  }
  0x38   :  { %s9829_s25 = smov [#allocation8]   ;;  %s9830_s27 = smov [#allocation13]  }
  0x39   :  { %s36_s26 = sshll.u32 %s9829_s25, 4  ;;  %s58_s3 = sshll.u32 %s9830_s27, 4  ;;  %s37_s26 = int_to_ptr.vmem [resolvable:$true] %s36_s26  ;;  %s59_s3 = int_to_ptr.vmem [resolvable:$true] %s58_s3 }
  0x3a   :  { %s9648_s30 = scalar_lea.hbm %s13410_s2, 128 }
  0x3b   :  { %p9649_p10 = scmp.ne.s32.totalorder %s13410_s2, %s9648_s30  ;;  %p9652_p11 = scmp.lt.u32.totalorder %s9648_s30, %s13410_s2 }
  0x3d   :  { %p9654_p12 = pnand %p9652_p11, %p9649_p10 }
  0x3f   :  { %9657 = shalt.err (!%p9654_p12)
}
  0x40   :  { %s9658_s7 = scalar_lea.vmem %s37_s26, 128  ;;  %p9663_p0 = scmp.lt.s32.totalorder %s37_s26, %s37_s26 }
  0x41   :  { %p9659_p13 = scmp.ne.s32.totalorder %s37_s26, %s9658_s7  ;;  %p9664_p1 = scmp.lt.s32.totalorder %s9658_s7, %s9658_s7 }
  0x43   :  { %p9665_p2 = por %p9664_p1, %p9663_p0 }
  0x45   :  { %p9666_p3 = pnand %p9665_p2, %p9659_p13 }
  0x47   :  { %9669 = shalt.err (!%p9666_p3)
}
  0x48   :  { %39 = dma.hbm_to_vmem [thread:$0]  %s13410_s2, 128, %s37_s26, [#allocation9]  }
  0x49   :  { %s9670_s5 = scalar_lea.hbm %s13412_s4, 96 }
  0x4a   :  { %p9671_p4 = scmp.ne.s32.totalorder %s13412_s4, %s9670_s5  ;;  %p9674_p5 = scmp.lt.u32.totalorder %s9670_s5, %s13412_s4 }
  0x4c   :  { %p9676_p6 = pnand %p9674_p5, %p9671_p4 }
  0x4e   :  { %9679 = shalt.err (!%p9676_p6)
}
  0x4f   :  { %s9680_s29 = scalar_lea.vmem %s59_s3, 96  ;;  %p9685_p8 = scmp.lt.s32.totalorder %s59_s3, %s59_s3 }
  0x50   :  { %p9681_p7 = scmp.ne.s32.totalorder %s59_s3, %s9680_s29  ;;  %p9686_p9 = scmp.lt.s32.totalorder %s9680_s29, %s9680_s29 }
  0x52   :  { %p9687_p10 = por %p9686_p9, %p9685_p8 }
  0x54   :  { %p9688_p11 = pnand %p9687_p10, %p9681_p7 }
  0x56   :  { %9691 = shalt.err (!%p9688_p11)
}
  0x57   :  { %61 = dma.hbm_to_vmem [thread:$0]  %s13412_s4, 96, %s59_s3, [#allocation12]  }
  0x58   :  { %s9831_s30 = smov [#allocation16]   ;;  %s9832_s17 = smov [#allocation19]  }
  0x59   :  { %s78_s16 = sshll.u32 %s9831_s30, 4  ;;  %s98_s15 = sshll.u32 %s9832_s17, 4  ;;  %s79_s16 = int_to_ptr.vmem [resolvable:$true] %s78_s16  ;;  %s99_s15 = int_to_ptr.vmem [resolvable:$true] %s98_s15 }
  0x5a   :  { %s9692_s21 = scalar_lea.hbm %s13414_s6, 96 }
  0x5b   :  { %p9693_p12 = scmp.ne.s32.totalorder %s13414_s6, %s9692_s21  ;;  %p9696_p13 = scmp.lt.u32.totalorder %s9692_s21, %s13414_s6 }
  0x5d   :  { %p9698_p0 = pnand %p9696_p13, %p9693_p12 }
  0x5f   :  { %9701 = shalt.err (!%p9698_p0)
}
  0x60   :  { %s9702_s4 = scalar_lea.vmem %s79_s16, 96  ;;  %p9707_p2 = scmp.lt.s32.totalorder %s79_s16, %s79_s16 }
  0x61   :  { %p9703_p1 = scmp.ne.s32.totalorder %s79_s16, %s9702_s4  ;;  %p9708_p3 = scmp.lt.s32.totalorder %s9702_s4, %s9702_s4 }
  0x63   :  { %p9709_p4 = por %p9708_p3, %p9707_p2 }
  0x65   :  { %p9710_p5 = pnand %p9709_p4, %p9703_p1 }
  0x67   :  { %9713 = shalt.err (!%p9710_p5)
}
  0x68   :  { %81 = dma.hbm_to_vmem [thread:$0]  %s13414_s6, 96, %s79_s16, [#allocation15]  }
  0x69   :  { %s9714_s19 = scalar_lea.hbm %s13416_s8, 96 }
  0x6a   :  { %p9715_p6 = scmp.ne.s32.totalorder %s13416_s8, %s9714_s19  ;;  %p9718_p7 = scmp.lt.u32.totalorder %s9714_s19, %s13416_s8 }
  0x6c   :  { %p9720_p8 = pnand %p9718_p7, %p9715_p6 }
  0x6e   :  { %9723 = shalt.err (!%p9720_p8)
}
  0x6f   :  { %s9724_s17 = scalar_lea.vmem %s99_s15, 96  ;;  %p9729_p10 = scmp.lt.s32.totalorder %s99_s15, %s99_s15 }
  0x70   :  { %p9725_p9 = scmp.ne.s32.totalorder %s99_s15, %s9724_s17  ;;  %p9730_p11 = scmp.lt.s32.totalorder %s9724_s17, %s9724_s17 }
  0x72   :  { %p9731_p12 = por %p9730_p11, %p9729_p10 }
  0x74   :  { %p9732_p13 = pnand %p9731_p12, %p9725_p9 }
  0x76   :  { %9735 = shalt.err (!%p9732_p13)
}
  0x77   :  { %101 = dma.hbm_to_vmem [thread:$0]  %s13416_s8, 96, %s99_s15, [#allocation18]  }
  0x78   :  { %s9833_s20 = smov [#allocation20]   ;;  %s9736_s23 = scalar_lea.hbm %s13417_s9, 16 }
  0x79   :  { %s108_s7 = sshll.u32 %s9833_s20, 4  ;;  %p9737_p0 = scmp.ne.s32.totalorder %s13417_s9, %s9736_s23  ;;  %s109_s7 = int_to_ptr.vmem [resolvable:$true] %s108_s7 }
  0x7a   :  { %p9740_p1 = scmp.lt.u32.totalorder %s9736_s23, %s13417_s9 }
  0x7c   :  { %p9742_p2 = pnand %p9740_p1, %p9737_p0 }
  0x7e   :  { %9745 = shalt.err (!%p9742_p2)
}
  0x7f   :  { %s9746_s18 = scalar_lea.vmem %s109_s7, 16  ;;  %s9750_s8 = scalar_lea.vmem %s109_s7, 32 }
  0x80   :  { %p9747_p3 = scmp.ne.s32.totalorder %s109_s7, %s9746_s18  ;;  %p9751_p4 = scmp.lt.s32.totalorder %s109_s7, %s109_s7 }
  0x81   :  { %p9752_p5 = scmp.lt.s32.totalorder %s9750_s8, %s9746_s18 }
  0x83   :  { %p9753_p6 = por %p9752_p5, %p9751_p4 }
  0x85   :  { %p9754_p7 = pnand %p9753_p6, %p9747_p3 }
  0x87   :  { %9757 = shalt.err (!%p9754_p7)
}
  0x88   :  { %111 = dma.hbm_to_vmem [thread:$0]  %s13417_s9, 16, %s109_s7, [#allocation21]  }
  0x89   :  { %9802 = dma.done.wait [#allocation9], 128  }
  0x8a   :  { %9803 = vsyncadd [#allocation9], 4294967168 }
  0x8b   :  { %9804 = dma.done.wait [#allocation12], 6240  }
  0x8c   :  { %9805 = vsyncadd [#allocation12], 4294961056 }
  0x8d   :  { %9806 = dma.done.wait [#allocation15], 192  }
  0x8e   :  { %9807 = vsyncadd [#allocation15], 4294967104 }
  0x8f   :  { %9808 = dma.done.wait [#allocation18], 192  }
  0x90   :  { %9809 = vsyncadd [#allocation18], 4294967104 }
  0x91   :  { %9810 = dma.done.wait [#allocation21], 16  }
  0x92   :  { %9811 = vsyncadd [#allocation21], 4294967280  ;;  %s141_s27 = sld [smem:[#allocation0]]   ;;  %s9834_s19 = smov 512   ;;  %v13427_v0 = vmov 0  }
  0x93   :  { %153 = sst [smem:[#allocation24]] %s9834_s19  ;;  %9460 = vset.pattern.permute.xlu0 %v13427_v0  ;;  %9461 = vset.pattern.permute.xlu1 %v13427_v0  ;;  %s9836_s9 = smov 4  }
  0x94   :  { %155 = sst [smem:[#allocation24 + $0x1]] %s9834_s19  ;;  %940 = vmatprep.mubr.bf16.mxu0 %v13427_v0  ;;  %1053 = vmatprep.mubr.bf16.mxu1 %v13427_v0  ;;  %s9837_s29 = smov 64  }
  0x95   :  { %157 = sst [smem:[#allocation24 + $0x2]] %s9836_s9  ;;  %s9838_s2 = smov 256  }
  0x96   :  { %159 = sst [smem:[#allocation24 + $0x3]] %s9837_s29  ;;  %s9839_s26 = smov [#allocation2]  }
  0x97   :  { %165 = sst [smem:[#allocation24 + $0x6]] %s9838_s2  ;;  %s149_s30 = sshll.u32 %s9839_s26, 4  ;;  %s150_s30 = int_to_ptr.vmem [resolvable:$true] %s149_s30 }
  0x98   :  { %167 = sst [smem:[#allocation24 + $0x7]] %s9837_s29  ;;  %s8614_s17 = sshll.u32 %s141_s27, 26 }
  0x99   :  { %169 = sst [smem:[#allocation24 + $0x8]] %s9836_s9  ;;  %s10049_s6 = sadd.s32 134217728, %s8614_s17 }
  0x9a   :  { %s9840_s16 = smov 128   ;;  %s9841_s20 = smov 2  }
  0x9b   :  { %161 = sst [smem:[#allocation24 + $0x4]] %s9840_s16  ;;  %s9842_s7 = smov [#allocation7]  }
  0x9c   :  { %163 = sst [smem:[#allocation24 + $0x5]] %s9841_s20  ;;  %s9843_s21 = smov [#allocation23]  }
  0x9d   :  { %171 = dma.general %s13418_s10, 24576, %s150_s30, %s9842_s7, %s9843_s21, [#allocation24], %s10049_s6, 0  }
  0x9e   :  { %s9844_s24 = smov 768   ;;  %s9845_s5 = smov 6  }
  0x9f   :  { %188 = sst [smem:[#allocation26]] %s9844_s24  ;;  %s9846_s4 = smov [#allocation3]  }
  0xa0   :  { %190 = sst [smem:[#allocation26 + $0x1]] %s9844_s24  ;;  %s184_s3 = sshll.u32 %s9846_s4, 4  ;;  %s185_s3 = int_to_ptr.vmem [resolvable:$true] %s184_s3 }
  0xa1   :  { %192 = sst [smem:[#allocation26 + $0x2]] %s9845_s5  ;;  %s9847_s10 = smov [#allocation7 + $0x1]  }
  0xa2   :  { %194 = sst [smem:[#allocation26 + $0x3]] %s9837_s29  ;;  %s9848_s18 = smov [#allocation25]  }
  0xa3   :  { %196 = sst [smem:[#allocation26 + $0x4]] %s9840_s16  ;;  %s9849_s25 = smov 1024  }
  0xa4   :  { %198 = sst [smem:[#allocation26 + $0x5]] %s9841_s20  ;;  %s9850_s27 = smov [#allocation4]  }
  0xa5   :  { %200 = sst [smem:[#allocation26 + $0x6]] %s9825_s28  ;;  %s219_s2 = sshll.u32 %s9850_s27, 4  ;;  %s220_s2 = int_to_ptr.vmem [resolvable:$true] %s219_s2 }
  0xa6   :  { %202 = sst [smem:[#allocation26 + $0x7]] %s9837_s29  ;;  %s9851_s26 = smov 8  }
  0xa7   :  { %204 = sst [smem:[#allocation26 + $0x8]] %s9836_s9  ;;  %s9853_s30 = smov [#allocation27]  }
  0xa8   :  { %206 = dma.general %s13419_s11, 36864, %s185_s3, %s9847_s10, %s9848_s18, [#allocation26], %s10049_s6, 0  }
  0xa9   :  { %223 = sst [smem:[#allocation28]] %s9849_s25  ;;  %s9852_s11 = smov [#allocation7 + $0x2]  }
  0xaa   :  { %225 = sst [smem:[#allocation28 + $0x1]] %s9849_s25  ;;  %s9854_s21 = smov [#allocation5]  }
  0xab   :  { %227 = sst [smem:[#allocation28 + $0x2]] %s9851_s26  ;;  %s254_s22 = sshll.u32 %s9854_s21, 4  ;;  %s255_s22 = int_to_ptr.vmem [resolvable:$true] %s254_s22 }
  0xac   :  { %229 = sst [smem:[#allocation28 + $0x3]] %s9837_s29  ;;  %s9758_s10 = scalar_lea.hbm %s13422_s14, 6144 }
  0xad   :  { %231 = sst [smem:[#allocation28 + $0x4]] %s9840_s16  ;;  %p9759_p8 = scmp.ne.s32.totalorder %s13422_s14, %s9758_s10 }
  0xae   :  { %233 = sst [smem:[#allocation28 + $0x5]] %s9841_s20  ;;  %p9762_p9 = scmp.lt.u32.totalorder %s9758_s10, %s13422_s14 }
  0xaf   :  { %235 = sst [smem:[#allocation28 + $0x6]] %s9834_s19  ;;  %s9856_s19 = smov [#allocation29]  }
  0xb0   :  { %237 = sst [smem:[#allocation28 + $0x7]] %s9837_s29  ;;  %p9764_p10 = pnand %p9762_p9, %p9759_p8 }
  0xb1   :  { %239 = sst [smem:[#allocation28 + $0x8]] %s9836_s9 }
  0xb2   :  { %241 = dma.general %s13420_s12, 49152, %s220_s2, %s9852_s11, %s9853_s30, [#allocation28], %s10049_s6, 0  }
  0xb3   :  { %258 = sst [smem:[#allocation30]] %s9844_s24  ;;  %s9855_s12 = smov [#allocation7 + $0x3]  }
  0xb4   :  { %260 = sst [smem:[#allocation30 + $0x1]] %s9844_s24 }
  0xb5   :  { %262 = sst [smem:[#allocation30 + $0x2]] %s9845_s5 }
  0xb6   :  { %264 = sst [smem:[#allocation30 + $0x3]] %s9837_s29 }
  0xb7   :  { %266 = sst [smem:[#allocation30 + $0x4]] %s9840_s16 }
  0xb8   :  { %268 = sst [smem:[#allocation30 + $0x5]] %s9841_s20 }
  0xb9   :  { %270 = sst [smem:[#allocation30 + $0x6]] %s9825_s28 }
  0xba   :  { %272 = sst [smem:[#allocation30 + $0x7]] %s9837_s29 }
  0xbb   :  { %274 = sst [smem:[#allocation30 + $0x8]] %s9836_s9 }
  0xbc   :  { %276 = dma.general %s13421_s13, 36864, %s255_s22, %s9855_s12, %s9856_s19, [#allocation30], %s10049_s6, 0  }
  0xbd   :  { %v324_v1 = vld [vmem:[%s13408_s0] sm:$0xff]  ;;  %v405_v4 = vld [vmem:[%s13409_s1 + $0x8] sm:$0xff]  ;;  %v326_v7 = vld [vmem:[%s13408_s0 + $0x10] sm:$0xff] }
  0xbe   :  { %v404_v2 = vld [vmem:[%s13409_s1] sm:$0xff]  ;;  %341 = vperm.xlu0 %9460, %v324_v1   ;;  %v325_v5 = vld [vmem:[%s13408_s0 + $0x8] sm:$0xff]  ;;  %v421_v6 = vadd.s32 64, %v405_v4  ;;  %v406_v8 = vld [vmem:[%s13409_s1 + $0x10] sm:$0xff] }
  0xbf   :  { %v420_v3 = vadd.s32 64, %v404_v2  ;;  %v327_v9 = vld [vmem:[%s13408_s0 + $0x18] sm:$0xff]  ;;  %v422_v11 = vadd.s32 64, %v406_v8  ;;  %v9462_v13 = vld [vmem:[#allocation11 + $0x4] ss:$24 sps:$4 sm:$0xff]   ;;  %v330_v32 = vld [vmem:[%s13408_s0 + $0x30] sm:$0xff] }
  0xc0   :  { %v407_v10 = vld [vmem:[%s13409_s1 + $0x18] sm:$0xff]  ;;  %v328_v14 = vld [vmem:[%s13408_s0 + $0x20] sm:$0xff]  ;;  %v9465_v17 = vld [vmem:[#allocation11 + $0xc] ss:$24 sps:$4 sm:$0xff]   ;;  %908 = vmatprep.subr.bf16.mxu0 %v9462_v13 }
  0xc1   :  { %437 = vperm.xlu1 %9461, %v420_v3   ;;  %v423_v12 = vadd.s32 64, %v407_v10  ;;  %v408_v15 = vld [vmem:[%s13409_s1 + $0x20] sm:$0xff]  ;;  %v9467_v18 = vld [vmem:[#allocation11 + $0x8] ss:$24 sps:$4 sm:$0xff]   ;;  %1021 = vmatprep.subr.bf16.mxu1 %v9465_v17  ;;  %v9468_v21 = vld [vmem:[#allocation11 + $0x34] ss:$24 sps:$4 sm:$0xff]  }
  0xc2   :  { %344 = vperm.xlu0 %9460, %v325_v5   ;;  %v9464_v16 = vld [vmem:[#allocation11] ss:$24 sps:$4 sm:$0xff]   ;;  %v9470_v22 = vld [vmem:[#allocation11 + $0x30] ss:$24 sps:$4 sm:$0xff]   ;;  %1022 = vmatpush1.bf16.msra.mxu1 %v9467_v18  ;;  %v9471_v23 = vld [vmem:[#allocation11 + $0x3c] ss:$24 sps:$4 sm:$0xff]  }
  0xc3   :  { %v329_v19 = vld [vmem:[%s13408_s0 + $0x28] sm:$0xff]  ;;  %909 = vmatpush1.bf16.msra.mxu0 %v9464_v16  ;;  %v9473_v24 = vld [vmem:[#allocation11 + $0x38] ss:$24 sps:$4 sm:$0xff]   ;;  %v424_v26 = vadd.s32 64, %v408_v15  ;;  %1023 = vmatprep.subr.bf16.mxu1 %v9471_v23  ;;  %v9480_v31 = vld [vmem:[#allocation11 + $0x94] ss:$24 sps:$4 sm:$0xff]  }
  0xc4   :  { %v409_v20 = vld [vmem:[%s13409_s1 + $0x28] sm:$0xff]  ;;  %910 = vmatprep.subr.bf16.mxu0 %v9468_v21  ;;  %v9483_v33 = vld [vmem:[#allocation11 + $0x9c] ss:$24 sps:$4 sm:$0xff]   ;;  %v410_v34 = vld [vmem:[%s13409_s1 + $0x30] sm:$0xff] }
  0xc5   :  { %440 = vperm.xlu1 %9461, %v421_v6   ;;  %v9474_v25 = vld [vmem:[#allocation11 + $0x64] ss:$24 sps:$4 sm:$0xff]   ;;  %v9476_v27 = vld [vmem:[#allocation11 + $0x60] ss:$24 sps:$4 sm:$0xff]   ;;  %v425_v29 = vadd.s32 64, %v409_v20  ;;  %v331_v35 = vld [vmem:[%s13408_s0 + $0x38] sm:$0xff] }
  0xc6   :  { %347 = vperm.xlu0 %9460, %v326_v7   ;;  %v9477_v28 = vld [vmem:[#allocation11 + $0x6c] ss:$24 sps:$4 sm:$0xff]   ;;  %1024 = vmatpush1.bf16.msra.mxu1 %v9473_v24  ;;  %v9479_v30 = vld [vmem:[#allocation11 + $0x68] ss:$24 sps:$4 sm:$0xff]   ;;  %v411_v36 = vld [vmem:[%s13409_s1 + $0x38] sm:$0xff]  ;;  %v426_v41 = vadd.s32 64, %v410_v34 }
  0xc7   :  { %911 = vmatpush1.bf16.msra.mxu0 %v9470_v22  ;;  %1025 = vmatprep.subr.bf16.mxu1 %v9477_v28  ;;  %v9482_v37 = vld [vmem:[#allocation11 + $0x90] ss:$24 sps:$4 sm:$0xff]   ;;  %v9486_v39 = vld [vmem:[#allocation11 + $0xc4] ss:$24 sps:$4 sm:$0xff]   ;;  %v9488_v42 = vld [vmem:[#allocation11 + $0xc0] ss:$24 sps:$4 sm:$0xff]  }
  0xc8   :  { %912 = vmatprep.subr.bf16.mxu0 %v9474_v25  ;;  %v9485_v38 = vld [vmem:[#allocation11 + $0x98] ss:$24 sps:$4 sm:$0xff]   ;;  %v9489_v40 = vld [vmem:[#allocation11 + $0xcc] ss:$24 sps:$4 sm:$0xff]   ;;  %v427_v43 = vadd.s32 64, %v411_v36 }
  0xc9   :  { %350 = vperm.xlu1 %9461, %v327_v9   ;;  %v9491_v44 = vld [vmem:[#allocation11 + $0xc8] ss:$24 sps:$4 sm:$0xff]   ;;  %v9492_v45 = vld [vmem:[#allocation11 + $0xf4] ss:$24 sps:$4 sm:$0xff]   ;;  %v332_v46 = vld [vmem:[%s13408_s0 + $0x40] sm:$0xff] }
  0xca   :  { %443 = vperm.xlu0 %9460, %v422_v11   ;;  %1026 = vmatpush1.bf16.msra.mxu1 %v9479_v30  ;;  %v9495_v47 = vld [vmem:[#allocation11 + $0xfc] ss:$24 sps:$4 sm:$0xff]   ;;  %v333_v49 = vld [vmem:[%s13408_s0 + $0x48] sm:$0xff]  ;;  %v9494_v51 = vld [vmem:[#allocation11 + $0xf0] ss:$24 sps:$4 sm:$0xff]  }
  0xcb   :  { %913 = vmatpush1.bf16.msra.mxu0 %v9476_v27  ;;  %1027 = vmatprep.subr.bf16.mxu1 %v9483_v33  ;;  %v412_v48 = vld [vmem:[%s13409_s1 + $0x40] sm:$0xff]  ;;  %v413_v50 = vld [vmem:[%s13409_s1 + $0x48] sm:$0xff]  ;;  %v9504_v59 = vld [vmem:[#allocation11 + $0x154] ss:$24 sps:$4 sm:$0xff]  }
  0xcc   :  { %914 = vmatprep.subr.bf16.mxu0 %v9480_v31  ;;  %v9497_v52 = vld [vmem:[#allocation11 + $0xf8] ss:$24 sps:$4 sm:$0xff]   ;;  %v9498_v53 = vld [vmem:[#allocation11 + $0x124] ss:$24 sps:$4 sm:$0xff]   ;;  %v428_v55 = vadd.s32 64, %v412_v48  ;;  %v429_v57 = vadd.s32 64, %v413_v50 }
  0xcd   :  { %446 = vperm.xlu1 %9461, %v423_v12   ;;  %v9501_v54 = vld [vmem:[#allocation11 + $0x12c] ss:$24 sps:$4 sm:$0xff]   ;;  %v9500_v56 = vld [vmem:[#allocation11 + $0x120] ss:$24 sps:$4 sm:$0xff]   ;;  %v9506_v62 = vld [vmem:[#allocation11 + $0x150] ss:$24 sps:$4 sm:$0xff]  }
  0xce   :  { %353 = vperm.xlu0 %9460, %v328_v14   ;;  %1028 = vmatpush1.bf16.msra.mxu1 %v9485_v38  ;;  %v9503_v58 = vld [vmem:[#allocation11 + $0x128] ss:$24 sps:$4 sm:$0xff]   ;;  %v9507_v63 = vld [vmem:[#allocation11 + $0x15c] ss:$24 sps:$4 sm:$0xff]   ;;  %v9509_v1 = vld [vmem:[#allocation11 + $0x158] ss:$24 sps:$4 sm:$0xff]  }
  0xcf   :  { %915 = vmatpush1.bf16.msra.mxu0 %v9482_v37  ;;  %1029 = vmatprep.subr.bf16.mxu1 %v9489_v40  ;;  %v334_v60 = vld [vmem:[%s13408_s0 + $0x50] sm:$0xff]  ;;  %v335_v2 = vld [vmem:[%s13408_s0 + $0x58] sm:$0xff]  ;;  %v336_v7 = vld [vmem:[%s13408_s0 + $0x60] sm:$0xff]  ;;  %v9857_v50 = vmov 1.0|1.0  }
  0xd0   :  { %916 = vmatprep.subr.bf16.mxu0 %v9486_v39  ;;  %v414_v61 = vld [vmem:[%s13409_s1 + $0x50] sm:$0xff]  ;;  %v415_v3 = vld [vmem:[%s13409_s1 + $0x58] sm:$0xff]  ;;  %v416_v8 = vld [vmem:[%s13409_s1 + $0x60] sm:$0xff] }
  0xd1   :  { %356 = vperm.xlu1 %9461, %v329_v19   ;;  %v9512_v4 = vld [vmem:[#allocation11 + $0x14] ss:$24 sps:$4 sm:$0xff]   ;;  %v430_v5 = vadd.s32 64, %v414_v61  ;;  %v431_v6 = vadd.s32 64, %v415_v3  ;;  %v337_v9 = vld [vmem:[%s13408_s0 + $0x68] sm:$0xff]  ;;  %v432_v11 = vadd.s32 64, %v416_v8  ;;  %v289_v19 = vlaneseq }
  0xd2   :  { %449 = vperm.xlu0 %9460, %v424_v26   ;;  %1030 = vmatpush1.bf16.msra.mxu1 %v9491_v44  ;;  %v417_v10 = vld [vmem:[%s13409_s1 + $0x68] sm:$0xff]  ;;  %v338_v13 = vld [vmem:[%s13408_s0 + $0x70] sm:$0xff]  ;;  %v339_v15 = vld [vmem:[%s13408_s0 + $0x78] sm:$0xff]  ;;  %s9858_s0 = smov [#allocation6]  }
  0xd3   :  { %917 = vmatpush1.bf16.msra.mxu0 %v9488_v42  ;;  %1031 = vmatprep.subr.bf16.mxu1 %v9495_v47  ;;  %v433_v12 = vadd.s32 64, %v417_v10  ;;  %v418_v14 = vld [vmem:[%s13409_s1 + $0x70] sm:$0xff]  ;;  %v419_v16 = vld [vmem:[%s13409_s1 + $0x78] sm:$0xff]  ;;  %v10189_v20 = vshrl.u32 %v289_v19, 7  ;;  %v10197_v26 = vand.u32 127, %v289_v19  ;;  %s285_s1 = sshll.u32 %s9858_s0, 4  ;;  %s286_s1 = int_to_ptr.vmem [resolvable:$true] %s285_s1 }
  0xd4   :  { %918 = vmatprep.subr.bf16.mxu0 %v9492_v45  ;;  %v434_v17 = vadd.s32 64, %v418_v14  ;;  %v435_v18 = vadd.s32 64, %v419_v16  ;;  %v9510_v42 = vld [vmem:[#allocation11 + $0x10] ss:$24 sps:$4 sm:$0xff]   ;;  %v9515_v45 = vld [vmem:[#allocation11 + $0x44] ss:$24 sps:$4 sm:$0xff]  }
  0xd5   :  { %452 = vperm.xlu1 %9461, %v425_v29   ;;  %13689 = vst [vmem:[#allocation46_spill] sm:$0xff] %v10189_v20  ;;  %v10192_v21 = vadd.s32 8, %v10189_v20  ;;  %v308_v22 = vand.u32 15, %v10189_v20  ;;  %v294_v25 = vadd.s32 16, %v10189_v20  ;;  %13691 = vst [vmem:[#allocation48_spill] sm:$0xff] %v10197_v26  ;;  %v295_v28 = vadd.s32 24, %v10189_v20 }
  0xd6   :  { %359 = vperm.xlu0 %9460, %v330_v32   ;;  %1032 = vmatpush1.bf16.msra.mxu1 %v9497_v52  ;;  %v296_v37 = vadd.s32 32, %v10189_v20  ;;  %v297_v40 = vadd.s32 40, %v10189_v20  ;;  %v9513_v52 = vld [vmem:[#allocation11 + $0x40] ss:$24 sps:$4 sm:$0xff]   ;;  %v9522_v16 = vld [vmem:[#allocation11 + $0xd0] ss:$24 sps:$4 sm:$0xff]  }
  0xd7   :  { %919 = vmatpush1.bf16.msra.mxu0 %v9494_v51  ;;  %1033 = vmatprep.subr.bf16.mxu1 %v9501_v54  ;;  %13690 = vst [vmem:[#allocation47_spill] sm:$0xff] %v10192_v21  ;;  %v309_v23 = vand.u32 15, %v10192_v21  ;;  %v516_v24 = vadd.s32 64, %v308_v22  ;;  %v310_v31 = vand.u32 15, %v294_v25  ;;  %v311_v34 = vand.u32 15, %v295_v28 }
  0xd8   :  { %920 = vmatprep.subr.bf16.mxu0 %v9498_v53  ;;  %v312_v44 = vand.u32 15, %v296_v37  ;;  %v298_v54 = vadd.s32 48, %v10189_v20  ;;  %v9519_v8 = vld [vmem:[#allocation11 + $0xa0] ss:$24 sps:$4 sm:$0xff]  }
  0xd9   :  { %362 = vperm.xlu1 %9461, %v331_v35   ;;  %v517_v27 = vadd.s32 64, %v309_v23  ;;  %v532_v30 = vadd.s32 2, %v516_v24  ;;  %v518_v36 = vadd.s32 64, %v310_v31  ;;  %v519_v39 = vadd.s32 64, %v311_v34  ;;  %v9527_v23 = vld [vmem:[#allocation11 + $0x104] ss:$24 sps:$4 sm:$0xff]  }
  0xda   :  { %455 = vperm.xlu0 %9460, %v426_v41   ;;  %1034 = vmatpush1.bf16.msra.mxu1 %v9503_v58  ;;  %v520_v53 = vadd.s32 64, %v312_v44  ;;  %v299_v58 = vadd.s32 56, %v10189_v20  ;;  %v314_v61 = vand.u32 15, %v298_v54  ;;  %v9525_v28 = vld [vmem:[#allocation11 + $0x100] ss:$24 sps:$4 sm:$0xff]   ;;  %v303_v31 = vadd.s32 88, %v10189_v20 }
  0xdb   :  { %921 = vmatpush1.bf16.msra.mxu0 %v9500_v56  ;;  %1035 = vmatprep.subr.bf16.mxu1 %v9507_v63  ;;  %v533_v33 = vadd.s32 2, %v517_v27  ;;  %vm548_vm2 = vcmp.eq.s32.totalorder %v10197_v26, %v532_v30  ;;  %v535_v48 = vadd.s32 2, %v519_v39  ;;  %v302_v27 = vadd.s32 80, %v10189_v20 }
  0xdc   :  { %922 = vmatprep.subr.bf16.mxu0 %v9504_v59  ;;  %v315_v3 = vand.u32 15, %v299_v58  ;;  %v304_v44 = vadd.s32 96, %v10189_v20 }
  0xdd   :  { %458 = vperm.xlu1 %9461, %v427_v43   ;;  %vm549_vm4 = vcmp.eq.s32.totalorder %v10197_v26, %v533_v33  ;;  %v534_v43 = vadd.s32 2, %v518_v36  ;;  %vm551_vm15 = vcmp.eq.s32.totalorder %v10197_v26, %v535_v48  ;;  %v9528_v36 = vld [vmem:[#allocation11 + $0x130] ss:$24 sps:$4 sm:$0xff]  }
  0xde   :  { %365 = vperm.xlu0 %9460, %v332_v46   ;;  %1036 = vmatpush1.bf16.msra.mxu1 %v9509_v1  ;;  %v523_v10 = vadd.s32 64, %v315_v3 }
  0xdf   :  { %923 = vmatpush1.bf16.msra.mxu0 %v9506_v62  ;;  %vm550_vm11 = vcmp.eq.s32.totalorder %v10197_v26, %v534_v43  ;;  %v9516_v62 = vld [vmem:[#allocation11 + $0x70] ss:$24 sps:$4 sm:$0xff]  }
  0xe0   :  { %1134 = vmatprep.subr.bf16.mxu0 %v9512_v4  ;;  %v9521_v4 = vld [vmem:[#allocation11 + $0xa4] ss:$24 sps:$4 sm:$0xff]   ;;  %v539_v19 = vadd.s32 2, %v523_v10 }
  0xe1   :  { %368 = vperm.xlu1 %9461, %v333_v49   ;;  %v313_v49 = vand.u32 15, %v297_v40  ;;  %v319_v40 = vand.u32 15, %v303_v31 }
  0xe2   :  { %461 = vperm.xlu0 %9460, %v428_v55   ;;  %v9518_v55 = vld [vmem:[#allocation11 + $0x74] ss:$24 sps:$4 sm:$0xff]  }
  0xe3   :  { %v527_v48 = vadd.s32 64, %v319_v40 }
  0xe5   :  { %464 = vperm.xlu1 %9461, %v429_v57   ;;  %v521_v57 = vadd.s32 64, %v313_v49  ;;  %v305_v49 = vadd.s32 104, %v10189_v20 }
  0xe6   :  { %371 = vperm.xlu0 %9460, %v334_v60   ;;  %v536_v60 = vadd.s32 2, %v520_v53  ;;  %v320_v53 = vand.u32 15, %v304_v44 }
  0xe9   :  { %374 = vperm.xlu1 %9461, %v335_v2   ;;  %v537_v2 = vadd.s32 2, %v521_v57  ;;  %v321_v57 = vand.u32 15, %v305_v49 }
  0xea   :  { %467 = vperm.xlu0 %9460, %v430_v5  }
  0xed   :  { %470 = vperm.xlu1 %9461, %v431_v6   ;;  %v522_v6 = vadd.s32 64, %v314_v61 }
  0xee   :  { %377 = vperm.xlu0 %9460, %v336_v7   ;;  %v300_v7 = vadd.s32 64, %v10189_v20 }
  0xef   :  { %v538_v14 = vadd.s32 2, %v522_v6  ;;  %v13702_v6 = vmov 0 }
  0xf1   :  { %380 = vperm.xlu1 %9461, %v337_v9  }
  0xf2   :  { %473 = vperm.xlu0 %9460, %v432_v11   ;;  %v301_v11 = vadd.s32 72, %v10189_v20 }
  0xf4   :  { %v317_v22 = vand.u32 15, %v301_v11 }
  0xf5   :  { %476 = vperm.xlu1 %9461, %v433_v12   ;;  %v9524_v12 = vld [vmem:[#allocation11 + $0xd4] ss:$24 sps:$4 sm:$0xff]  }
  0xf6   :  { %383 = vperm.xlu0 %9460, %v338_v13   ;;  %v525_v30 = vadd.s32 64, %v317_v22 }
  0xf8   :  { %v541_v39 = vadd.s32 2, %v525_v30 }
  0xf9   :  { %386 = vperm.xlu1 %9461, %v339_v15   ;;  %v316_v15 = vand.u32 15, %v300_v7 }
  0xfa   :  { %479 = vperm.xlu0 %9460, %v434_v17  }
  0xfb   :  { %v524_v25 = vadd.s32 64, %v316_v15 }
  0xfd   :  { %482 = vperm.xlu1 %9461, %v435_v18   ;;  %v540_v34 = vadd.s32 2, %v524_v25 }
 0x13d   :  { %v342_v29 = vpop.permute.xlu0 %341 }
 0x13e   :  { %vm388_vm0 = vcmp.eq.s32.totalorder %v10197_v26, %v342_v29 }
 0x140   :  { %v438_v32 = vpop.permute.xlu1 %437 }
 0x141   :  { %vm484_vm1 = vcmp.eq.s32.totalorder %v10197_v26, %v438_v32  ;;  %v345_v35 = vpop.permute.xlu0 %344  ;;  %v9530_v32 = vld [vmem:[#allocation11 + $0x134] ss:$24 sps:$4 sm:$0xff]  }
 0x142   :  { %vm500_vm3 = vmor %vm388_vm0, %vm484_vm1  ;;  %vm389_vm6 = vcmp.eq.s32.totalorder %v10197_v26, %v345_v35  ;;  %v318_v35 = vand.u32 15, %v302_v27 }
 0x143   :  { %vm564_vm5 = vmor %vm500_vm3, %vm548_vm2 }
 0x144   :  { %v441_v38 = vpop.permute.xlu1 %440  ;;  %v526_v43 = vadd.s32 64, %v318_v35 }
 0x145   :  { %vm485_vm7 = vcmp.eq.s32.totalorder %v10197_v26, %v441_v38  ;;  %v348_v41 = vpop.permute.xlu0 %347 }
 0x146   :  { %vm501_vm8 = vmor %vm389_vm6, %vm485_vm7  ;;  %vm390_vm12 = vcmp.eq.s32.totalorder %v10197_v26, %v348_v41  ;;  %vm552_vm6 = vcmp.eq.s32.totalorder %v10197_v26, %v536_v60  ;;  %v9533_v41 = vld [vmem:[#allocation11 + $0x164] ss:$24 sps:$4 sm:$0xff]   ;;  %v306_v60 = vadd.s32 112, %v10189_v20 }
 0x147   :  { %vm565_vm9 = vmor %vm501_vm8, %vm549_vm4 }
 0x148   :  { %v351_v46 = vpop.permute.xlu1 %350  ;;  %vm10208_vm10 = vmpackc.low %vm565_vm9, %vm564_vm5 }
 0x149   :  { %8687 = vmatmul.mubr.msk.bf16.vlgmr.msra.gmra.mrb[0].mxu0 %vm10208_vm10, %v9857_v50  ;;  %8703 = vmatmul.mubr.msk.bf16.vlgmr.msra.gmra.mrb[0].mxu1 %vm10208_vm10, %v9857_v50  ;;  %v444_v51 = vpop.permute.xlu0 %443  ;;  %vm391_vm0 = vcmp.eq.s32.totalorder %v10197_v26, %v351_v46 }
 0x14a   :  { %1135 = vmatpush1.bf16.msra.mxu0 %v9510_v42  ;;  %950 = vmatprep.mubr.bf16.mxu0 %v13427_v0  ;;  %vm486_vm13 = vcmp.eq.s32.totalorder %v10197_v26, %v444_v51 }
 0x14b   :  { %1063 = vmatprep.mubr.bf16.mxu1 %v13427_v0  ;;  %1136 = vmatprep.subr.bf16.mxu0 %v9515_v45  ;;  %vm502_vm14 = vmor %vm390_vm12, %vm486_vm13  ;;  %v9531_v45 = vld [vmem:[#allocation11 + $0x160] ss:$24 sps:$4 sm:$0xff]  }
 0x14c   :  { %v447_v56 = vpop.permute.xlu1 %446  ;;  %vm566_vm1 = vmor %vm502_vm14, %vm550_vm11  ;;  %vm553_vm11 = vcmp.eq.s32.totalorder %v10197_v26, %v537_v2 }
 0x14d   :  { %vm487_vm2 = vcmp.eq.s32.totalorder %v10197_v26, %v447_v56  ;;  %v354_v59 = vpop.permute.xlu0 %353  ;;  %v543_v56 = vadd.s32 2, %v527_v48 }
 0x14e   :  { %vm503_vm3 = vmor %vm391_vm0, %vm487_vm2  ;;  %1137 = vmatpush1.bf16.msra.mxu0 %v9513_v52  ;;  %vm392_vm7 = vcmp.eq.s32.totalorder %v10197_v26, %v354_v59  ;;  %vm554_vm2 = vcmp.eq.s32.totalorder %v10197_v26, %v538_v14  ;;  %v542_v52 = vadd.s32 2, %v526_v43  ;;  %v528_v59 = vadd.s32 64, %v320_v53 }
 0x14f   :  { %vm567_vm4 = vmor %vm503_vm3, %vm551_vm15  ;;  %1138 = vmatprep.subr.bf16.mxu0 %v9518_v55 }
 0x150   :  { %v357_v63 = vpop.permute.xlu1 %356  ;;  %vm10230_vm5 = vmpackc.low %vm567_vm4, %vm566_vm1  ;;  %v544_v3 = vadd.s32 2, %v528_v59 }
 0x151   :  { %8689 = vmatmul.mubr.msk.bf16.gmra.mrb[4].mxu0 %vm10230_vm5, %v9857_v50  ;;  %8705 = vmatmul.mubr.msk.bf16.gmra.mrb[4].mxu1 %vm10230_vm5, %v9857_v50  ;;  %v450_v5 = vpop.permute.xlu0 %449  ;;  %vm393_vm12 = vcmp.eq.s32.totalorder %v10197_v26, %v357_v63  ;;  %v307_v63 = vadd.s32 120, %v10189_v20 }
 0x152   :  { %960 = vmatprep.mubr.bf16.mxu0 %v13427_v0  ;;  %1073 = vmatprep.mubr.bf16.mxu1 %v13427_v0  ;;  %vm488_vm8 = vcmp.eq.s32.totalorder %v10197_v26, %v450_v5 }
 0x153   :  { %1139 = vmatpush1.bf16.msra.mxu0 %v9516_v62  ;;  %vm504_vm9 = vmor %vm392_vm7, %vm488_vm8  ;;  %vm555_vm7 = vcmp.eq.s32.totalorder %v10197_v26, %v539_v19  ;;  %v529_v62 = vadd.s32 64, %v321_v57 }
 0x154   :  { %v453_v9 = vpop.permute.xlu1 %452  ;;  %1140 = vmatprep.subr.bf16.mxu0 %v9521_v4  ;;  %vm568_vm13 = vmor %vm504_vm9, %vm552_vm6  ;;  %v322_v4 = vand.u32 15, %v306_v60 }
 0x155   :  { %vm489_vm14 = vcmp.eq.s32.totalorder %v10197_v26, %v453_v9  ;;  %v360_v13 = vpop.permute.xlu0 %359  ;;  %v545_v7 = vadd.s32 2, %v529_v62 }
 0x156   :  { %vm505_vm15 = vmor %vm393_vm12, %vm489_vm14  ;;  %vm394_vm3 = vcmp.eq.s32.totalorder %v10197_v26, %v360_v13  ;;  %v530_v10 = vadd.s32 64, %v322_v4 }
 0x157   :  { %vm569_vm0 = vmor %vm505_vm15, %vm553_vm11  ;;  %1141 = vmatpush1.bf16.msra.mxu0 %v9519_v8  ;;  %vm556_vm15 = vcmp.eq.s32.totalorder %v10197_v26, %v540_v34  ;;  %v323_v8 = vand.u32 15, %v307_v63 }
 0x158   :  { %v363_v17 = vpop.permute.xlu1 %362  ;;  %vm10252_vm1 = vmpackc.low %vm569_vm0, %vm568_vm13  ;;  %1142 = vmatprep.subr.bf16.mxu0 %v9524_v12  ;;  %v546_v14 = vadd.s32 2, %v530_v10 }
 0x159   :  { %8691 = vmatmul.mubr.msk.bf16.gmra.mrb[8].mxu0 %vm10252_vm1, %v9857_v50  ;;  %8707 = vmatmul.mubr.msk.bf16.gmra.mrb[8].mxu1 %vm10252_vm1, %v9857_v50  ;;  %v456_v24 = vpop.permute.xlu0 %455  ;;  %vm395_vm8 = vcmp.eq.s32.totalorder %v10197_v26, %v363_v17  ;;  %v531_v12 = vadd.s32 64, %v323_v8 }
 0x15a   :  { %970 = vmatprep.mubr.bf16.mxu0 %v13427_v0  ;;  %1083 = vmatprep.mubr.bf16.mxu1 %v13427_v0  ;;  %vm490_vm4 = vcmp.eq.s32.totalorder %v10197_v26, %v456_v24 }
 0x15b   :  { %1143 = vmatpush1.bf16.msra.mxu0 %v9522_v16  ;;  %vm506_vm6 = vmor %vm394_vm3, %vm490_vm4  ;;  %vm557_vm4 = vcmp.eq.s32.totalorder %v10197_v26, %v541_v39  ;;  %v13704_v16 = vmov 0  ;;  %v547_v17 = vadd.s32 2, %v531_v12 }
 0x15c   :  { %v459_v29 = vpop.permute.xlu1 %458  ;;  %1144 = vmatprep.subr.bf16.mxu0 %v9527_v23  ;;  %vm570_vm9 = vmor %vm506_vm6, %vm554_vm2 }
 0x15d   :  { %vm491_vm11 = vcmp.eq.s32.totalorder %v10197_v26, %v459_v29  ;;  %v366_v33 = vpop.permute.xlu0 %365 }
 0x15e   :  { %vm507_vm12 = vmor %vm395_vm8, %vm491_vm11  ;;  %vm396_vm0 = vcmp.eq.s32.totalorder %v10197_v26, %v366_v33 }
 0x15f   :  { %vm571_vm13 = vmor %vm507_vm12, %vm555_vm7  ;;  %1145 = vmatpush1.bf16.msra.mxu0 %v9525_v28 }
 0x160   :  { %v369_v37 = vpop.permute.xlu1 %368  ;;  %vm10274_vm14 = vmpackc.low %vm571_vm13, %vm570_vm9  ;;  %1146 = vmatprep.subr.bf16.mxu0 %v9530_v32  ;;  %vm558_vm13 = vcmp.eq.s32.totalorder %v10197_v26, %v542_v52 }
 0x161   :  { %8693 = vmatmul.mubr.msk.bf16.gmra.mrb[12].mxu0 %vm10274_vm14, %v9857_v50  ;;  %8709 = vmatmul.mubr.msk.bf16.gmra.mrb[12].mxu1 %vm10274_vm14, %v9857_v50  ;;  %v462_v42 = vpop.permute.xlu0 %461  ;;  %vm397_vm6 = vcmp.eq.s32.totalorder %v10197_v26, %v369_v37 }
 0x162   :  { %980 = vmatprep.mubr.bf16.mxu0 %v13427_v0  ;;  %1093 = vmatprep.mubr.bf16.mxu1 %v13427_v0  ;;  %vm492_vm2 = vcmp.eq.s32.totalorder %v10197_v26, %v462_v42 }
 0x163   :  { %1147 = vmatpush1.bf16.msra.mxu0 %v9528_v36  ;;  %vm508_vm3 = vmor %vm396_vm0, %vm492_vm2 }
 0x164   :  { %v465_v46 = vpop.permute.xlu1 %464  ;;  %1148 = vmatprep.subr.bf16.mxu0 %v9533_v41  ;;  %vm572_vm7 = vmor %vm508_vm3, %vm556_vm15  ;;  %vm559_vm3 = vcmp.eq.s32.totalorder %v10197_v26, %v543_v56 }
 0x165   :  { %vm493_vm8 = vcmp.eq.s32.totalorder %v10197_v26, %v465_v46  ;;  %v372_v51 = vpop.permute.xlu0 %371 }
 0x166   :  { %vm509_vm9 = vmor %vm397_vm6, %vm493_vm8  ;;  %vm398_vm15 = vcmp.eq.s32.totalorder %v10197_v26, %v372_v51 }
 0x167   :  { %vm573_vm11 = vmor %vm509_vm9, %vm557_vm4  ;;  %1149 = vmatpush1.bf16.msra.mxu0 %v9531_v45 }
 0x168   :  { %v375_v54 = vpop.permute.xlu1 %374  ;;  %vm10296_vm12 = vmpackc.low %vm573_vm11, %vm572_vm7 }
 0x169   :  { %8695 = vmatmul.mubr.msk.bf16.gmra.mrb[16].mxu0 %vm10296_vm12, %v9857_v50  ;;  %8711 = vmatmul.mubr.msk.bf16.gmra.mrb[16].mxu1 %vm10296_vm12, %v9857_v50  ;;  %v468_v58 = vpop.permute.xlu0 %467  ;;  %vm399_vm4 = vcmp.eq.s32.totalorder %v10197_v26, %v375_v54 }
 0x16a   :  { %990 = vmatprep.mubr.bf16.mxu0 %v13427_v0  ;;  %1103 = vmatprep.mubr.bf16.mxu1 %v13427_v0  ;;  %vm494_vm0 = vcmp.eq.s32.totalorder %v10197_v26, %v468_v58 }
 0x16b   :  { %vm510_vm2 = vmor %vm398_vm15, %vm494_vm0 }
 0x16c   :  { %v471_v61 = vpop.permute.xlu1 %470  ;;  %vm574_vm6 = vmor %vm510_vm2, %vm558_vm13  ;;  %vm560_vm13 = vcmp.eq.s32.totalorder %v10197_v26, %v544_v3 }
 0x16d   :  { %vm495_vm7 = vcmp.eq.s32.totalorder %v10197_v26, %v471_v61  ;;  %v378_v2 = vpop.permute.xlu0 %377 }
 0x16e   :  { %vm511_vm8 = vmor %vm399_vm4, %vm495_vm7  ;;  %vm400_vm15 = vcmp.eq.s32.totalorder %v10197_v26, %v378_v2 }
 0x16f   :  { %vm575_vm9 = vmor %vm511_vm8, %vm559_vm3  ;;  %vm561_vm3 = vcmp.eq.s32.totalorder %v10197_v26, %v545_v7 }
 0x170   :  { %v381_v5 = vpop.permute.xlu1 %380  ;;  %vm10316_vm11 = vmpackc.low %vm575_vm9, %vm574_vm6 }
 0x171   :  { %v13703_v6 = vsel %vm10316_vm11, 4294967295, %v13702_v6  ;;  %8697 = vmatmul.mubr.msk.bf16.gmra.mrb[20].mxu0 %vm10316_vm11, %v9857_v50  ;;  %8713 = vmatmul.mubr.msk.bf16.gmra.mrb[20].mxu1 %vm10316_vm11, %v9857_v50  ;;  %v474_v9 = vpop.permute.xlu0 %473  ;;  %vm401_vm4 = vcmp.eq.s32.totalorder %v10197_v26, %v381_v5 }
 0x172   :  { %1000 = vmatprep.mubr.bf16.mxu0 %v13427_v0  ;;  %1113 = vmatprep.mubr.bf16.mxu1 %v13427_v0  ;;  %vm496_vm0 = vcmp.eq.s32.totalorder %v10197_v26, %v474_v9 }
 0x173   :  { %vm512_vm2 = vmor %vm400_vm15, %vm496_vm0 }
 0x174   :  { %v477_v11 = vpop.permute.xlu1 %476  ;;  %vm576_vm6 = vmor %vm512_vm2, %vm560_vm13  ;;  %vm562_vm13 = vcmp.eq.s32.totalorder %v10197_v26, %v546_v14 }
 0x175   :  { %vm497_vm7 = vcmp.eq.s32.totalorder %v10197_v26, %v477_v11  ;;  %v384_v13 = vpop.permute.xlu0 %383 }
 0x176   :  { %vm513_vm8 = vmor %vm401_vm4, %vm497_vm7  ;;  %vm402_vm15 = vcmp.eq.s32.totalorder %v10197_v26, %v384_v13 }
 0x177   :  { %vm577_vm9 = vmor %vm513_vm8, %vm561_vm3  ;;  %vm563_vm3 = vcmp.eq.s32.totalorder %v10197_v26, %v547_v17 }
 0x178   :  { %v387_v15 = vpop.permute.xlu1 %386  ;;  %vm10334_vm11 = vmpackc.low %vm577_vm9, %vm576_vm6 }
 0x179   :  { %v13705_v16 = vsel %vm10334_vm11, 4294967295, %v13704_v16  ;;  %8699 = vmatmul.mubr.msk.bf16.gmra.mrb[24].mxu0 %vm10334_vm11, %v9857_v50  ;;  %8715 = vmatmul.mubr.msk.bf16.gmra.mrb[24].mxu1 %vm10334_vm11, %v9857_v50  ;;  %v480_v19 = vpop.permute.xlu0 %479  ;;  %vm403_vm4 = vcmp.eq.s32.totalorder %v10197_v26, %v387_v15 }
 0x17a   :  { %1010 = vmatprep.mubr.bf16.mxu0 %v13427_v0  ;;  %1123 = vmatprep.mubr.bf16.mxu1 %v13427_v0  ;;  %vm498_vm0 = vcmp.eq.s32.totalorder %v10197_v26, %v480_v19 }
 0x17b   :  { %vm514_vm2 = vmor %vm402_vm15, %vm498_vm0 }
 0x17c   :  { %v483_v22 = vpop.permute.xlu1 %482  ;;  %vm578_vm6 = vmor %vm514_vm2, %vm562_vm13 }
 0x17d   :  { %vm499_vm7 = vcmp.eq.s32.totalorder %v10197_v26, %v483_v22 }
 0x17e   :  { %vm515_vm8 = vmor %vm403_vm4, %vm499_vm7 }
 0x17f   :  { %vm579_vm9 = vmor %vm515_vm8, %vm563_vm3 }
 0x180   :  { %vm10352_vm11 = vmpackc.low %vm579_vm9, %vm578_vm6 }
 0x181   :  { %8701 = vmatmul.mubr.msk.bf16.gmra.mrb[28].mxu0 %vm10352_vm11, %v9857_v50  ;;  %8717 = vmatmul.mubr.msk.bf16.gmra.mrb[28].mxu1 %vm10352_vm11, %v9857_v50 }
 0x182   :  { %1166 = vmatprep.mubr.bf16.mxu0 %v13427_v0 }
 0x189   :  { %8719 = vmatmul.mubr.msk.bf16.vlgmr.msra.gmra.mrb[32].mxu0 %vm10208_vm10, %v9857_v50  ;;  %vm13708_vm10 = vnez %v13703_v6 }
 0x18a   :  { %1176 = vmatprep.mubr.bf16.mxu0 %v13427_v0 }
 0x191   :  { %8721 = vmatmul.mubr.msk.bf16.gmra.mrb[36].mxu0 %vm10230_vm5, %v9857_v50  ;;  %vm13709_vm5 = vnez %v13705_v16 }
 0x192   :  { %1186 = vmatprep.mubr.bf16.mxu0 %v13427_v0 }
 0x199   :  { %8723 = vmatmul.mubr.msk.bf16.gmra.mrb[40].mxu0 %vm10252_vm1, %v9857_v50  ;;  %vm2130_vm1 = vcmask 130048  }
 0x19a   :  { %1196 = vmatprep.mubr.bf16.mxu0 %v13427_v0 }
 0x1a1   :  { %8725 = vmatmul.mubr.msk.bf16.gmra.mrb[44].mxu0 %vm10274_vm14, %v9857_v50 }
 0x1a2   :  { %1206 = vmatprep.mubr.bf16.mxu0 %v13427_v0 }
 0x1a9   :  { %8727 = vmatmul.mubr.msk.bf16.gmra.mrb[48].mxu0 %vm10296_vm12, %v9857_v50 }
 0x1aa   :  { %1216 = vmatprep.mubr.bf16.mxu0 %v13427_v0 }
 0x1b1   :  { %8729 = vmatmul.mubr.msk.bf16.gmra.mrb[52].mxu0 %vm13708_vm10, %v9857_v50 }
 0x1b2   :  { %1226 = vmatprep.mubr.bf16.mxu0 %v13427_v0 }
 0x1b9   :  { %8731 = vmatmul.mubr.msk.bf16.gmra.mrb[56].mxu0 %vm13709_vm5, %v9857_v50 }
 0x1ba   :  { %1236 = vmatprep.mubr.bf16.mxu0 %v13427_v0 }
 0x1c1   :  { %8733 = vmatmul.mubr.msk.bf16.gmra.mrb[60].mxu0 %vm10352_vm11, %v9857_v50 }
 0x21c   :  { %v10394_v47 = vpop.f32.mrb[0].mxu0  ;;  %v10396_v1 = vpop.f32.mrb[0].mxu1 }
 0x21d   :  { %v10398_v18 = vpop.f32.mrb[1].mxu0  ;;  %v10400_v24 = vpop.f32.mrb[1].mxu1 }
 0x21e   :  { %v1247_v25 = vadd.f32 %v10398_v18, %v10394_v47  ;;  %v10404_v27 = vpop.f32.mrb[2].mxu0  ;;  %v10406_v28 = vpop.f32.mrb[2].mxu1 }
 0x21f   :  { %v10408_v29 = vpop.f32.mrb[3].mxu0  ;;  %v10410_v30 = vpop.f32.mrb[3].mxu1 }
 0x220   :  { %v1248_v50 = vadd.f32 %v1247_v25, %v10396_v1  ;;  %v1254_v31 = vadd.f32 %v10408_v29, %v10404_v27 }
 0x222   :  { %v10416_v32 = vadd.f32 %v1248_v50, %v10400_v24  ;;  %v1255_v33 = vadd.f32 %v1254_v31, %v10406_v28 }
 0x224   :  { %v10420_v34 = vadd.f32 %v1255_v33, %v10410_v30  ;;  %v10422_v35 = vpop.f32.mrb[4].mxu0  ;;  %v10424_v36 = vpop.f32.mrb[4].mxu1 }
 0x225   :  { %v10426_v37 = vpop.f32.mrb[5].mxu0  ;;  %v10428_v38 = vpop.f32.mrb[5].mxu1 }
 0x226   :  { %v1261_v39 = vadd.f32 %v10426_v37, %v10422_v35  ;;  %v10432_v40 = vpop.f32.mrb[6].mxu0  ;;  %v10434_v41 = vpop.f32.mrb[6].mxu1 }
 0x227   :  { %v10436_v42 = vpop.f32.mrb[7].mxu0  ;;  %v10438_v43 = vpop.f32.mrb[7].mxu1 }
 0x228   :  { %v1262_v44 = vadd.f32 %v1261_v39, %v10424_v36  ;;  %v1268_v45 = vadd.f32 %v10436_v42, %v10432_v40 }
 0x22a   :  { %v10444_v46 = vadd.f32 %v1262_v44, %v10428_v38  ;;  %v1269_v48 = vadd.f32 %v1268_v45, %v10434_v41 }
 0x22c   :  { %v10448_v49 = vadd.f32 %v1269_v48, %v10438_v43  ;;  %v10450_v51 = vpop.f32.mrb[8].mxu0  ;;  %v10452_v52 = vpop.f32.mrb[8].mxu1 }
 0x22d   :  { %v10454_v53 = vpop.f32.mrb[9].mxu0  ;;  %v10456_v54 = vpop.f32.mrb[9].mxu1 }
 0x22e   :  { %v1275_v55 = vadd.f32 %v10454_v53, %v10450_v51  ;;  %v10460_v56 = vpop.f32.mrb[10].mxu0  ;;  %v10462_v57 = vpop.f32.mrb[10].mxu1 }
 0x22f   :  { %v10464_v58 = vpop.f32.mrb[11].mxu0  ;;  %v10466_v59 = vpop.f32.mrb[11].mxu1 }
 0x230   :  { %v1276_v60 = vadd.f32 %v1275_v55, %v10452_v52  ;;  %v1282_v61 = vadd.f32 %v10464_v58, %v10460_v56 }
 0x232   :  { %v10472_v62 = vadd.f32 %v1276_v60, %v10456_v54  ;;  %v1283_v63 = vadd.f32 %v1282_v61, %v10462_v57 }
 0x234   :  { %v10476_v2 = vadd.f32 %v1283_v63, %v10466_v59  ;;  %v10478_v3 = vpop.f32.mrb[12].mxu0  ;;  %v10480_v4 = vpop.f32.mrb[12].mxu1 }
 0x235   :  { %v10482_v5 = vpop.f32.mrb[13].mxu0  ;;  %v10484_v6 = vpop.f32.mrb[13].mxu1 }
 0x236   :  { %v1289_v7 = vadd.f32 %v10482_v5, %v10478_v3  ;;  %v10488_v8 = vpop.f32.mrb[14].mxu0  ;;  %v10490_v9 = vpop.f32.mrb[14].mxu1 }
 0x237   :  { %v10492_v10 = vpop.f32.mrb[15].mxu0  ;;  %v10494_v11 = vpop.f32.mrb[15].mxu1 }
 0x238   :  { %13710 = vst [vmem:[#allocation49_spill] sm:$0xff] %v10494_v11  ;;  %v1290_v12 = vadd.f32 %v1289_v7, %v10480_v4  ;;  %v1296_v13 = vadd.f32 %v10492_v10, %v10488_v8 }
 0x23a   :  { %v10500_v14 = vadd.f32 %v1290_v12, %v10484_v6  ;;  %v1297_v15 = vadd.f32 %v1296_v13, %v10490_v9 }
 0x23c   :  { %v10504_v16 = vadd.f32 %v1297_v15, %v10494_v11  ;;  %v10506_v17 = vpop.f32.mrb[16].mxu0  ;;  %v10508_v19 = vpop.f32.mrb[16].mxu1 }
 0x23d   :  { %13711 = vst [vmem:[#allocation50_spill] sm:$0xff] %v10506_v17  ;;  %13712 = vst [vmem:[#allocation51_spill] sm:$0xff] %v10508_v19  ;;  %v10510_v22 = vpop.f32.mrb[17].mxu0  ;;  %v10512_v23 = vpop.f32.mrb[17].mxu1 }
 0x23e   :  { %13713 = vst [vmem:[#allocation52_spill] sm:$0xff] %v10510_v22  ;;  %13714 = vst [vmem:[#allocation53_spill] sm:$0xff] %v10512_v23  ;;  %v1303_v25 = vadd.f32 %v10510_v22, %v10506_v17  ;;  %v10516_v50 = vpop.f32.mrb[18].mxu0  ;;  %v10518_v31 = vpop.f32.mrb[18].mxu1 }
 0x23f   :  { %13715 = vst [vmem:[#allocation54_spill] sm:$0xff] %v10516_v50  ;;  %13716 = vst [vmem:[#allocation55_spill] sm:$0xff] %v10518_v31  ;;  %v10520_v33 = vpop.f32.mrb[19].mxu0  ;;  %v10522_v39 = vpop.f32.mrb[19].mxu1 }
 0x240   :  { %13717 = vst [vmem:[#allocation56_spill] sm:$0xff] %v10520_v33  ;;  %13718 = vst [vmem:[#allocation57_spill] sm:$0xff] %v10522_v39  ;;  %v1304_v44 = vadd.f32 %v1303_v25, %v10508_v19  ;;  %v1310_v45 = vadd.f32 %v10520_v33, %v10516_v50 }
 0x242   :  { %v10528_v48 = vadd.f32 %v1304_v44, %v10512_v23  ;;  %v1311_v55 = vadd.f32 %v1310_v45, %v10518_v31 }
 0x244   :  { %v10532_v60 = vadd.f32 %v1311_v55, %v10522_v39  ;;  %v10534_v61 = vpop.f32.mrb[20].mxu0  ;;  %v10536_v63 = vpop.f32.mrb[20].mxu1 }
 0x245   :  { %13719 = vst [vmem:[#allocation58_spill] sm:$0xff] %v10534_v61  ;;  %13720 = vst [vmem:[#allocation59_spill] sm:$0xff] %v10536_v63  ;;  %v10538_v7 = vpop.f32.mrb[21].mxu0  ;;  %v10540_v12 = vpop.f32.mrb[21].mxu1 }
 0x246   :  { %13721 = vst [vmem:[#allocation60_spill] sm:$0xff] %v10538_v7  ;;  %13722 = vst [vmem:[#allocation61_spill] sm:$0xff] %v10540_v12  ;;  %v1317_v13 = vadd.f32 %v10538_v7, %v10534_v61  ;;  %v10544_v15 = vpop.f32.mrb[22].mxu0  ;;  %v10546_v25 = vpop.f32.mrb[22].mxu1 }
 0x247   :  { %13723 = vst [vmem:[#allocation62_spill] sm:$0xff] %v10544_v15  ;;  %13724 = vst [vmem:[#allocation63_spill] sm:$0xff] %v10546_v25  ;;  %v10548_v44 = vpop.f32.mrb[23].mxu0  ;;  %v10550_v45 = vpop.f32.mrb[23].mxu1 }
 0x248   :  { %13725 = vst [vmem:[#allocation64_spill] sm:$0xff] %v10548_v44  ;;  %13726 = vst [vmem:[#allocation65_spill] sm:$0xff] %v10550_v45  ;;  %v1318_v55 = vadd.f32 %v1317_v13, %v10536_v63  ;;  %v1324_v0 = vadd.f32 %v10548_v44, %v10544_v15 }
 0x24a   :  { %v10556_v26 = vadd.f32 %v1318_v55, %v10540_v12  ;;  %v1325_v21 = vadd.f32 %v1324_v0, %v10546_v25 }
 0x24c   :  { %v10560_v20 = vadd.f32 %v1325_v21, %v10550_v45  ;;  %v10562_v7 = vpop.f32.mrb[24].mxu0  ;;  %v10564_v61 = vpop.f32.mrb[24].mxu1 }
 0x24d   :  { %13727 = vst [vmem:[#allocation66_spill] sm:$0xff] %v10562_v7  ;;  %13728 = vst [vmem:[#allocation67_spill] sm:$0xff] %v10564_v61  ;;  %v10566_v39 = vpop.f32.mrb[25].mxu0  ;;  %v10568_v31 = vpop.f32.mrb[25].mxu1 }
 0x24e   :  { %13729 = vst [vmem:[#allocation68_spill] sm:$0xff] %v10566_v39  ;;  %13730 = vst [vmem:[#allocation69_spill] sm:$0xff] %v10568_v31  ;;  %v1331_v13 = vadd.f32 %v10566_v39, %v10562_v7  ;;  %v10572_v44 = vpop.f32.mrb[26].mxu0  ;;  %v10574_v55 = vpop.f32.mrb[26].mxu1 }
 0x24f   :  { %13731 = vst [vmem:[#allocation70_spill] sm:$0xff] %v10572_v44  ;;  %13732 = vst [vmem:[#allocation71_spill] sm:$0xff] %v10574_v55  ;;  %v10576_v15 = vpop.f32.mrb[27].mxu0  ;;  %v10578_v0 = vpop.f32.mrb[27].mxu1 }
 0x250   :  { %13733 = vst [vmem:[#allocation72_spill] sm:$0xff] %v10576_v15  ;;  %13734 = vst [vmem:[#allocation73_spill] sm:$0xff] %v10578_v0  ;;  %v1332_v21 = vadd.f32 %v1331_v13, %v10564_v61  ;;  %v1338_v45 = vadd.f32 %v10576_v15, %v10572_v44 }
 0x252   :  { %v10584_v25 = vadd.f32 %v1332_v21, %v10568_v31  ;;  %v1339_v12 = vadd.f32 %v1338_v45, %v10574_v55 }
 0x254   :  { %v10588_v39 = vadd.f32 %v1339_v12, %v10578_v0  ;;  %v10590_v7 = vpop.f32.mrb[28].mxu0  ;;  %v10592_v63 = vpop.f32.mrb[28].mxu1 }
 0x255   :  { %13735 = vst [vmem:[#allocation74_spill] sm:$0xff] %v10590_v7  ;;  %13736 = vst [vmem:[#allocation75_spill] sm:$0xff] %v10592_v63  ;;  %v10594_v33 = vpop.f32.mrb[29].mxu0  ;;  %v10596_v50 = vpop.f32.mrb[29].mxu1 }
 0x256   :  { %13737 = vst [vmem:[#allocation76_spill] sm:$0xff] %v10594_v33  ;;  %13738 = vst [vmem:[#allocation77_spill] sm:$0xff] %v10596_v50  ;;  %v1345_v13 = vadd.f32 %v10594_v33, %v10590_v7  ;;  %v10600_v15 = vpop.f32.mrb[30].mxu0  ;;  %v10602_v21 = vpop.f32.mrb[30].mxu1 }
 0x257   :  { %13739 = vst [vmem:[#allocation78_spill] sm:$0xff] %v10600_v15  ;;  %13740 = vst [vmem:[#allocation79_spill] sm:$0xff] %v10602_v21  ;;  %v10604_v44 = vpop.f32.mrb[31].mxu0  ;;  %v10606_v45 = vpop.f32.mrb[31].mxu1 }
 0x258   :  { %13741 = vst [vmem:[#allocation80_spill] sm:$0xff] %v10604_v44  ;;  %13742 = vst [vmem:[#allocation81_spill] sm:$0xff] %v10606_v45  ;;  %v1346_v12 = vadd.f32 %v1345_v13, %v10592_v63  ;;  %v1352_v0 = vadd.f32 %v10604_v44, %v10600_v15 }
 0x25a   :  { %v10612_v55 = vadd.f32 %v1346_v12, %v10596_v50  ;;  %v1353_v31 = vadd.f32 %v1352_v0, %v10602_v21 }
 0x25c   :  { %v10616_v33 = vadd.f32 %v1353_v31, %v10606_v45  ;;  %v10618_v7 = vpop.f32.mrb[32].mxu0 }
 0x25d   :  { %v1250_v61 = vadd.f32 %v10416_v32, %v10618_v7  ;;  %v10622_v23 = vpop.f32.mrb[33].mxu0 }
 0x25e   :  { %v10624_v19 = vpop.f32.mrb[34].mxu0 }
 0x25f   :  { %v1257_v13 = vadd.f32 %v10420_v34, %v10624_v19  ;;  %v10628_v44 = vpop.f32.mrb[35].mxu0  ;;  %v1251_v12 = vadd.f32 %v1250_v61, %v10622_v23 }
 0x261   :  { %1252 = vadd.xlane.f32.xlu0 %v1251_v12  ;;  %v1258_v31 = vadd.f32 %v1257_v13, %v10628_v44 }
 0x263   :  { %1259 = vadd.xlane.f32.xlu1 %v1258_v31 }
 0x264   :  { %v10632_v0 = vpop.f32.mrb[36].mxu0 }
 0x265   :  { %v1264_v32 = vadd.f32 %v10444_v46, %v10632_v0  ;;  %v10636_v45 = vpop.f32.mrb[37].mxu0 }
 0x266   :  { %v10638_v21 = vpop.f32.mrb[38].mxu0 }
 0x267   :  { %v1271_v34 = vadd.f32 %v10448_v49, %v10638_v21  ;;  %v10642_v15 = vpop.f32.mrb[39].mxu0  ;;  %v1265_v61 = vadd.f32 %v1264_v32, %v10636_v45 }
 0x269   :  { %1266 = vadd.xlane.f32.xlu0 %v1265_v61  ;;  %v1272_v13 = vadd.f32 %v1271_v34, %v10642_v15 }
 0x26c   :  { %v10646_v12 = vpop.f32.mrb[40].mxu0 }
 0x26d   :  { %v1278_v31 = vadd.f32 %v10472_v62, %v10646_v12  ;;  %1273 = vadd.xlane.f32.xlu0 %v1272_v13  ;;  %v10650_v46 = vpop.f32.mrb[41].mxu0 }
 0x26e   :  { %v10652_v50 = vpop.f32.mrb[42].mxu0 }
 0x26f   :  { %v1285_v49 = vadd.f32 %v10476_v2, %v10652_v50  ;;  %v10656_v63 = vpop.f32.mrb[43].mxu0  ;;  %v1279_v32 = vadd.f32 %v1278_v31, %v10650_v46 }
 0x271   :  { %1280 = vadd.xlane.f32.xlu1 %v1279_v32  ;;  %v1286_v34 = vadd.f32 %v1285_v49, %v10656_v63 }
 0x273   :  { %1287 = vadd.xlane.f32.xlu0 %v1286_v34 }
 0x274   :  { %v10660_v61 = vpop.f32.mrb[44].mxu0 }
 0x275   :  { %v1292_v62 = vadd.f32 %v10500_v14, %v10660_v61  ;;  %v10664_v13 = vpop.f32.mrb[45].mxu0 }
 0x276   :  { %v10666_v22 = vpop.f32.mrb[46].mxu0 }
 0x277   :  { %13743 = vst [vmem:[#allocation82_spill] sm:$0xff] %v10666_v22  ;;  %v1299_v2 = vadd.f32 %v10504_v16, %v10666_v22  ;;  %v10670_v17 = vpop.f32.mrb[47].mxu0  ;;  %v1293_v31 = vadd.f32 %v1292_v62, %v10664_v13 }
 0x279   :  { %1294 = vadd.xlane.f32.xlu1 %v1293_v31  ;;  %v1300_v49 = vadd.f32 %v1299_v2, %v10670_v17 }
 0x27b   :  { %1301 = vadd.xlane.f32.xlu0 %v1300_v49 }
 0x27c   :  { %v10674_v32 = vpop.f32.mrb[48].mxu0 }
 0x27d   :  { %13744 = vst [vmem:[#allocation83_spill] sm:$0xff] %v10674_v32  ;;  %v1306_v14 = vadd.f32 %v10528_v48, %v10674_v32  ;;  %v10678_v34 = vpop.f32.mrb[49].mxu0 }
 0x27e   :  { %v10680_v11 = vpop.f32.mrb[50].mxu0 }
 0x27f   :  { %13745 = vst [vmem:[#allocation84_spill] sm:$0xff] %v10680_v11  ;;  %v1313_v16 = vadd.f32 %v10532_v60, %v10680_v11  ;;  %v10684_v22 = vpop.f32.mrb[51].mxu0  ;;  %v1307_v62 = vadd.f32 %v1306_v14, %v10678_v34 }
 0x281   :  { %1308 = vadd.xlane.f32.xlu1 %v1307_v62  ;;  %v1314_v2 = vadd.f32 %v1313_v16, %v10684_v22 }
 0x283   :  { %1315 = vadd.xlane.f32.xlu0 %v1314_v2 }
 0x284   :  { %v10688_v31 = vpop.f32.mrb[52].mxu0 }
 0x285   :  { %13746 = vst [vmem:[#allocation85_spill] sm:$0xff] %v10688_v31  ;;  %v1320_v48 = vadd.f32 %v10556_v26, %v10688_v31  ;;  %v10692_v49 = vpop.f32.mrb[53].mxu0 }
 0x286   :  { %v10694_v32 = vpop.f32.mrb[54].mxu0 }
 0x287   :  { %13747 = vst [vmem:[#allocation86_spill] sm:$0xff] %v10694_v32  ;;  %v1327_v60 = vadd.f32 %v10560_v20, %v10694_v32  ;;  %v10698_v11 = vpop.f32.mrb[55].mxu0  ;;  %v1321_v14 = vadd.f32 %v1320_v48, %v10692_v49 }
 0x289   :  { %1322 = vadd.xlane.f32.xlu1 %v1321_v14  ;;  %v1328_v16 = vadd.f32 %v1327_v60, %v10698_v11 }
 0x28b   :  { %1329 = vadd.xlane.f32.xlu0 %v1328_v16 }
 0x28c   :  { %v10702_v62 = vpop.f32.mrb[56].mxu0 }
 0x28d   :  { %13748 = vst [vmem:[#allocation87_spill] sm:$0xff] %v10702_v62  ;;  %v1334_v26 = vadd.f32 %v10584_v25, %v10702_v62  ;;  %v10706_v2 = vpop.f32.mrb[57].mxu0 }
 0x28e   :  { %13749 = vst [vmem:[#allocation88_spill] sm:$0xff] %v10706_v2  ;;  %v10708_v31 = vpop.f32.mrb[58].mxu0 }
 0x28f   :  { %13750 = vst [vmem:[#allocation89_spill] sm:$0xff] %v10708_v31  ;;  %v1341_v20 = vadd.f32 %v10588_v39, %v10708_v31  ;;  %v10712_v32 = vpop.f32.mrb[59].mxu0  ;;  %v1335_v48 = vadd.f32 %v1334_v26, %v10706_v2 }
 0x290   :  { %13751 = vst [vmem:[#allocation90_spill] sm:$0xff] %v10712_v32 }
 0x291   :  { %1336 = vadd.xlane.f32.xlu1 %v1335_v48  ;;  %v1342_v60 = vadd.f32 %v1341_v20, %v10712_v32 }
 0x293   :  { %1343 = vadd.xlane.f32.xlu0 %v1342_v60 }
 0x294   :  { %v10716_v14 = vpop.f32.mrb[60].mxu0 }
 0x295   :  { %13752 = vst [vmem:[#allocation91_spill] sm:$0xff] %v10716_v14  ;;  %v1348_v25 = vadd.f32 %v10612_v55, %v10716_v14  ;;  %v10720_v16 = vpop.f32.mrb[61].mxu0 }
 0x296   :  { %v10722_v62 = vpop.f32.mrb[62].mxu0 }
 0x297   :  { %13753 = vst [vmem:[#allocation92_spill] sm:$0xff] %v10722_v62  ;;  %v1355_v39 = vadd.f32 %v10616_v33, %v10722_v62  ;;  %v10726_v31 = vpop.f32.mrb[63].mxu0  ;;  %v1349_v26 = vadd.f32 %v1348_v25, %v10720_v16 }
 0x299   :  { %v1356_v48 = vadd.f32 %v1355_v39, %v10726_v31  ;;  %1350 = vadd.xlane.f32.xlu1 %v1349_v26 }
 0x29b   :  { %1357 = vadd.xlane.f32.xlu0 %v1356_v48 }
 0x2ee   :  { %v1253_v20 = vpop.xlane.xlu0 %1252 }
 0x2ef   :  { %v1360_v60 = vmul.f32 0.0013020834, %v1253_v20 }
 0x2f0   :  { %v1260_v32 = vpop.xlane.xlu1 %1259 }
 0x2f1   :  { %v1361_v2 = vmul.f32 0.0013020834, %v1260_v32  ;;  %v10731_v55 = vsub.f32 %v10394_v47, %v1360_v60  ;;  %v10734_v14 = vsub.f32 %v10398_v18, %v1360_v60  ;;  %v10737_v33 = vsub.f32 %v10396_v1, %v1360_v60 }
 0x2f2   :  { %v10740_v62 = vsub.f32 %v10400_v24, %v1360_v60  ;;  %v10743_v25 = vsub.f32 %v10618_v7, %v1360_v60  ;;  %v10753_v18 = vsub.f32 %v10622_v23, %v1360_v60 }
 0x2f3   :  { %13754 = vst [vmem:[#allocation93_spill] sm:$0xff] %v10734_v14  ;;  %13755 = vst [vmem:[#allocation94_spill] sm:$0xff] %v10737_v33  ;;  %v1472_v39 = vmul.f32 %v10731_v55, %v10731_v55  ;;  %v1473_v32 = vmul.f32 %v10734_v14, %v10734_v14  ;;  %v10750_v47 = vsub.f32 %v10404_v27, %v1361_v2 }
 0x2f4   :  { %13756 = vst [vmem:[#allocation95_spill] sm:$0xff] %v10743_v25  ;;  %13758 = vst [vmem:[#allocation97_spill] sm:$0xff] %v10753_v18  ;;  %v10756_v1 = vsub.f32 %v10408_v29, %v1361_v2  ;;  %v1474_v24 = vmul.f32 %v10737_v33, %v10737_v33  ;;  %v10761_v26 = vsub.f32 %v10406_v28, %v1361_v2 }
 0x2f5   :  { %13757 = vst [vmem:[#allocation96_spill] sm:$0xff] %v10750_v47  ;;  %v1568_v7 = vadd.f32 %v1473_v32, %v1472_v39  ;;  %v10764_v20 = vsub.f32 %v10410_v30, %v1361_v2  ;;  %v1478_v27 = vmul.f32 %v10750_v47, %v10750_v47  ;;  %v1475_v29 = vmul.f32 %v10740_v62, %v10740_v62 }
 0x2f6   :  { %13759 = vst [vmem:[#allocation98_spill] sm:$0xff] %v10756_v1  ;;  %v1267_v48 = vpop.xlane.xlu0 %1266  ;;  %v1479_v23 = vmul.f32 %v10756_v1, %v10756_v1  ;;  %v1476_v39 = vmul.f32 %v10743_v25, %v10743_v25  ;;  %v1477_v28 = vmul.f32 %v10753_v18, %v10753_v18  ;;  %v10777_v30 = vsub.f32 %v10624_v19, %v1361_v2 }
 0x2f7   :  { %v1362_v60 = vmul.f32 0.0013020834, %v1267_v48  ;;  %v1569_v32 = vadd.f32 %v1568_v7, %v1474_v24  ;;  %v1480_v47 = vmul.f32 %v10761_v26, %v10761_v26  ;;  %v10791_v7 = vsub.f32 %v10628_v44, %v1361_v2 }
 0x2f8   :  { %v1575_v33 = vadd.f32 %v1479_v23, %v1478_v27  ;;  %v1481_v19 = vmul.f32 %v10764_v20, %v10764_v20 }
 0x2f9   :  { %v1570_v14 = vadd.f32 %v1569_v32, %v1475_v29  ;;  %v10782_v48 = vsub.f32 %v10422_v35, %v1362_v60  ;;  %v10785_v1 = vsub.f32 %v10426_v37, %v1362_v60  ;;  %v10788_v25 = vsub.f32 %v10424_v36, %v1362_v60 }
 0x2fa   :  { %v1274_v24 = vpop.xlane.xlu0 %1273  ;;  %v1576_v18 = vadd.f32 %v1575_v33, %v1480_v47  ;;  %v10796_v27 = vsub.f32 %v10428_v38, %v1362_v60  ;;  %v1482_v29 = vmul.f32 %v10777_v30, %v10777_v30  ;;  %v10805_v2 = vsub.f32 %v10632_v0, %v1362_v60 }
 0x2fb   :  { %13760 = vst [vmem:[#allocation99_spill] sm:$0xff] %v10785_v1  ;;  %v1363_v23 = vmul.f32 0.0013020834, %v1274_v24  ;;  %v1571_v35 = vadd.f32 %v1570_v14, %v1476_v39  ;;  %v1484_v37 = vmul.f32 %v10782_v48, %v10782_v48  ;;  %v1485_v36 = vmul.f32 %v10785_v1, %v10785_v1 }
 0x2fc   :  { %v1577_v44 = vadd.f32 %v1576_v18, %v1481_v19  ;;  %v10808_v33 = vsub.f32 %v10636_v45, %v1362_v60  ;;  %v1486_v14 = vmul.f32 %v10788_v25, %v10788_v25  ;;  %v1483_v24 = vmul.f32 %v10791_v7, %v10791_v7 }
 0x2fd   :  { %v1572_v38 = vadd.f32 %v1571_v35, %v1477_v28  ;;  %v1582_v47 = vadd.f32 %v1485_v36, %v1484_v37  ;;  %v10813_v39 = vsub.f32 %v10432_v40, %v1363_v23  ;;  %v10818_v18 = vsub.f32 %v10436_v42, %v1363_v23 }
 0x2fe   :  { %v1281_v32 = vpop.xlane.xlu1 %1280  ;;  %v1578_v1 = vadd.f32 %v1577_v44, %v1482_v29  ;;  %v10821_v0 = vsub.f32 %v10434_v41, %v1363_v23  ;;  %v1487_v60 = vmul.f32 %v10796_v27, %v10796_v27  ;;  %v10826_v40 = vsub.f32 %v10438_v43, %v1363_v23 }
 0x2ff   :  { %v1364_v45 = vmul.f32 0.0013020834, %v1281_v32  ;;  %1573 = vadd.xlane.f32.xlu1 %v1572_v38  ;;  %v1583_v28 = vadd.f32 %v1582_v47, %v1486_v14  ;;  %v1488_v37 = vmul.f32 %v10805_v2, %v10805_v2  ;;  %v1490_v42 = vmul.f32 %v10813_v39, %v10813_v39 }
 0x300   :  { %v1288_v19 = vpop.xlane.xlu0 %1287  ;;  %v1579_v35 = vadd.f32 %v1578_v1, %v1483_v24  ;;  %v1491_v41 = vmul.f32 %v10818_v18, %v10818_v18  ;;  %v1489_v36 = vmul.f32 %v10808_v33, %v10808_v33  ;;  %v10837_v44 = vsub.f32 %v10638_v21, %v1363_v23 }
 0x301   :  { %v1584_v29 = vadd.f32 %v1583_v28, %v1487_v60  ;;  %v1492_v43 = vmul.f32 %v10821_v0, %v10821_v0  ;;  %v1365_v1 = vmul.f32 0.0013020834, %v1288_v19  ;;  %v10842_v14 = vsub.f32 %v10450_v51, %v1364_v45 }
 0x302   :  { %1580 = vadd.xlane.f32.xlu0 %v1579_v35  ;;  %v1589_v38 = vadd.f32 %v1491_v41, %v1490_v42  ;;  %v10845_v47 = vsub.f32 %v10454_v53, %v1364_v45  ;;  %v10848_v24 = vsub.f32 %v10642_v15, %v1363_v23  ;;  %v1493_v21 = vmul.f32 %v10826_v40, %v10826_v40 }
 0x303   :  { %v1585_v32 = vadd.f32 %v1584_v29, %v1488_v37  ;;  %v10853_v60 = vsub.f32 %v10452_v52, %v1364_v45  ;;  %v10856_v19 = vsub.f32 %v10456_v54, %v1364_v45  ;;  %v1496_v51 = vmul.f32 %v10842_v14, %v10842_v14 }
 0x304   :  { %v1590_v28 = vadd.f32 %v1589_v38, %v1492_v43  ;;  %v1497_v53 = vmul.f32 %v10845_v47, %v10845_v47  ;;  %v1494_v15 = vmul.f32 %v10837_v44, %v10837_v44  ;;  %v10865_v23 = vsub.f32 %v10646_v12, %v1364_v45 }
 0x305   :  { %v1586_v35 = vadd.f32 %v1585_v32, %v1489_v36  ;;  %v10868_v52 = vsub.f32 %v10650_v46, %v1364_v45  ;;  %v1498_v54 = vmul.f32 %v10853_v60, %v10853_v60  ;;  %v10873_v29 = vsub.f32 %v10460_v56, %v1365_v1 }
 0x306   :  { %v1295_v37 = vpop.xlane.xlu1 %1294  ;;  %v1591_v42 = vadd.f32 %v1590_v28, %v1493_v21  ;;  %v1596_v41 = vadd.f32 %v1497_v53, %v1496_v51  ;;  %v1495_v36 = vmul.f32 %v10848_v24, %v10848_v24  ;;  %v10878_v12 = vsub.f32 %v10464_v58, %v1365_v1 }
 0x307   :  { %13761 = vst [vmem:[#allocation100_spill] sm:$0xff] %v10873_v29  ;;  %v1366_v43 = vmul.f32 0.0013020834, %v1295_v37  ;;  %1587 = vadd.xlane.f32.xlu1 %v1586_v35  ;;  %v10881_v46 = vsub.f32 %v10462_v57, %v1365_v1  ;;  %v1499_v38 = vmul.f32 %v10856_v19, %v10856_v19  ;;  %v10886_v21 = vsub.f32 %v10466_v59, %v1365_v1 }
 0x308   :  { %v1592_v45 = vadd.f32 %v1591_v42, %v1494_v15  ;;  %v1597_v32 = vadd.f32 %v1596_v41, %v1498_v54  ;;  %v1302_v56 = vpop.xlane.xlu0 %1301  ;;  %v1500_v28 = vmul.f32 %v10865_v23, %v10865_v23  ;;  %v1501_v51 = vmul.f32 %v10868_v52, %v10868_v52 }
 0x309   :  { %v1502_v58 = vmul.f32 %v10873_v29, %v10873_v29  ;;  %v1503_v57 = vmul.f32 %v10878_v12, %v10878_v12  ;;  %v10897_v15 = vsub.f32 %v10652_v50, %v1365_v1  ;;  %v10900_v59 = vsub.f32 %v10656_v63, %v1365_v1 }
 0x30a   :  { %v1593_v53 = vadd.f32 %v1592_v45, %v1495_v36  ;;  %v1598_v35 = vadd.f32 %v1597_v32, %v1499_v38  ;;  %v1504_v37 = vmul.f32 %v10881_v46, %v10881_v46  ;;  %v10905_v54 = vsub.f32 %v10478_v3, %v1366_v43 }
 0x30b   :  { %v1603_v42 = vadd.f32 %v1503_v57, %v1502_v58  ;;  %v10908_v41 = vsub.f32 %v10482_v5, %v1366_v43  ;;  %v1367_v29 = vmul.f32 0.0013020834, %v1302_v56  ;;  %v1505_v50 = vmul.f32 %v10886_v21, %v10886_v21 }
 0x30c   :  { %1594 = vadd.xlane.f32.xlu0 %v1593_v53  ;;  %v1599_v36 = vadd.f32 %v1598_v35, %v1500_v28  ;;  %v10913_v45 = vsub.f32 %v10480_v4, %v1366_v43  ;;  %v10916_v1 = vsub.f32 %v10484_v6, %v1366_v43  ;;  %v1508_v3 = vmul.f32 %v10905_v54, %v10905_v54 }
 0x30d   :  { %v1604_v63 = vadd.f32 %v1603_v42, %v1504_v37  ;;  %v1509_v5 = vmul.f32 %v10908_v41, %v10908_v41  ;;  %v1506_v56 = vmul.f32 %v10897_v15, %v10897_v15  ;;  %v10925_v28 = vsub.f32 %v10660_v61, %v1366_v43 }
 0x30e   :  { %13762 = vst [vmem:[#allocation101_spill] sm:$0xff] %v10916_v1  ;;  %v1309_v38 = vpop.xlane.xlu1 %1308  ;;  %v1600_v32 = vadd.f32 %v1599_v36, %v1501_v51  ;;  %v10928_v4 = vsub.f32 %v10664_v13, %v1366_v43  ;;  %v1507_v6 = vmul.f32 %v10900_v59, %v10900_v59  ;;  %v1510_v57 = vmul.f32 %v10913_v45, %v10913_v45  ;;  %v13767_v36 = vld [vmem:[#allocation49_spill] sm:$0xff] }
 0x30f   :  { %13763 = vst [vmem:[#allocation102_spill] sm:$0xff] %v10925_v28  ;;  %v1605_v58 = vadd.f32 %v1604_v63, %v1505_v50  ;;  %v1610_v53 = vadd.f32 %v1509_v5, %v1508_v3  ;;  %v1368_v35 = vmul.f32 0.0013020834, %v1309_v38  ;;  %v10935_v51 = vsub.f32 %v10488_v8, %v1367_v29 }
 0x310   :  { %13764 = vst [vmem:[#allocation103_spill] sm:$0xff] %v10928_v4  ;;  %1601 = vadd.xlane.f32.xlu1 %v1600_v32  ;;  %v10938_v37 = vsub.f32 %v10492_v10, %v1367_v29  ;;  %v10941_v61 = vsub.f32 %v10490_v9, %v1367_v29  ;;  %v1511_v43 = vmul.f32 %v10916_v1, %v10916_v1  ;;  %v1316_v63 = vpop.xlane.xlu0 %1315  ;;  %v13769_v32 = vld [vmem:[#allocation82_spill] sm:$0xff] }
 0x311   :  { %13765 = vst [vmem:[#allocation104_spill] sm:$0xff] %v10935_v51  ;;  %v1606_v13 = vadd.f32 %v1605_v58, %v1506_v56  ;;  %v1611_v42 = vadd.f32 %v1610_v53, %v1510_v57  ;;  %v10946_v50 = vsub.f32 %v13767_v36, %v1367_v29  ;;  %v1512_v3 = vmul.f32 %v10925_v28, %v10925_v28  ;;  %v13772_v36 = vld [vmem:[#allocation50_spill] sm:$0xff]  ;;  %v13774_v28 = vld [vmem:[#allocation52_spill] sm:$0xff] }
 0x312   :  { %13766 = vst [vmem:[#allocation105_spill] sm:$0xff] %v10941_v61  ;;  %v1513_v8 = vmul.f32 %v10928_v4, %v10928_v4  ;;  %v1514_v10 = vmul.f32 %v10935_v51, %v10935_v51  ;;  %v1515_v9 = vmul.f32 %v10938_v37, %v10938_v37  ;;  %v10957_v56 = vsub.f32 %v13769_v32, %v1367_v29  ;;  %v13778_v32 = vld [vmem:[#allocation53_spill] sm:$0xff] }
 0x313   :  { %13768 = vst [vmem:[#allocation49_spill] sm:$0xff] %v10946_v50  ;;  %v1607_v5 = vadd.f32 %v1606_v13, %v1507_v6  ;;  %v1612_v38 = vadd.f32 %v1611_v42, %v1511_v43  ;;  %v10960_v58 = vsub.f32 %v10670_v17, %v1367_v29  ;;  %v1516_v57 = vmul.f32 %v10941_v61, %v10941_v61  ;;  %v13776_v43 = vld [vmem:[#allocation51_spill] sm:$0xff] }
 0x314   :  { %13770 = vst [vmem:[#allocation82_spill] sm:$0xff] %v10957_v56  ;;  %v1617_v53 = vadd.f32 %v1515_v9, %v1514_v10  ;;  %v10965_v4 = vsub.f32 %v13772_v36, %v1368_v35  ;;  %v10968_v51 = vsub.f32 %v13774_v28, %v1368_v35  ;;  %v1369_v1 = vmul.f32 0.0013020834, %v1316_v63 }
 0x315   :  { %13771 = vst [vmem:[#allocation106_spill] sm:$0xff] %v10960_v58  ;;  %1608 = vadd.xlane.f32.xlu0 %v1607_v5  ;;  %v1613_v6 = vadd.f32 %v1612_v38, %v1512_v3  ;;  %v1517_v13 = vmul.f32 %v10946_v50, %v10946_v50  ;;  %v10973_v42 = vsub.f32 %v13776_v43, %v1368_v35  ;;  %v13780_v5 = vld [vmem:[#allocation83_spill] sm:$0xff] }
 0x316   :  { %13773 = vst [vmem:[#allocation50_spill] sm:$0xff] %v10965_v4  ;;  %13775 = vst [vmem:[#allocation52_spill] sm:$0xff] %v10968_v51  ;;  %v1323_v17 = vpop.xlane.xlu1 %1322  ;;  %v1618_v29 = vadd.f32 %v1617_v53, %v1516_v57  ;;  %v10976_v61 = vsub.f32 %v13778_v32, %v1368_v35  ;;  %v1520_v10 = vmul.f32 %v10965_v4, %v10965_v4 }
 0x317   :  { %13777 = vst [vmem:[#allocation51_spill] sm:$0xff] %v10973_v42  ;;  %v1521_v28 = vmul.f32 %v10968_v51, %v10968_v51  ;;  %v1614_v63 = vadd.f32 %v1613_v6, %v1513_v8  ;;  %v1518_v3 = vmul.f32 %v10957_v56, %v10957_v56  ;;  %v1519_v9 = vmul.f32 %v10960_v58, %v10960_v58  ;;  %v13783_v8 = vld [vmem:[#allocation54_spill] sm:$0xff]  ;;  %v13785_v51 = vld [vmem:[#allocation56_spill] sm:$0xff]  ;;  %v13787_v58 = vld [vmem:[#allocation55_spill] sm:$0xff] }
 0x318   :  { %13779 = vst [vmem:[#allocation53_spill] sm:$0xff] %v10976_v61  ;;  %v10987_v38 = vsub.f32 %v13780_v5, %v1368_v35  ;;  %v1619_v57 = vadd.f32 %v1618_v29, %v1517_v13  ;;  %v10990_v53 = vsub.f32 %v10678_v34, %v1368_v35  ;;  %v1522_v36 = vmul.f32 %v10973_v42, %v10973_v42  ;;  %v13789_v13 = vld [vmem:[#allocation57_spill] sm:$0xff] }
 0x319   :  { %v1624_v43 = vadd.f32 %v1521_v28, %v1520_v10  ;;  %v1370_v32 = vmul.f32 0.0013020834, %v1323_v17  ;;  %1615 = vadd.xlane.f32.xlu1 %v1614_v63  ;;  %v10995_v6 = vsub.f32 %v13783_v8, %v1369_v1  ;;  %v10998_v4 = vsub.f32 %v13785_v51, %v1369_v1  ;;  %v1330_v10 = vpop.xlane.xlu0 %1329  ;;  %v13791_v28 = vld [vmem:[#allocation84_spill] sm:$0xff] }
 0x31a   :  { %13781 = vst [vmem:[#allocation83_spill] sm:$0xff] %v10987_v38  ;;  %13782 = vst [vmem:[#allocation107_spill] sm:$0xff] %v10990_v53  ;;  %v11001_v56 = vsub.f32 %v13787_v58, %v1369_v1  ;;  %v1620_v5 = vadd.f32 %v1619_v57, %v1518_v3  ;;  %v1523_v34 = vmul.f32 %v10976_v61, %v10976_v61  ;;  %v13796_v61 = vld [vmem:[#allocation60_spill] sm:$0xff]  ;;  %v1371_v42 = vmul.f32 0.0013020834, %v1330_v10 }
 0x31b   :  { %13784 = vst [vmem:[#allocation54_spill] sm:$0xff] %v10995_v6  ;;  %13786 = vst [vmem:[#allocation56_spill] sm:$0xff] %v10998_v4  ;;  %v1625_v35 = vadd.f32 %v1624_v43, %v1522_v36  ;;  %v11006_v29 = vsub.f32 %v13789_v13, %v1369_v1  ;;  %v1524_v17 = vmul.f32 %v10987_v38, %v10987_v38 }
 0x31c   :  { %13788 = vst [vmem:[#allocation55_spill] sm:$0xff] %v11001_v56  ;;  %v11011_v63 = vsub.f32 %v13791_v28, %v1369_v1  ;;  %v1526_v51 = vmul.f32 %v10995_v6, %v10995_v6  ;;  %v1527_v58 = vmul.f32 %v10998_v4, %v10998_v4  ;;  %v1621_v3 = vadd.f32 %v1620_v5, %v1519_v9  ;;  %v13794_v28 = vld [vmem:[#allocation58_spill] sm:$0xff] }
 0x31d   :  { %13790 = vst [vmem:[#allocation57_spill] sm:$0xff] %v11006_v29  ;;  %v1525_v57 = vmul.f32 %v10990_v53, %v10990_v53  ;;  %v1626_v36 = vadd.f32 %v1625_v35, %v1523_v34  ;;  %v11020_v43 = vsub.f32 %v10684_v22, %v1369_v1  ;;  %v1528_v8 = vmul.f32 %v11001_v56, %v11001_v56  ;;  %v13798_v35 = vld [vmem:[#allocation59_spill] sm:$0xff] }
 0x31e   :  { %13792 = vst [vmem:[#allocation84_spill] sm:$0xff] %v11011_v63  ;;  %v1631_v13 = vadd.f32 %v1527_v58, %v1526_v51  ;;  %v11025_v38 = vsub.f32 %v13794_v28, %v1370_v32  ;;  %v11028_v6 = vsub.f32 %v13796_v61, %v1370_v32  ;;  %1622 = vadd.xlane.f32.xlu0 %v1621_v3  ;;  %v1337_v9 = vpop.xlane.xlu1 %1336  ;;  %v13800_v58 = vld [vmem:[#allocation61_spill] sm:$0xff] }
 0x31f   :  { %13793 = vst [vmem:[#allocation108_spill] sm:$0xff] %v11020_v43  ;;  %v1627_v5 = vadd.f32 %v1626_v36, %v1524_v17  ;;  %v1529_v34 = vmul.f32 %v11006_v29, %v11006_v29  ;;  %v11033_v22 = vsub.f32 %v13798_v35, %v1370_v32  ;;  %v1530_v1 = vmul.f32 %v11011_v63, %v11011_v63  ;;  %v13802_v3 = vld [vmem:[#allocation85_spill] sm:$0xff] }
 0x320   :  { %13795 = vst [vmem:[#allocation58_spill] sm:$0xff] %v11025_v38  ;;  %13797 = vst [vmem:[#allocation60_spill] sm:$0xff] %v11028_v6  ;;  %v1632_v51 = vadd.f32 %v1631_v13, %v1528_v8  ;;  %v11038_v28 = vsub.f32 %v13800_v58, %v1370_v32  ;;  %v1532_v61 = vmul.f32 %v11025_v38, %v11025_v38  ;;  %v1372_v29 = vmul.f32 0.0013020834, %v1337_v9  ;;  %v1344_v56 = vpop.xlane.xlu0 %1343  ;;  %v13807_v38 = vld [vmem:[#allocation64_spill] sm:$0xff] }
 0x321   :  { %13799 = vst [vmem:[#allocation59_spill] sm:$0xff] %v11033_v22  ;;  %v1628_v10 = vadd.f32 %v1627_v5, %v1525_v57  ;;  %v1531_v17 = vmul.f32 %v11020_v43, %v11020_v43  ;;  %v11045_v36 = vsub.f32 %v13802_v3, %v1370_v32  ;;  %v1533_v35 = vmul.f32 %v11028_v6, %v11028_v6  ;;  %v13805_v5 = vld [vmem:[#allocation62_spill] sm:$0xff]  ;;  %v13809_v43 = vld [vmem:[#allocation63_spill] sm:$0xff] }
 0x322   :  { %13801 = vst [vmem:[#allocation61_spill] sm:$0xff] %v11038_v28  ;;  %v1633_v63 = vadd.f32 %v1632_v51, %v1529_v34  ;;  %v11050_v8 = vsub.f32 %v10692_v49, %v1370_v32  ;;  %v1534_v13 = vmul.f32 %v11033_v22, %v11033_v22  ;;  %v11055_v58 = vsub.f32 %v13805_v5, %v1371_v42  ;;  %v13811_v49 = vld [vmem:[#allocation65_spill] sm:$0xff]  ;;  %v13813_v51 = vld [vmem:[#allocation86_spill] sm:$0xff] }
 0x323   :  { %13803 = vst [vmem:[#allocation85_spill] sm:$0xff] %v11045_v36  ;;  %1629 = vadd.xlane.f32.xlu1 %v1628_v10  ;;  %v1638_v57 = vadd.f32 %v1533_v35, %v1532_v61  ;;  %v11058_v3 = vsub.f32 %v13807_v38, %v1371_v42  ;;  %v11061_v4 = vsub.f32 %v13809_v43, %v1371_v42  ;;  %v1373_v61 = vmul.f32 0.0013020834, %v1344_v56 }
 0x324   :  { %13804 = vst [vmem:[#allocation109_spill] sm:$0xff] %v11050_v8  ;;  %13806 = vst [vmem:[#allocation62_spill] sm:$0xff] %v11055_v58  ;;  %v1634_v9 = vadd.f32 %v1633_v63, %v1530_v1  ;;  %v1535_v34 = vmul.f32 %v11038_v28, %v11038_v28  ;;  %v11066_v32 = vsub.f32 %v13811_v49, %v1371_v42 }
 0x325   :  { %13808 = vst [vmem:[#allocation64_spill] sm:$0xff] %v11058_v3  ;;  %13810 = vst [vmem:[#allocation63_spill] sm:$0xff] %v11061_v4  ;;  %v11069_v22 = vsub.f32 %v13813_v51, %v1371_v42  ;;  %v1639_v10 = vadd.f32 %v1638_v57, %v1534_v13  ;;  %v1538_v35 = vmul.f32 %v11055_v58, %v11055_v58  ;;  %v13816_v13 = vld [vmem:[#allocation66_spill] sm:$0xff]  ;;  %v13818_v58 = vld [vmem:[#allocation68_spill] sm:$0xff] }
 0x326   :  { %13812 = vst [vmem:[#allocation65_spill] sm:$0xff] %v11066_v32  ;;  %v1539_v38 = vmul.f32 %v11058_v3, %v11058_v3  ;;  %v1635_v43 = vadd.f32 %v1634_v9, %v1531_v17  ;;  %v1536_v63 = vmul.f32 %v11045_v36, %v11045_v36  ;;  %v11078_v1 = vsub.f32 %v10698_v11, %v1371_v42  ;;  %v1351_v49 = vpop.xlane.xlu1 %1350  ;;  %v13820_v9 = vld [vmem:[#allocation67_spill] sm:$0xff]  ;;  %v13830_v36 = vld [vmem:[#allocation72_spill] sm:$0xff] }
 0x327   :  { %13814 = vst [vmem:[#allocation86_spill] sm:$0xff] %v11069_v22  ;;  %v1540_v5 = vmul.f32 %v11061_v4, %v11061_v4  ;;  %v1640_v51 = vadd.f32 %v1639_v10, %v1535_v34  ;;  %v11083_v57 = vsub.f32 %v13816_v13, %v1372_v29  ;;  %v11086_v28 = vsub.f32 %v13818_v58, %v1372_v29 }
 0x328   :  { %13815 = vst [vmem:[#allocation110_spill] sm:$0xff] %v11078_v1  ;;  %v1645_v56 = vadd.f32 %v1539_v38, %v1538_v35  ;;  %1636 = vadd.xlane.f32.xlu0 %v1635_v43  ;;  %v1537_v17 = vmul.f32 %v11050_v8, %v11050_v8  ;;  %v1541_v11 = vmul.f32 %v11066_v32, %v11066_v32  ;;  %v13822_v35 = vld [vmem:[#allocation69_spill] sm:$0xff]  ;;  %v1374_v43 = vmul.f32 0.0013020834, %v1351_v49  ;;  %v1358_v13 = vpop.xlane.xlu0 %1357  ;;  %v13824_v32 = vld [vmem:[#allocation87_spill] sm:$0xff]  ;;  %v13828_v49 = vld [vmem:[#allocation70_spill] sm:$0xff] }
 0x329   :  { %13817 = vst [vmem:[#allocation66_spill] sm:$0xff] %v11083_v57  ;;  %13819 = vst [vmem:[#allocation68_spill] sm:$0xff] %v11086_v28  ;;  %v1542_v42 = vmul.f32 %v11069_v22, %v11069_v22  ;;  %v11095_v4 = vsub.f32 %v13820_v9, %v1372_v29  ;;  %v1641_v34 = vadd.f32 %v1640_v51, %v1536_v63 }
 0x32a   :  { %v1646_v10 = vadd.f32 %v1645_v56, %v1540_v5  ;;  %v11098_v38 = vsub.f32 %v13822_v35, %v1372_v29  ;;  %v1544_v58 = vmul.f32 %v11083_v57, %v11083_v57  ;;  %v1543_v3 = vmul.f32 %v11078_v1, %v11078_v1  ;;  %v13826_v5 = vld [vmem:[#allocation88_spill] sm:$0xff] }
 0x32b   :  { %13821 = vst [vmem:[#allocation67_spill] sm:$0xff] %v11095_v4  ;;  %v11105_v8 = vsub.f32 %v13824_v32, %v1372_v29  ;;  %v1545_v9 = vmul.f32 %v11086_v28, %v11086_v28  ;;  %v1642_v22 = vadd.f32 %v1641_v34, %v1537_v17  ;;  %v11110_v51 = vsub.f32 %v13826_v5, %v1372_v29  ;;  %v13832_v32 = vld [vmem:[#allocation71_spill] sm:$0xff] }
 0x32c   :  { %13823 = vst [vmem:[#allocation69_spill] sm:$0xff] %v11098_v38  ;;  %v1647_v63 = vadd.f32 %v1646_v10, %v1541_v11  ;;  %v1546_v56 = vmul.f32 %v11095_v4, %v11095_v4  ;;  %v11115_v57 = vsub.f32 %v13828_v49, %v1373_v61  ;;  %v11118_v1 = vsub.f32 %v13830_v36, %v1373_v61  ;;  %v13834_v11 = vld [vmem:[#allocation73_spill] sm:$0xff] }
 0x32d   :  { %13825 = vst [vmem:[#allocation87_spill] sm:$0xff] %v11105_v8  ;;  %13827 = vst [vmem:[#allocation88_spill] sm:$0xff] %v11110_v51  ;;  %v1652_v35 = vadd.f32 %v1545_v9, %v1544_v58  ;;  %v11121_v6 = vsub.f32 %v13832_v32, %v1373_v61  ;;  %1643 = vadd.xlane.f32.xlu1 %v1642_v22  ;;  %v1375_v28 = vmul.f32 0.0013020834, %v1358_v13 }
 0x32e   :  { %13829 = vst [vmem:[#allocation70_spill] sm:$0xff] %v11115_v57  ;;  %13831 = vst [vmem:[#allocation72_spill] sm:$0xff] %v11118_v1  ;;  %v1648_v17 = vadd.f32 %v1647_v63, %v1542_v42  ;;  %v1547_v29 = vmul.f32 %v11098_v38, %v11098_v38  ;;  %v11126_v34 = vsub.f32 %v13834_v11, %v1373_v61  ;;  %v13836_v42 = vld [vmem:[#allocation89_spill] sm:$0xff]  ;;  %v13838_v11 = vld [vmem:[#allocation74_spill] sm:$0xff] }
 0x32f   :  { %13833 = vst [vmem:[#allocation71_spill] sm:$0xff] %v11121_v6  ;;  %v1548_v10 = vmul.f32 %v11105_v8, %v11105_v8  ;;  %v1653_v58 = vadd.f32 %v1652_v35, %v1546_v56  ;;  %v1550_v36 = vmul.f32 %v11115_v57, %v11115_v57  ;;  %v1551_v9 = vmul.f32 %v11118_v1, %v11118_v1  ;;  %v13840_v35 = vld [vmem:[#allocation76_spill] sm:$0xff]  ;;  %v13842_v1 = vld [vmem:[#allocation90_spill] sm:$0xff]  ;;  %v13846_v8 = vld [vmem:[#allocation77_spill] sm:$0xff] }
 0x330   :  { %13835 = vst [vmem:[#allocation73_spill] sm:$0xff] %v11126_v34  ;;  %v1649_v5 = vadd.f32 %v1648_v17, %v1543_v3  ;;  %v1549_v22 = vmul.f32 %v11110_v51, %v11110_v51  ;;  %v11137_v13 = vsub.f32 %v13836_v42, %v1373_v61  ;;  %v1552_v63 = vmul.f32 %v11121_v6, %v11121_v6  ;;  %v13844_v42 = vld [vmem:[#allocation75_spill] sm:$0xff] }
 0x331   :  { %v1654_v49 = vadd.f32 %v1653_v58, %v1547_v29  ;;  %v1659_v32 = vadd.f32 %v1551_v9, %v1550_v36  ;;  %v11142_v56 = vsub.f32 %v13838_v11, %v1374_v43  ;;  %v11145_v57 = vsub.f32 %v13840_v35, %v1374_v43 }
 0x332   :  { %13837 = vst [vmem:[#allocation89_spill] sm:$0xff] %v11137_v13  ;;  %1650 = vadd.xlane.f32.xlu0 %v1649_v5  ;;  %v11148_v3 = vsub.f32 %v13842_v1, %v1373_v61  ;;  %v1553_v17 = vmul.f32 %v11126_v34, %v11126_v34  ;;  %v11153_v51 = vsub.f32 %v13844_v42, %v1374_v43  ;;  %v13848_v1 = vld [vmem:[#allocation91_spill] sm:$0xff] }
 0x333   :  { %13839 = vst [vmem:[#allocation74_spill] sm:$0xff] %v11142_v56  ;;  %13841 = vst [vmem:[#allocation76_spill] sm:$0xff] %v11145_v57  ;;  %v11156_v6 = vsub.f32 %v13846_v8, %v1374_v43  ;;  %v1655_v29 = vadd.f32 %v1654_v49, %v1548_v10  ;;  %v1660_v58 = vadd.f32 %v1659_v32, %v1552_v63  ;;  %v13850_v10 = vld [vmem:[#allocation78_spill] sm:$0xff] }
 0x334   :  { %13843 = vst [vmem:[#allocation90_spill] sm:$0xff] %v11148_v3  ;;  %13845 = vst [vmem:[#allocation75_spill] sm:$0xff] %v11153_v51  ;;  %v1556_v36 = vmul.f32 %v11142_v56, %v11142_v56  ;;  %v1557_v9 = vmul.f32 %v11145_v57, %v11145_v57  ;;  %v1554_v61 = vmul.f32 %v11137_v13, %v11137_v13  ;;  %v13853_v57 = vld [vmem:[#allocation80_spill] sm:$0xff] }
 0x335   :  { %13847 = vst [vmem:[#allocation77_spill] sm:$0xff] %v11156_v6  ;;  %v11165_v5 = vsub.f32 %v13848_v1, %v1374_v43  ;;  %v1558_v11 = vmul.f32 %v11153_v51, %v11153_v51  ;;  %v1656_v35 = vadd.f32 %v1655_v29, %v1549_v22  ;;  %v1661_v8 = vadd.f32 %v1660_v58, %v1553_v17  ;;  %v13855_v1 = vld [vmem:[#allocation79_spill] sm:$0xff]  ;;  %v13857_v58 = vld [vmem:[#allocation81_spill] sm:$0xff] }
 0x336   :  { %v1666_v42 = vadd.f32 %v1557_v9, %v1556_v36  ;;  %v11170_v63 = vsub.f32 %v13850_v10, %v1375_v28  ;;  %v1555_v49 = vmul.f32 %v11148_v3, %v11148_v3  ;;  %v11175_v32 = vsub.f32 %v10720_v16, %v1374_v43 }
 0x337   :  { %13849 = vst [vmem:[#allocation91_spill] sm:$0xff] %v11165_v5  ;;  %v11178_v56 = vsub.f32 %v13853_v57, %v1375_v28  ;;  %v11181_v13 = vsub.f32 %v13855_v1, %v1375_v28  ;;  %1657 = vadd.xlane.f32.xlu1 %v1656_v35  ;;  %v1662_v51 = vadd.f32 %v1661_v8, %v1554_v61  ;;  %v2128_v35 = vld [vmem:[#allocation8] sm:$0xff] }
 0x338   :  { %13851 = vst [vmem:[#allocation78_spill] sm:$0xff] %v11170_v63  ;;  %13852 = vst [vmem:[#allocation111_spill] sm:$0xff] %v11175_v32  ;;  %v1559_v22 = vmul.f32 %v11156_v6, %v11156_v6  ;;  %v1667_v17 = vadd.f32 %v1666_v42, %v1558_v11  ;;  %v1562_v29 = vmul.f32 %v11170_v63, %v11170_v63  ;;  %v13859_v61 = vld [vmem:[#allocation92_spill] sm:$0xff] }
 0x339   :  { %13854 = vst [vmem:[#allocation80_spill] sm:$0xff] %v11178_v56  ;;  %13856 = vst [vmem:[#allocation79_spill] sm:$0xff] %v11181_v13  ;;  %v11188_v36 = vsub.f32 %v13857_v58, %v1375_v28  ;;  %v1563_v16 = vmul.f32 %v11178_v56, %v11178_v56  ;;  %v1663_v57 = vadd.f32 %v1662_v51, %v1555_v49 }
 0x33a   :  { %v1560_v43 = vmul.f32 %v11165_v5, %v11165_v5  ;;  %v1668_v9 = vadd.f32 %v1667_v17, %v1559_v22  ;;  %v11195_v8 = vsub.f32 %v13859_v61, %v1375_v28  ;;  %v1564_v11 = vmul.f32 %v11181_v13, %v11181_v13 }
 0x33b   :  { %13858 = vst [vmem:[#allocation81_spill] sm:$0xff] %v11188_v36  ;;  %v1673_v42 = vadd.f32 %v1563_v16, %v1562_v29  ;;  %1664 = vadd.xlane.f32.xlu0 %v1663_v57  ;;  %v1561_v10 = vmul.f32 %v11175_v32, %v11175_v32  ;;  %v11202_v58 = vsub.f32 %v10726_v31, %v1375_v28  ;;  %v2129_v22 = vand.u32 2147483647, %v2128_v35 }
 0x33c   :  { %13860 = vst [vmem:[#allocation92_spill] sm:$0xff] %v11195_v8  ;;  %v1669_v1 = vadd.f32 %v1668_v9, %v1560_v43  ;;  %v1565_v51 = vmul.f32 %v11188_v36, %v11188_v36  ;;  %v1566_v61 = vmul.f32 %v11195_v8, %v11195_v8 }
 0x33d   :  { %13861 = vst [vmem:[#allocation112_spill] sm:$0xff] %v11202_v58  ;;  %v1674_v49 = vadd.f32 %v1673_v42, %v1564_v11  ;;  %v1567_v29 = vmul.f32 %v11202_v58, %v11202_v58  ;;  %v2131_v57 = vsel %vm2130_vm1, %v2129_v22, -inf }
 0x33e   :  { %v1670_v17 = vadd.f32 %v1669_v1, %v1561_v10 }
 0x33f   :  { %v1675_v13 = vadd.f32 %v1674_v49, %v1565_v51 }
 0x340   :  { %1671 = vadd.xlane.f32.xlu1 %v1670_v17 }
 0x341   :  { %v1676_v16 = vadd.f32 %v1675_v13, %v1566_v61 }
 0x343   :  { %v1677_v43 = vadd.f32 %v1676_v16, %v1567_v29 }
 0x344   :  { %2132 = vmax.xlane.f32.xlu1 %v2131_v57 }
 0x345   :  { %1678 = vadd.xlane.f32.xlu0 %v1677_v43 }
 0x346   :  { %9767 = shalt.err (!%p9764_p10)  }
 0x347   :  { %s9768_s27 = scalar_lea.vmem %s286_s1, 6144  ;;  %p9773_p12 = scmp.lt.s32.totalorder %s286_s1, %s286_s1 }
 0x348   :  { %p9769_p11 = scmp.ne.s32.totalorder %s286_s1, %s9768_s27  ;;  %p9774_p13 = scmp.lt.s32.totalorder %s9768_s27, %s9768_s27 }
 0x34a   :  { %p9775_p0 = por %p9774_p13, %p9773_p12 }
 0x34c   :  { %p9776_p1 = pnand %p9775_p0, %p9769_p11 }
 0x34e   :  { %9779 = shalt.err (!%p9776_p1)  }
 0x34f   :  { %288 = dma.hbm_to_vmem [thread:$0]  %s13422_s14, 6144, %s286_s1, [#allocation7 + $0x4]  ;;  %v1824_v42 = vld [vmem:[#allocation13] sm:$0x3f]  ;;  %v1952_v57 = vld [vmem:[#allocation14] sm:$0x3f] }
 0x350   :  { %v13862_v10 = vld [vmem:[#allocation46_spill] sm:$0xff]  ;;  %v13869_v63 = vld [vmem:[#allocation93_spill] sm:$0xff]  ;;  %v13871_v6 = vld [vmem:[#allocation95_spill] sm:$0xff] }
 0x351   :  { %v11223_v1 = vsub.s32 0, %v13862_v10  ;;  %v11226_v49 = vsub.s32 1, %v13862_v10  ;;  %v11229_v22 = vsub.s32 2, %v13862_v10  ;;  %v11232_v17 = vsub.s32 3, %v13862_v10  ;;  %v13872_v3 = vld [vmem:[#allocation97_spill] sm:$0xff]  ;;  %v13874_v53 = vld [vmem:[#allocation98_spill] sm:$0xff] }
 0x352   :  { %v11235_v29 = vsub.s32 4, %v13862_v10  ;;  %v11238_v16 = vsub.s32 5, %v13862_v10 }
 0x353   :  { %13863 = vst [vmem:[#allocation113_spill] sm:$0xff] %v11223_v1  ;;  %13864 = vst [vmem:[#allocation114_spill] sm:$0xff] %v11226_v49  ;;  %v11262_v8 = vrot.slane %v1952_v57, %v11226_v49  ;;  %v11265_v36 = vrot.slane %v1952_v57, %v11229_v22 }
 0x354   :  { %13865 = vst [vmem:[#allocation115_spill] sm:$0xff] %v11229_v22  ;;  %13866 = vst [vmem:[#allocation116_spill] sm:$0xff] %v11232_v17  ;;  %v11271_v56 = vrot.slane %v1952_v57, %v11235_v29 }
 0x355   :  { %13867 = vst [vmem:[#allocation117_spill] sm:$0xff] %v11235_v29  ;;  %13868 = vst [vmem:[#allocation118_spill] sm:$0xff] %v11238_v16 }
 0x38c   :  { %v1574_v31 = vpop.xlane.xlu1 %1573 }
 0x38d   :  { %v1680_v28 = vmul.f32 0.0013020834, %v1574_v31  ;;  %v11241_v31 = vrot.slane %v1824_v42, %v11223_v1 }
 0x38f   :  { %v1696_v13 = vadd.f32 1e-12, %v1680_v28  ;;  %v1581_v9 = vpop.xlane.xlu0 %1580  ;;  %v11244_v28 = vrot.slane %v1824_v42, %v11226_v49  ;;  %v11278_v49 = vrot.slane %v1952_v57, %v11238_v16 }
 0x390   :  { %v1681_v35 = vmul.f32 0.0013020834, %v1581_v9  ;;  %v11250_v9 = vrot.slane %v1824_v42, %v11232_v17 }
 0x391   :  { %9534 = vrsqrt.f32 %v1696_v13  ;;  %v11247_v13 = vrot.slane %v1824_v42, %v11229_v22 }
 0x392   :  { %v1697_v11 = vadd.f32 1e-12, %v1681_v35 }
 0x394   :  { %9536 = vrsqrt.f32 %v1697_v11  ;;  %v1588_v51 = vpop.xlane.xlu1 %1587  ;;  %v11253_v11 = vrot.slane %v1824_v42, %v11235_v29 }
 0x395   :  { %v1682_v61 = vmul.f32 0.0013020834, %v1588_v51  ;;  %v11256_v51 = vrot.slane %v1824_v42, %v11238_v16 }
 0x397   :  { %v1698_v43 = vadd.f32 1e-12, %v1682_v61  ;;  %v11259_v61 = vrot.slane %v1952_v57, %v11223_v1  ;;  %v13870_v1 = vld [vmem:[#allocation94_spill] sm:$0xff] }
 0x399   :  { %9538 = vrsqrt.f32 %v1698_v43  ;;  %v1595_v35 = vpop.xlane.xlu0 %1594  ;;  %v11268_v43 = vrot.slane %v1952_v57, %v11232_v17  ;;  %v13873_v57 = vld [vmem:[#allocation96_spill] sm:$0xff] }
 0x39a   :  { %v1683_v10 = vmul.f32 0.0013020834, %v1595_v35 }
 0x39b   :  { %v9535_v58 = vpop.eup %9534 }
 0x39c   :  { %v1728_v42 = vmul.f32 %v9535_v58, %v10731_v55  ;;  %v1729_v32 = vmul.f32 %v9535_v58, %v13869_v63  ;;  %v1730_v5 = vmul.f32 %v9535_v58, %v13870_v1  ;;  %v1731_v35 = vmul.f32 %v9535_v58, %v10740_v62 }
 0x39d   :  { %v1732_v22 = vmul.f32 %v9535_v58, %v13871_v6  ;;  %v1733_v34 = vmul.f32 %v9535_v58, %v13872_v3  ;;  %v1699_v17 = vadd.f32 1e-12, %v1683_v10 }
 0x39e   :  { %v9537_v38 = vpop.eup %9536  ;;  %v1856_v29 = vmul.f32 %v11241_v31, %v1728_v42  ;;  %v1857_v4 = vmul.f32 %v11244_v28, %v1729_v32  ;;  %v1858_v55 = vmul.f32 %v11247_v13, %v1730_v5  ;;  %v1859_v63 = vmul.f32 %v11250_v9, %v1731_v35  ;;  %v1602_v42 = vpop.xlane.xlu1 %1601 }
 0x39f   :  { %v1860_v1 = vmul.f32 %v11253_v11, %v1732_v22  ;;  %v1861_v62 = vmul.f32 %v11256_v51, %v1733_v34  ;;  %v1734_v16 = vmul.f32 %v9537_v38, %v13873_v57  ;;  %v1735_v6 = vmul.f32 %v9537_v38, %v13874_v53 }
 0x3a0   :  { %v1984_v3 = vadd.f32 %v11259_v61, %v1856_v29  ;;  %v1985_v58 = vadd.f32 %v11262_v8, %v1857_v4  ;;  %v1986_v10 = vadd.f32 %v11265_v36, %v1858_v55  ;;  %v1987_v32 = vadd.f32 %v11268_v43, %v1859_v63 }
 0x3a1   :  { %v1988_v5 = vadd.f32 %v11271_v56, %v1860_v1  ;;  %v1989_v35 = vadd.f32 %v11278_v49, %v1861_v62  ;;  %v1736_v22 = vmul.f32 %v9537_v38, %v10761_v26  ;;  %v1737_v34 = vmul.f32 %v9537_v38, %v10764_v20 }
 0x3a2   :  { %v1738_v57 = vmul.f32 %v9537_v38, %v10777_v30  ;;  %v1739_v53 = vmul.f32 %v9537_v38, %v10791_v7  ;;  %v1862_v29 = vmul.f32 %v11241_v31, %v1734_v16  ;;  %v1863_v4 = vmul.f32 %v11244_v28, %v1735_v6  ;;  %v13875_v6 = vld [vmem:[#allocation99_spill] sm:$0xff] }
 0x3a3   :  { %v9539_v55 = vpop.eup %9538  ;;  %v1864_v63 = vmul.f32 %v11247_v13, %v1736_v22  ;;  %v1865_v50 = vmul.f32 %v11250_v9, %v1737_v34  ;;  %9540 = vrsqrt.f32 %v1699_v17  ;;  %v1684_v1 = vmul.f32 0.0013020834, %v1602_v42 }
 0x3a4   :  { %v1866_v62 = vmul.f32 %v11253_v11, %v1738_v57  ;;  %v1867_v26 = vmul.f32 %v11256_v51, %v1739_v53  ;;  %v1990_v20 = vadd.f32 %v11259_v61, %v1862_v29  ;;  %v1991_v30 = vadd.f32 %v11262_v8, %v1863_v4 }
 0x3a5   :  { %v1992_v7 = vadd.f32 %v11265_v36, %v1864_v63  ;;  %v1993_v38 = vadd.f32 %v11268_v43, %v1865_v50  ;;  %v1740_v16 = vmul.f32 %v9539_v55, %v10782_v48  ;;  %v1741_v22 = vmul.f32 %v9539_v55, %v13875_v6  ;;  %v1609_v63 = vpop.xlane.xlu0 %1608 }
 0x3a6   :  { %v1994_v34 = vadd.f32 %v11271_v56, %v1866_v62  ;;  %v1995_v17 = vadd.f32 %v11278_v49, %v1867_v26  ;;  %v11314_v42 = vpack.c.bf16 %v1990_v20, %v1984_v3  ;;  %v11316_v57 = vpack.c.bf16 %v1991_v30, %v1985_v58 }
 0x3a7   :  { %v11318_v53 = vpack.c.bf16 %v1992_v7, %v1986_v10  ;;  %v11320_v29 = vpack.c.bf16 %v1993_v38, %v1987_v32  ;;  %v1742_v4 = vmul.f32 %v9539_v55, %v10788_v25  ;;  %v1743_v50 = vmul.f32 %v9539_v55, %v10796_v27 }
 0x3a8   :  { %v11324_v48 = vpack.c.bf16 %v1994_v34, %v1988_v5  ;;  %v11326_v6 = vpack.c.bf16 %v1995_v17, %v1989_v35  ;;  %v1744_v62 = vmul.f32 %v9539_v55, %v10805_v2  ;;  %v1745_v3 = vmul.f32 %v9539_v55, %v10808_v33  ;;  %v1616_v5 = vpop.xlane.xlu1 %1615 }
 0x3a9   :  { %13876 = vst [vmem:[#allocation93_spill] sm:$0xff] %v11318_v53  ;;  %13877 = vst [vmem:[#allocation94_spill] sm:$0xff] %v11320_v29  ;;  %v1868_v58 = vmul.f32 %v11241_v31, %v1740_v16  ;;  %v1869_v10 = vmul.f32 %v11244_v28, %v1741_v22  ;;  %v1870_v32 = vmul.f32 %v11247_v13, %v1742_v4  ;;  %v1700_v27 = vadd.f32 1e-12, %v1684_v1 }
 0x3aa   :  { %13878 = vst [vmem:[#allocation95_spill] sm:$0xff] %v11324_v48  ;;  %13879 = vst [vmem:[#allocation97_spill] sm:$0xff] %v11326_v6  ;;  %v1871_v26 = vmul.f32 %v11250_v9, %v1743_v50  ;;  %v1872_v25 = vmul.f32 %v11253_v11, %v1744_v62  ;;  %v1685_v20 = vmul.f32 0.0013020834, %v1609_v63  ;;  %v1873_v35 = vmul.f32 %v11256_v51, %v1745_v3  ;;  %v13945_v6 = vld [vmem:[#allocation88_spill] sm:$0xff] }
 0x3ab   :  { %v1996_v30 = vadd.f32 %v11259_v61, %v1868_v58  ;;  %v1623_v2 = vpop.xlane.xlu0 %1622  ;;  %v1997_v33 = vadd.f32 %v11262_v8, %v1869_v10  ;;  %v1998_v55 = vadd.f32 %v11265_v36, %v1870_v32  ;;  %9542 = vrsqrt.f32 %v1700_v27 }
 0x3ac   :  { %v1701_v7 = vadd.f32 1e-12, %v1685_v20  ;;  %v1999_v16 = vadd.f32 %v11268_v43, %v1871_v26  ;;  %v2000_v22 = vadd.f32 %v11271_v56, %v1872_v25  ;;  %v1686_v34 = vmul.f32 0.0013020834, %v1616_v5 }
 0x3ad   :  { %v9541_v38 = vpop.eup %9540  ;;  %v1687_v1 = vmul.f32 0.0013020834, %v1623_v2  ;;  %v2001_v5 = vadd.f32 %v11278_v49, %v1873_v35 }
 0x3ae   :  { %v1746_v17 = vmul.f32 %v9541_v38, %v10813_v39  ;;  %v1747_v4 = vmul.f32 %v9541_v38, %v10818_v18  ;;  %v1748_v50 = vmul.f32 %v9541_v38, %v10821_v0  ;;  %v1749_v63 = vmul.f32 %v9541_v38, %v10826_v40 }
 0x3af   :  { %v1750_v62 = vmul.f32 %v9541_v38, %v10837_v44  ;;  %v1751_v3 = vmul.f32 %v9541_v38, %v10848_v24  ;;  %9544 = vrsqrt.f32 %v1701_v7  ;;  %v1702_v58 = vadd.f32 1e-12, %v1686_v34 }
 0x3b0   :  { %v1874_v10 = vmul.f32 %v11241_v31, %v1746_v17  ;;  %v1875_v32 = vmul.f32 %v11244_v28, %v1747_v4  ;;  %v1876_v26 = vmul.f32 %v11247_v13, %v1748_v50  ;;  %v1877_v39 = vmul.f32 %v11250_v9, %v1749_v63  ;;  %v1630_v25 = vpop.xlane.xlu1 %1629 }
 0x3b1   :  { %v1878_v18 = vmul.f32 %v11253_v11, %v1750_v62  ;;  %v1879_v0 = vmul.f32 %v11256_v51, %v1751_v3  ;;  %9546 = vrsqrt.f32 %v1702_v58  ;;  %v1703_v40 = vadd.f32 1e-12, %v1687_v1 }
 0x3b2   :  { %v2002_v44 = vadd.f32 %v11259_v61, %v1874_v10  ;;  %v2003_v24 = vadd.f32 %v11262_v8, %v1875_v32  ;;  %v2004_v27 = vadd.f32 %v11265_v36, %v1876_v26  ;;  %v2005_v20 = vadd.f32 %v11268_v43, %v1877_v39 }
 0x3b3   :  { %v2006_v2 = vadd.f32 %v11271_v56, %v1878_v18  ;;  %v2007_v7 = vadd.f32 %v11278_v49, %v1879_v0  ;;  %v1688_v38 = vmul.f32 0.0013020834, %v1630_v25  ;;  %9548 = vrsqrt.f32 %v1703_v40 }
 0x3b4   :  { %v11360_v34 = vpack.c.bf16 %v2002_v44, %v1996_v30  ;;  %v11362_v17 = vpack.c.bf16 %v2003_v24, %v1997_v33  ;;  %v11364_v1 = vpack.c.bf16 %v2004_v27, %v1998_v55  ;;  %v11366_v4 = vpack.c.bf16 %v2005_v20, %v1999_v16 }
 0x3b5   :  { %v11368_v50 = vpack.c.bf16 %v2006_v2, %v2000_v22  ;;  %v11370_v63 = vpack.c.bf16 %v2007_v7, %v2001_v5  ;;  %v1704_v62 = vadd.f32 1e-12, %v1688_v38  ;;  %v1637_v3 = vpop.xlane.xlu0 %1636  ;;  %v9543_v35 = vpop.eup %9542 }
 0x3b6   :  { %13880 = vst [vmem:[#allocation96_spill] sm:$0xff] %v11364_v1  ;;  %13881 = vst [vmem:[#allocation98_spill] sm:$0xff] %v11366_v4  ;;  %v1752_v58 = vmul.f32 %v9543_v35, %v10842_v14  ;;  %v1753_v10 = vmul.f32 %v9543_v35, %v10845_v47  ;;  %v1754_v30 = vmul.f32 %v9543_v35, %v10853_v60  ;;  %v1689_v22 = vmul.f32 0.0013020834, %v1637_v3 }
 0x3b7   :  { %13882 = vst [vmem:[#allocation99_spill] sm:$0xff] %v11368_v50  ;;  %13883 = vst [vmem:[#allocation119_spill] sm:$0xff] %v11370_v63  ;;  %v1755_v33 = vmul.f32 %v9543_v35, %v10856_v19  ;;  %v1756_v55 = vmul.f32 %v9543_v35, %v10865_v23  ;;  %v1757_v16 = vmul.f32 %v9543_v35, %v10868_v52  ;;  %9550 = vrsqrt.f32 %v1704_v62  ;;  %v13884_v19 = vld [vmem:[#allocation100_spill] sm:$0xff]  ;;  %v13936_v50 = vld [vmem:[#allocation67_spill] sm:$0xff] }
 0x3b8   :  { %v1880_v26 = vmul.f32 %v11241_v31, %v1752_v58  ;;  %v1881_v39 = vmul.f32 %v11244_v28, %v1753_v10  ;;  %v1882_v25 = vmul.f32 %v11247_v13, %v1754_v30  ;;  %v13937_v63 = vld [vmem:[#allocation69_spill] sm:$0xff] }
 0x3b9   :  { %v9545_v32 = vpop.eup %9544  ;;  %v1883_v14 = vmul.f32 %v11250_v9, %v1755_v33  ;;  %v1884_v47 = vmul.f32 %v11253_v11, %v1756_v55  ;;  %v1885_v60 = vmul.f32 %v11256_v51, %v1757_v16 }
 0x3ba   :  { %v1758_v18 = vmul.f32 %v9545_v32, %v13884_v19  ;;  %v1759_v23 = vmul.f32 %v9545_v32, %v10878_v12  ;;  %v2008_v0 = vadd.f32 %v11259_v61, %v1880_v26  ;;  %v2009_v40 = vadd.f32 %v11262_v8, %v1881_v39  ;;  %v13888_v19 = vld [vmem:[#allocation102_spill] sm:$0xff] }
 0x3bb   :  { %v9547_v52 = vpop.eup %9546  ;;  %v2010_v44 = vadd.f32 %v11265_v36, %v1882_v25  ;;  %v2011_v24 = vadd.f32 %v11268_v43, %v1883_v14  ;;  %v2012_v27 = vadd.f32 %v11271_v56, %v1884_v47  ;;  %v2013_v20 = vadd.f32 %v11278_v49, %v1885_v60 }
 0x3bc   :  { %v1760_v5 = vmul.f32 %v9545_v32, %v10881_v46  ;;  %v1761_v2 = vmul.f32 %v9545_v32, %v10886_v21  ;;  %v1762_v7 = vmul.f32 %v9545_v32, %v10897_v15  ;;  %v1763_v12 = vmul.f32 %v9545_v32, %v10900_v59  ;;  %v13885_v32 = vld [vmem:[#allocation101_spill] sm:$0xff] }
 0x3bd   :  { %v1886_v38 = vmul.f32 %v11241_v31, %v1758_v18  ;;  %v1887_v62 = vmul.f32 %v11244_v28, %v1759_v23  ;;  %v1764_v58 = vmul.f32 %v9547_v52, %v10905_v54  ;;  %v1765_v10 = vmul.f32 %v9547_v52, %v10908_v41  ;;  %v9549_v30 = vpop.eup %9548  ;;  %v13889_v23 = vld [vmem:[#allocation103_spill] sm:$0xff] }
 0x3be   :  { %v1888_v3 = vmul.f32 %v11247_v13, %v1760_v5  ;;  %v1889_v35 = vmul.f32 %v11250_v9, %v1761_v2  ;;  %v1890_v46 = vmul.f32 %v11253_v11, %v1762_v7  ;;  %v1891_v21 = vmul.f32 %v11256_v51, %v1763_v12 }
 0x3bf   :  { %v2014_v15 = vadd.f32 %v11259_v61, %v1886_v38  ;;  %v2015_v59 = vadd.f32 %v11262_v8, %v1887_v62  ;;  %v1766_v16 = vmul.f32 %v9547_v52, %v10913_v45  ;;  %v1767_v26 = vmul.f32 %v9547_v52, %v13885_v32  ;;  %v13892_v38 = vld [vmem:[#allocation104_spill] sm:$0xff] }
 0x3c0   :  { %v2016_v33 = vadd.f32 %v11265_v36, %v1888_v3  ;;  %v2017_v55 = vadd.f32 %v11268_v43, %v1889_v35  ;;  %v2018_v54 = vadd.f32 %v11271_v56, %v1890_v46  ;;  %v2019_v41 = vadd.f32 %v11278_v49, %v1891_v21  ;;  %v13894_v46 = vld [vmem:[#allocation49_spill] sm:$0xff] }
 0x3c1   :  { %v11412_v39 = vpack.c.bf16 %v2014_v15, %v2008_v0  ;;  %v11414_v25 = vpack.c.bf16 %v2015_v59, %v2009_v40  ;;  %v9551_v14 = vpop.eup %9550  ;;  %v1768_v18 = vmul.f32 %v9547_v52, %v13888_v19  ;;  %v1769_v5 = vmul.f32 %v9547_v52, %v13889_v23  ;;  %v13895_v15 = vld [vmem:[#allocation82_spill] sm:$0xff] }
 0x3c2   :  { %v11416_v47 = vpack.c.bf16 %v2016_v33, %v2010_v44  ;;  %v11418_v60 = vpack.c.bf16 %v2017_v55, %v2011_v24  ;;  %v11422_v45 = vpack.c.bf16 %v2018_v54, %v2012_v27  ;;  %v11424_v2 = vpack.c.bf16 %v2019_v41, %v2013_v20  ;;  %v1644_v44 = vpop.xlane.xlu1 %1643  ;;  %v13896_v33 = vld [vmem:[#allocation106_spill] sm:$0xff] }
 0x3c3   :  { %v1892_v7 = vmul.f32 %v11241_v31, %v1764_v58  ;;  %v1893_v0 = vmul.f32 %v11244_v28, %v1765_v10  ;;  %v1894_v40 = vmul.f32 %v11247_v13, %v1766_v16  ;;  %v1895_v12 = vmul.f32 %v11250_v9, %v1767_v26  ;;  %v13893_v58 = vld [vmem:[#allocation105_spill] sm:$0xff] }
 0x3c4   :  { %13886 = vst [vmem:[#allocation100_spill] sm:$0xff] %v11416_v47  ;;  %13887 = vst [vmem:[#allocation101_spill] sm:$0xff] %v11418_v60  ;;  %v1770_v24 = vmul.f32 %v9549_v30, %v13892_v38  ;;  %v1771_v62 = vmul.f32 %v9549_v30, %v10938_v37  ;;  %v1705_v3 = vadd.f32 1e-12, %v1689_v22  ;;  %v1896_v52 = vmul.f32 %v11253_v11, %v1768_v18 }
 0x3c5   :  { %13890 = vst [vmem:[#allocation102_spill] sm:$0xff] %v11422_v45  ;;  %13891 = vst [vmem:[#allocation103_spill] sm:$0xff] %v11424_v2  ;;  %v1897_v27 = vmul.f32 %v11256_v51, %v1769_v5  ;;  %v2020_v20 = vadd.f32 %v11259_v61, %v1892_v7  ;;  %v2021_v35 = vadd.f32 %v11262_v8, %v1893_v0  ;;  %v1651_v0 = vpop.xlane.xlu0 %1650  ;;  %v13934_v45 = vld [vmem:[#allocation66_spill] sm:$0xff]  ;;  %v13935_v2 = vld [vmem:[#allocation68_spill] sm:$0xff] }
 0x3c6   :  { %v1772_v10 = vmul.f32 %v9549_v30, %v13893_v58  ;;  %v1773_v21 = vmul.f32 %v9549_v30, %v13894_v46  ;;  %v1774_v59 = vmul.f32 %v9549_v30, %v13895_v15  ;;  %v1775_v55 = vmul.f32 %v9549_v30, %v13896_v33  ;;  %v1658_v26 = vpop.xlane.xlu1 %1657  ;;  %v13903_v33 = vld [vmem:[#allocation50_spill] sm:$0xff] }
 0x3c7   :  { %v2022_v16 = vadd.f32 %v11265_v36, %v1894_v40  ;;  %v2023_v37 = vadd.f32 %v11268_v43, %v1895_v12  ;;  %v1898_v22 = vmul.f32 %v11241_v31, %v1770_v24  ;;  %v1899_v32 = vmul.f32 %v11244_v28, %v1771_v62 }
 0x3c8   :  { %v1900_v54 = vmul.f32 %v11247_v13, %v1772_v10  ;;  %v1901_v41 = vmul.f32 %v11250_v9, %v1773_v21  ;;  %v1902_v19 = vmul.f32 %v11253_v11, %v1774_v59  ;;  %v1903_v18 = vmul.f32 %v11256_v51, %v1775_v55 }
 0x3c9   :  { %v2024_v23 = vadd.f32 %v11271_v56, %v1896_v52  ;;  %v2025_v30 = vadd.f32 %v11278_v49, %v1897_v27  ;;  %v2026_v5 = vadd.f32 %v11259_v61, %v1898_v22  ;;  %v2027_v7 = vadd.f32 %v11262_v8, %v1899_v32  ;;  %v1665_v15 = vpop.xlane.xlu0 %1664  ;;  %v13904_v22 = vld [vmem:[#allocation52_spill] sm:$0xff] }
 0x3ca   :  { %v2028_v40 = vadd.f32 %v11265_v36, %v1900_v54  ;;  %v2029_v12 = vadd.f32 %v11268_v43, %v1901_v41  ;;  %v2030_v38 = vadd.f32 %v11271_v56, %v1902_v19  ;;  %v2031_v24 = vadd.f32 %v11278_v49, %v1903_v18  ;;  %v13906_v41 = vld [vmem:[#allocation53_spill] sm:$0xff] }
 0x3cb   :  { %v11456_v62 = vpack.c.bf16 %v2026_v5, %v2020_v20  ;;  %v11458_v58 = vpack.c.bf16 %v2027_v7, %v2021_v35  ;;  %9552 = vrsqrt.f32 %v1705_v3  ;;  %v1690_v59 = vmul.f32 0.0013020834, %v1644_v44  ;;  %v13905_v20 = vld [vmem:[#allocation51_spill] sm:$0xff] }
 0x3cc   :  { %v11460_v10 = vpack.c.bf16 %v2028_v40, %v2022_v16  ;;  %v11462_v27 = vpack.c.bf16 %v2029_v12, %v2023_v37  ;;  %v11464_v46 = vpack.c.bf16 %v2030_v38, %v2024_v23  ;;  %v11466_v21 = vpack.c.bf16 %v2031_v24, %v2025_v30  ;;  %v13907_v37 = vld [vmem:[#allocation83_spill] sm:$0xff] }
 0x3cd   :  { %13897 = vst [vmem:[#allocation104_spill] sm:$0xff] %v11456_v62  ;;  %13898 = vst [vmem:[#allocation105_spill] sm:$0xff] %v11458_v58  ;;  %v1672_v52 = vpop.xlane.xlu1 %1671  ;;  %v1776_v55 = vmul.f32 %v9551_v14, %v13903_v33  ;;  %v1777_v32 = vmul.f32 %v9551_v14, %v13904_v22  ;;  %v1778_v54 = vmul.f32 %v9551_v14, %v13905_v20  ;;  %v1706_v16 = vadd.f32 1e-12, %v1690_v59  ;;  %v13908_v23 = vld [vmem:[#allocation107_spill] sm:$0xff] }
 0x3ce   :  { %13899 = vst [vmem:[#allocation49_spill] sm:$0xff] %v11460_v10  ;;  %13900 = vst [vmem:[#allocation82_spill] sm:$0xff] %v11462_v27  ;;  %v1779_v19 = vmul.f32 %v9551_v14, %v13906_v41  ;;  %v1691_v18 = vmul.f32 0.0013020834, %v1651_v0  ;;  %v1780_v5 = vmul.f32 %v9551_v14, %v13907_v37  ;;  %v1781_v7 = vmul.f32 %v9551_v14, %v13908_v23  ;;  %v13911_v23 = vld [vmem:[#allocation56_spill] sm:$0xff] }
 0x3cf   :  { %13901 = vst [vmem:[#allocation106_spill] sm:$0xff] %v11464_v46  ;;  %13902 = vst [vmem:[#allocation120_spill] sm:$0xff] %v11466_v21  ;;  %v1692_v30 = vmul.f32 0.0013020834, %v1658_v26  ;;  %v1693_v40 = vmul.f32 0.0013020834, %v1665_v15  ;;  %9554 = vrsqrt.f32 %v1706_v16  ;;  %v1904_v38 = vmul.f32 %v11241_v31, %v1776_v55 }
 0x3d0   :  { %v1707_v44 = vadd.f32 1e-12, %v1691_v18  ;;  %v1694_v3 = vmul.f32 0.0013020834, %v1672_v52  ;;  %v1905_v24 = vmul.f32 %v11244_v28, %v1777_v32  ;;  %v1906_v33 = vmul.f32 %v11247_v13, %v1778_v54  ;;  %v13910_v18 = vld [vmem:[#allocation54_spill] sm:$0xff]  ;;  %v13926_v46 = vld [vmem:[#allocation85_spill] sm:$0xff] }
 0x3d1   :  { %v2133_v35 = vpop.xlane.xlu1 %2132  ;;  %v1708_v22 = vadd.f32 1e-12, %v1692_v30  ;;  %v1907_v0 = vmul.f32 %v11250_v9, %v1779_v19  ;;  %v1709_v59 = vadd.f32 1e-12, %v1693_v40  ;;  %v13555_v41 = vmov 0.0   ;;  %v13927_v21 = vld [vmem:[#allocation109_spill] sm:$0xff] }
 0x3d2   :  { %v1679_v12 = vpop.xlane.xlu0 %1678  ;;  %vm2134_vm14 = vcmp.gt.f32.partialorder %v2133_v35, 0.0  ;;  %9556 = vrsqrt.f32 %v1707_v44  ;;  %v1908_v26 = vmul.f32 %v11253_v11, %v1780_v5  ;;  %v1710_v52 = vadd.f32 1e-12, %v1694_v3  ;;  %v13912_v5 = vld [vmem:[#allocation55_spill] sm:$0xff]  ;;  %v13914_v3 = vld [vmem:[#allocation84_spill] sm:$0xff] }
 0x3d3   :  { %v1695_v20 = vmul.f32 0.0013020834, %v1679_v12  ;;  %v11479_v14 = vsel %vm2134_vm14, 1.0, %v13555_v41  ;;  %v1909_v15 = vmul.f32 %v11256_v51, %v1781_v7  ;;  %v2032_v55 = vadd.f32 %v11259_v61, %v1904_v38  ;;  %v13913_v12 = vld [vmem:[#allocation57_spill] sm:$0xff] }
 0x3d4   :  { %13909 = vst [vmem:[#allocation50_spill] sm:$0xff] %v11479_v14  ;;  %v2033_v32 = vadd.f32 %v11262_v8, %v1905_v24  ;;  %9558 = vrsqrt.f32 %v1708_v22  ;;  %v2034_v35 = vadd.f32 %v11265_v36, %v1906_v33  ;;  %v2035_v19 = vadd.f32 %v11268_v43, %v1907_v0  ;;  %v13915_v24 = vld [vmem:[#allocation108_spill] sm:$0xff] }
 0x3d5   :  { %v9553_v54 = vpop.eup %9552  ;;  %9560 = vrsqrt.f32 %v1709_v59  ;;  %v1711_v16 = vadd.f32 1e-12, %v1695_v20  ;;  %v2036_v44 = vadd.f32 %v11271_v56, %v1908_v26 }
 0x3d6   :  { %v1782_v37 = vmul.f32 %v9553_v54, %v13910_v18  ;;  %v1783_v30 = vmul.f32 %v9553_v54, %v13911_v23  ;;  %v1784_v40 = vmul.f32 %v9553_v54, %v13912_v5  ;;  %v1785_v7 = vmul.f32 %v9553_v54, %v13913_v12 }
 0x3d7   :  { %v1786_v38 = vmul.f32 %v9553_v54, %v13914_v3  ;;  %v1787_v22 = vmul.f32 %v9553_v54, %v13915_v24  ;;  %9562 = vrsqrt.f32 %v1710_v52  ;;  %v2037_v23 = vadd.f32 %v11278_v49, %v1909_v15  ;;  %v13917_v15 = vld [vmem:[#allocation60_spill] sm:$0xff] }
 0x3d8   :  { %v1910_v33 = vmul.f32 %v11241_v31, %v1782_v37  ;;  %v1911_v0 = vmul.f32 %v11244_v28, %v1783_v30  ;;  %v1912_v59 = vmul.f32 %v11247_v13, %v1784_v40  ;;  %v1913_v20 = vmul.f32 %v11250_v9, %v1785_v7  ;;  %v13916_v7 = vld [vmem:[#allocation58_spill] sm:$0xff] }
 0x3d9   :  { %v9555_v18 = vpop.eup %9554  ;;  %v1914_v5 = vmul.f32 %v11253_v11, %v1786_v38  ;;  %v1915_v26 = vmul.f32 %v11256_v51, %v1787_v22  ;;  %9564 = vrsqrt.f32 %v1711_v16 }
 0x3da   :  { %v2038_v12 = vadd.f32 %v11259_v61, %v1910_v33  ;;  %v2039_v52 = vadd.f32 %v11262_v8, %v1911_v0  ;;  %v2040_v54 = vadd.f32 %v11265_v36, %v1912_v59  ;;  %v2041_v37 = vadd.f32 %v11268_v43, %v1913_v20  ;;  %v13924_v20 = vld [vmem:[#allocation59_spill] sm:$0xff] }
 0x3db   :  { %v2042_v30 = vadd.f32 %v11271_v56, %v1914_v5  ;;  %v2043_v40 = vadd.f32 %v11278_v49, %v1915_v26  ;;  %v1788_v3 = vmul.f32 %v9555_v18, %v13916_v7  ;;  %v1789_v24 = vmul.f32 %v9555_v18, %v13917_v15  ;;  %v13925_v26 = vld [vmem:[#allocation61_spill] sm:$0xff] }
 0x3dc   :  { %v9557_v38 = vpop.eup %9556  ;;  %v11509_v41 = vpack.c.bf16 %v2038_v12, %v2032_v55  ;;  %v11511_v16 = vpack.c.bf16 %v2039_v52, %v2033_v32  ;;  %v11513_v22 = vpack.c.bf16 %v2040_v54, %v2034_v35  ;;  %v11515_v33 = vpack.c.bf16 %v2041_v37, %v2035_v19  ;;  %v13929_v54 = vld [vmem:[#allocation64_spill] sm:$0xff] }
 0x3dd   :  { %v11517_v0 = vpack.c.bf16 %v2042_v30, %v2036_v44  ;;  %v11519_v59 = vpack.c.bf16 %v2043_v40, %v2037_v23  ;;  %v1790_v5 = vmul.f32 %v9555_v18, %v13924_v20  ;;  %v1791_v14 = vmul.f32 %v9555_v18, %v13925_v26  ;;  %v13928_v23 = vld [vmem:[#allocation62_spill] sm:$0xff]  ;;  %v13930_v20 = vld [vmem:[#allocation63_spill] sm:$0xff] }
 0x3de   :  { %13918 = vst [vmem:[#allocation52_spill] sm:$0xff] %v11509_v41  ;;  %13919 = vst [vmem:[#allocation51_spill] sm:$0xff] %v11511_v16  ;;  %v9559_v7 = vpop.eup %9558  ;;  %v1792_v15 = vmul.f32 %v9555_v18, %v13926_v46  ;;  %v1793_v55 = vmul.f32 %v9555_v18, %v13927_v21  ;;  %v1916_v32 = vmul.f32 %v11241_v31, %v1788_v3 }
 0x3df   :  { %13920 = vst [vmem:[#allocation53_spill] sm:$0xff] %v11513_v22  ;;  %13921 = vst [vmem:[#allocation83_spill] sm:$0xff] %v11515_v33  ;;  %v1917_v35 = vmul.f32 %v11244_v28, %v1789_v24  ;;  %v9561_v12 = vpop.eup %9560  ;;  %v1918_v19 = vmul.f32 %v11247_v13, %v1790_v5  ;;  %v1919_v44 = vmul.f32 %v11250_v9, %v1791_v14  ;;  %v13931_v5 = vld [vmem:[#allocation65_spill] sm:$0xff] }
 0x3e0   :  { %13922 = vst [vmem:[#allocation107_spill] sm:$0xff] %v11517_v0  ;;  %13923 = vst [vmem:[#allocation54_spill] sm:$0xff] %v11519_v59  ;;  %v1794_v52 = vmul.f32 %v9557_v38, %v13928_v23  ;;  %v1795_v37 = vmul.f32 %v9557_v38, %v13929_v54  ;;  %v1920_v30 = vmul.f32 %v11253_v11, %v1792_v15  ;;  %v13932_v54 = vld [vmem:[#allocation86_spill] sm:$0xff] }
 0x3e1   :  { %v1921_v40 = vmul.f32 %v11256_v51, %v1793_v55  ;;  %v2044_v46 = vadd.f32 %v11259_v61, %v1916_v32  ;;  %v2045_v21 = vadd.f32 %v11262_v8, %v1917_v35  ;;  %v11535_v18 = vpop.eup %9562  ;;  %v2046_v3 = vadd.f32 %v11265_v36, %v1918_v19  ;;  %v13933_v0 = vld [vmem:[#allocation110_spill] sm:$0xff] }
 0x3e2   :  { %v2047_v24 = vadd.f32 %v11268_v43, %v1919_v44  ;;  %v1796_v14 = vmul.f32 %v9557_v38, %v13930_v20  ;;  %v1797_v26 = vmul.f32 %v9557_v38, %v13931_v5  ;;  %v2048_v23 = vadd.f32 %v11271_v56, %v1920_v30 }
 0x3e3   :  { %v2049_v15 = vadd.f32 %v11278_v49, %v1921_v40  ;;  %v1798_v55 = vmul.f32 %v9557_v38, %v13932_v54  ;;  %v1799_v32 = vmul.f32 %v9557_v38, %v13933_v0  ;;  %v11545_v59 = vpop.eup %9564  ;;  %v1922_v35 = vmul.f32 %v11241_v31, %v1794_v52 }
 0x3e4   :  { %v1923_v19 = vmul.f32 %v11244_v28, %v1795_v37  ;;  %v1924_v44 = vmul.f32 %v11247_v13, %v1796_v14  ;;  %v1925_v20 = vmul.f32 %v11250_v9, %v1797_v26  ;;  %v1800_v40 = vmul.f32 %v9559_v7, %v13934_v45 }
 0x3e5   :  { %v1926_v5 = vmul.f32 %v11253_v11, %v1798_v55  ;;  %v1927_v30 = vmul.f32 %v11256_v51, %v1799_v32  ;;  %v1801_v54 = vmul.f32 %v9559_v7, %v13935_v2  ;;  %v2050_v38 = vadd.f32 %v11259_v61, %v1922_v35 }
 0x3e6   :  { %v2051_v0 = vadd.f32 %v11262_v8, %v1923_v19  ;;  %v2052_v52 = vadd.f32 %v11265_v36, %v1924_v44  ;;  %v2053_v37 = vadd.f32 %v11268_v43, %v1925_v20  ;;  %v1802_v55 = vmul.f32 %v9559_v7, %v13936_v50  ;;  %v13944_v20 = vld [vmem:[#allocation87_spill] sm:$0xff] }
 0x3e7   :  { %v2054_v14 = vadd.f32 %v11271_v56, %v1926_v5  ;;  %v2055_v26 = vadd.f32 %v11278_v49, %v1927_v30  ;;  %v1803_v32 = vmul.f32 %v9559_v7, %v13937_v63  ;;  %v11563_v48 = vpack.c.bf16 %v2050_v38, %v2044_v46 }
 0x3e8   :  { %v11565_v45 = vpack.c.bf16 %v2051_v0, %v2045_v21  ;;  %v11567_v2 = vpack.c.bf16 %v2052_v52, %v2046_v3  ;;  %v11569_v35 = vpack.c.bf16 %v2053_v37, %v2047_v24  ;;  %v1804_v5 = vmul.f32 %v9559_v7, %v13944_v20  ;;  %v13950_v20 = vld [vmem:[#allocation89_spill] sm:$0xff] }
 0x3e9   :  { %13938 = vst [vmem:[#allocation56_spill] sm:$0xff] %v11563_v48  ;;  %v11571_v19 = vpack.c.bf16 %v2054_v14, %v2048_v23  ;;  %v11573_v44 = vpack.c.bf16 %v2055_v26, %v2049_v15  ;;  %v1805_v30 = vmul.f32 %v9559_v7, %v13945_v6  ;;  %v1928_v50 = vmul.f32 %v11241_v31, %v1800_v40  ;;  %v13946_v23 = vld [vmem:[#allocation70_spill] sm:$0xff]  ;;  %v13947_v15 = vld [vmem:[#allocation72_spill] sm:$0xff]  ;;  %v13948_v14 = vld [vmem:[#allocation71_spill] sm:$0xff] }
 0x3ea   :  { %13939 = vst [vmem:[#allocation55_spill] sm:$0xff] %v11565_v45  ;;  %13940 = vst [vmem:[#allocation57_spill] sm:$0xff] %v11567_v2  ;;  %v1929_v63 = vmul.f32 %v11244_v28, %v1801_v54  ;;  %v1930_v46 = vmul.f32 %v11247_v13, %v1802_v55  ;;  %v1931_v21 = vmul.f32 %v11250_v9, %v1803_v32  ;;  %v13949_v55 = vld [vmem:[#allocation73_spill] sm:$0xff]  ;;  %v13961_v2 = vld [vmem:[#allocation111_spill] sm:$0xff] }
 0x3eb   :  { %13941 = vst [vmem:[#allocation84_spill] sm:$0xff] %v11569_v35  ;;  %13942 = vst [vmem:[#allocation108_spill] sm:$0xff] %v11571_v19  ;;  %v1932_v3 = vmul.f32 %v11253_v11, %v1804_v5  ;;  %v1933_v24 = vmul.f32 %v11256_v51, %v1805_v30  ;;  %v1806_v38 = vmul.f32 %v9561_v12, %v13946_v23  ;;  %v13951_v30 = vld [vmem:[#allocation90_spill] sm:$0xff]  ;;  %v13955_v19 = vld [vmem:[#allocation77_spill] sm:$0xff] }
 0x3ec   :  { %13943 = vst [vmem:[#allocation58_spill] sm:$0xff] %v11573_v44  ;;  %v1807_v0 = vmul.f32 %v9561_v12, %v13947_v15  ;;  %v2056_v52 = vadd.f32 %v11259_v61, %v1928_v50  ;;  %v2057_v6 = vadd.f32 %v11262_v8, %v1929_v63  ;;  %v2058_v7 = vadd.f32 %v11265_v36, %v1930_v46  ;;  %v13952_v15 = vld [vmem:[#allocation74_spill] sm:$0xff] }
 0x3ed   :  { %v2059_v40 = vadd.f32 %v11268_v43, %v1931_v21  ;;  %v2060_v54 = vadd.f32 %v11271_v56, %v1932_v3  ;;  %v2061_v37 = vadd.f32 %v11278_v49, %v1933_v24  ;;  %v1808_v26 = vmul.f32 %v9561_v12, %v13948_v14  ;;  %v13953_v24 = vld [vmem:[#allocation76_spill] sm:$0xff] }
 0x3ee   :  { %v1809_v32 = vmul.f32 %v9561_v12, %v13949_v55  ;;  %v1810_v5 = vmul.f32 %v9561_v12, %v13950_v20  ;;  %v1811_v23 = vmul.f32 %v9561_v12, %v13951_v30  ;;  %v1934_v50 = vmul.f32 %v11241_v31, %v1806_v38  ;;  %v13954_v30 = vld [vmem:[#allocation75_spill] sm:$0xff] }
 0x3ef   :  { %v1935_v63 = vmul.f32 %v11244_v28, %v1807_v0  ;;  %v1936_v46 = vmul.f32 %v11247_v13, %v1808_v26  ;;  %v1812_v3 = vmul.f32 %v11535_v18, %v13952_v15  ;;  %v1813_v14 = vmul.f32 %v11535_v18, %v13953_v24 }
 0x3f0   :  { %v1937_v21 = vmul.f32 %v11250_v9, %v1809_v32  ;;  %v1938_v55 = vmul.f32 %v11253_v11, %v1810_v5  ;;  %v1939_v20 = vmul.f32 %v11256_v51, %v1811_v23  ;;  %v2062_v12 = vadd.f32 %v11259_v61, %v1934_v50 }
 0x3f1   :  { %v2063_v38 = vadd.f32 %v11262_v8, %v1935_v63  ;;  %v2064_v0 = vadd.f32 %v11265_v36, %v1936_v46  ;;  %v1814_v32 = vmul.f32 %v11535_v18, %v13954_v30  ;;  %v1815_v15 = vmul.f32 %v11535_v18, %v13955_v19  ;;  %v13960_v46 = vld [vmem:[#allocation91_spill] sm:$0xff] }
 0x3f2   :  { %v2065_v26 = vadd.f32 %v11268_v43, %v1937_v21  ;;  %v2066_v24 = vadd.f32 %v11271_v56, %v1938_v55  ;;  %v2067_v5 = vadd.f32 %v11278_v49, %v1939_v20  ;;  %v11615_v44 = vpack.c.bf16 %v2062_v12, %v2056_v52  ;;  %v13965_v12 = vld [vmem:[#allocation80_spill] sm:$0xff] }
 0x3f3   :  { %v11617_v23 = vpack.c.bf16 %v2063_v38, %v2057_v6  ;;  %v11619_v50 = vpack.c.bf16 %v2064_v0, %v2058_v7  ;;  %v1816_v21 = vmul.f32 %v11535_v18, %v13960_v46  ;;  %v1817_v30 = vmul.f32 %v11535_v18, %v13961_v2  ;;  %v13967_v0 = vld [vmem:[#allocation81_spill] sm:$0xff] }
 0x3f4   :  { %13956 = vst [vmem:[#allocation60_spill] sm:$0xff] %v11615_v44  ;;  %v11621_v63 = vpack.c.bf16 %v2065_v26, %v2059_v40  ;;  %v11627_v35 = vpack.c.bf16 %v2066_v24, %v2060_v54  ;;  %v11629_v19 = vpack.c.bf16 %v2067_v5, %v2061_v37  ;;  %v1940_v55 = vmul.f32 %v11241_v31, %v1812_v3  ;;  %v13964_v40 = vld [vmem:[#allocation78_spill] sm:$0xff]  ;;  %v13966_v3 = vld [vmem:[#allocation79_spill] sm:$0xff]  ;;  %v13969_v24 = vld [vmem:[#allocation112_spill] sm:$0xff] }
 0x3f5   :  { %13957 = vst [vmem:[#allocation59_spill] sm:$0xff] %v11617_v23  ;;  %13958 = vst [vmem:[#allocation61_spill] sm:$0xff] %v11619_v50  ;;  %v1941_v52 = vmul.f32 %v11244_v28, %v1813_v14  ;;  %v1942_v6 = vmul.f32 %v11247_v13, %v1814_v32  ;;  %v1943_v7 = vmul.f32 %v11250_v9, %v1815_v15  ;;  %v13968_v32 = vld [vmem:[#allocation92_spill] sm:$0xff] }
 0x3f6   :  { %13959 = vst [vmem:[#allocation85_spill] sm:$0xff] %v11621_v63  ;;  %13962 = vst [vmem:[#allocation109_spill] sm:$0xff] %v11627_v35  ;;  %v1818_v20 = vmul.f32 %v11545_v59, %v13964_v40  ;;  %v1819_v38 = vmul.f32 %v11545_v59, %v13965_v12  ;;  %v1944_v18 = vmul.f32 %v11253_v11, %v1816_v21 }
 0x3f7   :  { %13963 = vst [vmem:[#allocation62_spill] sm:$0xff] %v11629_v19  ;;  %v1945_v2 = vmul.f32 %v11256_v51, %v1817_v30  ;;  %v2068_v54 = vadd.f32 %v11259_v61, %v1940_v55  ;;  %v2069_v37 = vadd.f32 %v11262_v8, %v1941_v52  ;;  %v1820_v14 = vmul.f32 %v11545_v59, %v13966_v3 }
 0x3f8   :  { %v1821_v26 = vmul.f32 %v11545_v59, %v13967_v0  ;;  %v1822_v15 = vmul.f32 %v11545_v59, %v13968_v32  ;;  %v1823_v5 = vmul.f32 %v11545_v59, %v13969_v24  ;;  %v2070_v46 = vadd.f32 %v11265_v36, %v1942_v6 }
 0x3f9   :  { %v2071_v21 = vadd.f32 %v11268_v43, %v1943_v7  ;;  %v1946_v30 = vmul.f32 %v11241_v31, %v1818_v20  ;;  %v1947_v55 = vmul.f32 %v11244_v28, %v1819_v38  ;;  %v1948_v52 = vmul.f32 %v11247_v13, %v1820_v14 }
 0x3fa   :  { %v1949_v40 = vmul.f32 %v11250_v9, %v1821_v26  ;;  %v1950_v12 = vmul.f32 %v11253_v11, %v1822_v15  ;;  %v1951_v3 = vmul.f32 %v11256_v51, %v1823_v5  ;;  %v2072_v0 = vadd.f32 %v11271_v56, %v1944_v18 }
 0x3fb   :  { %v2073_v59 = vadd.f32 %v11278_v49, %v1945_v2  ;;  %v2074_v6 = vadd.f32 %v11259_v61, %v1946_v30  ;;  %v2075_v7 = vadd.f32 %v11262_v8, %v1947_v55  ;;  %v2076_v31 = vadd.f32 %v11265_v36, %v1948_v52 }
 0x3fc   :  { %v2077_v28 = vadd.f32 %v11268_v43, %v1949_v40  ;;  %v2078_v13 = vadd.f32 %v11271_v56, %v1950_v12  ;;  %v2079_v9 = vadd.f32 %v11278_v49, %v1951_v3 }
 0x3fd   :  { %v11667_v20 = vpack.c.bf16 %v2074_v6, %v2068_v54  ;;  %v11669_v11 = vpack.c.bf16 %v2075_v7, %v2069_v37  ;;  %v11671_v51 = vpack.c.bf16 %v2076_v31, %v2070_v46 }
 0x3fe   :  { %v11673_v38 = vpack.c.bf16 %v2077_v28, %v2071_v21  ;;  %v11675_v18 = vpack.c.bf16 %v2078_v13, %v2072_v0  ;;  %v11677_v61 = vpack.c.bf16 %v2079_v9, %v2073_v59 }
 0x3ff   :  { %13970 = vst [vmem:[#allocation64_spill] sm:$0xff] %v11667_v20  ;;  %13971 = vst [vmem:[#allocation63_spill] sm:$0xff] %v11669_v11 }
 0x400   :  { %13972 = vst [vmem:[#allocation65_spill] sm:$0xff] %v11671_v51  ;;  %13973 = vst [vmem:[#allocation86_spill] sm:$0xff] %v11673_v38 }
 0x401   :  { %13974 = vst [vmem:[#allocation110_spill] sm:$0xff] %v11675_v18  ;;  %13975 = vst [vmem:[#allocation66_spill] sm:$0xff] %v11677_v61 }
 0x402   :  { %9812 = dma.done.wait [#allocation7], 24576 }
 0x403   :  { %9813 = vsyncadd [#allocation7], 4294942720  ;;  %2365 = vmatprep.mubr.bf16.mxu1 %v11316_v57  ;;  %2704 = vmatprep.mubr.bf16.mxu0 %v11316_v57  ;;  %v2142_v56 = vld [vmem:[#allocation2 + $0x8] sm:$0xff]  ;;  %v2144_v36 = vld [vmem:[#allocation2 + $0x18] sm:$0xff] }
 0x404   :  { %v2141_v8 = vld [vmem:[#allocation2] sm:$0xff]  ;;  %2333 = vmatprep.subr.bf16.mxu1 %v2142_v56  ;;  %2672 = vmatprep.subr.bf16.mxu0 %v2144_v36  ;;  %v2143_v49 = vld [vmem:[#allocation2 + $0x10] sm:$0xff]  ;;  %v2146_v43 = vld [vmem:[#allocation2 + $0x28] sm:$0xff] }
 0x405   :  { %v2148_v2 = vld [vmem:[#allocation2 + $0x38] sm:$0xff]  ;;  %2334 = vmatpush1.bf16.msra.mxu1 %v2141_v8  ;;  %2673 = vmatpush1.bf16.msra.mxu0 %v2143_v49  ;;  %v2145_v54 = vld [vmem:[#allocation2 + $0x20] sm:$0xff]  ;;  %v2147_v37 = vld [vmem:[#allocation2 + $0x30] sm:$0xff] }
 0x406   :  { %2335 = vmatprep.subr.bf16.mxu1 %v2146_v43  ;;  %2674 = vmatprep.subr.bf16.mxu0 %v2148_v2  ;;  %v2150_v14 = vld [vmem:[#allocation2 + $0x48] sm:$0xff]  ;;  %v2152_v26 = vld [vmem:[#allocation2 + $0x58] sm:$0xff]  ;;  %v2149_v32 = vld [vmem:[#allocation2 + $0x40] sm:$0xff] }
 0x407   :  { %v2151_v15 = vld [vmem:[#allocation2 + $0x50] sm:$0xff]  ;;  %v2154_v24 = vld [vmem:[#allocation2 + $0x68] sm:$0xff]  ;;  %v2156_v5 = vld [vmem:[#allocation2 + $0x78] sm:$0xff] }
 0x408   :  { %v2153_v46 = vld [vmem:[#allocation2 + $0x60] sm:$0xff]  ;;  %v2155_v21 = vld [vmem:[#allocation2 + $0x70] sm:$0xff]  ;;  %v2158_v30 = vld [vmem:[#allocation2 + $0x88] sm:$0xff] }
 0x409   :  { %2336 = vmatpush1.bf16.msra.mxu1 %v2145_v54  ;;  %2675 = vmatpush1.bf16.msra.mxu0 %v2147_v37  ;;  %v2160_v55 = vld [vmem:[#allocation2 + $0x98] sm:$0xff]  ;;  %v2157_v52 = vld [vmem:[#allocation2 + $0x80] sm:$0xff]  ;;  %v2159_v40 = vld [vmem:[#allocation2 + $0x90] sm:$0xff] }
 0x40a   :  { %2337 = vmatprep.subr.bf16.mxu1 %v2150_v14  ;;  %2676 = vmatprep.subr.bf16.mxu0 %v2152_v26  ;;  %v2162_v12 = vld [vmem:[#allocation2 + $0xa8] sm:$0xff]  ;;  %v2164_v3 = vld [vmem:[#allocation2 + $0xb8] sm:$0xff]  ;;  %v2161_v0 = vld [vmem:[#allocation2 + $0xa0] sm:$0xff] }
 0x40b   :  { %v2163_v59 = vld [vmem:[#allocation2 + $0xb0] sm:$0xff]  ;;  %v2166_v6 = vld [vmem:[#allocation2 + $0xc8] sm:$0xff]  ;;  %v2168_v7 = vld [vmem:[#allocation2 + $0xd8] sm:$0xff] }
 0x40c   :  { %v2165_v31 = vld [vmem:[#allocation2 + $0xc0] sm:$0xff]  ;;  %v2167_v28 = vld [vmem:[#allocation2 + $0xd0] sm:$0xff]  ;;  %v2170_v13 = vld [vmem:[#allocation2 + $0xe8] sm:$0xff] }
 0x40d   :  { %2338 = vmatpush1.bf16.msra.mxu1 %v2149_v32  ;;  %2677 = vmatpush1.bf16.msra.mxu0 %v2151_v15  ;;  %v2172_v9 = vld [vmem:[#allocation2 + $0xf8] sm:$0xff]  ;;  %v2169_v56 = vld [vmem:[#allocation2 + $0xe0] sm:$0xff]  ;;  %v2171_v36 = vld [vmem:[#allocation2 + $0xf0] sm:$0xff] }
 0x40e   :  { %2339 = vmatprep.subr.bf16.mxu1 %v2154_v24  ;;  %2678 = vmatprep.subr.bf16.mxu0 %v2156_v5  ;;  %v2174_v8 = vld [vmem:[#allocation2 + $0x108] sm:$0xff]  ;;  %v2176_v49 = vld [vmem:[#allocation2 + $0x118] sm:$0xff]  ;;  %v2173_v43 = vld [vmem:[#allocation2 + $0x100] sm:$0xff] }
 0x40f   :  { %v2175_v2 = vld [vmem:[#allocation2 + $0x110] sm:$0xff]  ;;  %v2178_v54 = vld [vmem:[#allocation2 + $0x128] sm:$0xff]  ;;  %v2180_v37 = vld [vmem:[#allocation2 + $0x138] sm:$0xff] }
 0x410   :  { %v2177_v14 = vld [vmem:[#allocation2 + $0x120] sm:$0xff]  ;;  %v2179_v26 = vld [vmem:[#allocation2 + $0x130] sm:$0xff]  ;;  %v2182_v32 = vld [vmem:[#allocation2 + $0x148] sm:$0xff] }
 0x411   :  { %2340 = vmatpush1.bf16.msra.mxu1 %v2153_v46  ;;  %2679 = vmatpush1.bf16.msra.mxu0 %v2155_v21  ;;  %v2184_v15 = vld [vmem:[#allocation2 + $0x158] sm:$0xff]  ;;  %v2181_v24 = vld [vmem:[#allocation2 + $0x140] sm:$0xff]  ;;  %v2183_v5 = vld [vmem:[#allocation2 + $0x150] sm:$0xff] }
 0x412   :  { %2341 = vmatprep.subr.bf16.mxu1 %v2158_v30  ;;  %2680 = vmatprep.subr.bf16.mxu0 %v2160_v55  ;;  %v2186_v46 = vld [vmem:[#allocation2 + $0x168] sm:$0xff]  ;;  %v2188_v21 = vld [vmem:[#allocation2 + $0x178] sm:$0xff]  ;;  %v2185_v30 = vld [vmem:[#allocation2 + $0x160] sm:$0xff] }
 0x413   :  { %v2187_v55 = vld [vmem:[#allocation2 + $0x170] sm:$0xff] }
 0x415   :  { %2342 = vmatpush1.bf16.msra.mxu1 %v2157_v52  ;;  %2681 = vmatpush1.bf16.msra.mxu0 %v2159_v40  ;;  %v2190_v52 = vld [vmem:[#allocation2 + $0x188] sm:$0xff]  ;;  %v2192_v40 = vld [vmem:[#allocation2 + $0x198] sm:$0xff] }
 0x416   :  { %2343 = vmatprep.subr.bf16.mxu1 %v2162_v12  ;;  %2682 = vmatprep.subr.bf16.mxu0 %v2164_v3  ;;  %v2189_v12 = vld [vmem:[#allocation2 + $0x180] sm:$0xff]  ;;  %v2191_v3 = vld [vmem:[#allocation2 + $0x190] sm:$0xff] }
 0x419   :  { %2344 = vmatpush1.bf16.msra.mxu1 %v2161_v0  ;;  %2683 = vmatpush1.bf16.msra.mxu0 %v2163_v59  ;;  %v2194_v0 = vld [vmem:[#allocation2 + $0x1a8] sm:$0xff]  ;;  %v2196_v59 = vld [vmem:[#allocation2 + $0x1b8] sm:$0xff] }
 0x41a   :  { %2345 = vmatprep.subr.bf16.mxu1 %v2166_v6  ;;  %2684 = vmatprep.subr.bf16.mxu0 %v2168_v7  ;;  %v2193_v6 = vld [vmem:[#allocation2 + $0x1a0] sm:$0xff]  ;;  %v2195_v7 = vld [vmem:[#allocation2 + $0x1b0] sm:$0xff] }
 0x41d   :  { %2346 = vmatpush1.bf16.msra.mxu1 %v2165_v31  ;;  %2685 = vmatpush1.bf16.msra.mxu0 %v2167_v28  ;;  %v2198_v31 = vld [vmem:[#allocation2 + $0x1c8] sm:$0xff]  ;;  %v2200_v28 = vld [vmem:[#allocation2 + $0x1d8] sm:$0xff] }
 0x41e   :  { %2347 = vmatprep.subr.bf16.mxu1 %v2170_v13  ;;  %2686 = vmatprep.subr.bf16.mxu0 %v2172_v9  ;;  %v2197_v13 = vld [vmem:[#allocation2 + $0x1c0] sm:$0xff]  ;;  %v2199_v9 = vld [vmem:[#allocation2 + $0x1d0] sm:$0xff] }
 0x421   :  { %2348 = vmatpush1.bf16.msra.mxu1 %v2169_v56  ;;  %2687 = vmatpush1.bf16.msra.mxu0 %v2171_v36  ;;  %v2202_v56 = vld [vmem:[#allocation2 + $0x1e8] sm:$0xff]  ;;  %v2204_v36 = vld [vmem:[#allocation2 + $0x1f8] sm:$0xff] }
 0x422   :  { %2349 = vmatprep.subr.bf16.mxu1 %v2174_v8  ;;  %2688 = vmatprep.subr.bf16.mxu0 %v2176_v49  ;;  %v2201_v8 = vld [vmem:[#allocation2 + $0x1e0] sm:$0xff]  ;;  %v2203_v49 = vld [vmem:[#allocation2 + $0x1f0] sm:$0xff] }
 0x425   :  { %2350 = vmatpush1.bf16.msra.mxu1 %v2173_v43  ;;  %2689 = vmatpush1.bf16.msra.mxu0 %v2175_v2  ;;  %v2206_v43 = vld [vmem:[#allocation2 + $0x208] sm:$0xff]  ;;  %v2208_v2 = vld [vmem:[#allocation2 + $0x218] sm:$0xff] }
 0x426   :  { %2351 = vmatprep.subr.bf16.mxu1 %v2178_v54  ;;  %2690 = vmatprep.subr.bf16.mxu0 %v2180_v37  ;;  %v2205_v54 = vld [vmem:[#allocation2 + $0x200] sm:$0xff]  ;;  %v2207_v37 = vld [vmem:[#allocation2 + $0x210] sm:$0xff] }
 0x429   :  { %2352 = vmatpush1.bf16.msra.mxu1 %v2177_v14  ;;  %2691 = vmatpush1.bf16.msra.mxu0 %v2179_v26  ;;  %v2210_v14 = vld [vmem:[#allocation2 + $0x228] sm:$0xff]  ;;  %v2212_v26 = vld [vmem:[#allocation2 + $0x238] sm:$0xff] }
 0x42a   :  { %2353 = vmatprep.subr.bf16.mxu1 %v2182_v32  ;;  %2692 = vmatprep.subr.bf16.mxu0 %v2184_v15  ;;  %v2209_v32 = vld [vmem:[#allocation2 + $0x220] sm:$0xff]  ;;  %v2211_v15 = vld [vmem:[#allocation2 + $0x230] sm:$0xff] }
 0x42d   :  { %2354 = vmatpush1.bf16.msra.mxu1 %v2181_v24  ;;  %2693 = vmatpush1.bf16.msra.mxu0 %v2183_v5  ;;  %v2214_v24 = vld [vmem:[#allocation2 + $0x248] sm:$0xff]  ;;  %v2216_v5 = vld [vmem:[#allocation2 + $0x258] sm:$0xff] }
 0x42e   :  { %2355 = vmatprep.subr.bf16.mxu1 %v2186_v46  ;;  %2694 = vmatprep.subr.bf16.mxu0 %v2188_v21  ;;  %v2213_v46 = vld [vmem:[#allocation2 + $0x240] sm:$0xff]  ;;  %v2215_v21 = vld [vmem:[#allocation2 + $0x250] sm:$0xff] }
 0x431   :  { %2356 = vmatpush1.bf16.msra.mxu1 %v2185_v30  ;;  %2695 = vmatpush1.bf16.msra.mxu0 %v2187_v55  ;;  %v2218_v30 = vld [vmem:[#allocation2 + $0x268] sm:$0xff]  ;;  %v2220_v55 = vld [vmem:[#allocation2 + $0x278] sm:$0xff] }
 0x432   :  { %2357 = vmatprep.subr.bf16.mxu1 %v2190_v52  ;;  %2696 = vmatprep.subr.bf16.mxu0 %v2192_v40  ;;  %v2217_v52 = vld [vmem:[#allocation2 + $0x260] sm:$0xff]  ;;  %v2219_v40 = vld [vmem:[#allocation2 + $0x270] sm:$0xff] }
 0x435   :  { %2358 = vmatpush1.bf16.msra.mxu1 %v2189_v12  ;;  %2697 = vmatpush1.bf16.msra.mxu0 %v2191_v3  ;;  %v2222_v12 = vld [vmem:[#allocation2 + $0x288] sm:$0xff]  ;;  %v2224_v3 = vld [vmem:[#allocation2 + $0x298] sm:$0xff] }
 0x436   :  { %2359 = vmatprep.subr.bf16.mxu1 %v2194_v0  ;;  %2698 = vmatprep.subr.bf16.mxu0 %v2196_v59  ;;  %v2221_v0 = vld [vmem:[#allocation2 + $0x280] sm:$0xff]  ;;  %v2223_v59 = vld [vmem:[#allocation2 + $0x290] sm:$0xff] }
 0x439   :  { %2360 = vmatpush1.bf16.msra.mxu1 %v2193_v6  ;;  %2699 = vmatpush1.bf16.msra.mxu0 %v2195_v7  ;;  %v2226_v6 = vld [vmem:[#allocation2 + $0x2a8] sm:$0xff]  ;;  %v2228_v7 = vld [vmem:[#allocation2 + $0x2b8] sm:$0xff] }
 0x43a   :  { %2361 = vmatprep.subr.bf16.mxu1 %v2198_v31  ;;  %2700 = vmatprep.subr.bf16.mxu0 %v2200_v28  ;;  %v2225_v31 = vld [vmem:[#allocation2 + $0x2a0] sm:$0xff]  ;;  %v2227_v28 = vld [vmem:[#allocation2 + $0x2b0] sm:$0xff] }
 0x43d   :  { %2362 = vmatpush1.bf16.msra.mxu1 %v2197_v13  ;;  %2701 = vmatpush1.bf16.msra.mxu0 %v2199_v9  ;;  %v2230_v13 = vld [vmem:[#allocation2 + $0x2c8] sm:$0xff]  ;;  %v2232_v9 = vld [vmem:[#allocation2 + $0x2d8] sm:$0xff] }
 0x43e   :  { %2363 = vmatprep.subr.bf16.mxu1 %v2202_v56  ;;  %2702 = vmatprep.subr.bf16.mxu0 %v2204_v36  ;;  %v2229_v56 = vld [vmem:[#allocation2 + $0x2c0] sm:$0xff]  ;;  %v2231_v36 = vld [vmem:[#allocation2 + $0x2d0] sm:$0xff] }
 0x441   :  { %2364 = vmatpush1.bf16.msra.mxu1 %v2201_v8  ;;  %2703 = vmatpush1.bf16.msra.mxu0 %v2203_v49  ;;  %v2234_v8 = vld [vmem:[#allocation2 + $0x2e8] sm:$0xff]  ;;  %v2236_v49 = vld [vmem:[#allocation2 + $0x2f8] sm:$0xff] }
 0x442   :  { %2446 = vmatprep.subr.bf16.mxu1 %v2206_v43  ;;  %2785 = vmatprep.subr.bf16.mxu0 %v2208_v2  ;;  %v2233_v43 = vld [vmem:[#allocation2 + $0x2e0] sm:$0xff]  ;;  %v2235_v2 = vld [vmem:[#allocation2 + $0x2f0] sm:$0xff] }
 0x444   :  { %2366 = vmatmul.mubr.bf16.vlgmr.msra.gmra.mrb[32].mxu1 %v11314_v42  ;;  %2705 = vmatmul.mubr.bf16.vlgmr.msra.gmra.mrb[64].mxu0 %v11314_v42 }
 0x445   :  { %2447 = vmatpush1.bf16.msra.mxu1 %v2205_v54  ;;  %2786 = vmatpush1.bf16.msra.mxu0 %v2207_v37  ;;  %v2238_v54 = vld [vmem:[#allocation2 + $0x308] sm:$0xff]  ;;  %v2240_v37 = vld [vmem:[#allocation2 + $0x318] sm:$0xff] }
 0x446   :  { %2448 = vmatprep.subr.bf16.mxu1 %v2210_v14  ;;  %2787 = vmatprep.subr.bf16.mxu0 %v2212_v26  ;;  %v2237_v14 = vld [vmem:[#allocation2 + $0x300] sm:$0xff]  ;;  %v2239_v26 = vld [vmem:[#allocation2 + $0x310] sm:$0xff] }
 0x447   :  { %2375 = vmatprep.mubr.bf16.mxu1 %v11362_v17  ;;  %2714 = vmatprep.mubr.bf16.mxu0 %v11362_v17 }
 0x449   :  { %2449 = vmatpush1.bf16.msra.mxu1 %v2209_v32  ;;  %2788 = vmatpush1.bf16.msra.mxu0 %v2211_v15  ;;  %v2242_v32 = vld [vmem:[#allocation2 + $0x328] sm:$0xff]  ;;  %v2244_v15 = vld [vmem:[#allocation2 + $0x338] sm:$0xff] }
 0x44a   :  { %2450 = vmatprep.subr.bf16.mxu1 %v2214_v24  ;;  %2789 = vmatprep.subr.bf16.mxu0 %v2216_v5  ;;  %v2241_v24 = vld [vmem:[#allocation2 + $0x320] sm:$0xff]  ;;  %v2243_v5 = vld [vmem:[#allocation2 + $0x330] sm:$0xff] }
 0x44c   :  { %2376 = vmatmul.mubr.bf16.gmra.mrb[36].mxu1 %v11360_v34  ;;  %2715 = vmatmul.mubr.bf16.gmra.mrb[68].mxu0 %v11360_v34 }
 0x44d   :  { %2451 = vmatpush1.bf16.msra.mxu1 %v2213_v46  ;;  %2790 = vmatpush1.bf16.msra.mxu0 %v2215_v21  ;;  %v2246_v46 = vld [vmem:[#allocation2 + $0x348] sm:$0xff]  ;;  %v2248_v21 = vld [vmem:[#allocation2 + $0x358] sm:$0xff] }
 0x44e   :  { %2452 = vmatprep.subr.bf16.mxu1 %v2218_v30  ;;  %2791 = vmatprep.subr.bf16.mxu0 %v2220_v55  ;;  %v2245_v30 = vld [vmem:[#allocation2 + $0x340] sm:$0xff]  ;;  %v2247_v55 = vld [vmem:[#allocation2 + $0x350] sm:$0xff] }
 0x44f   :  { %2385 = vmatprep.mubr.bf16.mxu1 %v11414_v25  ;;  %2724 = vmatprep.mubr.bf16.mxu0 %v11414_v25 }
 0x451   :  { %2453 = vmatpush1.bf16.msra.mxu1 %v2217_v52  ;;  %2792 = vmatpush1.bf16.msra.mxu0 %v2219_v40  ;;  %v2250_v52 = vld [vmem:[#allocation2 + $0x368] sm:$0xff]  ;;  %v2252_v40 = vld [vmem:[#allocation2 + $0x378] sm:$0xff] }
 0x452   :  { %2454 = vmatprep.subr.bf16.mxu1 %v2222_v12  ;;  %2793 = vmatprep.subr.bf16.mxu0 %v2224_v3  ;;  %v2249_v12 = vld [vmem:[#allocation2 + $0x360] sm:$0xff]  ;;  %v2251_v3 = vld [vmem:[#allocation2 + $0x370] sm:$0xff] }
 0x454   :  { %2386 = vmatmul.mubr.bf16.gmra.mrb[40].mxu1 %v11412_v39  ;;  %2725 = vmatmul.mubr.bf16.gmra.mrb[72].mxu0 %v11412_v39 }
 0x455   :  { %2455 = vmatpush1.bf16.msra.mxu1 %v2221_v0  ;;  %2794 = vmatpush1.bf16.msra.mxu0 %v2223_v59  ;;  %v2254_v0 = vld [vmem:[#allocation2 + $0x388] sm:$0xff]  ;;  %v2256_v59 = vld [vmem:[#allocation2 + $0x398] sm:$0xff] }
 0x456   :  { %2456 = vmatprep.subr.bf16.mxu1 %v2226_v6  ;;  %2795 = vmatprep.subr.bf16.mxu0 %v2228_v7  ;;  %v2253_v6 = vld [vmem:[#allocation2 + $0x380] sm:$0xff]  ;;  %v2255_v7 = vld [vmem:[#allocation2 + $0x390] sm:$0xff] }
 0x457   :  { %2395 = vmatprep.mubr.bf16.mxu1 %v11458_v58  ;;  %2734 = vmatprep.mubr.bf16.mxu0 %v11458_v58 }
 0x459   :  { %2457 = vmatpush1.bf16.msra.mxu1 %v2225_v31  ;;  %2796 = vmatpush1.bf16.msra.mxu0 %v2227_v28  ;;  %v2258_v31 = vld [vmem:[#allocation2 + $0x3a8] sm:$0xff]  ;;  %v2260_v28 = vld [vmem:[#allocation2 + $0x3b8] sm:$0xff] }
 0x45a   :  { %2458 = vmatprep.subr.bf16.mxu1 %v2230_v13  ;;  %2797 = vmatprep.subr.bf16.mxu0 %v2232_v9  ;;  %v2257_v13 = vld [vmem:[#allocation2 + $0x3a0] sm:$0xff]  ;;  %v2259_v9 = vld [vmem:[#allocation2 + $0x3b0] sm:$0xff] }
 0x45c   :  { %2396 = vmatmul.mubr.bf16.gmra.mrb[44].mxu1 %v11456_v62  ;;  %2735 = vmatmul.mubr.bf16.gmra.mrb[76].mxu0 %v11456_v62 }
 0x45d   :  { %2459 = vmatpush1.bf16.msra.mxu1 %v2229_v56  ;;  %2798 = vmatpush1.bf16.msra.mxu0 %v2231_v36  ;;  %v2262_v56 = vld [vmem:[#allocation2 + $0x3c8] sm:$0xff]  ;;  %v2264_v36 = vld [vmem:[#allocation2 + $0x3d8] sm:$0xff] }
 0x45e   :  { %2460 = vmatprep.subr.bf16.mxu1 %v2234_v8  ;;  %2799 = vmatprep.subr.bf16.mxu0 %v2236_v49  ;;  %v2261_v8 = vld [vmem:[#allocation2 + $0x3c0] sm:$0xff]  ;;  %v2263_v49 = vld [vmem:[#allocation2 + $0x3d0] sm:$0xff] }
 0x45f   :  { %2405 = vmatprep.mubr.bf16.mxu1 %v11511_v16  ;;  %2744 = vmatprep.mubr.bf16.mxu0 %v11511_v16 }
 0x461   :  { %2461 = vmatpush1.bf16.msra.mxu1 %v2233_v43  ;;  %2800 = vmatpush1.bf16.msra.mxu0 %v2235_v2  ;;  %v2266_v43 = vld [vmem:[#allocation2 + $0x3e8] sm:$0xff]  ;;  %v2268_v2 = vld [vmem:[#allocation2 + $0x3f8] sm:$0xff] }
 0x462   :  { %2462 = vmatprep.subr.bf16.mxu1 %v2238_v54  ;;  %2801 = vmatprep.subr.bf16.mxu0 %v2240_v37  ;;  %v2265_v54 = vld [vmem:[#allocation2 + $0x3e0] sm:$0xff]  ;;  %v2267_v37 = vld [vmem:[#allocation2 + $0x3f0] sm:$0xff] }
 0x464   :  { %2406 = vmatmul.mubr.bf16.gmra.mrb[48].mxu1 %v11509_v41  ;;  %2745 = vmatmul.mubr.bf16.gmra.mrb[80].mxu0 %v11509_v41 }
 0x465   :  { %2463 = vmatpush1.bf16.msra.mxu1 %v2237_v14  ;;  %2802 = vmatpush1.bf16.msra.mxu0 %v2239_v26  ;;  %v2270_v14 = vld [vmem:[#allocation2 + $0x408] sm:$0xff]  ;;  %v2272_v26 = vld [vmem:[#allocation2 + $0x418] sm:$0xff] }
 0x466   :  { %2464 = vmatprep.subr.bf16.mxu1 %v2242_v32  ;;  %2803 = vmatprep.subr.bf16.mxu0 %v2244_v15  ;;  %v2269_v32 = vld [vmem:[#allocation2 + $0x400] sm:$0xff]  ;;  %v2271_v15 = vld [vmem:[#allocation2 + $0x410] sm:$0xff] }
 0x467   :  { %2415 = vmatprep.mubr.bf16.mxu1 %v11565_v45  ;;  %2754 = vmatprep.mubr.bf16.mxu0 %v11565_v45 }
 0x469   :  { %2465 = vmatpush1.bf16.msra.mxu1 %v2241_v24  ;;  %2804 = vmatpush1.bf16.msra.mxu0 %v2243_v5  ;;  %v2274_v24 = vld [vmem:[#allocation2 + $0x428] sm:$0xff]  ;;  %v2276_v5 = vld [vmem:[#allocation2 + $0x438] sm:$0xff] }
 0x46a   :  { %2466 = vmatprep.subr.bf16.mxu1 %v2246_v46  ;;  %2805 = vmatprep.subr.bf16.mxu0 %v2248_v21  ;;  %v2273_v46 = vld [vmem:[#allocation2 + $0x420] sm:$0xff]  ;;  %v2275_v21 = vld [vmem:[#allocation2 + $0x430] sm:$0xff] }
 0x46c   :  { %2416 = vmatmul.mubr.bf16.gmra.mrb[52].mxu1 %v11563_v48  ;;  %2755 = vmatmul.mubr.bf16.gmra.mrb[84].mxu0 %v11563_v48 }
 0x46d   :  { %2467 = vmatpush1.bf16.msra.mxu1 %v2245_v30  ;;  %2806 = vmatpush1.bf16.msra.mxu0 %v2247_v55  ;;  %v2278_v30 = vld [vmem:[#allocation2 + $0x448] sm:$0xff]  ;;  %v2280_v55 = vld [vmem:[#allocation2 + $0x458] sm:$0xff] }
 0x46e   :  { %2468 = vmatprep.subr.bf16.mxu1 %v2250_v52  ;;  %2807 = vmatprep.subr.bf16.mxu0 %v2252_v40  ;;  %v2277_v52 = vld [vmem:[#allocation2 + $0x440] sm:$0xff]  ;;  %v2279_v40 = vld [vmem:[#allocation2 + $0x450] sm:$0xff] }
 0x46f   :  { %2425 = vmatprep.mubr.bf16.mxu1 %v11617_v23  ;;  %2764 = vmatprep.mubr.bf16.mxu0 %v11617_v23 }
 0x471   :  { %2469 = vmatpush1.bf16.msra.mxu1 %v2249_v12  ;;  %2808 = vmatpush1.bf16.msra.mxu0 %v2251_v3  ;;  %v2282_v12 = vld [vmem:[#allocation2 + $0x468] sm:$0xff]  ;;  %v2284_v3 = vld [vmem:[#allocation2 + $0x478] sm:$0xff] }
 0x472   :  { %2470 = vmatprep.subr.bf16.mxu1 %v2254_v0  ;;  %2809 = vmatprep.subr.bf16.mxu0 %v2256_v59  ;;  %v2281_v0 = vld [vmem:[#allocation2 + $0x460] sm:$0xff]  ;;  %v2283_v59 = vld [vmem:[#allocation2 + $0x470] sm:$0xff] }
 0x474   :  { %2426 = vmatmul.mubr.bf16.gmra.mrb[56].mxu1 %v11615_v44  ;;  %2765 = vmatmul.mubr.bf16.gmra.mrb[88].mxu0 %v11615_v44 }
 0x475   :  { %2471 = vmatpush1.bf16.msra.mxu1 %v2253_v6  ;;  %2810 = vmatpush1.bf16.msra.mxu0 %v2255_v7  ;;  %v2286_v6 = vld [vmem:[#allocation2 + $0x488] sm:$0xff]  ;;  %v2288_v7 = vld [vmem:[#allocation2 + $0x498] sm:$0xff] }
 0x476   :  { %2472 = vmatprep.subr.bf16.mxu1 %v2258_v31  ;;  %2811 = vmatprep.subr.bf16.mxu0 %v2260_v28  ;;  %v2285_v31 = vld [vmem:[#allocation2 + $0x480] sm:$0xff]  ;;  %v2287_v28 = vld [vmem:[#allocation2 + $0x490] sm:$0xff] }
 0x477   :  { %2435 = vmatprep.mubr.bf16.mxu1 %v11669_v11  ;;  %2774 = vmatprep.mubr.bf16.mxu0 %v11669_v11 }
 0x479   :  { %2473 = vmatpush1.bf16.msra.mxu1 %v2257_v13  ;;  %2812 = vmatpush1.bf16.msra.mxu0 %v2259_v9  ;;  %v2290_v13 = vld [vmem:[#allocation2 + $0x4a8] sm:$0xff]  ;;  %v2292_v9 = vld [vmem:[#allocation2 + $0x4b8] sm:$0xff] }
 0x47a   :  { %2474 = vmatprep.subr.bf16.mxu1 %v2262_v56  ;;  %2813 = vmatprep.subr.bf16.mxu0 %v2264_v36  ;;  %v2289_v56 = vld [vmem:[#allocation2 + $0x4a0] sm:$0xff]  ;;  %v2291_v36 = vld [vmem:[#allocation2 + $0x4b0] sm:$0xff] }
 0x47c   :  { %2436 = vmatmul.mubr.bf16.gmra.mrb[60].mxu1 %v11667_v20  ;;  %2775 = vmatmul.mubr.bf16.gmra.mrb[92].mxu0 %v11667_v20 }
 0x47d   :  { %2475 = vmatpush1.bf16.msra.mxu1 %v2261_v8  ;;  %2814 = vmatpush1.bf16.msra.mxu0 %v2263_v49  ;;  %v2294_v8 = vld [vmem:[#allocation2 + $0x4c8] sm:$0xff]  ;;  %v2296_v49 = vld [vmem:[#allocation2 + $0x4d8] sm:$0xff] }
 0x47e   :  { %2476 = vmatprep.subr.bf16.mxu1 %v2266_v43  ;;  %2815 = vmatprep.subr.bf16.mxu0 %v2268_v2  ;;  %v2293_v43 = vld [vmem:[#allocation2 + $0x4c0] sm:$0xff]  ;;  %v2295_v2 = vld [vmem:[#allocation2 + $0x4d0] sm:$0xff] }
 0x47f   :  { %2478 = vmatprep.mubr.bf16.mxu1 %v11320_v29  ;;  %2817 = vmatprep.mubr.bf16.mxu0 %v11320_v29 }
 0x481   :  { %2477 = vmatpush1.bf16.msra.mxu1 %v2265_v54  ;;  %2816 = vmatpush1.bf16.msra.mxu0 %v2267_v37  ;;  %v2298_v54 = vld [vmem:[#allocation2 + $0x4e8] sm:$0xff]  ;;  %v2300_v37 = vld [vmem:[#allocation2 + $0x4f8] sm:$0xff] }
 0x482   :  { %2559 = vmatprep.subr.bf16.mxu1 %v2270_v14  ;;  %2898 = vmatprep.subr.bf16.mxu0 %v2272_v26  ;;  %v2297_v14 = vld [vmem:[#allocation2 + $0x4e0] sm:$0xff]  ;;  %v2299_v26 = vld [vmem:[#allocation2 + $0x4f0] sm:$0xff] }
 0x484   :  { %2479 = vmatmul.mubr.bf16.vlgmr.msra.gmra.mrb[32].mxu1 %v11318_v53  ;;  %2818 = vmatmul.mubr.bf16.vlgmr.msra.gmra.mrb[64].mxu0 %v11318_v53 }
 0x485   :  { %2560 = vmatpush1.bf16.msra.mxu1 %v2269_v32  ;;  %2899 = vmatpush1.bf16.msra.mxu0 %v2271_v15  ;;  %v2302_v32 = vld [vmem:[#allocation2 + $0x508] sm:$0xff]  ;;  %v2304_v15 = vld [vmem:[#allocation2 + $0x518] sm:$0xff] }
 0x486   :  { %2561 = vmatprep.subr.bf16.mxu1 %v2274_v24  ;;  %2900 = vmatprep.subr.bf16.mxu0 %v2276_v5  ;;  %v2301_v24 = vld [vmem:[#allocation2 + $0x500] sm:$0xff]  ;;  %v2303_v5 = vld [vmem:[#allocation2 + $0x510] sm:$0xff] }
 0x487   :  { %2488 = vmatprep.mubr.bf16.mxu1 %v11366_v4  ;;  %2827 = vmatprep.mubr.bf16.mxu0 %v11366_v4 }
 0x489   :  { %2562 = vmatpush1.bf16.msra.mxu1 %v2273_v46  ;;  %2901 = vmatpush1.bf16.msra.mxu0 %v2275_v21  ;;  %v2306_v46 = vld [vmem:[#allocation2 + $0x528] sm:$0xff]  ;;  %v2308_v21 = vld [vmem:[#allocation2 + $0x538] sm:$0xff] }
 0x48a   :  { %2563 = vmatprep.subr.bf16.mxu1 %v2278_v30  ;;  %2902 = vmatprep.subr.bf16.mxu0 %v2280_v55  ;;  %v2305_v30 = vld [vmem:[#allocation2 + $0x520] sm:$0xff]  ;;  %v2307_v55 = vld [vmem:[#allocation2 + $0x530] sm:$0xff] }
 0x48c   :  { %2489 = vmatmul.mubr.bf16.gmra.mrb[36].mxu1 %v11364_v1  ;;  %2828 = vmatmul.mubr.bf16.gmra.mrb[68].mxu0 %v11364_v1 }
 0x48d   :  { %2564 = vmatpush1.bf16.msra.mxu1 %v2277_v52  ;;  %2903 = vmatpush1.bf16.msra.mxu0 %v2279_v40  ;;  %v13976_v52 = vld [vmem:[#allocation84_spill] sm:$0xff]  ;;  %v2310_v40 = vld [vmem:[#allocation2 + $0x548] sm:$0xff] }
 0x48e   :  { %2565 = vmatprep.subr.bf16.mxu1 %v2282_v12  ;;  %2904 = vmatprep.subr.bf16.mxu0 %v2284_v3  ;;  %v2312_v12 = vld [vmem:[#allocation2 + $0x558] sm:$0xff]  ;;  %v2309_v3 = vld [vmem:[#allocation2 + $0x540] sm:$0xff] }
 0x48f   :  { %2498 = vmatprep.mubr.bf16.mxu1 %v11418_v60  ;;  %2837 = vmatprep.mubr.bf16.mxu0 %v11418_v60 }
 0x491   :  { %2566 = vmatpush1.bf16.msra.mxu1 %v2281_v0  ;;  %2905 = vmatpush1.bf16.msra.mxu0 %v2283_v59  ;;  %v2311_v0 = vld [vmem:[#allocation2 + $0x550] sm:$0xff]  ;;  %v2314_v59 = vld [vmem:[#allocation2 + $0x568] sm:$0xff] }
 0x492   :  { %2567 = vmatprep.subr.bf16.mxu1 %v2286_v6  ;;  %2906 = vmatprep.subr.bf16.mxu0 %v2288_v7  ;;  %v2316_v6 = vld [vmem:[#allocation2 + $0x578] sm:$0xff]  ;;  %v13977_v7 = vld [vmem:[#allocation57_spill] sm:$0xff] }
 0x494   :  { %2499 = vmatmul.mubr.bf16.gmra.mrb[40].mxu1 %v11416_v47  ;;  %2838 = vmatmul.mubr.bf16.gmra.mrb[72].mxu0 %v11416_v47 }
 0x495   :  { %2568 = vmatpush1.bf16.msra.mxu1 %v2285_v31  ;;  %2907 = vmatpush1.bf16.msra.mxu0 %v2287_v28  ;;  %v2313_v31 = vld [vmem:[#allocation2 + $0x560] sm:$0xff]  ;;  %v2315_v28 = vld [vmem:[#allocation2 + $0x570] sm:$0xff] }
 0x496   :  { %2569 = vmatprep.subr.bf16.mxu1 %v2290_v13  ;;  %2908 = vmatprep.subr.bf16.mxu0 %v2292_v9  ;;  %v2318_v13 = vld [vmem:[#allocation2 + $0x588] sm:$0xff]  ;;  %v2320_v9 = vld [vmem:[#allocation2 + $0x598] sm:$0xff] }
 0x497   :  { %2508 = vmatprep.mubr.bf16.mxu1 %v11462_v27  ;;  %2847 = vmatprep.mubr.bf16.mxu0 %v11462_v27 }
 0x499   :  { %2570 = vmatpush1.bf16.msra.mxu1 %v2289_v56  ;;  %2909 = vmatpush1.bf16.msra.mxu0 %v2291_v36  ;;  %v2317_v56 = vld [vmem:[#allocation2 + $0x580] sm:$0xff]  ;;  %v2319_v36 = vld [vmem:[#allocation2 + $0x590] sm:$0xff] }
 0x49a   :  { %2571 = vmatprep.subr.bf16.mxu1 %v2294_v8  ;;  %2910 = vmatprep.subr.bf16.mxu0 %v2296_v49  ;;  %v2322_v8 = vld [vmem:[#allocation2 + $0x5a8] sm:$0xff]  ;;  %v2324_v49 = vld [vmem:[#allocation2 + $0x5b8] sm:$0xff] }
 0x49c   :  { %2509 = vmatmul.mubr.bf16.gmra.mrb[44].mxu1 %v11460_v10  ;;  %2848 = vmatmul.mubr.bf16.gmra.mrb[76].mxu0 %v11460_v10 }
 0x49d   :  { %2572 = vmatpush1.bf16.msra.mxu1 %v2293_v43  ;;  %2911 = vmatpush1.bf16.msra.mxu0 %v2295_v2  ;;  %v2321_v43 = vld [vmem:[#allocation2 + $0x5a0] sm:$0xff]  ;;  %v2323_v2 = vld [vmem:[#allocation2 + $0x5b0] sm:$0xff] }
 0x49e   :  { %2573 = vmatprep.subr.bf16.mxu1 %v2298_v54  ;;  %2912 = vmatprep.subr.bf16.mxu0 %v2300_v37  ;;  %v2326_v54 = vld [vmem:[#allocation2 + $0x5c8] sm:$0xff]  ;;  %v2328_v37 = vld [vmem:[#allocation2 + $0x5d8] sm:$0xff] }
 0x49f   :  { %2518 = vmatprep.mubr.bf16.mxu1 %v11515_v33  ;;  %2857 = vmatprep.mubr.bf16.mxu0 %v11515_v33 }
 0x4a1   :  { %2574 = vmatpush1.bf16.msra.mxu1 %v2297_v14  ;;  %2913 = vmatpush1.bf16.msra.mxu0 %v2299_v26  ;;  %v2325_v14 = vld [vmem:[#allocation2 + $0x5c0] sm:$0xff]  ;;  %v2327_v26 = vld [vmem:[#allocation2 + $0x5d0] sm:$0xff] }
 0x4a2   :  { %2575 = vmatprep.subr.bf16.mxu1 %v2302_v32  ;;  %2914 = vmatprep.subr.bf16.mxu0 %v2304_v15  ;;  %v2330_v32 = vld [vmem:[#allocation2 + $0x5e8] sm:$0xff]  ;;  %v2332_v15 = vld [vmem:[#allocation2 + $0x5f8] sm:$0xff] }
 0x4a4   :  { %2519 = vmatmul.mubr.bf16.gmra.mrb[48].mxu1 %v11513_v22  ;;  %2858 = vmatmul.mubr.bf16.gmra.mrb[80].mxu0 %v11513_v22 }
 0x4a5   :  { %2576 = vmatpush1.bf16.msra.mxu1 %v2301_v24  ;;  %2915 = vmatpush1.bf16.msra.mxu0 %v2303_v5  ;;  %v2329_v24 = vld [vmem:[#allocation2 + $0x5e0] sm:$0xff]  ;;  %v2331_v5 = vld [vmem:[#allocation2 + $0x5f0] sm:$0xff] }
 0x4a6   :  { %2577 = vmatprep.subr.bf16.mxu1 %v2306_v46  ;;  %2916 = vmatprep.subr.bf16.mxu0 %v2308_v21  ;;  %v13978_v46 = vld [vmem:[#allocation97_spill] sm:$0xff]  ;;  %v13979_v21 = vld [vmem:[#allocation95_spill] sm:$0xff] }
 0x4a7   :  { %2528 = vmatprep.mubr.bf16.mxu1 %v13976_v52  ;;  %2867 = vmatprep.mubr.bf16.mxu0 %v13976_v52 }
 0x4a9   :  { %2578 = vmatpush1.bf16.msra.mxu1 %v2305_v30  ;;  %2917 = vmatpush1.bf16.msra.mxu0 %v2307_v55  ;;  %v13980_v30 = vld [vmem:[#allocation119_spill] sm:$0xff] }
 0x4aa   :  { %2579 = vmatprep.subr.bf16.mxu1 %v2310_v40  ;;  %2918 = vmatprep.subr.bf16.mxu0 %v2312_v12  ;;  %v13981_v55 = vld [vmem:[#allocation99_spill] sm:$0xff]  ;;  %v13983_v12 = vld [vmem:[#allocation102_spill] sm:$0xff] }
 0x4ab   :  { %v13982_v40 = vld [vmem:[#allocation103_spill] sm:$0xff] }
 0x4ac   :  { %2529 = vmatmul.mubr.bf16.gmra.mrb[52].mxu1 %v13977_v7  ;;  %2868 = vmatmul.mubr.bf16.gmra.mrb[84].mxu0 %v13977_v7 }
 0x4ad   :  { %2580 = vmatpush1.bf16.msra.mxu1 %v2309_v3  ;;  %2919 = vmatpush1.bf16.msra.mxu0 %v2311_v0  ;;  %v13984_v3 = vld [vmem:[#allocation120_spill] sm:$0xff]  ;;  %v13985_v0 = vld [vmem:[#allocation106_spill] sm:$0xff] }
 0x4ae   :  { %2581 = vmatprep.subr.bf16.mxu1 %v2314_v59  ;;  %2920 = vmatprep.subr.bf16.mxu0 %v2316_v6  ;;  %v13986_v59 = vld [vmem:[#allocation54_spill] sm:$0xff]  ;;  %v13987_v6 = vld [vmem:[#allocation107_spill] sm:$0xff] }
 0x4af   :  { %2538 = vmatprep.mubr.bf16.mxu1 %v11621_v63  ;;  %2877 = vmatprep.mubr.bf16.mxu0 %v11621_v63 }
 0x4b1   :  { %2582 = vmatpush1.bf16.msra.mxu1 %v2313_v31  ;;  %2921 = vmatpush1.bf16.msra.mxu0 %v2315_v28  ;;  %v13988_v31 = vld [vmem:[#allocation58_spill] sm:$0xff]  ;;  %v13989_v28 = vld [vmem:[#allocation108_spill] sm:$0xff] }
 0x4b2   :  { %2583 = vmatprep.subr.bf16.mxu1 %v2318_v13  ;;  %2922 = vmatprep.subr.bf16.mxu0 %v2320_v9 }
 0x4b4   :  { %2539 = vmatmul.mubr.bf16.gmra.mrb[56].mxu1 %v11619_v50  ;;  %2878 = vmatmul.mubr.bf16.gmra.mrb[88].mxu0 %v11619_v50 }
 0x4b5   :  { %2584 = vmatpush1.bf16.msra.mxu1 %v2317_v56  ;;  %2923 = vmatpush1.bf16.msra.mxu0 %v2319_v36 }
 0x4b6   :  { %2585 = vmatprep.subr.bf16.mxu1 %v2322_v8  ;;  %2924 = vmatprep.subr.bf16.mxu0 %v2324_v49 }
 0x4b7   :  { %2548 = vmatprep.mubr.bf16.mxu1 %v11673_v38  ;;  %2887 = vmatprep.mubr.bf16.mxu0 %v11673_v38 }
 0x4b9   :  { %2586 = vmatpush1.bf16.msra.mxu1 %v2321_v43  ;;  %2925 = vmatpush1.bf16.msra.mxu0 %v2323_v2  ;;  %v13990_v43 = vld [vmem:[#allocation46_spill] sm:$0xff] }
 0x4ba   :  { %2587 = vmatprep.subr.bf16.mxu1 %v2326_v54  ;;  %2926 = vmatprep.subr.bf16.mxu0 %v2328_v37  ;;  %vm3043_vm12 = vcmp.lt.s32.totalorder %v13990_v43, 7 }
 0x4bc   :  { %2549 = vmatmul.mubr.bf16.gmra.mrb[60].mxu1 %v11671_v51  ;;  %2888 = vmatmul.mubr.bf16.gmra.mrb[92].mxu0 %v11671_v51 }
 0x4bd   :  { %2588 = vmatpush1.bf16.msra.mxu1 %v2325_v14  ;;  %2927 = vmatpush1.bf16.msra.mxu0 %v2327_v26 }
 0x4be   :  { %2589 = vmatprep.subr.bf16.mxu1 %v2330_v32  ;;  %2928 = vmatprep.subr.bf16.mxu0 %v2332_v15 }
 0x4bf   :  { %2591 = vmatprep.mubr.bf16.mxu1 %v13978_v46  ;;  %2930 = vmatprep.mubr.bf16.mxu0 %v13978_v46 }
 0x4c1   :  { %2590 = vmatpush1.bf16.msra.mxu1 %v2329_v24  ;;  %2929 = vmatpush1.bf16.msra.mxu0 %v2331_v5  ;;  %v3108_v5 = vld [vmem:[#allocation16] sm:$0x3] }
 0x4c4   :  { %2592 = vmatmul.mubr.bf16.vlgmr.msra.gmra.mrb[32].mxu1 %v13979_v21  ;;  %2931 = vmatmul.mubr.bf16.vlgmr.msra.gmra.mrb[64].mxu0 %v13979_v21 }
 0x4c5   :  { %2601 = vmatprep.mubr.bf16.mxu1 %v13980_v30  ;;  %2940 = vmatprep.mubr.bf16.mxu0 %v13980_v30 }
 0x4cc   :  { %2602 = vmatmul.mubr.bf16.gmra.mrb[36].mxu1 %v13981_v55  ;;  %2941 = vmatmul.mubr.bf16.gmra.mrb[68].mxu0 %v13981_v55 }
 0x4cd   :  { %2611 = vmatprep.mubr.bf16.mxu1 %v13982_v40  ;;  %2950 = vmatprep.mubr.bf16.mxu0 %v13982_v40  ;;  %v13993_v40 = vld [vmem:[#allocation47_spill] sm:$0xff] }
 0x4ce   :  { %vm3185_vm11 = vcmp.le.s32.totalorder %v13993_v40, 14 }
 0x4d4   :  { %2612 = vmatmul.mubr.bf16.gmra.mrb[40].mxu1 %v13983_v12  ;;  %2951 = vmatmul.mubr.bf16.gmra.mrb[72].mxu0 %v13983_v12 }
 0x4d5   :  { %2621 = vmatprep.mubr.bf16.mxu1 %v13984_v3  ;;  %2960 = vmatprep.mubr.bf16.mxu0 %v13984_v3 }
 0x4dc   :  { %2622 = vmatmul.mubr.bf16.gmra.mrb[44].mxu1 %v13985_v0  ;;  %2961 = vmatmul.mubr.bf16.gmra.mrb[76].mxu0 %v13985_v0 }
 0x4dd   :  { %2631 = vmatprep.mubr.bf16.mxu1 %v13986_v59  ;;  %2970 = vmatprep.mubr.bf16.mxu0 %v13986_v59  ;;  %v13992_v59 = vld [vmem:[#allocation114_spill] sm:$0xff] }
 0x4de   :  { %v11794_v0 = vrot.slane %v3108_v5, %v13992_v59 }
 0x4e4   :  { %2632 = vmatmul.mubr.bf16.gmra.mrb[48].mxu1 %v13987_v6  ;;  %2971 = vmatmul.mubr.bf16.gmra.mrb[80].mxu0 %v13987_v6 }
 0x4e5   :  { %2641 = vmatprep.mubr.bf16.mxu1 %v13988_v31  ;;  %2980 = vmatprep.mubr.bf16.mxu0 %v13988_v31 }
 0x4ec   :  { %2642 = vmatmul.mubr.bf16.gmra.mrb[52].mxu1 %v13989_v28  ;;  %2981 = vmatmul.mubr.bf16.gmra.mrb[84].mxu0 %v13989_v28 }
 0x4ed   :  { %2651 = vmatprep.mubr.bf16.mxu1 %v11629_v19  ;;  %2990 = vmatprep.mubr.bf16.mxu0 %v11629_v19  ;;  %v13991_v19 = vld [vmem:[#allocation113_spill] sm:$0xff] }
 0x4ee   :  { %v11791_v28 = vrot.slane %v3108_v5, %v13991_v19 }
 0x4f4   :  { %2652 = vmatmul.mubr.bf16.gmra.mrb[56].mxu1 %v11627_v35  ;;  %2991 = vmatmul.mubr.bf16.gmra.mrb[88].mxu0 %v11627_v35 }
 0x4f5   :  { %2661 = vmatprep.mubr.bf16.mxu1 %v11677_v61  ;;  %3000 = vmatprep.mubr.bf16.mxu0 %v11677_v61 }
 0x4fc   :  { %2662 = vmatmul.mubr.bf16.gmra.mrb[60].mxu1 %v11675_v18  ;;  %3001 = vmatmul.mubr.bf16.gmra.mrb[92].mxu0 %v11675_v18 }
 0x597   :  { %v2593_v13 = vpop.f32.mrb[32].mxu1  ;;  %v11775_v9 = vpop.f32.mrb[64].mxu0 }
 0x598   :  { %v2595_v56 = vpop.f32.mrb[33].mxu1  ;;  %v11777_v36 = vpop.f32.mrb[65].mxu0  ;;  %v13585_v2 = vrot.slane %v11775_v9, 1 }
 0x599   :  { %v2597_v8 = vpop.f32.mrb[34].mxu1  ;;  %v2936_v49 = vpop.f32.mrb[66].mxu0  ;;  %v13588_v26 = vrot.slane %v11777_v36, 1 }
 0x59a   :  { %v3013_v54 = vrot.slane %v2936_v49, 1  ;;  %v2599_v37 = vpop.f32.mrb[35].mxu1  ;;  %v2938_v14 = vpop.f32.mrb[67].mxu0 }
 0x59b   :  { %v3014_v32 = vrot.slane %v2938_v14, 1 }
 0x59c   :  { %v3072_v15 = vsel %vm3043_vm12, %v13585_v2, %v3013_v54 }
 0x59d   :  { %v3076_v24 = vadd.f32 %v3072_v15, %v2593_v13  ;;  %v3073_v18 = vsel %vm3043_vm12, %v13588_v26, %v3014_v32 }
 0x59e   :  { %v3077_v61 = vadd.f32 %v3073_v18, %v2595_v56 }
 0x59f   :  { %v2603_v35 = vpop.f32.mrb[36].mxu1  ;;  %v2942_v49 = vpop.f32.mrb[68].mxu0  ;;  %v3120_v55 = vadd.f32 %v11791_v28, %v3076_v24 }
 0x5a0   :  { %v3015_v31 = vrot.slane %v2942_v49, 1  ;;  %v2605_v14 = vpop.f32.mrb[37].mxu1  ;;  %v2944_v6 = vpop.f32.mrb[69].mxu0  ;;  %v3121_v59 = vadd.f32 %v11794_v0, %v3077_v61 }
 0x5a1   :  { %v3016_v2 = vrot.slane %v2944_v6, 1  ;;  %v2607_v13 = vpop.f32.mrb[38].mxu1  ;;  %v2946_v15 = vpop.f32.mrb[70].mxu0 }
 0x5a2   :  { %v3070_v3 = vsel %vm3043_vm12, %v3013_v54, %v3015_v31  ;;  %v3017_v12 = vrot.slane %v2946_v15, 1  ;;  %v2609_v26 = vpop.f32.mrb[39].mxu1  ;;  %v2948_v18 = vpop.f32.mrb[71].mxu0  ;;  %v3153_v51 = vmax.f32 %v3121_v59, 0.0 }
 0x5a3   :  { %v3078_v56 = vadd.f32 %v3070_v3, %v2597_v8  ;;  %v3071_v49 = vsel %vm3043_vm12, %v3014_v32, %v3016_v2  ;;  %v3018_v19 = vrot.slane %v2948_v18, 1  ;;  %v13994_v8 = vmov 0.0  }
 0x5a4   :  { %v3079_v5 = vadd.f32 %v3071_v49, %v2599_v37  ;;  %v3068_v6 = vsel %vm3043_vm12, %v3015_v31, %v3017_v12  ;;  %v11809_v40 = vsel %vm3185_vm11, 1.0, %v13994_v8  ;;  %v3152_v49 = vmax.f32 %v3120_v55, 0.0 }
 0x5a5   :  { %v3122_v54 = vadd.f32 %v11791_v28, %v3078_v56  ;;  %v3080_v15 = vadd.f32 %v3068_v6, %v2603_v35  ;;  %v3069_v3 = vsel %vm3043_vm12, %v3016_v2, %v3018_v19 }
 0x5a6   :  { %v3123_v32 = vadd.f32 %v11794_v0, %v3079_v5  ;;  %v3081_v18 = vadd.f32 %v3069_v3, %v2605_v14 }
 0x5a7   :  { %v3154_v30 = vmax.f32 %v3122_v54, 0.0  ;;  %v2613_v24 = vpop.f32.mrb[40].mxu1  ;;  %v2952_v37 = vpop.f32.mrb[72].mxu0  ;;  %v3124_v56 = vadd.f32 %v11791_v28, %v3080_v15 }
 0x5a8   :  { %v3155_v21 = vmax.f32 %v3123_v32, 0.0  ;;  %v3019_v31 = vrot.slane %v2952_v37, 1  ;;  %v2615_v46 = vpop.f32.mrb[41].mxu1  ;;  %v2954_v61 = vpop.f32.mrb[73].mxu0  ;;  %v3125_v14 = vadd.f32 %v11794_v0, %v3081_v18 }
 0x5a9   :  { %v3192_v35 = vmul.f32 %v11809_v40, %v3154_v30  ;;  %v3020_v2 = vrot.slane %v2954_v61, 1  ;;  %v2617_v6 = vpop.f32.mrb[42].mxu1  ;;  %v2956_v8 = vpop.f32.mrb[74].mxu0  ;;  %v3156_v7 = vmax.f32 %v3124_v56, 0.0 }
 0x5aa   :  { %v3193_v38 = vmul.f32 %v11809_v40, %v3155_v21  ;;  %v3066_v5 = vsel %vm3043_vm12, %v3017_v12, %v3019_v31  ;;  %v3021_v55 = vrot.slane %v2956_v8, 1  ;;  %v2619_v54 = vpop.f32.mrb[43].mxu1  ;;  %v2958_v3 = vpop.f32.mrb[75].mxu0 }
 0x5ab   :  { %v3222_v32 = vmax.f32 %v3152_v49, %v3192_v35  ;;  %v3082_v37 = vadd.f32 %v3066_v5, %v2607_v13  ;;  %v3067_v30 = vsel %vm3043_vm12, %v3018_v19, %v3020_v2  ;;  %v3022_v59 = vrot.slane %v2958_v3, 1 }
 0x5ac   :  { %v3229_v15 = vmax.f32 %v3153_v51, %v3193_v38  ;;  %v3083_v61 = vadd.f32 %v3067_v30, %v2609_v26  ;;  %v3064_v50 = vsel %vm3043_vm12, %v3019_v31, %v3021_v55  ;;  %v3157_v19 = vmax.f32 %v3125_v14, 0.0 }
 0x5ad   :  { %v3223_v21 = vrot.slane %v3222_v32, 4  ;;  %v3126_v18 = vadd.f32 %v11791_v28, %v3082_v37  ;;  %v3084_v63 = vadd.f32 %v3064_v50, %v2613_v24  ;;  %v3065_v12 = vsel %vm3043_vm12, %v3020_v2, %v3022_v59 }
 0x5ae   :  { %v3230_v8 = vrot.slane %v3229_v15, 4  ;;  %v3127_v13 = vadd.f32 %v11794_v0, %v3083_v61  ;;  %v3085_v49 = vadd.f32 %v3065_v12, %v2615_v46 }
 0x5af   :  { %v3224_v35 = vmax.f32 %v3222_v32, %v3223_v21  ;;  %v3158_v5 = vmax.f32 %v3126_v18, 0.0  ;;  %v11827_v51 = vadd.f32 %v11791_v28, %v3084_v63  ;;  %v2623_v38 = vpop.f32.mrb[44].mxu1  ;;  %v2962_v26 = vpop.f32.mrb[76].mxu0 }
 0x5b0   :  { %v3231_v31 = vmax.f32 %v3229_v15, %v3230_v8  ;;  %v3159_v3 = vmax.f32 %v3127_v13, 0.0  ;;  %v3129_v50 = vadd.f32 %v11794_v0, %v3085_v49  ;;  %v3023_v24 = vrot.slane %v2962_v26, 1  ;;  %v2625_v37 = vpop.f32.mrb[45].mxu1  ;;  %v2964_v2 = vpop.f32.mrb[77].mxu0 }
 0x5b1   :  { %v3225_v30 = vrot.slane %v3224_v35, 2  ;;  %v3196_v56 = vmul.f32 %v11809_v40, %v3158_v5  ;;  %v3160_v46 = vmax.f32 %v11827_v51, 0.0  ;;  %v3024_v32 = vrot.slane %v2964_v2, 1  ;;  %v2627_v14 = vpop.f32.mrb[46].mxu1  ;;  %v2966_v61 = vpop.f32.mrb[78].mxu0 }
 0x5b2   :  { %v3232_v21 = vrot.slane %v3231_v31, 2  ;;  %v3197_v63 = vmul.f32 %v11809_v40, %v3159_v3  ;;  %v3161_v18 = vmax.f32 %v3129_v50, 0.0  ;;  %v3062_v15 = vsel %vm3043_vm12, %v3021_v55, %v3023_v24  ;;  %v2629_v12 = vpop.f32.mrb[47].mxu1  ;;  %v2968_v8 = vpop.f32.mrb[79].mxu0 }
 0x5b3   :  { %v3226_v13 = vmax.f32 %v3224_v35, %v3225_v30  ;;  %v3236_v49 = vmax.f32 %v3156_v7, %v3196_v56  ;;  %v3086_v26 = vadd.f32 %v3062_v15, %v2617_v6  ;;  %v3063_v5 = vsel %vm3043_vm12, %v3022_v59, %v3024_v32 }
 0x5b4   :  { %v3233_v52 = vmax.f32 %v3231_v31, %v3232_v21  ;;  %v3243_v51 = vmax.f32 %v3157_v19, %v3197_v63  ;;  %v3087_v2 = vadd.f32 %v3063_v5, %v2619_v54  ;;  %v3025_v22 = vrot.slane %v2966_v61, 1 }
 0x5b5   :  { %v3227_v33 = vrot.slane %v3226_v13, 1  ;;  %v3237_v10 = vrot.slane %v3236_v49, 4  ;;  %v3130_v3 = vadd.f32 %v11791_v28, %v3086_v26  ;;  %v3026_v50 = vrot.slane %v2968_v8, 1 }
 0x5b6   :  { %v3234_v27 = vrot.slane %v3233_v52, 1  ;;  %v3244_v47 = vrot.slane %v3243_v51, 4  ;;  %v3131_v55 = vadd.f32 %v11794_v0, %v3087_v2  ;;  %v3060_v7 = vsel %vm3043_vm12, %v3023_v24, %v3025_v22 }
 0x5b7   :  { %v11841_v6 = vmax.f32 %v3226_v13, %v3227_v33  ;;  %v3238_v35 = vmax.f32 %v3236_v49, %v3237_v10  ;;  %v3162_v59 = vmax.f32 %v3130_v3, 0.0  ;;  %v3088_v31 = vadd.f32 %v3060_v7, %v2623_v38  ;;  %v2633_v19 = vpop.f32.mrb[48].mxu1  ;;  %v2972_v54 = vpop.f32.mrb[80].mxu0 }
 0x5b8   :  { %v11843_v30 = vmax.f32 %v3233_v52, %v3234_v27  ;;  %v3245_v56 = vmax.f32 %v3243_v51, %v3244_v47  ;;  %v3163_v61 = vmax.f32 %v3131_v55, 0.0  ;;  %v3061_v21 = vsel %vm3043_vm12, %v3024_v32, %v3026_v50  ;;  %v2635_v63 = vpop.f32.mrb[49].mxu1  ;;  %v2974_v15 = vpop.f32.mrb[81].mxu0 }
 0x5b9   :  { %13995 = vst [vmem:[#allocation68_spill] sm:$0xff] %v11841_v6  ;;  %v3239_v8 = vrot.slane %v3238_v35, 2  ;;  %v3200_v26 = vmul.f32 %v11809_v40, %v3162_v59  ;;  %v3132_v33 = vadd.f32 %v11791_v28, %v3088_v31  ;;  %v3089_v24 = vadd.f32 %v3061_v21, %v2625_v37  ;;  %v2637_v10 = vpop.f32.mrb[50].mxu1  ;;  %v2976_v13 = vpop.f32.mrb[82].mxu0 }
 0x5ba   :  { %13996 = vst [vmem:[#allocation67_spill] sm:$0xff] %v11843_v30  ;;  %v3246_v38 = vrot.slane %v3245_v56, 2  ;;  %v3201_v49 = vmul.f32 %v11809_v40, %v3163_v61  ;;  %v3027_v27 = vrot.slane %v2972_v54, 1  ;;  %v3028_v52 = vrot.slane %v2974_v15, 1  ;;  %v2639_v47 = vpop.f32.mrb[51].mxu1  ;;  %v2978_v5 = vpop.f32.mrb[83].mxu0 }
 0x5bb   :  { %v3240_v51 = vmax.f32 %v3238_v35, %v3239_v8  ;;  %v3250_v2 = vmax.f32 %v3160_v46, %v3200_v26  ;;  %v3164_v32 = vmax.f32 %v3132_v33, 0.0  ;;  %v3133_v3 = vadd.f32 %v11794_v0, %v3089_v24 }
 0x5bc   :  { %v3247_v55 = vmax.f32 %v3245_v56, %v3246_v38  ;;  %v3257_v7 = vmax.f32 %v3161_v18, %v3201_v49  ;;  %v3058_v59 = vsel %vm3043_vm12, %v3025_v22, %v3027_v27  ;;  %v3059_v37 = vsel %vm3043_vm12, %v3026_v50, %v3028_v52 }
 0x5bd   :  { %v3241_v31 = vrot.slane %v3240_v51, 1  ;;  %v3251_v21 = vrot.slane %v3250_v2, 4  ;;  %v3165_v61 = vmax.f32 %v3133_v3, 0.0  ;;  %v3090_v54 = vadd.f32 %v3058_v59, %v2627_v14 }
 0x5be   :  { %v3248_v15 = vrot.slane %v3247_v55, 1  ;;  %v3258_v30 = vrot.slane %v3257_v7, 4  ;;  %v3091_v6 = vadd.f32 %v3059_v37, %v2629_v12  ;;  %v3029_v35 = vrot.slane %v2976_v13, 1 }
 0x5bf   :  { %v11855_v46 = vmax.f32 %v3240_v51, %v3241_v31  ;;  %v3252_v8 = vmax.f32 %v3250_v2, %v3251_v21  ;;  %v3134_v56 = vadd.f32 %v11791_v28, %v3090_v54  ;;  %v3030_v18 = vrot.slane %v2978_v5, 1  ;;  %v11858_v26 = vpop.f32.mrb[52].mxu1  ;;  %v2982_v22 = vpop.f32.mrb[84].mxu0 }
 0x5c0   :  { %v11860_v33 = vmax.f32 %v3247_v55, %v3248_v15  ;;  %v3259_v50 = vmax.f32 %v3257_v7, %v3258_v30  ;;  %v3135_v24 = vadd.f32 %v11794_v0, %v3091_v6  ;;  %v3056_v14 = vsel %vm3043_vm12, %v3027_v27, %v3029_v35  ;;  %v2645_v38 = vpop.f32.mrb[53].mxu1  ;;  %v2984_v12 = vpop.f32.mrb[85].mxu0 }
 0x5c1   :  { %13997 = vst [vmem:[#allocation69_spill] sm:$0xff] %v11855_v46  ;;  %v3253_v13 = vrot.slane %v3252_v8, 2  ;;  %v3166_v49 = vmax.f32 %v3134_v56, 0.0  ;;  %v3092_v51 = vadd.f32 %v3056_v14, %v2633_v19  ;;  %v3057_v2 = vsel %vm3043_vm12, %v3028_v52, %v3030_v18  ;;  %v2647_v5 = vpop.f32.mrb[54].mxu1  ;;  %v2986_v3 = vpop.f32.mrb[86].mxu0 }
 0x5c2   :  { %13998 = vst [vmem:[#allocation87_spill] sm:$0xff] %v11860_v33  ;;  %v3260_v59 = vrot.slane %v3259_v50, 2  ;;  %v3167_v37 = vmax.f32 %v3135_v24, 0.0  ;;  %v3093_v55 = vadd.f32 %v3057_v2, %v2635_v63  ;;  %v3031_v31 = vrot.slane %v2982_v22, 1  ;;  %v2649_v30 = vpop.f32.mrb[55].mxu1  ;;  %v2988_v7 = vpop.f32.mrb[87].mxu0 }
 0x5c3   :  { %v3254_v6 = vmax.f32 %v3252_v8, %v3253_v13  ;;  %v3204_v21 = vmul.f32 %v11809_v40, %v3166_v49  ;;  %v3136_v27 = vadd.f32 %v11791_v28, %v3092_v51  ;;  %v3032_v54 = vrot.slane %v2984_v12, 1 }
 0x5c4   :  { %v3261_v15 = vmax.f32 %v3259_v50, %v3260_v59  ;;  %v3205_v19 = vmul.f32 %v11809_v40, %v3167_v37  ;;  %v3137_v56 = vadd.f32 %v11794_v0, %v3093_v55  ;;  %v3054_v52 = vsel %vm3043_vm12, %v3029_v35, %v3031_v31 }
 0x5c5   :  { %v3255_v14 = vrot.slane %v3254_v6, 1  ;;  %v3264_v24 = vmax.f32 %v3164_v32, %v3204_v21  ;;  %v3168_v63 = vmax.f32 %v3136_v27, 0.0  ;;  %v3094_v22 = vadd.f32 %v3054_v52, %v2637_v10 }
 0x5c6   :  { %v3262_v2 = vrot.slane %v3261_v15, 1  ;;  %v3271_v33 = vmax.f32 %v3165_v61, %v3205_v19  ;;  %v3169_v8 = vmax.f32 %v3137_v56, 0.0  ;;  %v3055_v13 = vsel %vm3043_vm12, %v3030_v18, %v3032_v54 }
 0x5c7   :  { %v11875_v49 = vmax.f32 %v3254_v6, %v3255_v14  ;;  %v3265_v50 = vrot.slane %v3264_v24, 4  ;;  %v3138_v12 = vadd.f32 %v11791_v28, %v3094_v22  ;;  %v3095_v51 = vadd.f32 %v3055_v13, %v2639_v47  ;;  %v11878_v59 = vpop.f32.mrb[56].mxu1  ;;  %v11880_v37 = vpop.f32.mrb[88].mxu0 }
 0x5c8   :  { %v11882_v35 = vmax.f32 %v3261_v15, %v3262_v2  ;;  %v3272_v32 = vrot.slane %v3271_v33, 4  ;;  %v3033_v10 = vrot.slane %v2986_v3, 1  ;;  %v3034_v55 = vrot.slane %v2988_v7, 1  ;;  %v11884_v61 = vpop.f32.mrb[57].mxu1  ;;  %v2994_v21 = vpop.f32.mrb[89].mxu0 }
 0x5c9   :  { %13999 = vst [vmem:[#allocation88_spill] sm:$0xff] %v11875_v49  ;;  %v3266_v27 = vmax.f32 %v3264_v24, %v3265_v50  ;;  %v3170_v18 = vmax.f32 %v3138_v12, 0.0  ;;  %v3139_v6 = vadd.f32 %v11794_v0, %v3095_v51  ;;  %v3035_v19 = vrot.slane %v11880_v37, 1  ;;  %v11888_v56 = vpop.f32.mrb[58].mxu1  ;;  %v2996_v47 = vpop.f32.mrb[90].mxu0 }
 0x5ca   :  { %14000 = vst [vmem:[#allocation70_spill] sm:$0xff] %v11882_v35  ;;  %v3273_v52 = vmax.f32 %v3271_v33, %v3272_v32  ;;  %v3052_v15 = vsel %vm3043_vm12, %v3031_v31, %v3033_v10  ;;  %v3053_v3 = vsel %vm3043_vm12, %v3032_v54, %v3034_v55  ;;  %v3036_v7 = vrot.slane %v2994_v21, 1  ;;  %v11894_v14 = vpop.f32.mrb[59].mxu1  ;;  %v11896_v22 = vpop.f32.mrb[91].mxu0 }
 0x5cb   :  { %v3267_v24 = vrot.slane %v3266_v27, 2  ;;  %v3208_v2 = vmul.f32 %v11809_v40, %v3170_v18  ;;  %v3171_v13 = vmax.f32 %v3139_v6, 0.0  ;;  %v3096_v50 = vadd.f32 %v3052_v15, %v11858_v26 }
 0x5cc   :  { %v3274_v12 = vrot.slane %v3273_v52, 2  ;;  %v3097_v51 = vadd.f32 %v3053_v3, %v2645_v38  ;;  %v3050_v33 = vsel %vm3043_vm12, %v3033_v10, %v3035_v19  ;;  %v3051_v31 = vsel %vm3043_vm12, %v3034_v55, %v3036_v7 }
 0x5cd   :  { %v3268_v54 = vmax.f32 %v3266_v27, %v3267_v24  ;;  %v3278_v37 = vmax.f32 %v3168_v63, %v3208_v2  ;;  %v3209_v32 = vmul.f32 %v11809_v40, %v3171_v13  ;;  %v3140_v21 = vadd.f32 %v11791_v28, %v3096_v50 }
 0x5ce   :  { %v3275_v35 = vmax.f32 %v3273_v52, %v3274_v12  ;;  %v3141_v18 = vadd.f32 %v11794_v0, %v3097_v51  ;;  %v3098_v6 = vadd.f32 %v3050_v33, %v2647_v5  ;;  %v3099_v49 = vadd.f32 %v3051_v31, %v2649_v30 }
 0x5cf   :  { %v3269_v26 = vrot.slane %v3268_v54, 1  ;;  %v3279_v15 = vrot.slane %v3278_v37, 4  ;;  %v3285_v38 = vmax.f32 %v3169_v8, %v3209_v32  ;;  %v3172_v3 = vmax.f32 %v3140_v21, 0.0  ;;  %v11907_v46 = vpop.f32.mrb[60].mxu1  ;;  %v3002_v10 = vpop.f32.mrb[92].mxu0 }
 0x5d0   :  { %v3276_v60 = vrot.slane %v3275_v35, 1  ;;  %v3173_v55 = vmax.f32 %v3141_v18, 0.0  ;;  %v3142_v63 = vadd.f32 %v11791_v28, %v3098_v6  ;;  %v3143_v27 = vadd.f32 %v11794_v0, %v3099_v49  ;;  %v11911_v24 = vpop.f32.mrb[61].mxu1  ;;  %v3004_v52 = vpop.f32.mrb[93].mxu0 }
 0x5d1   :  { %v11913_v2 = vmax.f32 %v3268_v54, %v3269_v26  ;;  %v3280_v5 = vmax.f32 %v3278_v37, %v3279_v15  ;;  %v3286_v30 = vrot.slane %v3285_v38, 4  ;;  %v3037_v13 = vrot.slane %v2996_v47, 1  ;;  %v2667_v50 = vpop.f32.mrb[62].mxu1  ;;  %v3006_v8 = vpop.f32.mrb[94].mxu0 }
 0x5d2   :  { %v11915_v12 = vmax.f32 %v3275_v35, %v3276_v60  ;;  %v3174_v51 = vmax.f32 %v3142_v63, 0.0  ;;  %v3175_v33 = vmax.f32 %v3143_v27, 0.0  ;;  %v3038_v31 = vrot.slane %v11896_v22, 1  ;;  %v2669_v32 = vpop.f32.mrb[63].mxu1  ;;  %v3008_v21 = vpop.f32.mrb[95].mxu0 }
 0x5d3   :  { %14001 = vst [vmem:[#allocation72_spill] sm:$0xff] %v11913_v2  ;;  %v3281_v18 = vrot.slane %v3280_v5, 2  ;;  %v3287_v49 = vmax.f32 %v3285_v38, %v3286_v30  ;;  %v3048_v6 = vsel %vm3043_vm12, %v3035_v19, %v3037_v13  ;;  %v3039_v54 = vrot.slane %v3002_v10, 1 }
 0x5d4   :  { %14002 = vst [vmem:[#allocation71_spill] sm:$0xff] %v11915_v12  ;;  %v3212_v37 = vmul.f32 %v11809_v40, %v3174_v51  ;;  %v3213_v47 = vmul.f32 %v11809_v40, %v3175_v33  ;;  %v3100_v26 = vadd.f32 %v3048_v6, %v11878_v59  ;;  %v3049_v60 = vsel %vm3043_vm12, %v3036_v7, %v3038_v31 }
 0x5d5   :  { %v3282_v35 = vmax.f32 %v3280_v5, %v3281_v18  ;;  %v3288_v15 = vrot.slane %v3287_v49, 2  ;;  %v3101_v22 = vadd.f32 %v3049_v60, %v11884_v61  ;;  %v3046_v38 = vsel %vm3043_vm12, %v3037_v13, %v3039_v54 }
 0x5d6   :  { %v3292_v63 = vmax.f32 %v3172_v3, %v3212_v37  ;;  %v3299_v27 = vmax.f32 %v3173_v55, %v3213_v47  ;;  %v3144_v19 = vadd.f32 %v11791_v28, %v3100_v26  ;;  %v3102_v10 = vadd.f32 %v3046_v38, %v11888_v56 }
 0x5d7   :  { %v3283_v30 = vrot.slane %v3282_v35, 1  ;;  %v3289_v51 = vmax.f32 %v3287_v49, %v3288_v15  ;;  %v3145_v59 = vadd.f32 %v11794_v0, %v3101_v22  ;;  %v3040_v33 = vrot.slane %v3004_v52, 1 }
 0x5d8   :  { %v3293_v6 = vrot.slane %v3292_v63, 4  ;;  %v3300_v7 = vrot.slane %v3299_v27, 4  ;;  %v3146_v5 = vadd.f32 %v11791_v28, %v3102_v10  ;;  %v3176_v60 = vmax.f32 %v3144_v19, 0.0 }
 0x5d9   :  { %v11932_v18 = vmax.f32 %v3282_v35, %v3283_v30  ;;  %v3290_v61 = vrot.slane %v3289_v51, 1  ;;  %v3047_v3 = vsel %vm3043_vm12, %v3038_v31, %v3040_v33  ;;  %v3177_v47 = vmax.f32 %v3145_v59, 0.0 }
 0x5da   :  { %v3294_v55 = vmax.f32 %v3292_v63, %v3293_v6  ;;  %v3301_v13 = vmax.f32 %v3299_v27, %v3300_v7  ;;  %v3178_v37 = vmax.f32 %v3146_v5, 0.0  ;;  %v3103_v56 = vadd.f32 %v3047_v3, %v11894_v14 }
 0x5db   :  { %14003 = vst [vmem:[#allocation73_spill] sm:$0xff] %v11932_v18  ;;  %v11937_v49 = vmax.f32 %v3289_v51, %v3290_v61  ;;  %v3041_v52 = vrot.slane %v3006_v8, 1  ;;  %v3042_v26 = vrot.slane %v3008_v21, 1  ;;  %v14005_v31 = vrot.slane %v11775_v9, 1 }
 0x5dc   :  { %v3295_v15 = vrot.slane %v3294_v55, 2  ;;  %v3302_v22 = vrot.slane %v3301_v13, 2  ;;  %v3216_v35 = vmul.f32 %v11809_v40, %v3178_v37  ;;  %v3147_v38 = vadd.f32 %v11794_v0, %v3103_v56 }
 0x5dd   :  { %14004 = vst [vmem:[#allocation89_spill] sm:$0xff] %v11937_v49  ;;  %v3044_v19 = vsel %vm3043_vm12, %v3039_v54, %v3041_v52  ;;  %v3074_v63 = vsel %vm3043_vm12, %v3041_v52, %v14005_v31  ;;  %v3045_v14 = vsel %vm3043_vm12, %v3040_v33, %v3042_v26  ;;  %v14006_v8 = vrot.slane %v11777_v36, 1 }
 0x5de   :  { %v3296_v27 = vmax.f32 %v3294_v55, %v3295_v15  ;;  %v3303_v10 = vmax.f32 %v3301_v13, %v3302_v22  ;;  %v3306_v30 = vmax.f32 %v3176_v60, %v3216_v35  ;;  %v3179_v51 = vmax.f32 %v3147_v38, 0.0 }
 0x5df   :  { %v3075_v21 = vsel %vm3043_vm12, %v3042_v26, %v14006_v8  ;;  %v3104_v59 = vadd.f32 %v3044_v19, %v11907_v46  ;;  %v3106_v54 = vadd.f32 %v3074_v63, %v2667_v50  ;;  %v3105_v9 = vadd.f32 %v3045_v14, %v11911_v24 }
 0x5e0   :  { %v3107_v6 = vadd.f32 %v3075_v21, %v2669_v32  ;;  %v3297_v7 = vrot.slane %v3296_v27, 1  ;;  %v3304_v5 = vrot.slane %v3303_v10, 1  ;;  %v3307_v61 = vrot.slane %v3306_v30, 4 }
 0x5e1   :  { %v3217_v33 = vmul.f32 %v11809_v40, %v3179_v51  ;;  %v3148_v36 = vadd.f32 %v11791_v28, %v3104_v59  ;;  %v3150_v3 = vadd.f32 %v11791_v28, %v3106_v54  ;;  %v3149_v55 = vadd.f32 %v11794_v0, %v3105_v9 }
 0x5e2   :  { %v3151_v60 = vadd.f32 %v11794_v0, %v3107_v6  ;;  %v11960_v13 = vmax.f32 %v3296_v27, %v3297_v7  ;;  %v11962_v46 = vmax.f32 %v3303_v10, %v3304_v5  ;;  %v3308_v50 = vmax.f32 %v3306_v30, %v3307_v61 }
 0x5e3   :  { %v3313_v24 = vmax.f32 %v3177_v47, %v3217_v33  ;;  %v3182_v32 = vmax.f32 %v3150_v3, 0.0  ;;  %v3180_v26 = vmax.f32 %v3148_v36, 0.0  ;;  %v3181_v22 = vmax.f32 %v3149_v55, 0.0 }
 0x5e4   :  { %14007 = vst [vmem:[#allocation90_spill] sm:$0xff] %v11960_v13  ;;  %14008 = vst [vmem:[#allocation74_spill] sm:$0xff] %v11962_v46  ;;  %v3183_v37 = vmax.f32 %v3151_v60, 0.0  ;;  %v3309_v56 = vrot.slane %v3308_v50, 2 }
 0x5e5   :  { %v3314_v52 = vrot.slane %v3313_v24, 4  ;;  %v3220_v15 = vmul.f32 %v11809_v40, %v3182_v32 }
 0x5e6   :  { %v3221_v28 = vmul.f32 %v11809_v40, %v3183_v37  ;;  %v3310_v35 = vmax.f32 %v3308_v50, %v3309_v56 }
 0x5e7   :  { %v3315_v38 = vmax.f32 %v3313_v24, %v3314_v52  ;;  %v3320_v19 = vmax.f32 %v3180_v26, %v3220_v15 }
 0x5e8   :  { %v3327_v0 = vmax.f32 %v3181_v22, %v3221_v28  ;;  %v3311_v31 = vrot.slane %v3310_v35, 1 }
 0x5e9   :  { %v3316_v63 = vrot.slane %v3315_v38, 2  ;;  %v3321_v14 = vrot.slane %v3320_v19, 4 }
 0x5ea   :  { %v3328_v8 = vrot.slane %v3327_v0, 4  ;;  %v11966_v21 = vmax.f32 %v3310_v35, %v3311_v31 }
 0x5eb   :  { %v3317_v47 = vmax.f32 %v3315_v38, %v3316_v63  ;;  %v3322_v27 = vmax.f32 %v3320_v19, %v3321_v14 }
 0x5ec   :  { %14009 = vst [vmem:[#allocation76_spill] sm:$0xff] %v11966_v21  ;;  %v3329_v10 = vmax.f32 %v3327_v0, %v3328_v8 }
 0x5ed   :  { %v3318_v30 = vrot.slane %v3317_v47, 1  ;;  %v3323_v51 = vrot.slane %v3322_v27, 2 }
 0x5ee   :  { %v3330_v59 = vrot.slane %v3329_v10, 2 }
 0x5ef   :  { %v11968_v54 = vmax.f32 %v3317_v47, %v3318_v30  ;;  %v3324_v9 = vmax.f32 %v3322_v27, %v3323_v51 }
 0x5f0   :  { %v3331_v40 = vmax.f32 %v3329_v10, %v3330_v59 }
 0x5f1   :  { %14010 = vst [vmem:[#allocation75_spill] sm:$0xff] %v11968_v54  ;;  %v3325_v6 = vrot.slane %v3324_v9, 1 }
 0x5f2   :  { %v3332_v7 = vrot.slane %v3331_v40, 1 }
 0x5f3   :  { %v11970_v5 = vmax.f32 %v3324_v9, %v3325_v6 }
 0x5f4   :  { %v11972_v61 = vmax.f32 %v3331_v40, %v3332_v7 }
 0x5f5   :  { %14011 = vst [vmem:[#allocation77_spill] sm:$0xff] %v11970_v5 }
 0x5f6   :  { %14012 = vst [vmem:[#allocation91_spill] sm:$0xff] %v11972_v61 }
 0x5f7   :  { %9814 = dma.done.wait [#allocation7 + $0x1], 36864 }
 0x5f8   :  { %9815 = vsyncadd [#allocation7 + $0x1], 4294930432  ;;  %3657 = vmatprep.mubr.bf16.mxu1 %v11316_v57  ;;  %3996 = vmatprep.mubr.bf16.mxu0 %v11316_v57  ;;  %v3338_v33 = vld [vmem:[#allocation3 + $0x8] sm:$0xff]  ;;  %v3340_v36 = vld [vmem:[#allocation3 + $0x18] sm:$0xff]  ;;  %vm4770_vm13 = vcmp.lt.s32.totalorder %v13990_v43, 6 }
 0x5f9   :  { %v3337_v3 = vld [vmem:[#allocation3] sm:$0xff]  ;;  %3625 = vmatprep.subr.bf16.mxu1 %v3338_v33  ;;  %3964 = vmatprep.subr.bf16.mxu0 %v3340_v36  ;;  %v3339_v55 = vld [vmem:[#allocation3 + $0x10] sm:$0xff]  ;;  %v3344_v60 = vld [vmem:[#allocation3 + $0x38] sm:$0xff] }
 0x5fa   :  { %v3346_v50 = vld [vmem:[#allocation3 + $0x48] sm:$0xff]  ;;  %3626 = vmatpush1.bf16.msra.mxu1 %v3337_v3  ;;  %3965 = vmatpush1.bf16.msra.mxu0 %v3339_v55  ;;  %v3343_v24 = vld [vmem:[#allocation3 + $0x30] sm:$0xff]  ;;  %v3345_v32 = vld [vmem:[#allocation3 + $0x40] sm:$0xff] }
 0x5fb   :  { %3627 = vmatprep.subr.bf16.mxu1 %v3344_v60  ;;  %3966 = vmatprep.subr.bf16.mxu0 %v3346_v50  ;;  %v3350_v37 = vld [vmem:[#allocation3 + $0x68] sm:$0xff]  ;;  %v3352_v56 = vld [vmem:[#allocation3 + $0x78] sm:$0xff]  ;;  %v3349_v52 = vld [vmem:[#allocation3 + $0x60] sm:$0xff] }
 0x5fc   :  { %v3351_v26 = vld [vmem:[#allocation3 + $0x70] sm:$0xff]  ;;  %v3356_v15 = vld [vmem:[#allocation3 + $0x98] sm:$0xff]  ;;  %v3358_v22 = vld [vmem:[#allocation3 + $0xa8] sm:$0xff] }
 0x5fd   :  { %v3355_v28 = vld [vmem:[#allocation3 + $0x90] sm:$0xff]  ;;  %v3357_v35 = vld [vmem:[#allocation3 + $0xa0] sm:$0xff]  ;;  %v3362_v38 = vld [vmem:[#allocation3 + $0xc8] sm:$0xff] }
 0x5fe   :  { %3628 = vmatpush1.bf16.msra.mxu1 %v3343_v24  ;;  %3967 = vmatpush1.bf16.msra.mxu0 %v3345_v32  ;;  %v3364_v19 = vld [vmem:[#allocation3 + $0xd8] sm:$0xff]  ;;  %v3361_v0 = vld [vmem:[#allocation3 + $0xc0] sm:$0xff]  ;;  %v3363_v31 = vld [vmem:[#allocation3 + $0xd0] sm:$0xff] }
 0x5ff   :  { %3629 = vmatprep.subr.bf16.mxu1 %v3350_v37  ;;  %3968 = vmatprep.subr.bf16.mxu0 %v3352_v56  ;;  %v3368_v63 = vld [vmem:[#allocation3 + $0xf8] sm:$0xff]  ;;  %v3370_v14 = vld [vmem:[#allocation3 + $0x108] sm:$0xff]  ;;  %v3367_v8 = vld [vmem:[#allocation3 + $0xf0] sm:$0xff] }
 0x600   :  { %v3369_v47 = vld [vmem:[#allocation3 + $0x100] sm:$0xff]  ;;  %v3374_v27 = vld [vmem:[#allocation3 + $0x128] sm:$0xff]  ;;  %v3376_v10 = vld [vmem:[#allocation3 + $0x138] sm:$0xff] }
 0x601   :  { %v3373_v30 = vld [vmem:[#allocation3 + $0x120] sm:$0xff]  ;;  %v3375_v51 = vld [vmem:[#allocation3 + $0x130] sm:$0xff]  ;;  %v3380_v59 = vld [vmem:[#allocation3 + $0x158] sm:$0xff] }
 0x602   :  { %3630 = vmatpush1.bf16.msra.mxu1 %v3349_v52  ;;  %3969 = vmatpush1.bf16.msra.mxu0 %v3351_v26  ;;  %v3382_v9 = vld [vmem:[#allocation3 + $0x168] sm:$0xff]  ;;  %v3379_v40 = vld [vmem:[#allocation3 + $0x150] sm:$0xff]  ;;  %v3381_v6 = vld [vmem:[#allocation3 + $0x160] sm:$0xff] }
 0x603   :  { %3631 = vmatprep.subr.bf16.mxu1 %v3356_v15  ;;  %3970 = vmatprep.subr.bf16.mxu0 %v3358_v22  ;;  %v3386_v7 = vld [vmem:[#allocation3 + $0x188] sm:$0xff]  ;;  %v3388_v33 = vld [vmem:[#allocation3 + $0x198] sm:$0xff]  ;;  %v3385_v36 = vld [vmem:[#allocation3 + $0x180] sm:$0xff] }
 0x604   :  { %v3387_v3 = vld [vmem:[#allocation3 + $0x190] sm:$0xff]  ;;  %v3392_v55 = vld [vmem:[#allocation3 + $0x1b8] sm:$0xff]  ;;  %v3394_v60 = vld [vmem:[#allocation3 + $0x1c8] sm:$0xff] }
 0x605   :  { %v3391_v50 = vld [vmem:[#allocation3 + $0x1b0] sm:$0xff]  ;;  %v3393_v24 = vld [vmem:[#allocation3 + $0x1c0] sm:$0xff]  ;;  %v3398_v32 = vld [vmem:[#allocation3 + $0x1e8] sm:$0xff] }
 0x606   :  { %3632 = vmatpush1.bf16.msra.mxu1 %v3355_v28  ;;  %3971 = vmatpush1.bf16.msra.mxu0 %v3357_v35  ;;  %v3400_v37 = vld [vmem:[#allocation3 + $0x1f8] sm:$0xff]  ;;  %v3397_v56 = vld [vmem:[#allocation3 + $0x1e0] sm:$0xff]  ;;  %v3399_v52 = vld [vmem:[#allocation3 + $0x1f0] sm:$0xff] }
 0x607   :  { %3633 = vmatprep.subr.bf16.mxu1 %v3362_v38  ;;  %3972 = vmatprep.subr.bf16.mxu0 %v3364_v19  ;;  %v3404_v26 = vld [vmem:[#allocation3 + $0x218] sm:$0xff]  ;;  %v3406_v15 = vld [vmem:[#allocation3 + $0x228] sm:$0xff]  ;;  %v3403_v22 = vld [vmem:[#allocation3 + $0x210] sm:$0xff] }
 0x608   :  { %v3405_v28 = vld [vmem:[#allocation3 + $0x220] sm:$0xff]  ;;  %v3410_v35 = vld [vmem:[#allocation3 + $0x248] sm:$0xff]  ;;  %v3412_v38 = vld [vmem:[#allocation3 + $0x258] sm:$0xff] }
 0x609   :  { %v3409_v19 = vld [vmem:[#allocation3 + $0x240] sm:$0xff]  ;;  %v3432_v5 = vld [vmem:[#allocation3 + $0x2f8] sm:$0xff] }
 0x60a   :  { %3634 = vmatpush1.bf16.msra.mxu1 %v3361_v0  ;;  %3973 = vmatpush1.bf16.msra.mxu0 %v3363_v31  ;;  %v3411_v0 = vld [vmem:[#allocation3 + $0x250] sm:$0xff]  ;;  %v3416_v31 = vld [vmem:[#allocation3 + $0x278] sm:$0xff]  ;;  %v3425_v61 = vld [vmem:[#allocation3 + $0x2c0] sm:$0xff] }
 0x60b   :  { %3635 = vmatprep.subr.bf16.mxu1 %v3368_v63  ;;  %3974 = vmatprep.subr.bf16.mxu0 %v3370_v14  ;;  %v3418_v63 = vld [vmem:[#allocation3 + $0x288] sm:$0xff]  ;;  %v3415_v14 = vld [vmem:[#allocation3 + $0x270] sm:$0xff]  ;;  %v3444_v54 = vld [vmem:[#allocation3 + $0x358] sm:$0xff] }
 0x60c   :  { %v3456_v21 = vld [vmem:[#allocation3 + $0x3b8] sm:$0xff] }
 0x60e   :  { %3636 = vmatpush1.bf16.msra.mxu1 %v3367_v8  ;;  %3975 = vmatpush1.bf16.msra.mxu0 %v3369_v47  ;;  %v3417_v8 = vld [vmem:[#allocation3 + $0x280] sm:$0xff]  ;;  %v3422_v47 = vld [vmem:[#allocation3 + $0x2a8] sm:$0xff] }
 0x60f   :  { %3637 = vmatprep.subr.bf16.mxu1 %v3374_v27  ;;  %3976 = vmatprep.subr.bf16.mxu0 %v3376_v10  ;;  %v3424_v27 = vld [vmem:[#allocation3 + $0x2b8] sm:$0xff]  ;;  %v3421_v10 = vld [vmem:[#allocation3 + $0x2a0] sm:$0xff] }
 0x612   :  { %3638 = vmatpush1.bf16.msra.mxu1 %v3373_v30  ;;  %3977 = vmatpush1.bf16.msra.mxu0 %v3375_v51  ;;  %v3423_v30 = vld [vmem:[#allocation3 + $0x2b0] sm:$0xff]  ;;  %v3428_v51 = vld [vmem:[#allocation3 + $0x2d8] sm:$0xff] }
 0x613   :  { %3639 = vmatprep.subr.bf16.mxu1 %v3380_v59  ;;  %3978 = vmatprep.subr.bf16.mxu0 %v3382_v9  ;;  %v3430_v59 = vld [vmem:[#allocation3 + $0x2e8] sm:$0xff]  ;;  %v3427_v9 = vld [vmem:[#allocation3 + $0x2d0] sm:$0xff] }
 0x616   :  { %3640 = vmatpush1.bf16.msra.mxu1 %v3379_v40  ;;  %3979 = vmatpush1.bf16.msra.mxu0 %v3381_v6  ;;  %v3429_v40 = vld [vmem:[#allocation3 + $0x2e0] sm:$0xff]  ;;  %v3434_v6 = vld [vmem:[#allocation3 + $0x308] sm:$0xff] }
 0x617   :  { %3641 = vmatprep.subr.bf16.mxu1 %v3386_v7  ;;  %3980 = vmatprep.subr.bf16.mxu0 %v3388_v33  ;;  %v3436_v7 = vld [vmem:[#allocation3 + $0x318] sm:$0xff]  ;;  %v3433_v33 = vld [vmem:[#allocation3 + $0x300] sm:$0xff] }
 0x61a   :  { %3642 = vmatpush1.bf16.msra.mxu1 %v3385_v36  ;;  %3981 = vmatpush1.bf16.msra.mxu0 %v3387_v3  ;;  %v3435_v36 = vld [vmem:[#allocation3 + $0x310] sm:$0xff]  ;;  %v3440_v3 = vld [vmem:[#allocation3 + $0x338] sm:$0xff] }
 0x61b   :  { %3643 = vmatprep.subr.bf16.mxu1 %v3392_v55  ;;  %3982 = vmatprep.subr.bf16.mxu0 %v3394_v60  ;;  %v3442_v55 = vld [vmem:[#allocation3 + $0x348] sm:$0xff]  ;;  %v3439_v60 = vld [vmem:[#allocation3 + $0x330] sm:$0xff] }
 0x61e   :  { %3644 = vmatpush1.bf16.msra.mxu1 %v3391_v50  ;;  %3983 = vmatpush1.bf16.msra.mxu0 %v3393_v24  ;;  %v3441_v50 = vld [vmem:[#allocation3 + $0x340] sm:$0xff]  ;;  %v3446_v24 = vld [vmem:[#allocation3 + $0x368] sm:$0xff] }
 0x61f   :  { %3645 = vmatprep.subr.bf16.mxu1 %v3398_v32  ;;  %3984 = vmatprep.subr.bf16.mxu0 %v3400_v37  ;;  %v3448_v32 = vld [vmem:[#allocation3 + $0x378] sm:$0xff]  ;;  %v3445_v37 = vld [vmem:[#allocation3 + $0x360] sm:$0xff] }
 0x622   :  { %3646 = vmatpush1.bf16.msra.mxu1 %v3397_v56  ;;  %3985 = vmatpush1.bf16.msra.mxu0 %v3399_v52  ;;  %v3447_v56 = vld [vmem:[#allocation3 + $0x370] sm:$0xff]  ;;  %v3452_v52 = vld [vmem:[#allocation3 + $0x398] sm:$0xff] }
 0x623   :  { %3647 = vmatprep.subr.bf16.mxu1 %v3404_v26  ;;  %3986 = vmatprep.subr.bf16.mxu0 %v3406_v15  ;;  %v3454_v26 = vld [vmem:[#allocation3 + $0x3a8] sm:$0xff]  ;;  %v3451_v15 = vld [vmem:[#allocation3 + $0x390] sm:$0xff] }
 0x626   :  { %3648 = vmatpush1.bf16.msra.mxu1 %v3403_v22  ;;  %3987 = vmatpush1.bf16.msra.mxu0 %v3405_v28  ;;  %v3453_v22 = vld [vmem:[#allocation3 + $0x3a0] sm:$0xff]  ;;  %v3458_v28 = vld [vmem:[#allocation3 + $0x3c8] sm:$0xff] }
 0x627   :  { %3649 = vmatprep.subr.bf16.mxu1 %v3410_v35  ;;  %3988 = vmatprep.subr.bf16.mxu0 %v3412_v38  ;;  %v3460_v35 = vld [vmem:[#allocation3 + $0x3d8] sm:$0xff]  ;;  %v3457_v38 = vld [vmem:[#allocation3 + $0x3c0] sm:$0xff] }
 0x62a   :  { %3650 = vmatpush1.bf16.msra.mxu1 %v3409_v19  ;;  %3989 = vmatpush1.bf16.msra.mxu0 %v3411_v0  ;;  %v3459_v19 = vld [vmem:[#allocation3 + $0x3d0] sm:$0xff]  ;;  %v3464_v0 = vld [vmem:[#allocation3 + $0x3f8] sm:$0xff] }
 0x62b   :  { %3651 = vmatprep.subr.bf16.mxu1 %v3416_v31  ;;  %3990 = vmatprep.subr.bf16.mxu0 %v3418_v63  ;;  %v3466_v31 = vld [vmem:[#allocation3 + $0x408] sm:$0xff]  ;;  %v3463_v63 = vld [vmem:[#allocation3 + $0x3f0] sm:$0xff] }
 0x62e   :  { %3652 = vmatpush1.bf16.msra.mxu1 %v3415_v14  ;;  %3991 = vmatpush1.bf16.msra.mxu0 %v3417_v8  ;;  %v3465_v14 = vld [vmem:[#allocation3 + $0x400] sm:$0xff]  ;;  %v3470_v8 = vld [vmem:[#allocation3 + $0x428] sm:$0xff] }
 0x62f   :  { %3653 = vmatprep.subr.bf16.mxu1 %v3422_v47  ;;  %3992 = vmatprep.subr.bf16.mxu0 %v3424_v27  ;;  %v3472_v47 = vld [vmem:[#allocation3 + $0x438] sm:$0xff]  ;;  %v3469_v27 = vld [vmem:[#allocation3 + $0x420] sm:$0xff] }
 0x632   :  { %3654 = vmatpush1.bf16.msra.mxu1 %v3421_v10  ;;  %3993 = vmatpush1.bf16.msra.mxu0 %v3423_v30  ;;  %v3471_v10 = vld [vmem:[#allocation3 + $0x430] sm:$0xff]  ;;  %v3476_v30 = vld [vmem:[#allocation3 + $0x458] sm:$0xff] }
 0x633   :  { %3655 = vmatprep.subr.bf16.mxu1 %v3428_v51  ;;  %3994 = vmatprep.subr.bf16.mxu0 %v3430_v59  ;;  %v3478_v51 = vld [vmem:[#allocation3 + $0x468] sm:$0xff]  ;;  %v3475_v59 = vld [vmem:[#allocation3 + $0x450] sm:$0xff] }
 0x636   :  { %3656 = vmatpush1.bf16.msra.mxu1 %v3427_v9  ;;  %3995 = vmatpush1.bf16.msra.mxu0 %v3429_v40  ;;  %v3477_v9 = vld [vmem:[#allocation3 + $0x460] sm:$0xff]  ;;  %v3482_v40 = vld [vmem:[#allocation3 + $0x488] sm:$0xff] }
 0x637   :  { %3738 = vmatprep.subr.bf16.mxu1 %v3434_v6  ;;  %4077 = vmatprep.subr.bf16.mxu0 %v3436_v7  ;;  %v3484_v6 = vld [vmem:[#allocation3 + $0x498] sm:$0xff]  ;;  %v3481_v7 = vld [vmem:[#allocation3 + $0x480] sm:$0xff] }
 0x639   :  { %3658 = vmatmul.mubr.bf16.vlgmr.msra.gmra.mrb[64].mxu1 %v11314_v42  ;;  %3997 = vmatmul.mubr.bf16.vlgmr.msra.gmra.mrb[96].mxu0 %v11314_v42 }
 0x63a   :  { %3739 = vmatpush1.bf16.msra.mxu1 %v3433_v33  ;;  %4078 = vmatpush1.bf16.msra.mxu0 %v3435_v36  ;;  %v3483_v33 = vld [vmem:[#allocation3 + $0x490] sm:$0xff]  ;;  %v3488_v36 = vld [vmem:[#allocation3 + $0x4b8] sm:$0xff] }
 0x63b   :  { %3740 = vmatprep.subr.bf16.mxu1 %v3440_v3  ;;  %4079 = vmatprep.subr.bf16.mxu0 %v3442_v55  ;;  %v3490_v3 = vld [vmem:[#allocation3 + $0x4c8] sm:$0xff]  ;;  %v3487_v55 = vld [vmem:[#allocation3 + $0x4b0] sm:$0xff] }
 0x63c   :  { %3667 = vmatprep.mubr.bf16.mxu1 %v11362_v17  ;;  %4006 = vmatprep.mubr.bf16.mxu0 %v11362_v17 }
 0x63e   :  { %3741 = vmatpush1.bf16.msra.mxu1 %v3439_v60  ;;  %4080 = vmatpush1.bf16.msra.mxu0 %v3441_v50  ;;  %v3489_v60 = vld [vmem:[#allocation3 + $0x4c0] sm:$0xff]  ;;  %v3494_v50 = vld [vmem:[#allocation3 + $0x4e8] sm:$0xff] }
 0x63f   :  { %3742 = vmatprep.subr.bf16.mxu1 %v3446_v24  ;;  %4081 = vmatprep.subr.bf16.mxu0 %v3448_v32  ;;  %v3496_v24 = vld [vmem:[#allocation3 + $0x4f8] sm:$0xff]  ;;  %v3493_v32 = vld [vmem:[#allocation3 + $0x4e0] sm:$0xff] }
 0x641   :  { %3668 = vmatmul.mubr.bf16.gmra.mrb[68].mxu1 %v11360_v34  ;;  %4007 = vmatmul.mubr.bf16.gmra.mrb[100].mxu0 %v11360_v34 }
 0x642   :  { %3743 = vmatpush1.bf16.msra.mxu1 %v3445_v37  ;;  %4082 = vmatpush1.bf16.msra.mxu0 %v3447_v56  ;;  %v3495_v37 = vld [vmem:[#allocation3 + $0x4f0] sm:$0xff]  ;;  %v3500_v56 = vld [vmem:[#allocation3 + $0x518] sm:$0xff] }
 0x643   :  { %3744 = vmatprep.subr.bf16.mxu1 %v3452_v52  ;;  %4083 = vmatprep.subr.bf16.mxu0 %v3454_v26  ;;  %v3502_v52 = vld [vmem:[#allocation3 + $0x528] sm:$0xff]  ;;  %v3499_v26 = vld [vmem:[#allocation3 + $0x510] sm:$0xff] }
 0x644   :  { %3677 = vmatprep.mubr.bf16.mxu1 %v11414_v25  ;;  %4016 = vmatprep.mubr.bf16.mxu0 %v11414_v25 }
 0x646   :  { %3745 = vmatpush1.bf16.msra.mxu1 %v3451_v15  ;;  %4084 = vmatpush1.bf16.msra.mxu0 %v3453_v22  ;;  %v3501_v15 = vld [vmem:[#allocation3 + $0x520] sm:$0xff]  ;;  %v3506_v22 = vld [vmem:[#allocation3 + $0x548] sm:$0xff] }
 0x647   :  { %3746 = vmatprep.subr.bf16.mxu1 %v3458_v28  ;;  %4085 = vmatprep.subr.bf16.mxu0 %v3460_v35  ;;  %v3508_v28 = vld [vmem:[#allocation3 + $0x558] sm:$0xff]  ;;  %v3505_v35 = vld [vmem:[#allocation3 + $0x540] sm:$0xff] }
 0x649   :  { %3678 = vmatmul.mubr.bf16.gmra.mrb[72].mxu1 %v11412_v39  ;;  %4017 = vmatmul.mubr.bf16.gmra.mrb[104].mxu0 %v11412_v39 }
 0x64a   :  { %3747 = vmatpush1.bf16.msra.mxu1 %v3457_v38  ;;  %4086 = vmatpush1.bf16.msra.mxu0 %v3459_v19  ;;  %v3507_v38 = vld [vmem:[#allocation3 + $0x550] sm:$0xff]  ;;  %v3512_v19 = vld [vmem:[#allocation3 + $0x578] sm:$0xff] }
 0x64b   :  { %3748 = vmatprep.subr.bf16.mxu1 %v3464_v0  ;;  %4087 = vmatprep.subr.bf16.mxu0 %v3466_v31  ;;  %v3514_v0 = vld [vmem:[#allocation3 + $0x588] sm:$0xff]  ;;  %v3511_v31 = vld [vmem:[#allocation3 + $0x570] sm:$0xff] }
 0x64c   :  { %3687 = vmatprep.mubr.bf16.mxu1 %v11458_v58  ;;  %4026 = vmatprep.mubr.bf16.mxu0 %v11458_v58 }
 0x64e   :  { %3749 = vmatpush1.bf16.msra.mxu1 %v3463_v63  ;;  %4088 = vmatpush1.bf16.msra.mxu0 %v3465_v14  ;;  %v3513_v63 = vld [vmem:[#allocation3 + $0x580] sm:$0xff]  ;;  %v3518_v14 = vld [vmem:[#allocation3 + $0x5a8] sm:$0xff] }
 0x64f   :  { %3750 = vmatprep.subr.bf16.mxu1 %v3470_v8  ;;  %4089 = vmatprep.subr.bf16.mxu0 %v3472_v47  ;;  %v3520_v8 = vld [vmem:[#allocation3 + $0x5b8] sm:$0xff]  ;;  %v3517_v47 = vld [vmem:[#allocation3 + $0x5a0] sm:$0xff] }
 0x651   :  { %3688 = vmatmul.mubr.bf16.gmra.mrb[76].mxu1 %v11456_v62  ;;  %4027 = vmatmul.mubr.bf16.gmra.mrb[108].mxu0 %v11456_v62 }
 0x652   :  { %3751 = vmatpush1.bf16.msra.mxu1 %v3469_v27  ;;  %4090 = vmatpush1.bf16.msra.mxu0 %v3471_v10  ;;  %v3519_v27 = vld [vmem:[#allocation3 + $0x5b0] sm:$0xff]  ;;  %v3524_v10 = vld [vmem:[#allocation3 + $0x5d8] sm:$0xff] }
 0x653   :  { %3752 = vmatprep.subr.bf16.mxu1 %v3476_v30  ;;  %4091 = vmatprep.subr.bf16.mxu0 %v3478_v51  ;;  %v3526_v30 = vld [vmem:[#allocation3 + $0x5e8] sm:$0xff]  ;;  %v3523_v51 = vld [vmem:[#allocation3 + $0x5d0] sm:$0xff] }
 0x654   :  { %3697 = vmatprep.mubr.bf16.mxu1 %v11511_v16  ;;  %4036 = vmatprep.mubr.bf16.mxu0 %v11511_v16 }
 0x656   :  { %3753 = vmatpush1.bf16.msra.mxu1 %v3475_v59  ;;  %4092 = vmatpush1.bf16.msra.mxu0 %v3477_v9  ;;  %v3525_v59 = vld [vmem:[#allocation3 + $0x5e0] sm:$0xff]  ;;  %v3530_v9 = vld [vmem:[#allocation3 + $0x608] sm:$0xff] }
 0x657   :  { %3754 = vmatprep.subr.bf16.mxu1 %v3482_v40  ;;  %4093 = vmatprep.subr.bf16.mxu0 %v3484_v6  ;;  %v3532_v40 = vld [vmem:[#allocation3 + $0x618] sm:$0xff]  ;;  %v3529_v6 = vld [vmem:[#allocation3 + $0x600] sm:$0xff] }
 0x659   :  { %3698 = vmatmul.mubr.bf16.gmra.mrb[80].mxu1 %v11509_v41  ;;  %4037 = vmatmul.mubr.bf16.gmra.mrb[112].mxu0 %v11509_v41 }
 0x65a   :  { %3755 = vmatpush1.bf16.msra.mxu1 %v3481_v7  ;;  %4094 = vmatpush1.bf16.msra.mxu0 %v3483_v33  ;;  %v3531_v7 = vld [vmem:[#allocation3 + $0x610] sm:$0xff]  ;;  %v3536_v33 = vld [vmem:[#allocation3 + $0x638] sm:$0xff] }
 0x65b   :  { %3756 = vmatprep.subr.bf16.mxu1 %v3488_v36  ;;  %4095 = vmatprep.subr.bf16.mxu0 %v3490_v3  ;;  %v3538_v36 = vld [vmem:[#allocation3 + $0x648] sm:$0xff]  ;;  %v3535_v3 = vld [vmem:[#allocation3 + $0x630] sm:$0xff] }
 0x65c   :  { %3707 = vmatprep.mubr.bf16.mxu1 %v11565_v45  ;;  %4046 = vmatprep.mubr.bf16.mxu0 %v11565_v45 }
 0x65e   :  { %3757 = vmatpush1.bf16.msra.mxu1 %v3487_v55  ;;  %4096 = vmatpush1.bf16.msra.mxu0 %v3489_v60  ;;  %v3537_v55 = vld [vmem:[#allocation3 + $0x640] sm:$0xff]  ;;  %v3542_v60 = vld [vmem:[#allocation3 + $0x668] sm:$0xff] }
 0x65f   :  { %3758 = vmatprep.subr.bf16.mxu1 %v3494_v50  ;;  %4097 = vmatprep.subr.bf16.mxu0 %v3496_v24  ;;  %v3544_v50 = vld [vmem:[#allocation3 + $0x678] sm:$0xff]  ;;  %v3541_v24 = vld [vmem:[#allocation3 + $0x660] sm:$0xff] }
 0x661   :  { %3708 = vmatmul.mubr.bf16.gmra.mrb[84].mxu1 %v11563_v48  ;;  %4047 = vmatmul.mubr.bf16.gmra.mrb[116].mxu0 %v11563_v48 }
 0x662   :  { %3759 = vmatpush1.bf16.msra.mxu1 %v3493_v32  ;;  %4098 = vmatpush1.bf16.msra.mxu0 %v3495_v37  ;;  %v3543_v32 = vld [vmem:[#allocation3 + $0x670] sm:$0xff]  ;;  %v3548_v37 = vld [vmem:[#allocation3 + $0x698] sm:$0xff] }
 0x663   :  { %3760 = vmatprep.subr.bf16.mxu1 %v3500_v56  ;;  %4099 = vmatprep.subr.bf16.mxu0 %v3502_v52  ;;  %v3550_v56 = vld [vmem:[#allocation3 + $0x6a8] sm:$0xff]  ;;  %v3547_v52 = vld [vmem:[#allocation3 + $0x690] sm:$0xff] }
 0x664   :  { %3717 = vmatprep.mubr.bf16.mxu1 %v11617_v23  ;;  %4056 = vmatprep.mubr.bf16.mxu0 %v11617_v23 }
 0x666   :  { %3761 = vmatpush1.bf16.msra.mxu1 %v3499_v26  ;;  %4100 = vmatpush1.bf16.msra.mxu0 %v3501_v15  ;;  %v3549_v26 = vld [vmem:[#allocation3 + $0x6a0] sm:$0xff] }
 0x667   :  { %3762 = vmatprep.subr.bf16.mxu1 %v3506_v22  ;;  %4101 = vmatprep.subr.bf16.mxu0 %v3508_v28  ;;  %v14013_v15 = vld [vmem:[#allocation101_spill] sm:$0xff]  ;;  %v3556_v28 = vld [vmem:[#allocation3 + $0x6d8] sm:$0xff] }
 0x668   :  { %v3554_v22 = vld [vmem:[#allocation3 + $0x6c8] sm:$0xff] }
 0x669   :  { %3718 = vmatmul.mubr.bf16.gmra.mrb[88].mxu1 %v11615_v44  ;;  %4057 = vmatmul.mubr.bf16.gmra.mrb[120].mxu0 %v11615_v44 }
 0x66a   :  { %3763 = vmatpush1.bf16.msra.mxu1 %v3505_v35  ;;  %4102 = vmatpush1.bf16.msra.mxu0 %v3507_v38  ;;  %v3553_v35 = vld [vmem:[#allocation3 + $0x6c0] sm:$0xff]  ;;  %v3555_v38 = vld [vmem:[#allocation3 + $0x6d0] sm:$0xff] }
 0x66b   :  { %3764 = vmatprep.subr.bf16.mxu1 %v3512_v19  ;;  %4103 = vmatprep.subr.bf16.mxu0 %v3514_v0  ;;  %v3560_v19 = vld [vmem:[#allocation3 + $0x6f8] sm:$0xff]  ;;  %v3562_v0 = vld [vmem:[#allocation3 + $0x708] sm:$0xff] }
 0x66c   :  { %3727 = vmatprep.mubr.bf16.mxu1 %v11669_v11  ;;  %4066 = vmatprep.mubr.bf16.mxu0 %v11669_v11 }
 0x66e   :  { %3765 = vmatpush1.bf16.msra.mxu1 %v3511_v31  ;;  %4104 = vmatpush1.bf16.msra.mxu0 %v3513_v63  ;;  %v14014_v31 = vld [vmem:[#allocation100_spill] sm:$0xff]  ;;  %v3559_v63 = vld [vmem:[#allocation3 + $0x6f0] sm:$0xff] }
 0x66f   :  { %3766 = vmatprep.subr.bf16.mxu1 %v3518_v14  ;;  %4105 = vmatprep.subr.bf16.mxu0 %v3520_v8  ;;  %v3561_v14 = vld [vmem:[#allocation3 + $0x700] sm:$0xff]  ;;  %v14015_v8 = vld [vmem:[#allocation82_spill] sm:$0xff] }
 0x671   :  { %3728 = vmatmul.mubr.bf16.gmra.mrb[92].mxu1 %v11667_v20  ;;  %4067 = vmatmul.mubr.bf16.gmra.mrb[124].mxu0 %v11667_v20 }
 0x672   :  { %3767 = vmatpush1.bf16.msra.mxu1 %v3517_v47  ;;  %4106 = vmatpush1.bf16.msra.mxu0 %v3519_v27  ;;  %v3566_v47 = vld [vmem:[#allocation3 + $0x728] sm:$0xff]  ;;  %v3568_v27 = vld [vmem:[#allocation3 + $0x738] sm:$0xff] }
 0x673   :  { %3768 = vmatprep.subr.bf16.mxu1 %v3524_v10  ;;  %4107 = vmatprep.subr.bf16.mxu0 %v3526_v30  ;;  %v3565_v10 = vld [vmem:[#allocation3 + $0x720] sm:$0xff]  ;;  %v3567_v30 = vld [vmem:[#allocation3 + $0x730] sm:$0xff] }
 0x674   :  { %3770 = vmatprep.mubr.bf16.mxu1 %v11320_v29  ;;  %4109 = vmatprep.mubr.bf16.mxu0 %v11320_v29 }
 0x676   :  { %3769 = vmatpush1.bf16.msra.mxu1 %v3523_v51  ;;  %4108 = vmatpush1.bf16.msra.mxu0 %v3525_v59  ;;  %v3572_v51 = vld [vmem:[#allocation3 + $0x758] sm:$0xff]  ;;  %v3574_v59 = vld [vmem:[#allocation3 + $0x768] sm:$0xff] }
 0x677   :  { %3851 = vmatprep.subr.bf16.mxu1 %v3530_v9  ;;  %4190 = vmatprep.subr.bf16.mxu0 %v3532_v40  ;;  %v14016_v9 = vld [vmem:[#allocation49_spill] sm:$0xff]  ;;  %v3571_v40 = vld [vmem:[#allocation3 + $0x750] sm:$0xff] }
 0x679   :  { %3771 = vmatmul.mubr.bf16.vlgmr.msra.gmra.mrb[64].mxu1 %v11318_v53  ;;  %4110 = vmatmul.mubr.bf16.vlgmr.msra.gmra.mrb[96].mxu0 %v11318_v53 }
 0x67a   :  { %3852 = vmatpush1.bf16.msra.mxu1 %v3529_v6  ;;  %4191 = vmatpush1.bf16.msra.mxu0 %v3531_v7  ;;  %v3573_v6 = vld [vmem:[#allocation3 + $0x760] sm:$0xff]  ;;  %v14017_v7 = vld [vmem:[#allocation83_spill] sm:$0xff] }
 0x67b   :  { %3853 = vmatprep.subr.bf16.mxu1 %v3536_v33  ;;  %4192 = vmatprep.subr.bf16.mxu0 %v3538_v36  ;;  %v3578_v33 = vld [vmem:[#allocation3 + $0x788] sm:$0xff]  ;;  %v3580_v36 = vld [vmem:[#allocation3 + $0x798] sm:$0xff] }
 0x67c   :  { %3780 = vmatprep.mubr.bf16.mxu1 %v11366_v4  ;;  %4119 = vmatprep.mubr.bf16.mxu0 %v11366_v4 }
 0x67e   :  { %3854 = vmatpush1.bf16.msra.mxu1 %v3535_v3  ;;  %4193 = vmatpush1.bf16.msra.mxu0 %v3537_v55  ;;  %v3577_v3 = vld [vmem:[#allocation3 + $0x780] sm:$0xff]  ;;  %v3579_v55 = vld [vmem:[#allocation3 + $0x790] sm:$0xff] }
 0x67f   :  { %3855 = vmatprep.subr.bf16.mxu1 %v3542_v60  ;;  %4194 = vmatprep.subr.bf16.mxu0 %v3544_v50  ;;  %v3584_v60 = vld [vmem:[#allocation3 + $0x7b8] sm:$0xff]  ;;  %v3586_v50 = vld [vmem:[#allocation3 + $0x7c8] sm:$0xff] }
 0x681   :  { %3781 = vmatmul.mubr.bf16.gmra.mrb[68].mxu1 %v11364_v1  ;;  %4120 = vmatmul.mubr.bf16.gmra.mrb[100].mxu0 %v11364_v1 }
 0x682   :  { %3856 = vmatpush1.bf16.msra.mxu1 %v3541_v24  ;;  %4195 = vmatpush1.bf16.msra.mxu0 %v3543_v32  ;;  %v14018_v24 = vld [vmem:[#allocation53_spill] sm:$0xff]  ;;  %v3583_v32 = vld [vmem:[#allocation3 + $0x7b0] sm:$0xff] }
 0x683   :  { %3857 = vmatprep.subr.bf16.mxu1 %v3548_v37  ;;  %4196 = vmatprep.subr.bf16.mxu0 %v3550_v56  ;;  %v3585_v37 = vld [vmem:[#allocation3 + $0x7c0] sm:$0xff] }
 0x684   :  { %3790 = vmatprep.mubr.bf16.mxu1 %v14013_v15  ;;  %4129 = vmatprep.mubr.bf16.mxu0 %v14013_v15  ;;  %v14019_v56 = vld [vmem:[#allocation84_spill] sm:$0xff] }
 0x686   :  { %3858 = vmatpush1.bf16.msra.mxu1 %v3547_v52  ;;  %4197 = vmatpush1.bf16.msra.mxu0 %v3549_v26  ;;  %v3590_v52 = vld [vmem:[#allocation3 + $0x7e8] sm:$0xff]  ;;  %v3592_v26 = vld [vmem:[#allocation3 + $0x7f8] sm:$0xff] }
 0x687   :  { %3859 = vmatprep.subr.bf16.mxu1 %v3554_v22  ;;  %4198 = vmatprep.subr.bf16.mxu0 %v3556_v28  ;;  %v3589_v22 = vld [vmem:[#allocation3 + $0x7e0] sm:$0xff]  ;;  %v3591_v28 = vld [vmem:[#allocation3 + $0x7f0] sm:$0xff] }
 0x689   :  { %3791 = vmatmul.mubr.bf16.gmra.mrb[72].mxu1 %v14014_v31  ;;  %4130 = vmatmul.mubr.bf16.gmra.mrb[104].mxu0 %v14014_v31 }
 0x68a   :  { %3860 = vmatpush1.bf16.msra.mxu1 %v3553_v35  ;;  %4199 = vmatpush1.bf16.msra.mxu0 %v3555_v38  ;;  %v3596_v35 = vld [vmem:[#allocation3 + $0x818] sm:$0xff]  ;;  %v3598_v38 = vld [vmem:[#allocation3 + $0x828] sm:$0xff] }
 0x68b   :  { %3861 = vmatprep.subr.bf16.mxu1 %v3560_v19  ;;  %4200 = vmatprep.subr.bf16.mxu0 %v3562_v0  ;;  %v14020_v19 = vld [vmem:[#allocation57_spill] sm:$0xff]  ;;  %v3595_v0 = vld [vmem:[#allocation3 + $0x810] sm:$0xff] }
 0x68c   :  { %3800 = vmatprep.mubr.bf16.mxu1 %v14015_v8  ;;  %4139 = vmatprep.mubr.bf16.mxu0 %v14015_v8 }
 0x68e   :  { %3862 = vmatpush1.bf16.msra.mxu1 %v3559_v63  ;;  %4201 = vmatpush1.bf16.msra.mxu0 %v3561_v14  ;;  %v3597_v63 = vld [vmem:[#allocation3 + $0x820] sm:$0xff] }
 0x68f   :  { %3863 = vmatprep.subr.bf16.mxu1 %v3566_v47  ;;  %4202 = vmatprep.subr.bf16.mxu0 %v3568_v27  ;;  %v14021_v14 = vld [vmem:[#allocation85_spill] sm:$0xff]  ;;  %v3604_v27 = vld [vmem:[#allocation3 + $0x858] sm:$0xff] }
 0x690   :  { %v3602_v47 = vld [vmem:[#allocation3 + $0x848] sm:$0xff] }
 0x691   :  { %3801 = vmatmul.mubr.bf16.gmra.mrb[76].mxu1 %v14016_v9  ;;  %4140 = vmatmul.mubr.bf16.gmra.mrb[108].mxu0 %v14016_v9 }
 0x692   :  { %3864 = vmatpush1.bf16.msra.mxu1 %v3565_v10  ;;  %4203 = vmatpush1.bf16.msra.mxu0 %v3567_v30  ;;  %v3601_v10 = vld [vmem:[#allocation3 + $0x840] sm:$0xff]  ;;  %v3603_v30 = vld [vmem:[#allocation3 + $0x850] sm:$0xff] }
 0x693   :  { %3865 = vmatprep.subr.bf16.mxu1 %v3572_v51  ;;  %4204 = vmatprep.subr.bf16.mxu0 %v3574_v59  ;;  %v3608_v51 = vld [vmem:[#allocation3 + $0x878] sm:$0xff]  ;;  %v3610_v59 = vld [vmem:[#allocation3 + $0x888] sm:$0xff] }
 0x694   :  { %3810 = vmatprep.mubr.bf16.mxu1 %v14017_v7  ;;  %4149 = vmatprep.mubr.bf16.mxu0 %v14017_v7 }
 0x696   :  { %3866 = vmatpush1.bf16.msra.mxu1 %v3571_v40  ;;  %4205 = vmatpush1.bf16.msra.mxu0 %v3573_v6  ;;  %v14022_v40 = vld [vmem:[#allocation61_spill] sm:$0xff]  ;;  %v3607_v6 = vld [vmem:[#allocation3 + $0x870] sm:$0xff] }
 0x697   :  { %3867 = vmatprep.subr.bf16.mxu1 %v3578_v33  ;;  %4206 = vmatprep.subr.bf16.mxu0 %v3580_v36  ;;  %v3609_v33 = vld [vmem:[#allocation3 + $0x880] sm:$0xff]  ;;  %v14023_v36 = vld [vmem:[#allocation86_spill] sm:$0xff] }
 0x699   :  { %3811 = vmatmul.mubr.bf16.gmra.mrb[80].mxu1 %v14018_v24  ;;  %4150 = vmatmul.mubr.bf16.gmra.mrb[112].mxu0 %v14018_v24 }
 0x69a   :  { %3868 = vmatpush1.bf16.msra.mxu1 %v3577_v3  ;;  %4207 = vmatpush1.bf16.msra.mxu0 %v3579_v55  ;;  %v3614_v3 = vld [vmem:[#allocation3 + $0x8a8] sm:$0xff]  ;;  %v3616_v55 = vld [vmem:[#allocation3 + $0x8b8] sm:$0xff] }
 0x69b   :  { %3869 = vmatprep.subr.bf16.mxu1 %v3584_v60  ;;  %4208 = vmatprep.subr.bf16.mxu0 %v3586_v50  ;;  %v3613_v60 = vld [vmem:[#allocation3 + $0x8a0] sm:$0xff]  ;;  %v3615_v50 = vld [vmem:[#allocation3 + $0x8b0] sm:$0xff] }
 0x69c   :  { %3820 = vmatprep.mubr.bf16.mxu1 %v14019_v56  ;;  %4159 = vmatprep.mubr.bf16.mxu0 %v14019_v56 }
 0x69e   :  { %3870 = vmatpush1.bf16.msra.mxu1 %v3583_v32  ;;  %4209 = vmatpush1.bf16.msra.mxu0 %v3585_v37  ;;  %v3620_v32 = vld [vmem:[#allocation3 + $0x8d8] sm:$0xff]  ;;  %v3622_v37 = vld [vmem:[#allocation3 + $0x8e8] sm:$0xff] }
 0x69f   :  { %3871 = vmatprep.subr.bf16.mxu1 %v3590_v52  ;;  %4210 = vmatprep.subr.bf16.mxu0 %v3592_v26  ;;  %v14024_v52 = vld [vmem:[#allocation65_spill] sm:$0xff]  ;;  %v3619_v26 = vld [vmem:[#allocation3 + $0x8d0] sm:$0xff] }
 0x6a1   :  { %3821 = vmatmul.mubr.bf16.gmra.mrb[84].mxu1 %v14020_v19  ;;  %4160 = vmatmul.mubr.bf16.gmra.mrb[116].mxu0 %v14020_v19 }
 0x6a2   :  { %3872 = vmatpush1.bf16.msra.mxu1 %v3589_v22  ;;  %4211 = vmatpush1.bf16.msra.mxu0 %v3591_v28  ;;  %v3621_v22 = vld [vmem:[#allocation3 + $0x8e0] sm:$0xff] }
 0x6a3   :  { %3873 = vmatprep.subr.bf16.mxu1 %v3596_v35  ;;  %4212 = vmatprep.subr.bf16.mxu0 %v3598_v38  ;;  %v14025_v28 = vld [vmem:[#allocation97_spill] sm:$0xff] }
 0x6a4   :  { %3830 = vmatprep.mubr.bf16.mxu1 %v14021_v14  ;;  %4169 = vmatprep.mubr.bf16.mxu0 %v14021_v14  ;;  %v3342_v35 = vld [vmem:[#allocation3 + $0x28] sm:$0xff]  ;;  %v3341_v38 = vld [vmem:[#allocation3 + $0x20] sm:$0xff] }
 0x6a6   :  { %3874 = vmatpush1.bf16.msra.mxu1 %v3595_v0  ;;  %4213 = vmatpush1.bf16.msra.mxu0 %v3597_v63  ;;  %v3348_v0 = vld [vmem:[#allocation3 + $0x58] sm:$0xff] }
 0x6a7   :  { %3875 = vmatprep.subr.bf16.mxu1 %v3602_v47  ;;  %4214 = vmatprep.subr.bf16.mxu0 %v3604_v27  ;;  %v14026_v63 = vld [vmem:[#allocation95_spill] sm:$0xff] }
 0x6a8   :  { %v14027_v47 = vld [vmem:[#allocation119_spill] sm:$0xff] }
 0x6a9   :  { %3831 = vmatmul.mubr.bf16.gmra.mrb[88].mxu1 %v14022_v40  ;;  %4170 = vmatmul.mubr.bf16.gmra.mrb[120].mxu0 %v14022_v40  ;;  %v3347_v27 = vld [vmem:[#allocation3 + $0x50] sm:$0xff] }
 0x6aa   :  { %3876 = vmatpush1.bf16.msra.mxu1 %v3601_v10  ;;  %4215 = vmatpush1.bf16.msra.mxu0 %v3603_v30  ;;  %v3354_v10 = vld [vmem:[#allocation3 + $0x88] sm:$0xff]  ;;  %v3353_v30 = vld [vmem:[#allocation3 + $0x80] sm:$0xff] }
 0x6ab   :  { %3877 = vmatprep.subr.bf16.mxu1 %v3608_v51  ;;  %4216 = vmatprep.subr.bf16.mxu0 %v3610_v59  ;;  %v3360_v51 = vld [vmem:[#allocation3 + $0xb8] sm:$0xff] }
 0x6ac   :  { %3840 = vmatprep.mubr.bf16.mxu1 %v14023_v36  ;;  %4179 = vmatprep.mubr.bf16.mxu0 %v14023_v36  ;;  %v14028_v59 = vld [vmem:[#allocation99_spill] sm:$0xff] }
 0x6ae   :  { %3878 = vmatpush1.bf16.msra.mxu1 %v3607_v6  ;;  %4217 = vmatpush1.bf16.msra.mxu0 %v3609_v33  ;;  %v14029_v6 = vld [vmem:[#allocation103_spill] sm:$0xff] }
 0x6af   :  { %3879 = vmatprep.subr.bf16.mxu1 %v3614_v3  ;;  %4218 = vmatprep.subr.bf16.mxu0 %v3616_v55  ;;  %v3359_v33 = vld [vmem:[#allocation3 + $0xb0] sm:$0xff]  ;;  %v3366_v3 = vld [vmem:[#allocation3 + $0xe8] sm:$0xff]  ;;  %v3365_v55 = vld [vmem:[#allocation3 + $0xe0] sm:$0xff] }
 0x6b1   :  { %3841 = vmatmul.mubr.bf16.gmra.mrb[92].mxu1 %v14024_v52  ;;  %4180 = vmatmul.mubr.bf16.gmra.mrb[124].mxu0 %v14024_v52 }
 0x6b2   :  { %3880 = vmatpush1.bf16.msra.mxu1 %v3613_v60  ;;  %4219 = vmatpush1.bf16.msra.mxu0 %v3615_v50  ;;  %v3372_v60 = vld [vmem:[#allocation3 + $0x118] sm:$0xff]  ;;  %v14030_v50 = vld [vmem:[#allocation102_spill] sm:$0xff] }
 0x6b3   :  { %3881 = vmatprep.subr.bf16.mxu1 %v3620_v32  ;;  %4220 = vmatprep.subr.bf16.mxu0 %v3622_v37  ;;  %v14031_v32 = vld [vmem:[#allocation120_spill] sm:$0xff]  ;;  %v3371_v37 = vld [vmem:[#allocation3 + $0x110] sm:$0xff] }
 0x6b4   :  { %3883 = vmatprep.mubr.bf16.mxu1 %v14025_v28  ;;  %4222 = vmatprep.mubr.bf16.mxu0 %v14025_v28 }
 0x6b6   :  { %3882 = vmatpush1.bf16.msra.mxu1 %v3619_v26  ;;  %4221 = vmatpush1.bf16.msra.mxu0 %v3621_v22  ;;  %v3378_v26 = vld [vmem:[#allocation3 + $0x148] sm:$0xff]  ;;  %v3377_v22 = vld [vmem:[#allocation3 + $0x140] sm:$0xff] }
 0x6b7   :  { %4303 = vmatprep.subr.bf16.mxu1 %v3342_v35  ;;  %v3384_v35 = vld [vmem:[#allocation3 + $0x178] sm:$0xff] }
 0x6b9   :  { %3884 = vmatmul.mubr.bf16.vlgmr.msra.gmra.mrb[64].mxu1 %v14026_v63  ;;  %4223 = vmatmul.mubr.bf16.vlgmr.msra.gmra.mrb[96].mxu0 %v14026_v63 }
 0x6ba   :  { %4304 = vmatpush1.bf16.msra.mxu1 %v3341_v38  ;;  %3893 = vmatprep.mubr.bf16.mxu1 %v14027_v47  ;;  %v14032_v38 = vld [vmem:[#allocation106_spill] sm:$0xff] }
 0x6bb   :  { %4305 = vmatprep.subr.bf16.mxu1 %v3348_v0  ;;  %4232 = vmatprep.mubr.bf16.mxu0 %v14027_v47  ;;  %v14033_v0 = vld [vmem:[#allocation54_spill] sm:$0xff] }
 0x6be   :  { %4306 = vmatpush1.bf16.msra.mxu1 %v3347_v27  ;;  %v3383_v27 = vld [vmem:[#allocation3 + $0x170] sm:$0xff] }
 0x6bf   :  { %4307 = vmatprep.subr.bf16.mxu1 %v3354_v10  ;;  %v3390_v10 = vld [vmem:[#allocation3 + $0x1a8] sm:$0xff] }
 0x6c1   :  { %3894 = vmatmul.mubr.bf16.gmra.mrb[68].mxu1 %v14028_v59  ;;  %4233 = vmatmul.mubr.bf16.gmra.mrb[100].mxu0 %v14028_v59 }
 0x6c2   :  { %4308 = vmatpush1.bf16.msra.mxu1 %v3353_v30  ;;  %3903 = vmatprep.mubr.bf16.mxu1 %v14029_v6  ;;  %v3389_v30 = vld [vmem:[#allocation3 + $0x1a0] sm:$0xff] }
 0x6c3   :  { %4309 = vmatprep.subr.bf16.mxu1 %v3360_v51  ;;  %4242 = vmatprep.mubr.bf16.mxu0 %v14029_v6  ;;  %v3396_v51 = vld [vmem:[#allocation3 + $0x1d8] sm:$0xff] }
 0x6c6   :  { %4310 = vmatpush1.bf16.msra.mxu1 %v3359_v33  ;;  %v14034_v33 = vld [vmem:[#allocation107_spill] sm:$0xff] }
 0x6c7   :  { %4311 = vmatprep.subr.bf16.mxu1 %v3366_v3  ;;  %v14035_v3 = vld [vmem:[#allocation58_spill] sm:$0xff] }
 0x6c9   :  { %3904 = vmatmul.mubr.bf16.gmra.mrb[72].mxu1 %v14030_v50  ;;  %4243 = vmatmul.mubr.bf16.gmra.mrb[104].mxu0 %v14030_v50 }
 0x6ca   :  { %4312 = vmatpush1.bf16.msra.mxu1 %v3365_v55  ;;  %3913 = vmatprep.mubr.bf16.mxu1 %v14031_v32  ;;  %v3395_v55 = vld [vmem:[#allocation3 + $0x1d0] sm:$0xff] }
 0x6cb   :  { %4313 = vmatprep.subr.bf16.mxu1 %v3372_v60  ;;  %4252 = vmatprep.mubr.bf16.mxu0 %v14031_v32  ;;  %v3402_v60 = vld [vmem:[#allocation3 + $0x208] sm:$0xff] }
 0x6ce   :  { %4314 = vmatpush1.bf16.msra.mxu1 %v3371_v37  ;;  %v3401_v37 = vld [vmem:[#allocation3 + $0x200] sm:$0xff] }
 0x6cf   :  { %4315 = vmatprep.subr.bf16.mxu1 %v3378_v26  ;;  %v3408_v26 = vld [vmem:[#allocation3 + $0x238] sm:$0xff] }
 0x6d1   :  { %3914 = vmatmul.mubr.bf16.gmra.mrb[76].mxu1 %v14032_v38  ;;  %4253 = vmatmul.mubr.bf16.gmra.mrb[108].mxu0 %v14032_v38 }
 0x6d2   :  { %4316 = vmatpush1.bf16.msra.mxu1 %v3377_v22  ;;  %3923 = vmatprep.mubr.bf16.mxu1 %v14033_v0  ;;  %v14036_v22 = vld [vmem:[#allocation108_spill] sm:$0xff] }
 0x6d3   :  { %4317 = vmatprep.subr.bf16.mxu1 %v3384_v35  ;;  %4262 = vmatprep.mubr.bf16.mxu0 %v14033_v0  ;;  %v14037_v35 = vld [vmem:[#allocation62_spill] sm:$0xff] }
 0x6d6   :  { %4318 = vmatpush1.bf16.msra.mxu1 %v3383_v27  ;;  %v3407_v27 = vld [vmem:[#allocation3 + $0x230] sm:$0xff] }
 0x6d7   :  { %4319 = vmatprep.subr.bf16.mxu1 %v3390_v10  ;;  %v3414_v10 = vld [vmem:[#allocation3 + $0x268] sm:$0xff] }
 0x6d9   :  { %3924 = vmatmul.mubr.bf16.gmra.mrb[80].mxu1 %v14034_v33  ;;  %4263 = vmatmul.mubr.bf16.gmra.mrb[112].mxu0 %v14034_v33 }
 0x6da   :  { %4320 = vmatpush1.bf16.msra.mxu1 %v3389_v30  ;;  %3933 = vmatprep.mubr.bf16.mxu1 %v14035_v3  ;;  %v3413_v30 = vld [vmem:[#allocation3 + $0x260] sm:$0xff] }
 0x6db   :  { %4321 = vmatprep.subr.bf16.mxu1 %v3396_v51  ;;  %4272 = vmatprep.mubr.bf16.mxu0 %v14035_v3  ;;  %v3420_v51 = vld [vmem:[#allocation3 + $0x298] sm:$0xff] }
 0x6de   :  { %4322 = vmatpush1.bf16.msra.mxu1 %v3395_v55  ;;  %v14038_v55 = vld [vmem:[#allocation109_spill] sm:$0xff] }
 0x6df   :  { %4323 = vmatprep.subr.bf16.mxu1 %v3402_v60  ;;  %v14039_v60 = vld [vmem:[#allocation66_spill] sm:$0xff] }
 0x6e1   :  { %3934 = vmatmul.mubr.bf16.gmra.mrb[84].mxu1 %v14036_v22  ;;  %4273 = vmatmul.mubr.bf16.gmra.mrb[116].mxu0 %v14036_v22 }
 0x6e2   :  { %4324 = vmatpush1.bf16.msra.mxu1 %v3401_v37  ;;  %3943 = vmatprep.mubr.bf16.mxu1 %v14037_v35  ;;  %v3419_v37 = vld [vmem:[#allocation3 + $0x290] sm:$0xff] }
 0x6e3   :  { %4325 = vmatprep.subr.bf16.mxu1 %v3408_v26  ;;  %4282 = vmatprep.mubr.bf16.mxu0 %v14037_v35  ;;  %v3426_v26 = vld [vmem:[#allocation3 + $0x2c8] sm:$0xff] }
 0x6e6   :  { %4326 = vmatpush1.bf16.msra.mxu1 %v3407_v27  ;;  %v14040_v27 = vld [vmem:[#allocation110_spill] sm:$0xff] }
 0x6e7   :  { %4327 = vmatprep.subr.bf16.mxu1 %v3414_v10  ;;  %v3431_v10 = vld [vmem:[#allocation3 + $0x2f0] sm:$0xff] }
 0x6e9   :  { %3944 = vmatmul.mubr.bf16.gmra.mrb[88].mxu1 %v14038_v55  ;;  %4283 = vmatmul.mubr.bf16.gmra.mrb[120].mxu0 %v14038_v55 }
 0x6ea   :  { %4328 = vmatpush1.bf16.msra.mxu1 %v3413_v30  ;;  %3953 = vmatprep.mubr.bf16.mxu1 %v14039_v60  ;;  %v3438_v30 = vld [vmem:[#allocation3 + $0x328] sm:$0xff] }
 0x6eb   :  { %4329 = vmatprep.subr.bf16.mxu1 %v3420_v51  ;;  %4292 = vmatprep.mubr.bf16.mxu0 %v14039_v60  ;;  %v3437_v51 = vld [vmem:[#allocation3 + $0x320] sm:$0xff] }
 0x6ee   :  { %4330 = vmatpush1.bf16.msra.mxu1 %v3419_v37  ;;  %v3443_v37 = vld [vmem:[#allocation3 + $0x350] sm:$0xff] }
 0x6ef   :  { %4331 = vmatprep.subr.bf16.mxu1 %v3426_v26  ;;  %v3450_v26 = vld [vmem:[#allocation3 + $0x388] sm:$0xff] }
 0x6f1   :  { %3954 = vmatmul.mubr.bf16.gmra.mrb[92].mxu1 %v14040_v27  ;;  %4293 = vmatmul.mubr.bf16.gmra.mrb[124].mxu0 %v14040_v27 }
 0x6f2   :  { %4332 = vmatpush1.bf16.msra.mxu1 %v3425_v61  ;;  %4335 = vmatprep.mubr.bf16.mxu1 %v11316_v57  ;;  %v3449_v61 = vld [vmem:[#allocation3 + $0x380] sm:$0xff] }
 0x6f3   :  { %4333 = vmatprep.subr.bf16.mxu1 %v3432_v5  ;;  %v3455_v5 = vld [vmem:[#allocation3 + $0x3b0] sm:$0xff] }
 0x6f6   :  { %4334 = vmatpush1.bf16.msra.mxu1 %v3431_v10  ;;  %v3462_v10 = vld [vmem:[#allocation3 + $0x3e8] sm:$0xff] }
 0x6f7   :  { %4416 = vmatprep.subr.bf16.mxu1 %v3438_v30  ;;  %v3461_v30 = vld [vmem:[#allocation3 + $0x3e0] sm:$0xff] }
 0x6f9   :  { %4336 = vmatmul.mubr.bf16.vlgmr.msra.gmra.mrb[96].mxu1 %v11314_v42 }
 0x6fa   :  { %4417 = vmatpush1.bf16.msra.mxu1 %v3437_v51  ;;  %4345 = vmatprep.mubr.bf16.mxu1 %v11362_v17  ;;  %v3468_v51 = vld [vmem:[#allocation3 + $0x418] sm:$0xff] }
 0x6fb   :  { %4418 = vmatprep.subr.bf16.mxu1 %v3444_v54  ;;  %v3467_v54 = vld [vmem:[#allocation3 + $0x410] sm:$0xff] }
 0x6fe   :  { %4419 = vmatpush1.bf16.msra.mxu1 %v3443_v37  ;;  %v3474_v37 = vld [vmem:[#allocation3 + $0x448] sm:$0xff] }
 0x6ff   :  { %4420 = vmatprep.subr.bf16.mxu1 %v3450_v26  ;;  %v3473_v26 = vld [vmem:[#allocation3 + $0x440] sm:$0xff] }
 0x701   :  { %4346 = vmatmul.mubr.bf16.gmra.mrb[100].mxu1 %v11360_v34 }
 0x702   :  { %4421 = vmatpush1.bf16.msra.mxu1 %v3449_v61  ;;  %4355 = vmatprep.mubr.bf16.mxu1 %v11414_v25  ;;  %v3480_v61 = vld [vmem:[#allocation3 + $0x478] sm:$0xff] }
 0x703   :  { %4422 = vmatprep.subr.bf16.mxu1 %v3456_v21  ;;  %v3479_v21 = vld [vmem:[#allocation3 + $0x470] sm:$0xff] }
 0x706   :  { %4423 = vmatpush1.bf16.msra.mxu1 %v3455_v5  ;;  %v3486_v5 = vld [vmem:[#allocation3 + $0x4a8] sm:$0xff] }
 0x707   :  { %4424 = vmatprep.subr.bf16.mxu1 %v3462_v10  ;;  %v3485_v10 = vld [vmem:[#allocation3 + $0x4a0] sm:$0xff] }
 0x709   :  { %4356 = vmatmul.mubr.bf16.gmra.mrb[104].mxu1 %v11412_v39 }
 0x70a   :  { %4425 = vmatpush1.bf16.msra.mxu1 %v3461_v30  ;;  %4365 = vmatprep.mubr.bf16.mxu1 %v11458_v58  ;;  %v3492_v30 = vld [vmem:[#allocation3 + $0x4d8] sm:$0xff] }
 0x70b   :  { %4426 = vmatprep.subr.bf16.mxu1 %v3468_v51  ;;  %v3491_v51 = vld [vmem:[#allocation3 + $0x4d0] sm:$0xff] }
 0x70e   :  { %4427 = vmatpush1.bf16.msra.mxu1 %v3467_v54  ;;  %v3498_v54 = vld [vmem:[#allocation3 + $0x508] sm:$0xff] }
 0x70f   :  { %4428 = vmatprep.subr.bf16.mxu1 %v3474_v37  ;;  %v3497_v37 = vld [vmem:[#allocation3 + $0x500] sm:$0xff] }
 0x711   :  { %4366 = vmatmul.mubr.bf16.gmra.mrb[108].mxu1 %v11456_v62 }
 0x712   :  { %4429 = vmatpush1.bf16.msra.mxu1 %v3473_v26  ;;  %4375 = vmatprep.mubr.bf16.mxu1 %v11511_v16  ;;  %v3504_v26 = vld [vmem:[#allocation3 + $0x538] sm:$0xff] }
 0x713   :  { %4430 = vmatprep.subr.bf16.mxu1 %v3480_v61  ;;  %v3503_v61 = vld [vmem:[#allocation3 + $0x530] sm:$0xff] }
 0x716   :  { %4431 = vmatpush1.bf16.msra.mxu1 %v3479_v21  ;;  %v3510_v21 = vld [vmem:[#allocation3 + $0x568] sm:$0xff] }
 0x717   :  { %4432 = vmatprep.subr.bf16.mxu1 %v3486_v5  ;;  %v3509_v5 = vld [vmem:[#allocation3 + $0x560] sm:$0xff] }
 0x719   :  { %4376 = vmatmul.mubr.bf16.gmra.mrb[112].mxu1 %v11509_v41 }
 0x71a   :  { %4433 = vmatpush1.bf16.msra.mxu1 %v3485_v10  ;;  %4385 = vmatprep.mubr.bf16.mxu1 %v11565_v45  ;;  %v3516_v10 = vld [vmem:[#allocation3 + $0x598] sm:$0xff] }
 0x71b   :  { %4434 = vmatprep.subr.bf16.mxu1 %v3492_v30  ;;  %v3515_v30 = vld [vmem:[#allocation3 + $0x590] sm:$0xff] }
 0x71c   :  { %v14045_v45 = vld [vmem:[#allocation47_spill] sm:$0xff] }
 0x71d   :  { %vm4912_vm15 = vcmp.le.s32.totalorder %v14045_v45, 13 }
 0x71e   :  { %4435 = vmatpush1.bf16.msra.mxu1 %v3491_v51  ;;  %v3522_v51 = vld [vmem:[#allocation3 + $0x5c8] sm:$0xff] }
 0x71f   :  { %4436 = vmatprep.subr.bf16.mxu1 %v3498_v54  ;;  %v3521_v54 = vld [vmem:[#allocation3 + $0x5c0] sm:$0xff] }
 0x721   :  { %4386 = vmatmul.mubr.bf16.gmra.mrb[116].mxu1 %v11563_v48 }
 0x722   :  { %4437 = vmatpush1.bf16.msra.mxu1 %v3497_v37  ;;  %4395 = vmatprep.mubr.bf16.mxu1 %v11617_v23  ;;  %v3528_v37 = vld [vmem:[#allocation3 + $0x5f8] sm:$0xff] }
 0x723   :  { %4438 = vmatprep.subr.bf16.mxu1 %v3504_v26  ;;  %v3527_v26 = vld [vmem:[#allocation3 + $0x5f0] sm:$0xff] }
 0x726   :  { %4439 = vmatpush1.bf16.msra.mxu1 %v3503_v61  ;;  %v3534_v61 = vld [vmem:[#allocation3 + $0x628] sm:$0xff] }
 0x727   :  { %4440 = vmatprep.subr.bf16.mxu1 %v3510_v21  ;;  %v3533_v21 = vld [vmem:[#allocation3 + $0x620] sm:$0xff] }
 0x729   :  { %4396 = vmatmul.mubr.bf16.gmra.mrb[120].mxu1 %v11615_v44 }
 0x72a   :  { %4441 = vmatpush1.bf16.msra.mxu1 %v3509_v5  ;;  %4405 = vmatprep.mubr.bf16.mxu1 %v11669_v11  ;;  %v3540_v5 = vld [vmem:[#allocation3 + $0x658] sm:$0xff] }
 0x72b   :  { %4442 = vmatprep.subr.bf16.mxu1 %v3516_v10  ;;  %v3539_v10 = vld [vmem:[#allocation3 + $0x650] sm:$0xff] }
 0x72e   :  { %4443 = vmatpush1.bf16.msra.mxu1 %v3515_v30  ;;  %v3546_v30 = vld [vmem:[#allocation3 + $0x688] sm:$0xff] }
 0x72f   :  { %4444 = vmatprep.subr.bf16.mxu1 %v3522_v51  ;;  %v3545_v51 = vld [vmem:[#allocation3 + $0x680] sm:$0xff] }
 0x731   :  { %4406 = vmatmul.mubr.bf16.gmra.mrb[124].mxu1 %v11667_v20 }
 0x732   :  { %4445 = vmatpush1.bf16.msra.mxu1 %v3521_v54  ;;  %4448 = vmatprep.mubr.bf16.mxu1 %v11320_v29  ;;  %v3552_v54 = vld [vmem:[#allocation3 + $0x6b8] sm:$0xff] }
 0x733   :  { %4446 = vmatprep.subr.bf16.mxu1 %v3528_v37  ;;  %v3551_v37 = vld [vmem:[#allocation3 + $0x6b0] sm:$0xff] }
 0x736   :  { %4447 = vmatpush1.bf16.msra.mxu1 %v3527_v26  ;;  %v3558_v26 = vld [vmem:[#allocation3 + $0x6e8] sm:$0xff] }
 0x737   :  { %4529 = vmatprep.subr.bf16.mxu1 %v3534_v61  ;;  %v3557_v61 = vld [vmem:[#allocation3 + $0x6e0] sm:$0xff] }
 0x739   :  { %4449 = vmatmul.mubr.bf16.vlgmr.msra.gmra.mrb[96].mxu1 %v11318_v53 }
 0x73a   :  { %4530 = vmatpush1.bf16.msra.mxu1 %v3533_v21  ;;  %4458 = vmatprep.mubr.bf16.mxu1 %v11366_v4  ;;  %v3564_v21 = vld [vmem:[#allocation3 + $0x718] sm:$0xff] }
 0x73b   :  { %4531 = vmatprep.subr.bf16.mxu1 %v3540_v5  ;;  %v3563_v5 = vld [vmem:[#allocation3 + $0x710] sm:$0xff] }
 0x73e   :  { %4532 = vmatpush1.bf16.msra.mxu1 %v3539_v10  ;;  %v3570_v10 = vld [vmem:[#allocation3 + $0x748] sm:$0xff] }
 0x73f   :  { %4533 = vmatprep.subr.bf16.mxu1 %v3546_v30  ;;  %v3569_v30 = vld [vmem:[#allocation3 + $0x740] sm:$0xff] }
 0x741   :  { %4459 = vmatmul.mubr.bf16.gmra.mrb[100].mxu1 %v11364_v1 }
 0x742   :  { %4534 = vmatpush1.bf16.msra.mxu1 %v3545_v51  ;;  %4468 = vmatprep.mubr.bf16.mxu1 %v14013_v15  ;;  %v3576_v51 = vld [vmem:[#allocation3 + $0x778] sm:$0xff] }
 0x743   :  { %4535 = vmatprep.subr.bf16.mxu1 %v3552_v54  ;;  %v3575_v54 = vld [vmem:[#allocation3 + $0x770] sm:$0xff] }
 0x746   :  { %4536 = vmatpush1.bf16.msra.mxu1 %v3551_v37  ;;  %v3582_v37 = vld [vmem:[#allocation3 + $0x7a8] sm:$0xff] }
 0x747   :  { %4537 = vmatprep.subr.bf16.mxu1 %v3558_v26  ;;  %v3581_v26 = vld [vmem:[#allocation3 + $0x7a0] sm:$0xff] }
 0x749   :  { %4469 = vmatmul.mubr.bf16.gmra.mrb[104].mxu1 %v14014_v31 }
 0x74a   :  { %4538 = vmatpush1.bf16.msra.mxu1 %v3557_v61  ;;  %4478 = vmatprep.mubr.bf16.mxu1 %v14015_v8  ;;  %v3588_v61 = vld [vmem:[#allocation3 + $0x7d8] sm:$0xff] }
 0x74b   :  { %4539 = vmatprep.subr.bf16.mxu1 %v3564_v21  ;;  %v3587_v21 = vld [vmem:[#allocation3 + $0x7d0] sm:$0xff] }
 0x74e   :  { %4540 = vmatpush1.bf16.msra.mxu1 %v3563_v5  ;;  %v3594_v5 = vld [vmem:[#allocation3 + $0x808] sm:$0xff] }
 0x74f   :  { %4541 = vmatprep.subr.bf16.mxu1 %v3570_v10  ;;  %v3593_v10 = vld [vmem:[#allocation3 + $0x800] sm:$0xff] }
 0x751   :  { %4479 = vmatmul.mubr.bf16.gmra.mrb[108].mxu1 %v14016_v9 }
 0x752   :  { %4542 = vmatpush1.bf16.msra.mxu1 %v3569_v30  ;;  %4488 = vmatprep.mubr.bf16.mxu1 %v14017_v7  ;;  %v3600_v30 = vld [vmem:[#allocation3 + $0x838] sm:$0xff] }
 0x753   :  { %4543 = vmatprep.subr.bf16.mxu1 %v3576_v51  ;;  %v3599_v51 = vld [vmem:[#allocation3 + $0x830] sm:$0xff] }
 0x756   :  { %4544 = vmatpush1.bf16.msra.mxu1 %v3575_v54  ;;  %v3606_v54 = vld [vmem:[#allocation3 + $0x868] sm:$0xff] }
 0x757   :  { %4545 = vmatprep.subr.bf16.mxu1 %v3582_v37  ;;  %v3605_v37 = vld [vmem:[#allocation3 + $0x860] sm:$0xff] }
 0x759   :  { %4489 = vmatmul.mubr.bf16.gmra.mrb[112].mxu1 %v14018_v24 }
 0x75a   :  { %4546 = vmatpush1.bf16.msra.mxu1 %v3581_v26  ;;  %4498 = vmatprep.mubr.bf16.mxu1 %v14019_v56  ;;  %v3612_v26 = vld [vmem:[#allocation3 + $0x898] sm:$0xff] }
 0x75b   :  { %4547 = vmatprep.subr.bf16.mxu1 %v3588_v61  ;;  %v3611_v61 = vld [vmem:[#allocation3 + $0x890] sm:$0xff] }
 0x75e   :  { %4548 = vmatpush1.bf16.msra.mxu1 %v3587_v21  ;;  %v3618_v21 = vld [vmem:[#allocation3 + $0x8c8] sm:$0xff] }
 0x75f   :  { %4549 = vmatprep.subr.bf16.mxu1 %v3594_v5  ;;  %v3617_v5 = vld [vmem:[#allocation3 + $0x8c0] sm:$0xff] }
 0x761   :  { %4499 = vmatmul.mubr.bf16.gmra.mrb[116].mxu1 %v14020_v19 }
 0x762   :  { %4550 = vmatpush1.bf16.msra.mxu1 %v3593_v10  ;;  %4508 = vmatprep.mubr.bf16.mxu1 %v14021_v14  ;;  %v3624_v10 = vld [vmem:[#allocation3 + $0x8f8] sm:$0xff] }
 0x763   :  { %4551 = vmatprep.subr.bf16.mxu1 %v3600_v30  ;;  %v3623_v30 = vld [vmem:[#allocation3 + $0x8f0] sm:$0xff] }
 0x766   :  { %4552 = vmatpush1.bf16.msra.mxu1 %v3599_v51 }
 0x767   :  { %4553 = vmatprep.subr.bf16.mxu1 %v3606_v54 }
 0x769   :  { %4509 = vmatmul.mubr.bf16.gmra.mrb[120].mxu1 %v14022_v40 }
 0x76a   :  { %4554 = vmatpush1.bf16.msra.mxu1 %v3605_v37  ;;  %4518 = vmatprep.mubr.bf16.mxu1 %v14023_v36 }
 0x76b   :  { %4555 = vmatprep.subr.bf16.mxu1 %v3612_v26 }
 0x76e   :  { %4556 = vmatpush1.bf16.msra.mxu1 %v3611_v61 }
 0x76f   :  { %4557 = vmatprep.subr.bf16.mxu1 %v3618_v21 }
 0x771   :  { %4519 = vmatmul.mubr.bf16.gmra.mrb[124].mxu1 %v14024_v52 }
 0x772   :  { %4558 = vmatpush1.bf16.msra.mxu1 %v3617_v5  ;;  %4561 = vmatprep.mubr.bf16.mxu1 %v14025_v28 }
 0x773   :  { %4559 = vmatprep.subr.bf16.mxu1 %v3624_v10 }
 0x776   :  { %4560 = vmatpush1.bf16.msra.mxu1 %v3623_v30 }
 0x779   :  { %4562 = vmatmul.mubr.bf16.vlgmr.msra.gmra.mrb[96].mxu1 %v14026_v63 }
 0x77a   :  { %4571 = vmatprep.mubr.bf16.mxu1 %v14027_v47 }
 0x781   :  { %4572 = vmatmul.mubr.bf16.gmra.mrb[100].mxu1 %v14028_v59 }
 0x782   :  { %4581 = vmatprep.mubr.bf16.mxu1 %v14029_v6 }
 0x789   :  { %4582 = vmatmul.mubr.bf16.gmra.mrb[104].mxu1 %v14030_v50 }
 0x78a   :  { %4591 = vmatprep.mubr.bf16.mxu1 %v14031_v32 }
 0x78c   :  { %v3885_v51 = vpop.f32.mrb[64].mxu1  ;;  %v12109_v54 = vpop.f32.mrb[96].mxu0 }
 0x78d   :  { %v13621_v37 = vrot.slane %v12109_v54, 1  ;;  %v3887_v26 = vpop.f32.mrb[65].mxu1  ;;  %v12112_v61 = vpop.f32.mrb[97].mxu0 }
 0x78e   :  { %v13626_v21 = vrot.slane %v12112_v61, 1  ;;  %v3889_v5 = vpop.f32.mrb[66].mxu1  ;;  %v4228_v10 = vpop.f32.mrb[98].mxu0 }
 0x78f   :  { %v4644_v30 = vrot.slane %v4228_v10, 1  ;;  %v3891_v46 = vpop.f32.mrb[67].mxu1  ;;  %v4230_v13 = vpop.f32.mrb[99].mxu0 }
 0x790   :  { %v4645_v49 = vrot.slane %v4230_v13, 1 }
 0x791   :  { %v4702_v18 = vsel %vm3043_vm12, %v13621_v37, %v4644_v30  ;;  %4592 = vmatmul.mubr.bf16.gmra.mrb[108].mxu1 %v14032_v38 }
 0x792   :  { %v12120_v12 = vadd.f32 %v4702_v18, %v3885_v51  ;;  %v4703_v2 = vsel %vm3043_vm12, %v13626_v21, %v4645_v49  ;;  %4601 = vmatprep.mubr.bf16.mxu1 %v14033_v0 }
 0x793   :  { %v12127_v10 = vadd.f32 %v4703_v2, %v3887_v26 }
 0x794   :  { %v3895_v32 = vpop.f32.mrb[68].mxu1  ;;  %v4234_v13 = vpop.f32.mrb[100].mxu0 }
 0x795   :  { %v4646_v50 = vrot.slane %v4234_v13, 1  ;;  %v3897_v6 = vpop.f32.mrb[69].mxu1  ;;  %v4236_v59 = vpop.f32.mrb[101].mxu0 }
 0x796   :  { %v4647_v47 = vrot.slane %v4236_v59, 1  ;;  %v3899_v37 = vpop.f32.mrb[70].mxu1  ;;  %v4238_v63 = vpop.f32.mrb[102].mxu0 }
 0x797   :  { %v4700_v18 = vsel %vm3043_vm12, %v4644_v30, %v4646_v50  ;;  %v4648_v51 = vrot.slane %v4238_v63, 1  ;;  %v3901_v38 = vpop.f32.mrb[71].mxu1  ;;  %v4240_v28 = vpop.f32.mrb[103].mxu0 }
 0x798   :  { %v12131_v52 = vadd.f32 %v4700_v18, %v3889_v5  ;;  %v4701_v2 = vsel %vm3043_vm12, %v4645_v49, %v4647_v47  ;;  %v4649_v26 = vrot.slane %v4240_v28, 1 }
 0x799   :  { %v12135_v21 = vadd.f32 %v4701_v2, %v3891_v46  ;;  %v4698_v13 = vsel %vm3043_vm12, %v4646_v50, %v4648_v51  ;;  %4602 = vmatmul.mubr.bf16.gmra.mrb[112].mxu1 %v14034_v33 }
 0x79a   :  { %v12140_v59 = vadd.f32 %v4698_v13, %v3895_v32  ;;  %v4699_v63 = vsel %vm3043_vm12, %v4647_v47, %v4649_v26  ;;  %4611 = vmatprep.mubr.bf16.mxu1 %v14035_v3 }
 0x79b   :  { %v12145_v5 = vadd.f32 %v4699_v63, %v3897_v6 }
 0x79c   :  { %v3905_v30 = vpop.f32.mrb[72].mxu1  ;;  %v4244_v18 = vpop.f32.mrb[104].mxu0 }
 0x79d   :  { %v4650_v49 = vrot.slane %v4244_v18, 1  ;;  %v3907_v28 = vpop.f32.mrb[73].mxu1  ;;  %v4246_v46 = vpop.f32.mrb[105].mxu0 }
 0x79e   :  { %v4651_v2 = vrot.slane %v4246_v46, 1  ;;  %v3909_v0 = vpop.f32.mrb[74].mxu1  ;;  %v4248_v36 = vpop.f32.mrb[106].mxu0 }
 0x79f   :  { %v4696_v50 = vsel %vm3043_vm12, %v4648_v51, %v4650_v49  ;;  %v4652_v32 = vrot.slane %v4248_v36, 1  ;;  %v3911_v13 = vpop.f32.mrb[75].mxu1  ;;  %v4250_v33 = vpop.f32.mrb[107].mxu0 }
 0x7a0   :  { %v12149_v40 = vadd.f32 %v4696_v50, %v3899_v37  ;;  %v4697_v47 = vsel %vm3043_vm12, %v4649_v26, %v4651_v2  ;;  %v4653_v6 = vrot.slane %v4250_v33, 1 }
 0x7a1   :  { %v12153_v63 = vadd.f32 %v4697_v47, %v3901_v38  ;;  %v4694_v18 = vsel %vm3043_vm12, %v4650_v49, %v4652_v32  ;;  %4612 = vmatmul.mubr.bf16.gmra.mrb[116].mxu1 %v14036_v22 }
 0x7a2   :  { %v12158_v46 = vadd.f32 %v4694_v18, %v3905_v30  ;;  %v4695_v36 = vsel %vm3043_vm12, %v4651_v2, %v4653_v6  ;;  %4621 = vmatprep.mubr.bf16.mxu1 %v14037_v35 }
 0x7a3   :  { %v12163_v37 = vadd.f32 %v4695_v36, %v3907_v28 }
 0x7a4   :  { %v3915_v51 = vpop.f32.mrb[76].mxu1  ;;  %v4254_v50 = vpop.f32.mrb[108].mxu0 }
 0x7a5   :  { %v4654_v26 = vrot.slane %v4254_v50, 1  ;;  %v3917_v33 = vpop.f32.mrb[77].mxu1  ;;  %v4256_v38 = vpop.f32.mrb[109].mxu0 }
 0x7a6   :  { %v4655_v47 = vrot.slane %v4256_v38, 1  ;;  %v3919_v3 = vpop.f32.mrb[78].mxu1  ;;  %v4258_v14 = vpop.f32.mrb[110].mxu0 }
 0x7a7   :  { %v4692_v49 = vsel %vm3043_vm12, %v4652_v32, %v4654_v26  ;;  %v4656_v30 = vrot.slane %v4258_v14, 1  ;;  %v3921_v18 = vpop.f32.mrb[79].mxu1  ;;  %v4260_v22 = vpop.f32.mrb[111].mxu0 }
 0x7a8   :  { %v12167_v19 = vadd.f32 %v4692_v49, %v3909_v0  ;;  %v4693_v28 = vsel %vm3043_vm12, %v4653_v6, %v4655_v47  ;;  %v4657_v2 = vrot.slane %v4260_v22, 1 }
 0x7a9   :  { %v12171_v36 = vadd.f32 %v4693_v28, %v3911_v13  ;;  %v4690_v50 = vsel %vm3043_vm12, %v4654_v26, %v4656_v30  ;;  %4622 = vmatmul.mubr.bf16.gmra.mrb[120].mxu1 %v14038_v55 }
 0x7aa   :  { %v12176_v38 = vadd.f32 %v4690_v50, %v3915_v51  ;;  %v4691_v14 = vsel %vm3043_vm12, %v4655_v47, %v4657_v2  ;;  %4631 = vmatprep.mubr.bf16.mxu1 %v14039_v60 }
 0x7ab   :  { %v12181_v0 = vadd.f32 %v4691_v14, %v3917_v33 }
 0x7ac   :  { %v3925_v32 = vpop.f32.mrb[80].mxu1  ;;  %v4264_v49 = vpop.f32.mrb[112].mxu0 }
 0x7ad   :  { %v4658_v6 = vrot.slane %v4264_v49, 1  ;;  %v3927_v22 = vpop.f32.mrb[81].mxu1  ;;  %v4266_v13 = vpop.f32.mrb[113].mxu0 }
 0x7ae   :  { %v4659_v28 = vrot.slane %v4266_v13, 1  ;;  %v3929_v35 = vpop.f32.mrb[82].mxu1  ;;  %v4268_v56 = vpop.f32.mrb[114].mxu0 }
 0x7af   :  { %v4688_v26 = vsel %vm3043_vm12, %v4656_v30, %v4658_v6  ;;  %v4660_v51 = vrot.slane %v4268_v56, 1  ;;  %v3931_v50 = vpop.f32.mrb[83].mxu1  ;;  %v4270_v55 = vpop.f32.mrb[115].mxu0 }
 0x7b0   :  { %v12185_v24 = vadd.f32 %v4688_v26, %v3919_v3  ;;  %v4689_v33 = vsel %vm3043_vm12, %v4657_v2, %v4659_v28  ;;  %v4661_v47 = vrot.slane %v4270_v55, 1 }
 0x7b1   :  { %v12189_v14 = vadd.f32 %v4689_v33, %v3921_v18  ;;  %v4686_v49 = vsel %vm3043_vm12, %v4658_v6, %v4660_v51  ;;  %4632 = vmatmul.mubr.bf16.gmra.mrb[124].mxu1 %v14040_v27 }
 0x7b2   :  { %v12194_v13 = vadd.f32 %v4686_v49, %v3925_v32  ;;  %v4687_v56 = vsel %vm3043_vm12, %v4659_v28, %v4661_v47 }
 0x7b3   :  { %v12198_v30 = vadd.f32 %v4687_v56, %v3927_v22 }
 0x7b4   :  { %v3935_v3 = vpop.f32.mrb[84].mxu1  ;;  %v4274_v26 = vpop.f32.mrb[116].mxu0 }
 0x7b5   :  { %v4662_v60 = vrot.slane %v4274_v26, 1  ;;  %v3937_v7 = vpop.f32.mrb[85].mxu1  ;;  %v4276_v2 = vpop.f32.mrb[117].mxu0 }
 0x7b6   :  { %v4663_v55 = vrot.slane %v4276_v2, 1  ;;  %v3939_v18 = vpop.f32.mrb[86].mxu1  ;;  %v4278_v33 = vpop.f32.mrb[118].mxu0 }
 0x7b7   :  { %v4684_v6 = vsel %vm3043_vm12, %v4660_v51, %v4662_v60  ;;  %v4664_v9 = vrot.slane %v4278_v33, 1  ;;  %v3941_v27 = vpop.f32.mrb[87].mxu1  ;;  %v4280_v32 = vpop.f32.mrb[119].mxu0 }
 0x7b8   :  { %v12202_v49 = vadd.f32 %v4684_v6, %v3929_v35  ;;  %v4685_v22 = vsel %vm3043_vm12, %v4661_v47, %v4663_v55  ;;  %v4665_v28 = vrot.slane %v4280_v32, 1 }
 0x7b9   :  { %v12206_v56 = vadd.f32 %v4685_v22, %v3931_v50  ;;  %v4682_v26 = vsel %vm3043_vm12, %v4662_v60, %v4664_v9 }
 0x7ba   :  { %v12210_v2 = vadd.f32 %v4682_v26, %v3935_v3  ;;  %v4683_v8 = vsel %vm3043_vm12, %v4663_v55, %v4665_v28 }
 0x7bb   :  { %v12214_v51 = vadd.f32 %v4683_v8, %v3937_v7 }
 0x7bc   :  { %v3945_v33 = vpop.f32.mrb[88].mxu1  ;;  %v4284_v31 = vpop.f32.mrb[120].mxu0 }
 0x7bd   :  { %v4666_v35 = vrot.slane %v4284_v31, 1  ;;  %v3947_v6 = vpop.f32.mrb[89].mxu1  ;;  %v4286_v15 = vpop.f32.mrb[121].mxu0 }
 0x7be   :  { %v4667_v1 = vrot.slane %v4286_v15, 1  ;;  %v3949_v47 = vpop.f32.mrb[90].mxu1  ;;  %v4288_v32 = vpop.f32.mrb[122].mxu0 }
 0x7bf   :  { %v4680_v50 = vsel %vm3043_vm12, %v4664_v9, %v4666_v35  ;;  %v4668_v22 = vrot.slane %v4288_v32, 1  ;;  %v3951_v60 = vpop.f32.mrb[91].mxu1  ;;  %v4290_v3 = vpop.f32.mrb[123].mxu0 }
 0x7c0   :  { %v12218_v26 = vadd.f32 %v4680_v50, %v3939_v18  ;;  %v4681_v8 = vsel %vm3043_vm12, %v4665_v28, %v4667_v1  ;;  %v4669_v7 = vrot.slane %v4290_v3, 1 }
 0x7c1   :  { %v12222_v55 = vadd.f32 %v4681_v8, %v3941_v27  ;;  %v4678_v31 = vsel %vm3043_vm12, %v4666_v35, %v4668_v22 }
 0x7c2   :  { %v12226_v15 = vadd.f32 %v4678_v31, %v3945_v33  ;;  %v4679_v4 = vsel %vm3043_vm12, %v4667_v1, %v4669_v7 }
 0x7c3   :  { %v12230_v9 = vadd.f32 %v4679_v4, %v3947_v6 }
 0x7c4   :  { %v3955_v32 = vpop.f32.mrb[92].mxu1  ;;  %v4294_v53 = vpop.f32.mrb[124].mxu0 }
 0x7c5   :  { %v4670_v18 = vrot.slane %v4294_v53, 1  ;;  %v3957_v50 = vpop.f32.mrb[93].mxu1  ;;  %v4296_v29 = vpop.f32.mrb[125].mxu0 }
 0x7c6   :  { %v4671_v20 = vrot.slane %v4296_v29, 1  ;;  %v3959_v28 = vpop.f32.mrb[94].mxu1  ;;  %v4298_v3 = vpop.f32.mrb[126].mxu0  ;;  %v14041_v29 = vrot.slane %v12109_v54, 1 }
 0x7c7   :  { %v4676_v27 = vsel %vm3043_vm12, %v4668_v22, %v4670_v18  ;;  %v4672_v8 = vrot.slane %v4298_v3, 1  ;;  %v3961_v35 = vpop.f32.mrb[95].mxu1  ;;  %v4300_v33 = vpop.f32.mrb[127].mxu0 }
 0x7c8   :  { %v12234_v31 = vadd.f32 %v4676_v27, %v3949_v47  ;;  %v4677_v1 = vsel %vm3043_vm12, %v4669_v7, %v4671_v20  ;;  %v4673_v4 = vrot.slane %v4300_v33, 1  ;;  %v14042_v7 = vrot.slane %v12112_v61, 1 }
 0x7c9   :  { %v12238_v6 = vadd.f32 %v4677_v1, %v3951_v60  ;;  %v4674_v53 = vsel %vm3043_vm12, %v4670_v18, %v4672_v8  ;;  %v4704_v11 = vsel %vm3043_vm12, %v4672_v8, %v14041_v29  ;;  %v4835_v1 = vld [vmem:[#allocation16 + $0x2] sm:$0x3] }
 0x7ca   :  { %v12246_v22 = vadd.f32 %v4674_v53, %v3955_v32  ;;  %v12248_v3 = vadd.f32 %v4704_v11, %v3959_v28  ;;  %v4675_v47 = vsel %vm3043_vm12, %v4671_v20, %v4673_v4  ;;  %v4705_v60 = vsel %vm3043_vm12, %v4673_v4, %v14042_v7 }
 0x7cb   :  { %v12256_v27 = vadd.f32 %v4675_v47, %v3957_v50  ;;  %v12258_v18 = vadd.f32 %v4705_v60, %v3961_v35  ;;  %v14043_v47 = vld [vmem:[#allocation113_spill] sm:$0xff] }
 0x7cc   :  { %v12278_v7 = vrot.slane %v4835_v1, %v14043_v47 }
 0x84c   :  { %v12260_v54 = vpop.f32.mrb[96].mxu1 }
 0x84d   :  { %v12262_v33 = vpop.f32.mrb[97].mxu1  ;;  %v13660_v11 = vrot.slane %v12260_v54, 2 }
 0x84e   :  { %v4567_v32 = vpop.f32.mrb[98].mxu1  ;;  %v13665_v61 = vrot.slane %v12262_v33, 2 }
 0x84f   :  { %v4740_v28 = vrot.slane %v4567_v32, 2  ;;  %v4569_v20 = vpop.f32.mrb[99].mxu1 }
 0x850   :  { %v4741_v8 = vrot.slane %v4569_v20, 2  ;;  %v14044_v20 = vld [vmem:[#allocation114_spill] sm:$0xff] }
 0x851   :  { %v4799_v50 = vsel %vm4770_vm13, %v13660_v11, %v4740_v28  ;;  %v12281_v44 = vrot.slane %v4835_v1, %v14044_v20 }
 0x852   :  { %v4803_v35 = vadd.f32 %v4799_v50, %v12120_v12  ;;  %v4800_v4 = vsel %vm4770_vm13, %v13665_v61, %v4741_v8 }
 0x853   :  { %v4804_v53 = vadd.f32 %v4800_v4, %v12127_v10 }
 0x854   :  { %v4573_v29 = vpop.f32.mrb[100].mxu1 }
 0x855   :  { %v4742_v60 = vrot.slane %v4573_v29, 2  ;;  %v4575_v32 = vpop.f32.mrb[101].mxu1  ;;  %v4847_v29 = vadd.f32 %v12278_v7, %v4803_v35  ;;  %v4848_v20 = vadd.f32 %v12281_v44, %v4804_v53 }
 0x856   :  { %v4743_v11 = vrot.slane %v4575_v32, 2  ;;  %v4577_v23 = vpop.f32.mrb[102].mxu1 }
 0x857   :  { %v4797_v12 = vsel %vm4770_vm13, %v4740_v28, %v4742_v60  ;;  %v4744_v50 = vrot.slane %v4577_v23, 2  ;;  %v4579_v48 = vpop.f32.mrb[103].mxu1  ;;  %v4880_v41 = vmax.f32 %v4848_v20, 0.0 }
 0x858   :  { %v4805_v61 = vadd.f32 %v4797_v12, %v12131_v52  ;;  %v4798_v10 = vsel %vm4770_vm13, %v4741_v8, %v4743_v11  ;;  %v4745_v4 = vrot.slane %v4579_v48, 2  ;;  %v14046_v12 = vmov 0.0  }
 0x859   :  { %v4806_v1 = vadd.f32 %v4798_v10, %v12135_v21  ;;  %v4795_v32 = vsel %vm4770_vm13, %v4742_v60, %v4744_v50  ;;  %v12299_v45 = vsel %vm4912_vm15, 1.0, %v14046_v12  ;;  %v4879_v10 = vmax.f32 %v4847_v29, 0.0 }
 0x85a   :  { %v4849_v23 = vadd.f32 %v12278_v7, %v4805_v61  ;;  %v4807_v28 = vadd.f32 %v4795_v32, %v12140_v59  ;;  %v4796_v52 = vsel %vm4770_vm13, %v4743_v11, %v4745_v4 }
 0x85b   :  { %v4850_v48 = vadd.f32 %v12281_v44, %v4806_v1  ;;  %v4808_v8 = vadd.f32 %v4796_v52, %v12145_v5 }
 0x85c   :  { %v4881_v21 = vmax.f32 %v4849_v23, 0.0  ;;  %v4583_v35 = vpop.f32.mrb[104].mxu1  ;;  %v4851_v59 = vadd.f32 %v12278_v7, %v4807_v28 }
 0x85d   :  { %v4882_v60 = vmax.f32 %v4850_v48, 0.0  ;;  %v4746_v47 = vrot.slane %v4583_v35, 2  ;;  %v4585_v53 = vpop.f32.mrb[105].mxu1  ;;  %v4852_v16 = vadd.f32 %v12281_v44, %v4808_v8 }
 0x85e   :  { %v4919_v61 = vmul.f32 %v12299_v45, %v4881_v21  ;;  %v4747_v32 = vrot.slane %v4585_v53, 2  ;;  %v4587_v11 = vpop.f32.mrb[106].mxu1 }
 0x85f   :  { %v4920_v12 = vmul.f32 %v12299_v45, %v4882_v60  ;;  %v4793_v5 = vsel %vm4770_vm13, %v4744_v50, %v4746_v47  ;;  %v4748_v1 = vrot.slane %v4587_v11, 2  ;;  %v4589_v23 = vpop.f32.mrb[107].mxu1 }
 0x860   :  { %v4949_v29 = vmax.f32 %v4879_v10, %v4919_v61  ;;  %v4809_v52 = vadd.f32 %v4793_v5, %v12149_v40  ;;  %v4794_v20 = vsel %vm4770_vm13, %v4745_v4, %v4747_v32  ;;  %v4749_v48 = vrot.slane %v4589_v23, 2 }
 0x861   :  { %v4956_v21 = vmax.f32 %v4880_v41, %v4920_v12  ;;  %v4810_v28 = vadd.f32 %v4794_v20, %v12153_v63  ;;  %v4791_v35 = vsel %vm4770_vm13, %v4746_v47, %v4748_v1  ;;  %v4883_v40 = vmax.f32 %v4851_v59, 0.0 }
 0x862   :  { %v4950_v60 = vrot.slane %v4949_v29, 4  ;;  %v4853_v8 = vadd.f32 %v12278_v7, %v4809_v52  ;;  %v4811_v50 = vadd.f32 %v4791_v35, %v12158_v46  ;;  %v4792_v10 = vsel %vm4770_vm13, %v4747_v32, %v4749_v48 }
 0x863   :  { %v4957_v53 = vrot.slane %v4956_v21, 4  ;;  %v4854_v61 = vadd.f32 %v12281_v44, %v4810_v28  ;;  %v4812_v4 = vadd.f32 %v4792_v10, %v12163_v37  ;;  %v4884_v12 = vmax.f32 %v4852_v16, 0.0 }
 0x864   :  { %v4951_v41 = vmax.f32 %v4949_v29, %v4950_v60  ;;  %v4885_v63 = vmax.f32 %v4853_v8, 0.0  ;;  %v4855_v11 = vadd.f32 %v12278_v7, %v4811_v50  ;;  %v4593_v47 = vpop.f32.mrb[108].mxu1 }
 0x865   :  { %v4958_v5 = vmax.f32 %v4956_v21, %v4957_v53  ;;  %v4886_v23 = vmax.f32 %v4854_v61, 0.0  ;;  %v4856_v52 = vadd.f32 %v12281_v44, %v4812_v4  ;;  %v4750_v46 = vrot.slane %v4593_v47, 2  ;;  %v4595_v20 = vpop.f32.mrb[109].mxu1 }
 0x866   :  { %v4952_v35 = vrot.slane %v4951_v41, 2  ;;  %v4923_v32 = vmul.f32 %v12299_v45, %v4885_v63  ;;  %v4887_v59 = vmax.f32 %v4855_v11, 0.0  ;;  %v4751_v62 = vrot.slane %v4595_v20, 2  ;;  %v4597_v28 = vpop.f32.mrb[110].mxu1 }
 0x867   :  { %v4959_v58 = vrot.slane %v4958_v5, 2  ;;  %v4924_v37 = vmul.f32 %v12299_v45, %v4886_v23  ;;  %v4888_v16 = vmax.f32 %v4856_v52, 0.0  ;;  %v4789_v29 = vsel %vm4770_vm13, %v4748_v1, %v4750_v46  ;;  %v4599_v60 = vpop.f32.mrb[111].mxu1 }
 0x868   :  { %v4953_v21 = vmax.f32 %v4951_v41, %v4952_v35  ;;  %v4963_v8 = vmax.f32 %v4883_v40, %v4923_v32  ;;  %v4813_v50 = vadd.f32 %v4789_v29, %v12167_v19  ;;  %v4790_v10 = vsel %vm4770_vm13, %v4749_v48, %v4751_v62 }
 0x869   :  { %v4960_v53 = vmax.f32 %v4958_v5, %v4959_v58  ;;  %v4970_v61 = vmax.f32 %v4884_v12, %v4924_v37  ;;  %v4814_v4 = vadd.f32 %v4790_v10, %v12171_v36  ;;  %v4752_v63 = vrot.slane %v4597_v28, 2 }
 0x86a   :  { %v4954_v11 = vrot.slane %v4953_v21, 1  ;;  %v4964_v47 = vrot.slane %v4963_v8, 4  ;;  %v4857_v23 = vadd.f32 %v12278_v7, %v4813_v50  ;;  %v4753_v52 = vrot.slane %v4599_v60, 2 }
 0x86b   :  { %v4961_v20 = vrot.slane %v4960_v53, 1  ;;  %v4971_v1 = vrot.slane %v4970_v61, 4  ;;  %v4858_v41 = vadd.f32 %v12281_v44, %v4814_v4  ;;  %v4787_v19 = vsel %vm4770_vm13, %v4750_v46, %v4752_v63 }
 0x86c   :  { %v12335_v40 = vmax.f32 %v4953_v21, %v4954_v11  ;;  %v4965_v48 = vmax.f32 %v4963_v8, %v4964_v47  ;;  %v4889_v58 = vmax.f32 %v4857_v23, 0.0  ;;  %v4815_v12 = vadd.f32 %v4787_v19, %v12176_v38  ;;  %v4603_v36 = vpop.f32.mrb[112].mxu1 }
 0x86d   :  { %v12338_v5 = vmax.f32 %v4960_v53, %v4961_v20  ;;  %v4972_v35 = vmax.f32 %v4970_v61, %v4971_v1  ;;  %v4890_v32 = vmax.f32 %v4858_v41, 0.0  ;;  %v4788_v28 = vsel %vm4770_vm13, %v4751_v62, %v4753_v52  ;;  %v4605_v37 = vpop.f32.mrb[113].mxu1 }
 0x86e   :  { %v4966_v29 = vrot.slane %v4965_v48, 2  ;;  %v4927_v60 = vmul.f32 %v12299_v45, %v4889_v58  ;;  %v4859_v46 = vadd.f32 %v12278_v7, %v4815_v12  ;;  %v4816_v21 = vadd.f32 %v4788_v28, %v12181_v0  ;;  %v4607_v8 = vpop.f32.mrb[114].mxu1 }
 0x86f   :  { %v4973_v50 = vrot.slane %v4972_v35, 2  ;;  %v4928_v38 = vmul.f32 %v12299_v45, %v4890_v32  ;;  %v4754_v10 = vrot.slane %v4603_v36, 2  ;;  %v4755_v53 = vrot.slane %v4605_v37, 2  ;;  %v4609_v4 = vpop.f32.mrb[115].mxu1 }
 0x870   :  { %v4967_v61 = vmax.f32 %v4965_v48, %v4966_v29  ;;  %v4977_v11 = vmax.f32 %v4887_v59, %v4927_v60  ;;  %v4891_v47 = vmax.f32 %v4859_v46, 0.0  ;;  %v4860_v62 = vadd.f32 %v12281_v44, %v4816_v21 }
 0x871   :  { %v4974_v23 = vmax.f32 %v4972_v35, %v4973_v50  ;;  %v4984_v20 = vmax.f32 %v4888_v16, %v4928_v38  ;;  %v4785_v1 = vsel %vm4770_vm13, %v4752_v63, %v4754_v10  ;;  %v4786_v0 = vsel %vm4770_vm13, %v4753_v52, %v4755_v53 }
 0x872   :  { %v4968_v41 = vrot.slane %v4967_v61, 1  ;;  %v4978_v19 = vrot.slane %v4977_v11, 4  ;;  %v4892_v58 = vmax.f32 %v4860_v62, 0.0  ;;  %v4817_v12 = vadd.f32 %v4785_v1, %v12185_v24 }
 0x873   :  { %v4975_v36 = vrot.slane %v4974_v23, 1  ;;  %v4985_v32 = vrot.slane %v4984_v20, 4  ;;  %v4818_v59 = vadd.f32 %v4786_v0, %v12189_v14  ;;  %v4756_v48 = vrot.slane %v4607_v8, 2 }
 0x874   :  { %v12353_v28 = vmax.f32 %v4967_v61, %v4968_v41  ;;  %v4979_v35 = vmax.f32 %v4977_v11, %v4978_v19  ;;  %v4861_v16 = vadd.f32 %v12278_v7, %v4817_v12  ;;  %v4757_v37 = vrot.slane %v4609_v4, 2  ;;  %v4613_v63 = vpop.f32.mrb[116].mxu1 }
 0x875   :  { %v12356_v29 = vmax.f32 %v4974_v23, %v4975_v36  ;;  %v4986_v52 = vmax.f32 %v4984_v20, %v4985_v32  ;;  %v4862_v60 = vadd.f32 %v12281_v44, %v4818_v59  ;;  %v4783_v24 = vsel %vm4770_vm13, %v4754_v10, %v4756_v48  ;;  %v4615_v46 = vpop.f32.mrb[117].mxu1 }
 0x876   :  { %v4980_v21 = vrot.slane %v4979_v35, 2  ;;  %v4893_v50 = vmax.f32 %v4861_v16, 0.0  ;;  %v4819_v14 = vadd.f32 %v4783_v24, %v12194_v13  ;;  %v4784_v8 = vsel %vm4770_vm13, %v4755_v53, %v4757_v37  ;;  %v4617_v38 = vpop.f32.mrb[118].mxu1 }
 0x877   :  { %14047 = vst [vmem:[#allocation111_spill] sm:$0xff] %v12356_v29  ;;  %v4987_v61 = vrot.slane %v4986_v52, 2  ;;  %v4894_v4 = vmax.f32 %v4862_v60, 0.0  ;;  %v4820_v11 = vadd.f32 %v4784_v8, %v12198_v30  ;;  %v4758_v62 = vrot.slane %v4613_v63, 2  ;;  %v4619_v23 = vpop.f32.mrb[119].mxu1 }
 0x878   :  { %v4981_v20 = vmax.f32 %v4979_v35, %v4980_v21  ;;  %v4931_v1 = vmul.f32 %v12299_v45, %v4893_v50  ;;  %v4863_v10 = vadd.f32 %v12278_v7, %v4819_v14  ;;  %v4759_v0 = vrot.slane %v4615_v46, 2 }
 0x879   :  { %v4988_v41 = vmax.f32 %v4986_v52, %v4987_v61  ;;  %v4932_v19 = vmul.f32 %v12299_v45, %v4894_v4  ;;  %v4864_v13 = vadd.f32 %v12281_v44, %v4820_v11  ;;  %v4781_v53 = vsel %vm4770_vm13, %v4756_v48, %v4758_v62 }
 0x87a   :  { %v4982_v12 = vrot.slane %v4981_v20, 1  ;;  %v4991_v36 = vmax.f32 %v4891_v47, %v4931_v1  ;;  %v4895_v32 = vmax.f32 %v4863_v10, 0.0  ;;  %v4821_v30 = vadd.f32 %v4781_v53, %v12202_v49 }
 0x87b   :  { %v4989_v59 = vrot.slane %v4988_v41, 1  ;;  %v4998_v35 = vmax.f32 %v4892_v58, %v4932_v19  ;;  %v4896_v16 = vmax.f32 %v4864_v13, 0.0  ;;  %v4782_v63 = vsel %vm4770_vm13, %v4757_v37, %v4759_v0 }
 0x87c   :  { %v12374_v60 = vmax.f32 %v4981_v20, %v4982_v12  ;;  %v4992_v52 = vrot.slane %v4991_v36, 4  ;;  %v4865_v24 = vadd.f32 %v12278_v7, %v4821_v30  ;;  %v4822_v46 = vadd.f32 %v4782_v63, %v12206_v56  ;;  %v4623_v21 = vpop.f32.mrb[120].mxu1 }
 0x87d   :  { %v12378_v48 = vmax.f32 %v4988_v41, %v4989_v59  ;;  %v4999_v47 = vrot.slane %v4998_v35, 4  ;;  %v4760_v50 = vrot.slane %v4617_v38, 2  ;;  %v4761_v14 = vrot.slane %v4619_v23, 2  ;;  %v4625_v49 = vpop.f32.mrb[121].mxu1 }
 0x87e   :  { %14048 = vst [vmem:[#allocation78_spill] sm:$0xff] %v12374_v60  ;;  %v4993_v8 = vmax.f32 %v4991_v36, %v4992_v52  ;;  %v4897_v58 = vmax.f32 %v4865_v24, 0.0  ;;  %v4866_v61 = vadd.f32 %v12281_v44, %v4822_v46  ;;  %v4762_v4 = vrot.slane %v4623_v21, 2  ;;  %v4627_v37 = vpop.f32.mrb[122].mxu1 }
 0x87f   :  { %14049 = vst [vmem:[#allocation80_spill] sm:$0xff] %v12378_v48  ;;  %v5000_v11 = vmax.f32 %v4998_v35, %v4999_v47  ;;  %v4779_v20 = vsel %vm4770_vm13, %v4758_v62, %v4760_v50  ;;  %v4780_v56 = vsel %vm4770_vm13, %v4759_v0, %v4761_v14  ;;  %v4763_v1 = vrot.slane %v4625_v49, 2  ;;  %v12385_v10 = vpop.f32.mrb[123].mxu1 }
 0x880   :  { %v4994_v41 = vrot.slane %v4993_v8, 2  ;;  %v4935_v38 = vmul.f32 %v12299_v45, %v4897_v58  ;;  %v4898_v23 = vmax.f32 %v4866_v61, 0.0  ;;  %v4823_v19 = vadd.f32 %v4779_v20, %v12210_v2 }
 0x881   :  { %v5001_v13 = vrot.slane %v5000_v11, 2  ;;  %v4824_v53 = vadd.f32 %v4780_v56, %v12214_v51  ;;  %v4777_v12 = vsel %vm4770_vm13, %v4760_v50, %v4762_v4  ;;  %v4778_v62 = vsel %vm4770_vm13, %v4761_v14, %v4763_v1 }
 0x882   :  { %v4995_v36 = vmax.f32 %v4993_v8, %v4994_v41  ;;  %v5005_v0 = vmax.f32 %v4895_v32, %v4935_v38  ;;  %v4936_v30 = vmul.f32 %v12299_v45, %v4898_v23  ;;  %v4867_v59 = vadd.f32 %v12278_v7, %v4823_v19 }
 0x883   :  { %v5002_v35 = vmax.f32 %v5000_v11, %v5001_v13  ;;  %v4868_v63 = vadd.f32 %v12281_v44, %v4824_v53  ;;  %v4825_v2 = vadd.f32 %v4777_v12, %v12218_v26  ;;  %v4826_v52 = vadd.f32 %v4778_v62, %v12222_v55 }
 0x884   :  { %v4996_v51 = vrot.slane %v4995_v36, 1  ;;  %v5006_v24 = vrot.slane %v5005_v0, 4  ;;  %v5012_v46 = vmax.f32 %v4896_v16, %v4936_v30  ;;  %v4899_v21 = vmax.f32 %v4867_v59, 0.0  ;;  %v4633_v47 = vpop.f32.mrb[124].mxu1 }
 0x885   :  { %v5003_v50 = vrot.slane %v5002_v35, 1  ;;  %v4900_v14 = vmax.f32 %v4868_v63, 0.0  ;;  %v4869_v32 = vadd.f32 %v12278_v7, %v4825_v2  ;;  %v4870_v49 = vadd.f32 %v12281_v44, %v4826_v52  ;;  %v4635_v8 = vpop.f32.mrb[125].mxu1 }
 0x886   :  { %v12401_v58 = vmax.f32 %v4995_v36, %v4996_v51  ;;  %v5007_v61 = vmax.f32 %v5005_v0, %v5006_v24  ;;  %v5013_v11 = vrot.slane %v5012_v46, 4  ;;  %v4764_v20 = vrot.slane %v4627_v37, 2  ;;  %v4637_v26 = vpop.f32.mrb[126].mxu1 }
 0x887   :  { %v12403_v56 = vmax.f32 %v5002_v35, %v5003_v50  ;;  %v4901_v55 = vmax.f32 %v4869_v32, 0.0  ;;  %v4902_v41 = vmax.f32 %v4870_v49, 0.0  ;;  %v4765_v16 = vrot.slane %v12385_v10, 2  ;;  %v4639_v38 = vpop.f32.mrb[127].mxu1 }
 0x888   :  { %14050 = vst [vmem:[#allocation79_spill] sm:$0xff] %v12401_v58  ;;  %v5008_v23 = vrot.slane %v5007_v61, 2  ;;  %v5014_v19 = vmax.f32 %v5012_v46, %v5013_v11  ;;  %v4775_v13 = vsel %vm4770_vm13, %v4762_v4, %v4764_v20  ;;  %v4766_v53 = vrot.slane %v4633_v47, 2 }
 0x889   :  { %14051 = vst [vmem:[#allocation81_spill] sm:$0xff] %v12403_v56  ;;  %v4939_v12 = vmul.f32 %v12299_v45, %v4901_v55  ;;  %v4940_v62 = vmul.f32 %v12299_v45, %v4902_v41  ;;  %v4827_v37 = vadd.f32 %v4775_v13, %v12226_v15  ;;  %v4776_v36 = vsel %vm4770_vm13, %v4763_v1, %v4765_v16 }
 0x88a   :  { %v5009_v0 = vmax.f32 %v5007_v61, %v5008_v23  ;;  %v5015_v30 = vrot.slane %v5014_v19, 2  ;;  %v4828_v10 = vadd.f32 %v4776_v36, %v12230_v9  ;;  %v4773_v59 = vsel %vm4770_vm13, %v4764_v20, %v4766_v53 }
 0x88b   :  { %v5019_v35 = vmax.f32 %v4899_v21, %v4939_v12  ;;  %v5026_v63 = vmax.f32 %v4900_v14, %v4940_v62  ;;  %v4871_v4 = vadd.f32 %v12278_v7, %v4827_v37  ;;  %v4829_v2 = vadd.f32 %v4773_v59, %v12234_v31 }
 0x88c   :  { %v5010_v52 = vrot.slane %v5009_v0, 1  ;;  %v5016_v51 = vmax.f32 %v5014_v19, %v5015_v30  ;;  %v4872_v15 = vadd.f32 %v12281_v44, %v4828_v10  ;;  %v4767_v24 = vrot.slane %v4635_v8, 2 }
 0x88d   :  { %v5020_v46 = vrot.slane %v5019_v35, 4  ;;  %v5027_v1 = vrot.slane %v5026_v63, 4  ;;  %v4873_v47 = vadd.f32 %v12278_v7, %v4829_v2  ;;  %v4903_v32 = vmax.f32 %v4871_v4, 0.0 }
 0x88e   :  { %v12420_v50 = vmax.f32 %v5009_v0, %v5010_v52  ;;  %v5017_v9 = vrot.slane %v5016_v51, 1  ;;  %v4774_v21 = vsel %vm4770_vm13, %v4765_v16, %v4767_v24  ;;  %v4904_v20 = vmax.f32 %v4872_v15, 0.0 }
 0x88f   :  { %v5021_v14 = vmax.f32 %v5019_v35, %v5020_v46  ;;  %v5028_v49 = vmax.f32 %v5026_v63, %v5027_v1  ;;  %v4905_v61 = vmax.f32 %v4873_v47, 0.0  ;;  %v4830_v31 = vadd.f32 %v4774_v21, %v12238_v6 }
 0x890   :  { %14052 = vst [vmem:[#allocation92_spill] sm:$0xff] %v12420_v50  ;;  %v12425_v11 = vmax.f32 %v5016_v51, %v5017_v9  ;;  %v4768_v8 = vrot.slane %v4637_v26, 2  ;;  %v4769_v55 = vrot.slane %v4639_v38, 2  ;;  %v14054_v16 = vrot.slane %v12260_v54, 2 }
 0x891   :  { %v5022_v41 = vrot.slane %v5021_v14, 2  ;;  %v5029_v23 = vrot.slane %v5028_v49, 2  ;;  %v4943_v19 = vmul.f32 %v12299_v45, %v4905_v61  ;;  %v4874_v13 = vadd.f32 %v12281_v44, %v4830_v31 }
 0x892   :  { %14053 = vst [vmem:[#allocation112_spill] sm:$0xff] %v12425_v11  ;;  %v4771_v12 = vsel %vm4770_vm13, %v4766_v53, %v4768_v8  ;;  %v4801_v62 = vsel %vm4770_vm13, %v4768_v8, %v14054_v16  ;;  %v4772_v6 = vsel %vm4770_vm13, %v4767_v24, %v4769_v55  ;;  %v14055_v26 = vrot.slane %v12262_v33, 2 }
 0x893   :  { %v5023_v37 = vmax.f32 %v5021_v14, %v5022_v41  ;;  %v5030_v36 = vmax.f32 %v5028_v49, %v5029_v23  ;;  %v5033_v0 = vmax.f32 %v4903_v32, %v4943_v19  ;;  %v4906_v30 = vmax.f32 %v4874_v13, 0.0 }
 0x894   :  { %v4802_v38 = vsel %vm4770_vm13, %v4769_v55, %v14055_v26  ;;  %v4831_v10 = vadd.f32 %v4771_v12, %v12246_v22  ;;  %v4833_v53 = vadd.f32 %v4801_v62, %v12248_v3  ;;  %v4832_v54 = vadd.f32 %v4772_v6, %v12256_v27 }
 0x895   :  { %v4834_v59 = vadd.f32 %v4802_v38, %v12258_v18  ;;  %v5024_v35 = vrot.slane %v5023_v37, 1  ;;  %v5031_v63 = vrot.slane %v5030_v36, 1  ;;  %v5034_v4 = vrot.slane %v5033_v0, 4 }
 0x896   :  { %v4944_v33 = vmul.f32 %v12299_v45, %v4906_v30  ;;  %v4875_v2 = vadd.f32 %v12278_v7, %v4831_v10  ;;  %v4877_v52 = vadd.f32 %v12278_v7, %v4833_v53  ;;  %v4876_v51 = vadd.f32 %v12281_v44, %v4832_v54 }
 0x897   :  { %v4878_v15 = vadd.f32 %v12281_v44, %v4834_v59  ;;  %v12450_v22 = vmax.f32 %v5023_v37, %v5024_v35  ;;  %v12452_v3 = vmax.f32 %v5030_v36, %v5031_v63  ;;  %v5035_v27 = vmax.f32 %v5033_v0, %v5034_v4 }
 0x898   :  { %v5040_v24 = vmax.f32 %v4904_v20, %v4944_v33  ;;  %v4909_v18 = vmax.f32 %v4877_v52, 0.0  ;;  %v4907_v9 = vmax.f32 %v4875_v2, 0.0  ;;  %v4908_v21 = vmax.f32 %v4876_v51, 0.0 }
 0x899   :  { %14056 = vst [vmem:[#allocation46_spill] sm:$0xff] %v12450_v22  ;;  %14057 = vst [vmem:[#allocation121_spill] sm:$0xff] %v12452_v3  ;;  %v4910_v46 = vmax.f32 %v4878_v15, 0.0  ;;  %v5036_v1 = vrot.slane %v5035_v27, 2 }
 0x89a   :  { %v5041_v47 = vrot.slane %v5040_v24, 4  ;;  %v4947_v32 = vmul.f32 %v12299_v45, %v4909_v18 }
 0x89b   :  { %v4948_v7 = vmul.f32 %v12299_v45, %v4910_v46  ;;  %v5037_v14 = vmax.f32 %v5035_v27, %v5036_v1 }
 0x89c   :  { %v5042_v49 = vmax.f32 %v5040_v24, %v5041_v47  ;;  %v5047_v61 = vmax.f32 %v4907_v9, %v4947_v32 }
 0x89d   :  { %v5054_v44 = vmax.f32 %v4908_v21, %v4948_v7  ;;  %v5038_v31 = vrot.slane %v5037_v14, 1 }
 0x89e   :  { %v5043_v8 = vrot.slane %v5042_v49, 2  ;;  %v5048_v55 = vrot.slane %v5047_v61, 4 }
 0x89f   :  { %v5055_v41 = vrot.slane %v5054_v44, 4  ;;  %v12456_v23 = vmax.f32 %v5037_v14, %v5038_v31 }
 0x8a0   :  { %v5044_v20 = vmax.f32 %v5042_v49, %v5043_v8  ;;  %v5049_v19 = vmax.f32 %v5047_v61, %v5048_v55 }
 0x8a1   :  { %14058 = vst [vmem:[#allocation122_spill] sm:$0xff] %v12456_v23  ;;  %v5056_v13 = vmax.f32 %v5054_v44, %v5055_v41 }
 0x8a2   :  { %v5045_v12 = vrot.slane %v5044_v20, 1  ;;  %v5050_v16 = vrot.slane %v5049_v19, 2 }
 0x8a3   :  { %v5057_v62 = vrot.slane %v5056_v13, 2 }
 0x8a4   :  { %v12458_v6 = vmax.f32 %v5044_v20, %v5045_v12  ;;  %v5051_v26 = vmax.f32 %v5049_v19, %v5050_v16 }
 0x8a5   :  { %v5058_v45 = vmax.f32 %v5056_v13, %v5057_v62 }
 0x8a6   :  { %14059 = vst [vmem:[#allocation123_spill] sm:$0xff] %v12458_v6  ;;  %v5052_v38 = vrot.slane %v5051_v26, 1 }
 0x8a7   :  { %v5059_v37 = vrot.slane %v5058_v45, 1 }
 0x8a8   :  { %v12460_v36 = vmax.f32 %v5051_v26, %v5052_v38 }
 0x8a9   :  { %v12462_v0 = vmax.f32 %v5058_v45, %v5059_v37 }
 0x8aa   :  { %14060 = vst [vmem:[#allocation124_spill] sm:$0xff] %v12460_v36 }
 0x8ab   :  { %14061 = vst [vmem:[#allocation125_spill] sm:$0xff] %v12462_v0 }
 0x8ac   :  { %9816 = dma.done.wait [#allocation7 + $0x2], 49152 }
 0x8ad   :  { %9817 = vsyncadd [#allocation7 + $0x2], 4294918144  ;;  %5480 = vmatprep.mubr.bf16.mxu0 %v11316_v57  ;;  %5819 = vmatprep.mubr.bf16.mxu1 %v11316_v57  ;;  %v5065_v30 = vld [vmem:[#allocation4 + $0x8] sm:$0xff]  ;;  %v5067_v10 = vld [vmem:[#allocation4 + $0x18] sm:$0xff]  ;;  %vm7335_vm0 = vcmask 1041409   ;;  %vm7337_vm2 = vcmask 1042434  }
 0x8ae   :  { %v5064_v53 = vld [vmem:[#allocation4] sm:$0xff]  ;;  %5448 = vmatprep.subr.bf16.mxu0 %v5065_v30  ;;  %5787 = vmatprep.subr.bf16.mxu1 %v5067_v10  ;;  %v5066_v54 = vld [vmem:[#allocation4 + $0x10] sm:$0xff]  ;;  %v5073_v59 = vld [vmem:[#allocation4 + $0x48] sm:$0xff]  ;;  %vm7339_vm3 = vcmask 1043459   ;;  %vm7341_vm4 = vcmask 1044484   ;;  %vm7343_vm6 = vcmask 1045509  }
 0x8af   :  { %v5075_v35 = vld [vmem:[#allocation4 + $0x58] sm:$0xff]  ;;  %5449 = vmatpush1.bf16.msra.mxu0 %v5064_v53  ;;  %5788 = vmatpush1.bf16.msra.mxu1 %v5066_v54  ;;  %v5072_v63 = vld [vmem:[#allocation4 + $0x40] sm:$0xff]  ;;  %v5074_v4 = vld [vmem:[#allocation4 + $0x50] sm:$0xff]  ;;  %vm7345_vm7 = vcmask 1046534   ;;  %vm7347_vm8 = vcmask 1047559   ;;  %vm7028_vm9 = vcmp.lt.s32.totalorder %v13990_v43, 5 }
 0x8b0   :  { %5450 = vmatprep.subr.bf16.mxu0 %v5073_v59  ;;  %5789 = vmatprep.subr.bf16.mxu1 %v5075_v35  ;;  %v5081_v33 = vld [vmem:[#allocation4 + $0x88] sm:$0xff]  ;;  %v5083_v2 = vld [vmem:[#allocation4 + $0x98] sm:$0xff]  ;;  %v5080_v52 = vld [vmem:[#allocation4 + $0x80] sm:$0xff] }
 0x8b1   :  { %v5082_v51 = vld [vmem:[#allocation4 + $0x90] sm:$0xff]  ;;  %v5089_v15 = vld [vmem:[#allocation4 + $0xc8] sm:$0xff]  ;;  %v5091_v27 = vld [vmem:[#allocation4 + $0xd8] sm:$0xff] }
 0x8b2   :  { %v5088_v24 = vld [vmem:[#allocation4 + $0xc0] sm:$0xff]  ;;  %v5090_v18 = vld [vmem:[#allocation4 + $0xd0] sm:$0xff]  ;;  %v5097_v46 = vld [vmem:[#allocation4 + $0x108] sm:$0xff] }
 0x8b3   :  { %5451 = vmatpush1.bf16.msra.mxu0 %v5072_v63  ;;  %5790 = vmatpush1.bf16.msra.mxu1 %v5074_v4  ;;  %v5099_v1 = vld [vmem:[#allocation4 + $0x118] sm:$0xff]  ;;  %v5096_v47 = vld [vmem:[#allocation4 + $0x100] sm:$0xff]  ;;  %v5098_v9 = vld [vmem:[#allocation4 + $0x110] sm:$0xff] }
 0x8b4   :  { %5452 = vmatprep.subr.bf16.mxu0 %v5081_v33  ;;  %5791 = vmatprep.subr.bf16.mxu1 %v5083_v2  ;;  %v5105_v32 = vld [vmem:[#allocation4 + $0x148] sm:$0xff]  ;;  %v5107_v21 = vld [vmem:[#allocation4 + $0x158] sm:$0xff]  ;;  %v5104_v7 = vld [vmem:[#allocation4 + $0x140] sm:$0xff] }
 0x8b5   :  { %v5106_v14 = vld [vmem:[#allocation4 + $0x150] sm:$0xff]  ;;  %v5113_v49 = vld [vmem:[#allocation4 + $0x188] sm:$0xff]  ;;  %v5115_v61 = vld [vmem:[#allocation4 + $0x198] sm:$0xff] }
 0x8b6   :  { %v5112_v44 = vld [vmem:[#allocation4 + $0x180] sm:$0xff]  ;;  %v5114_v31 = vld [vmem:[#allocation4 + $0x190] sm:$0xff]  ;;  %v5121_v8 = vld [vmem:[#allocation4 + $0x1c8] sm:$0xff] }
 0x8b7   :  { %5453 = vmatpush1.bf16.msra.mxu0 %v5080_v52  ;;  %5792 = vmatpush1.bf16.msra.mxu1 %v5082_v51  ;;  %v5123_v55 = vld [vmem:[#allocation4 + $0x1d8] sm:$0xff]  ;;  %v5120_v41 = vld [vmem:[#allocation4 + $0x1c0] sm:$0xff]  ;;  %v5122_v20 = vld [vmem:[#allocation4 + $0x1d0] sm:$0xff] }
 0x8b8   :  { %5454 = vmatprep.subr.bf16.mxu0 %v5089_v15  ;;  %5793 = vmatprep.subr.bf16.mxu1 %v5091_v27  ;;  %v5129_v19 = vld [vmem:[#allocation4 + $0x208] sm:$0xff]  ;;  %v5131_v13 = vld [vmem:[#allocation4 + $0x218] sm:$0xff]  ;;  %v5128_v12 = vld [vmem:[#allocation4 + $0x200] sm:$0xff] }
 0x8b9   :  { %v5130_v16 = vld [vmem:[#allocation4 + $0x210] sm:$0xff]  ;;  %v5137_v62 = vld [vmem:[#allocation4 + $0x248] sm:$0xff]  ;;  %v5139_v26 = vld [vmem:[#allocation4 + $0x258] sm:$0xff] }
 0x8ba   :  { %v5136_v45 = vld [vmem:[#allocation4 + $0x240] sm:$0xff]  ;;  %v5138_v38 = vld [vmem:[#allocation4 + $0x250] sm:$0xff]  ;;  %v5145_v37 = vld [vmem:[#allocation4 + $0x288] sm:$0xff] }
 0x8bb   :  { %5455 = vmatpush1.bf16.msra.mxu0 %v5088_v24  ;;  %5794 = vmatpush1.bf16.msra.mxu1 %v5090_v18  ;;  %v5147_v30 = vld [vmem:[#allocation4 + $0x298] sm:$0xff]  ;;  %v5144_v10 = vld [vmem:[#allocation4 + $0x280] sm:$0xff]  ;;  %v5146_v53 = vld [vmem:[#allocation4 + $0x290] sm:$0xff] }
 0x8bc   :  { %5456 = vmatprep.subr.bf16.mxu0 %v5097_v46  ;;  %5795 = vmatprep.subr.bf16.mxu1 %v5099_v1  ;;  %v5153_v54 = vld [vmem:[#allocation4 + $0x2c8] sm:$0xff]  ;;  %v5155_v59 = vld [vmem:[#allocation4 + $0x2d8] sm:$0xff]  ;;  %v5152_v35 = vld [vmem:[#allocation4 + $0x2c0] sm:$0xff] }
 0x8bd   :  { %v5154_v63 = vld [vmem:[#allocation4 + $0x2d0] sm:$0xff]  ;;  %v5161_v4 = vld [vmem:[#allocation4 + $0x308] sm:$0xff]  ;;  %v5163_v33 = vld [vmem:[#allocation4 + $0x318] sm:$0xff] }
 0x8be   :  { %v5160_v2 = vld [vmem:[#allocation4 + $0x300] sm:$0xff]  ;;  %v5162_v52 = vld [vmem:[#allocation4 + $0x310] sm:$0xff]  ;;  %v5169_v51 = vld [vmem:[#allocation4 + $0x348] sm:$0xff] }
 0x8bf   :  { %5457 = vmatpush1.bf16.msra.mxu0 %v5096_v47  ;;  %5796 = vmatpush1.bf16.msra.mxu1 %v5098_v9  ;;  %v5171_v15 = vld [vmem:[#allocation4 + $0x358] sm:$0xff]  ;;  %v5168_v27 = vld [vmem:[#allocation4 + $0x340] sm:$0xff]  ;;  %v5170_v24 = vld [vmem:[#allocation4 + $0x350] sm:$0xff] }
 0x8c0   :  { %5458 = vmatprep.subr.bf16.mxu0 %v5105_v32  ;;  %5797 = vmatprep.subr.bf16.mxu1 %v5107_v21  ;;  %v5177_v18 = vld [vmem:[#allocation4 + $0x388] sm:$0xff]  ;;  %v5179_v46 = vld [vmem:[#allocation4 + $0x398] sm:$0xff]  ;;  %v5176_v1 = vld [vmem:[#allocation4 + $0x380] sm:$0xff] }
 0x8c1   :  { %v5178_v47 = vld [vmem:[#allocation4 + $0x390] sm:$0xff]  ;;  %v5185_v9 = vld [vmem:[#allocation4 + $0x3c8] sm:$0xff]  ;;  %v5187_v32 = vld [vmem:[#allocation4 + $0x3d8] sm:$0xff] }
 0x8c2   :  { %v5184_v21 = vld [vmem:[#allocation4 + $0x3c0] sm:$0xff]  ;;  %v5109_v0 = vld [vmem:[#allocation4 + $0x168] sm:$0xff]  ;;  %v5111_v6 = vld [vmem:[#allocation4 + $0x178] sm:$0xff] }
 0x8c3   :  { %5459 = vmatpush1.bf16.msra.mxu0 %v5104_v7  ;;  %5798 = vmatpush1.bf16.msra.mxu1 %v5106_v14  ;;  %v5186_v7 = vld [vmem:[#allocation4 + $0x3d0] sm:$0xff]  ;;  %v5193_v14 = vld [vmem:[#allocation4 + $0x408] sm:$0xff]  ;;  %v5127_v3 = vld [vmem:[#allocation4 + $0x1f8] sm:$0xff] }
 0x8c4   :  { %5460 = vmatprep.subr.bf16.mxu0 %v5113_v49  ;;  %5799 = vmatprep.subr.bf16.mxu1 %v5115_v61  ;;  %v5195_v49 = vld [vmem:[#allocation4 + $0x418] sm:$0xff]  ;;  %v5192_v61 = vld [vmem:[#allocation4 + $0x400] sm:$0xff]  ;;  %v5125_v36 = vld [vmem:[#allocation4 + $0x1e8] sm:$0xff] }
 0x8c5   :  { %v5141_v23 = vld [vmem:[#allocation4 + $0x268] sm:$0xff]  ;;  %v5143_v22 = vld [vmem:[#allocation4 + $0x278] sm:$0xff] }
 0x8c6   :  { %v5157_v11 = vld [vmem:[#allocation4 + $0x2e8] sm:$0xff]  ;;  %v5159_v50 = vld [vmem:[#allocation4 + $0x2f8] sm:$0xff] }
 0x8c7   :  { %5461 = vmatpush1.bf16.msra.mxu0 %v5112_v44  ;;  %5800 = vmatpush1.bf16.msra.mxu1 %v5114_v31  ;;  %v5194_v44 = vld [vmem:[#allocation4 + $0x410] sm:$0xff]  ;;  %v5201_v31 = vld [vmem:[#allocation4 + $0x448] sm:$0xff]  ;;  %v5175_v58 = vld [vmem:[#allocation4 + $0x378] sm:$0xff] }
 0x8c8   :  { %5462 = vmatprep.subr.bf16.mxu0 %v5121_v8  ;;  %5801 = vmatprep.subr.bf16.mxu1 %v5123_v55  ;;  %v5203_v8 = vld [vmem:[#allocation4 + $0x458] sm:$0xff]  ;;  %v5200_v55 = vld [vmem:[#allocation4 + $0x440] sm:$0xff]  ;;  %v5173_v56 = vld [vmem:[#allocation4 + $0x368] sm:$0xff] }
 0x8c9   :  { %v5189_v48 = vld [vmem:[#allocation4 + $0x3e8] sm:$0xff]  ;;  %v5191_v60 = vld [vmem:[#allocation4 + $0x3f8] sm:$0xff] }
 0x8ca   :  { %v5207_v29 = vld [vmem:[#allocation4 + $0x478] sm:$0xff] }
 0x8cb   :  { %5463 = vmatpush1.bf16.msra.mxu0 %v5120_v41  ;;  %5802 = vmatpush1.bf16.msra.mxu1 %v5122_v20  ;;  %v5202_v41 = vld [vmem:[#allocation4 + $0x450] sm:$0xff]  ;;  %v5209_v20 = vld [vmem:[#allocation4 + $0x488] sm:$0xff] }
 0x8cc   :  { %5464 = vmatprep.subr.bf16.mxu0 %v5129_v19  ;;  %5803 = vmatprep.subr.bf16.mxu1 %v5131_v13  ;;  %v5211_v19 = vld [vmem:[#allocation4 + $0x498] sm:$0xff]  ;;  %v5208_v13 = vld [vmem:[#allocation4 + $0x480] sm:$0xff] }
 0x8cf   :  { %5465 = vmatpush1.bf16.msra.mxu0 %v5128_v12  ;;  %5804 = vmatpush1.bf16.msra.mxu1 %v5130_v16  ;;  %v5210_v12 = vld [vmem:[#allocation4 + $0x490] sm:$0xff]  ;;  %v5217_v16 = vld [vmem:[#allocation4 + $0x4c8] sm:$0xff] }
 0x8d0   :  { %5466 = vmatprep.subr.bf16.mxu0 %v5137_v62  ;;  %5805 = vmatprep.subr.bf16.mxu1 %v5139_v26  ;;  %v5219_v62 = vld [vmem:[#allocation4 + $0x4d8] sm:$0xff]  ;;  %v5216_v26 = vld [vmem:[#allocation4 + $0x4c0] sm:$0xff] }
 0x8d3   :  { %5467 = vmatpush1.bf16.msra.mxu0 %v5136_v45  ;;  %5806 = vmatpush1.bf16.msra.mxu1 %v5138_v38  ;;  %v5218_v45 = vld [vmem:[#allocation4 + $0x4d0] sm:$0xff]  ;;  %v5225_v38 = vld [vmem:[#allocation4 + $0x508] sm:$0xff] }
 0x8d4   :  { %5468 = vmatprep.subr.bf16.mxu0 %v5145_v37  ;;  %5807 = vmatprep.subr.bf16.mxu1 %v5147_v30  ;;  %v5227_v37 = vld [vmem:[#allocation4 + $0x518] sm:$0xff]  ;;  %v5224_v30 = vld [vmem:[#allocation4 + $0x500] sm:$0xff] }
 0x8d7   :  { %5469 = vmatpush1.bf16.msra.mxu0 %v5144_v10  ;;  %5808 = vmatpush1.bf16.msra.mxu1 %v5146_v53  ;;  %v5226_v10 = vld [vmem:[#allocation4 + $0x510] sm:$0xff]  ;;  %v5233_v53 = vld [vmem:[#allocation4 + $0x548] sm:$0xff] }
 0x8d8   :  { %5470 = vmatprep.subr.bf16.mxu0 %v5153_v54  ;;  %5809 = vmatprep.subr.bf16.mxu1 %v5155_v59  ;;  %v5235_v54 = vld [vmem:[#allocation4 + $0x558] sm:$0xff]  ;;  %v5232_v59 = vld [vmem:[#allocation4 + $0x540] sm:$0xff] }
 0x8db   :  { %5471 = vmatpush1.bf16.msra.mxu0 %v5152_v35  ;;  %5810 = vmatpush1.bf16.msra.mxu1 %v5154_v63  ;;  %v5234_v35 = vld [vmem:[#allocation4 + $0x550] sm:$0xff]  ;;  %v14062_v63 = vld [vmem:[#allocation105_spill] sm:$0xff] }
 0x8dc   :  { %5472 = vmatprep.subr.bf16.mxu0 %v5161_v4  ;;  %5811 = vmatprep.subr.bf16.mxu1 %v5163_v33  ;;  %v5241_v4 = vld [vmem:[#allocation4 + $0x588] sm:$0xff]  ;;  %v5243_v33 = vld [vmem:[#allocation4 + $0x598] sm:$0xff] }
 0x8df   :  { %5473 = vmatpush1.bf16.msra.mxu0 %v5160_v2  ;;  %5812 = vmatpush1.bf16.msra.mxu1 %v5162_v52  ;;  %v5240_v2 = vld [vmem:[#allocation4 + $0x580] sm:$0xff]  ;;  %v5242_v52 = vld [vmem:[#allocation4 + $0x590] sm:$0xff] }
 0x8e0   :  { %5474 = vmatprep.subr.bf16.mxu0 %v5169_v51  ;;  %5813 = vmatprep.subr.bf16.mxu1 %v5171_v15  ;;  %v5249_v51 = vld [vmem:[#allocation4 + $0x5c8] sm:$0xff]  ;;  %v5251_v15 = vld [vmem:[#allocation4 + $0x5d8] sm:$0xff] }
 0x8e3   :  { %5475 = vmatpush1.bf16.msra.mxu0 %v5168_v27  ;;  %5814 = vmatpush1.bf16.msra.mxu1 %v5170_v24  ;;  %v14063_v27 = vld [vmem:[#allocation104_spill] sm:$0xff] }
 0x8e4   :  { %5476 = vmatprep.subr.bf16.mxu0 %v5177_v18  ;;  %5815 = vmatprep.subr.bf16.mxu1 %v5179_v46  ;;  %v5248_v24 = vld [vmem:[#allocation4 + $0x5c0] sm:$0xff]  ;;  %v5250_v18 = vld [vmem:[#allocation4 + $0x5d0] sm:$0xff] }
 0x8e5   :  { %v14064_v46 = vld [vmem:[#allocation51_spill] sm:$0xff] }
 0x8e7   :  { %5477 = vmatpush1.bf16.msra.mxu0 %v5176_v1  ;;  %5816 = vmatpush1.bf16.msra.mxu1 %v5178_v47  ;;  %v5257_v1 = vld [vmem:[#allocation4 + $0x608] sm:$0xff]  ;;  %v5259_v47 = vld [vmem:[#allocation4 + $0x618] sm:$0xff] }
 0x8e8   :  { %5478 = vmatprep.subr.bf16.mxu0 %v5185_v9  ;;  %5817 = vmatprep.subr.bf16.mxu1 %v5187_v32  ;;  %v5256_v9 = vld [vmem:[#allocation4 + $0x600] sm:$0xff]  ;;  %v5258_v32 = vld [vmem:[#allocation4 + $0x610] sm:$0xff] }
 0x8eb   :  { %5479 = vmatpush1.bf16.msra.mxu0 %v5184_v21  ;;  %5818 = vmatpush1.bf16.msra.mxu1 %v5186_v7  ;;  %v5265_v21 = vld [vmem:[#allocation4 + $0x648] sm:$0xff]  ;;  %v5267_v7 = vld [vmem:[#allocation4 + $0x658] sm:$0xff] }
 0x8ec   :  { %5561 = vmatprep.subr.bf16.mxu0 %v5193_v14  ;;  %5900 = vmatprep.subr.bf16.mxu1 %v5195_v49  ;;  %v14065_v14 = vld [vmem:[#allocation52_spill] sm:$0xff] }
 0x8ed   :  { %v5264_v49 = vld [vmem:[#allocation4 + $0x640] sm:$0xff] }
 0x8ee   :  { %5481 = vmatmul.mubr.bf16.vlgmr.msra.gmra.mrb[128].mxu0 %v11314_v42  ;;  %5820 = vmatmul.mubr.bf16.vlgmr.msra.gmra.mrb[128].mxu1 %v11314_v42 }
 0x8ef   :  { %5562 = vmatpush1.bf16.msra.mxu0 %v5192_v61  ;;  %5901 = vmatpush1.bf16.msra.mxu1 %v5194_v44  ;;  %v5266_v61 = vld [vmem:[#allocation4 + $0x650] sm:$0xff] }
 0x8f0   :  { %5563 = vmatprep.subr.bf16.mxu0 %v5201_v31  ;;  %5902 = vmatprep.subr.bf16.mxu1 %v5203_v8  ;;  %v14066_v44 = vld [vmem:[#allocation55_spill] sm:$0xff]  ;;  %v5273_v31 = vld [vmem:[#allocation4 + $0x688] sm:$0xff] }
 0x8f1   :  { %5490 = vmatprep.mubr.bf16.mxu0 %v11362_v17  ;;  %5829 = vmatprep.mubr.bf16.mxu1 %v11362_v17  ;;  %v5275_v8 = vld [vmem:[#allocation4 + $0x698] sm:$0xff] }
 0x8f3   :  { %5564 = vmatpush1.bf16.msra.mxu0 %v5200_v55  ;;  %5903 = vmatpush1.bf16.msra.mxu1 %v5202_v41  ;;  %v5272_v55 = vld [vmem:[#allocation4 + $0x680] sm:$0xff]  ;;  %v5274_v41 = vld [vmem:[#allocation4 + $0x690] sm:$0xff] }
 0x8f4   :  { %5565 = vmatprep.subr.bf16.mxu0 %v5209_v20  ;;  %5904 = vmatprep.subr.bf16.mxu1 %v5211_v19  ;;  %v5281_v20 = vld [vmem:[#allocation4 + $0x6c8] sm:$0xff]  ;;  %v5283_v19 = vld [vmem:[#allocation4 + $0x6d8] sm:$0xff] }
 0x8f6   :  { %5491 = vmatmul.mubr.bf16.gmra.mrb[132].mxu0 %v11360_v34  ;;  %5830 = vmatmul.mubr.bf16.gmra.mrb[132].mxu1 %v11360_v34 }
 0x8f7   :  { %5566 = vmatpush1.bf16.msra.mxu0 %v5208_v13  ;;  %5905 = vmatpush1.bf16.msra.mxu1 %v5210_v12  ;;  %v14067_v13 = vld [vmem:[#allocation56_spill] sm:$0xff] }
 0x8f8   :  { %5567 = vmatprep.subr.bf16.mxu0 %v5217_v16  ;;  %5906 = vmatprep.subr.bf16.mxu1 %v5219_v62  ;;  %v5280_v12 = vld [vmem:[#allocation4 + $0x6c0] sm:$0xff]  ;;  %v5282_v16 = vld [vmem:[#allocation4 + $0x6d0] sm:$0xff] }
 0x8f9   :  { %5500 = vmatprep.mubr.bf16.mxu0 %v11414_v25  ;;  %5839 = vmatprep.mubr.bf16.mxu1 %v11414_v25  ;;  %v14068_v62 = vld [vmem:[#allocation59_spill] sm:$0xff] }
 0x8fb   :  { %5568 = vmatpush1.bf16.msra.mxu0 %v5216_v26  ;;  %5907 = vmatpush1.bf16.msra.mxu1 %v5218_v45  ;;  %v5289_v26 = vld [vmem:[#allocation4 + $0x708] sm:$0xff]  ;;  %v5291_v45 = vld [vmem:[#allocation4 + $0x718] sm:$0xff] }
 0x8fc   :  { %5569 = vmatprep.subr.bf16.mxu0 %v5225_v38  ;;  %5908 = vmatprep.subr.bf16.mxu1 %v5227_v37  ;;  %v5288_v38 = vld [vmem:[#allocation4 + $0x700] sm:$0xff]  ;;  %v5290_v37 = vld [vmem:[#allocation4 + $0x710] sm:$0xff] }
 0x8fe   :  { %5501 = vmatmul.mubr.bf16.gmra.mrb[136].mxu0 %v11412_v39  ;;  %5840 = vmatmul.mubr.bf16.gmra.mrb[136].mxu1 %v11412_v39 }
 0x8ff   :  { %5570 = vmatpush1.bf16.msra.mxu0 %v5224_v30  ;;  %5909 = vmatpush1.bf16.msra.mxu1 %v5226_v10  ;;  %v5297_v30 = vld [vmem:[#allocation4 + $0x748] sm:$0xff]  ;;  %v5299_v10 = vld [vmem:[#allocation4 + $0x758] sm:$0xff] }
 0x900   :  { %5571 = vmatprep.subr.bf16.mxu0 %v5233_v53  ;;  %5910 = vmatprep.subr.bf16.mxu1 %v5235_v54  ;;  %v14069_v53 = vld [vmem:[#allocation60_spill] sm:$0xff] }
 0x901   :  { %5510 = vmatprep.mubr.bf16.mxu0 %v14062_v63  ;;  %5849 = vmatprep.mubr.bf16.mxu1 %v14062_v63  ;;  %v5296_v54 = vld [vmem:[#allocation4 + $0x740] sm:$0xff] }
 0x903   :  { %5572 = vmatpush1.bf16.msra.mxu0 %v5232_v59  ;;  %5911 = vmatpush1.bf16.msra.mxu1 %v5234_v35  ;;  %v5298_v59 = vld [vmem:[#allocation4 + $0x750] sm:$0xff] }
 0x904   :  { %5573 = vmatprep.subr.bf16.mxu0 %v5241_v4  ;;  %5912 = vmatprep.subr.bf16.mxu1 %v5243_v33  ;;  %v14070_v35 = vld [vmem:[#allocation63_spill] sm:$0xff]  ;;  %v5305_v4 = vld [vmem:[#allocation4 + $0x788] sm:$0xff] }
 0x905   :  { %v5307_v33 = vld [vmem:[#allocation4 + $0x798] sm:$0xff] }
 0x906   :  { %5511 = vmatmul.mubr.bf16.gmra.mrb[140].mxu0 %v14063_v27  ;;  %5850 = vmatmul.mubr.bf16.gmra.mrb[140].mxu1 %v14063_v27 }
 0x907   :  { %5574 = vmatpush1.bf16.msra.mxu0 %v5240_v2  ;;  %5913 = vmatpush1.bf16.msra.mxu1 %v5242_v52  ;;  %v5304_v2 = vld [vmem:[#allocation4 + $0x780] sm:$0xff]  ;;  %v5306_v52 = vld [vmem:[#allocation4 + $0x790] sm:$0xff] }
 0x908   :  { %5575 = vmatprep.subr.bf16.mxu0 %v5249_v51  ;;  %5914 = vmatprep.subr.bf16.mxu1 %v5251_v15  ;;  %v5313_v51 = vld [vmem:[#allocation4 + $0x7c8] sm:$0xff]  ;;  %v5315_v15 = vld [vmem:[#allocation4 + $0x7d8] sm:$0xff] }
 0x909   :  { %5520 = vmatprep.mubr.bf16.mxu0 %v14064_v46  ;;  %5859 = vmatprep.mubr.bf16.mxu1 %v14064_v46 }
 0x90b   :  { %5576 = vmatpush1.bf16.msra.mxu0 %v5248_v24  ;;  %5915 = vmatpush1.bf16.msra.mxu1 %v5250_v18  ;;  %v14071_v24 = vld [vmem:[#allocation64_spill] sm:$0xff] }
 0x90c   :  { %5577 = vmatprep.subr.bf16.mxu0 %v5257_v1  ;;  %5916 = vmatprep.subr.bf16.mxu1 %v5259_v47  ;;  %v5312_v18 = vld [vmem:[#allocation4 + $0x7c0] sm:$0xff]  ;;  %v5314_v1 = vld [vmem:[#allocation4 + $0x7d0] sm:$0xff] }
 0x90d   :  { %v14072_v47 = vld [vmem:[#allocation94_spill] sm:$0xff] }
 0x90e   :  { %5521 = vmatmul.mubr.bf16.gmra.mrb[144].mxu0 %v14065_v14  ;;  %5860 = vmatmul.mubr.bf16.gmra.mrb[144].mxu1 %v14065_v14 }
 0x90f   :  { %5578 = vmatpush1.bf16.msra.mxu0 %v5256_v9  ;;  %5917 = vmatpush1.bf16.msra.mxu1 %v5258_v32  ;;  %v5321_v9 = vld [vmem:[#allocation4 + $0x808] sm:$0xff]  ;;  %v5323_v32 = vld [vmem:[#allocation4 + $0x818] sm:$0xff] }
 0x910   :  { %5579 = vmatprep.subr.bf16.mxu0 %v5265_v21  ;;  %5918 = vmatprep.subr.bf16.mxu1 %v5267_v7  ;;  %v5320_v21 = vld [vmem:[#allocation4 + $0x800] sm:$0xff]  ;;  %v5322_v7 = vld [vmem:[#allocation4 + $0x810] sm:$0xff] }
 0x911   :  { %5530 = vmatprep.mubr.bf16.mxu0 %v14066_v44  ;;  %5869 = vmatprep.mubr.bf16.mxu1 %v14066_v44 }
 0x913   :  { %5580 = vmatpush1.bf16.msra.mxu0 %v5264_v49  ;;  %5919 = vmatpush1.bf16.msra.mxu1 %v5266_v61  ;;  %v5329_v49 = vld [vmem:[#allocation4 + $0x848] sm:$0xff]  ;;  %v5331_v61 = vld [vmem:[#allocation4 + $0x858] sm:$0xff] }
 0x914   :  { %5581 = vmatprep.subr.bf16.mxu0 %v5273_v31  ;;  %5920 = vmatprep.subr.bf16.mxu1 %v5275_v8  ;;  %v14073_v31 = vld [vmem:[#allocation93_spill] sm:$0xff] }
 0x915   :  { %v5328_v8 = vld [vmem:[#allocation4 + $0x840] sm:$0xff] }
 0x916   :  { %5531 = vmatmul.mubr.bf16.gmra.mrb[148].mxu0 %v14067_v13  ;;  %5870 = vmatmul.mubr.bf16.gmra.mrb[148].mxu1 %v14067_v13 }
 0x917   :  { %5582 = vmatpush1.bf16.msra.mxu0 %v5272_v55  ;;  %5921 = vmatpush1.bf16.msra.mxu1 %v5274_v41  ;;  %v5330_v55 = vld [vmem:[#allocation4 + $0x850] sm:$0xff] }
 0x918   :  { %5583 = vmatprep.subr.bf16.mxu0 %v5281_v20  ;;  %5922 = vmatprep.subr.bf16.mxu1 %v5283_v19  ;;  %v14074_v41 = vld [vmem:[#allocation98_spill] sm:$0xff]  ;;  %v5339_v19 = vld [vmem:[#allocation4 + $0x898] sm:$0xff] }
 0x919   :  { %5540 = vmatprep.mubr.bf16.mxu0 %v14068_v62  ;;  %5879 = vmatprep.mubr.bf16.mxu1 %v14068_v62  ;;  %v5337_v20 = vld [vmem:[#allocation4 + $0x888] sm:$0xff] }
 0x91b   :  { %5584 = vmatpush1.bf16.msra.mxu0 %v5280_v12  ;;  %5923 = vmatpush1.bf16.msra.mxu1 %v5282_v16  ;;  %v5336_v12 = vld [vmem:[#allocation4 + $0x880] sm:$0xff]  ;;  %v5338_v16 = vld [vmem:[#allocation4 + $0x890] sm:$0xff] }
 0x91c   :  { %5585 = vmatprep.subr.bf16.mxu0 %v5289_v26  ;;  %5924 = vmatprep.subr.bf16.mxu1 %v5291_v45  ;;  %v5345_v26 = vld [vmem:[#allocation4 + $0x8c8] sm:$0xff]  ;;  %v5347_v45 = vld [vmem:[#allocation4 + $0x8d8] sm:$0xff] }
 0x91e   :  { %5541 = vmatmul.mubr.bf16.gmra.mrb[152].mxu0 %v14069_v53  ;;  %5880 = vmatmul.mubr.bf16.gmra.mrb[152].mxu1 %v14069_v53 }
 0x91f   :  { %5586 = vmatpush1.bf16.msra.mxu0 %v5288_v38  ;;  %5925 = vmatpush1.bf16.msra.mxu1 %v5290_v37  ;;  %v14075_v38 = vld [vmem:[#allocation96_spill] sm:$0xff] }
 0x920   :  { %5587 = vmatprep.subr.bf16.mxu0 %v5297_v30  ;;  %5926 = vmatprep.subr.bf16.mxu1 %v5299_v10  ;;  %v5344_v37 = vld [vmem:[#allocation4 + $0x8c0] sm:$0xff]  ;;  %v5346_v30 = vld [vmem:[#allocation4 + $0x8d0] sm:$0xff] }
 0x921   :  { %5550 = vmatprep.mubr.bf16.mxu0 %v14070_v35  ;;  %5889 = vmatprep.mubr.bf16.mxu1 %v14070_v35  ;;  %v14076_v10 = vld [vmem:[#allocation101_spill] sm:$0xff] }
 0x923   :  { %5588 = vmatpush1.bf16.msra.mxu0 %v5296_v54  ;;  %5927 = vmatpush1.bf16.msra.mxu1 %v5298_v59  ;;  %v5353_v54 = vld [vmem:[#allocation4 + $0x908] sm:$0xff]  ;;  %v5355_v59 = vld [vmem:[#allocation4 + $0x918] sm:$0xff] }
 0x924   :  { %5589 = vmatprep.subr.bf16.mxu0 %v5305_v4  ;;  %5928 = vmatprep.subr.bf16.mxu1 %v5307_v33  ;;  %v5352_v4 = vld [vmem:[#allocation4 + $0x900] sm:$0xff]  ;;  %v5354_v33 = vld [vmem:[#allocation4 + $0x910] sm:$0xff] }
 0x926   :  { %5551 = vmatmul.mubr.bf16.gmra.mrb[156].mxu0 %v14071_v24  ;;  %5890 = vmatmul.mubr.bf16.gmra.mrb[156].mxu1 %v14071_v24 }
 0x927   :  { %5590 = vmatpush1.bf16.msra.mxu0 %v5304_v2  ;;  %5929 = vmatpush1.bf16.msra.mxu1 %v5306_v52  ;;  %v5361_v2 = vld [vmem:[#allocation4 + $0x948] sm:$0xff]  ;;  %v5363_v52 = vld [vmem:[#allocation4 + $0x958] sm:$0xff] }
 0x928   :  { %5591 = vmatprep.subr.bf16.mxu0 %v5313_v51  ;;  %5930 = vmatprep.subr.bf16.mxu1 %v5315_v15  ;;  %v14077_v51 = vld [vmem:[#allocation100_spill] sm:$0xff] }
 0x929   :  { %5593 = vmatprep.mubr.bf16.mxu0 %v14072_v47  ;;  %5932 = vmatprep.mubr.bf16.mxu1 %v14072_v47  ;;  %v5360_v15 = vld [vmem:[#allocation4 + $0x940] sm:$0xff] }
 0x92b   :  { %5592 = vmatpush1.bf16.msra.mxu0 %v5312_v18  ;;  %5931 = vmatpush1.bf16.msra.mxu1 %v5314_v1  ;;  %v5362_v18 = vld [vmem:[#allocation4 + $0x950] sm:$0xff] }
 0x92c   :  { %5674 = vmatprep.subr.bf16.mxu0 %v5321_v9  ;;  %6013 = vmatprep.subr.bf16.mxu1 %v5323_v32  ;;  %v14078_v1 = vld [vmem:[#allocation82_spill] sm:$0xff]  ;;  %v5371_v32 = vld [vmem:[#allocation4 + $0x998] sm:$0xff] }
 0x92d   :  { %v5369_v9 = vld [vmem:[#allocation4 + $0x988] sm:$0xff] }
 0x92e   :  { %5594 = vmatmul.mubr.bf16.vlgmr.msra.gmra.mrb[128].mxu0 %v14073_v31  ;;  %5933 = vmatmul.mubr.bf16.vlgmr.msra.gmra.mrb[128].mxu1 %v14073_v31 }
 0x92f   :  { %5675 = vmatpush1.bf16.msra.mxu0 %v5320_v21  ;;  %6014 = vmatpush1.bf16.msra.mxu1 %v5322_v7  ;;  %v5368_v21 = vld [vmem:[#allocation4 + $0x980] sm:$0xff]  ;;  %v5370_v7 = vld [vmem:[#allocation4 + $0x990] sm:$0xff] }
 0x930   :  { %5676 = vmatprep.subr.bf16.mxu0 %v5329_v49  ;;  %6015 = vmatprep.subr.bf16.mxu1 %v5331_v61  ;;  %v5377_v49 = vld [vmem:[#allocation4 + $0x9c8] sm:$0xff]  ;;  %v5379_v61 = vld [vmem:[#allocation4 + $0x9d8] sm:$0xff] }
 0x931   :  { %5603 = vmatprep.mubr.bf16.mxu0 %v14074_v41  ;;  %5942 = vmatprep.mubr.bf16.mxu1 %v14074_v41 }
 0x933   :  { %5677 = vmatpush1.bf16.msra.mxu0 %v5328_v8  ;;  %6016 = vmatpush1.bf16.msra.mxu1 %v5330_v55  ;;  %v14079_v8 = vld [vmem:[#allocation49_spill] sm:$0xff] }
 0x934   :  { %5678 = vmatprep.subr.bf16.mxu0 %v5337_v20  ;;  %6017 = vmatprep.subr.bf16.mxu1 %v5339_v19  ;;  %v5376_v55 = vld [vmem:[#allocation4 + $0x9c0] sm:$0xff]  ;;  %v5378_v20 = vld [vmem:[#allocation4 + $0x9d0] sm:$0xff] }
 0x935   :  { %v14080_v19 = vld [vmem:[#allocation83_spill] sm:$0xff] }
 0x936   :  { %5604 = vmatmul.mubr.bf16.gmra.mrb[132].mxu0 %v14075_v38  ;;  %5943 = vmatmul.mubr.bf16.gmra.mrb[132].mxu1 %v14075_v38 }
 0x937   :  { %5679 = vmatpush1.bf16.msra.mxu0 %v5336_v12  ;;  %6018 = vmatpush1.bf16.msra.mxu1 %v5338_v16  ;;  %v5385_v12 = vld [vmem:[#allocation4 + $0xa08] sm:$0xff]  ;;  %v5387_v16 = vld [vmem:[#allocation4 + $0xa18] sm:$0xff] }
 0x938   :  { %5680 = vmatprep.subr.bf16.mxu0 %v5345_v26  ;;  %6019 = vmatprep.subr.bf16.mxu1 %v5347_v45  ;;  %v5384_v26 = vld [vmem:[#allocation4 + $0xa00] sm:$0xff]  ;;  %v5386_v45 = vld [vmem:[#allocation4 + $0xa10] sm:$0xff] }
 0x939   :  { %5613 = vmatprep.mubr.bf16.mxu0 %v14076_v10  ;;  %5952 = vmatprep.mubr.bf16.mxu1 %v14076_v10 }
 0x93b   :  { %5681 = vmatpush1.bf16.msra.mxu0 %v5344_v37  ;;  %6020 = vmatpush1.bf16.msra.mxu1 %v5346_v30  ;;  %v5393_v37 = vld [vmem:[#allocation4 + $0xa48] sm:$0xff]  ;;  %v5395_v30 = vld [vmem:[#allocation4 + $0xa58] sm:$0xff] }
 0x93c   :  { %5682 = vmatprep.subr.bf16.mxu0 %v5353_v54  ;;  %6021 = vmatprep.subr.bf16.mxu1 %v5355_v59  ;;  %v14081_v54 = vld [vmem:[#allocation53_spill] sm:$0xff] }
 0x93d   :  { %v5392_v59 = vld [vmem:[#allocation4 + $0xa40] sm:$0xff] }
 0x93e   :  { %5614 = vmatmul.mubr.bf16.gmra.mrb[136].mxu0 %v14077_v51  ;;  %5953 = vmatmul.mubr.bf16.gmra.mrb[136].mxu1 %v14077_v51 }
 0x93f   :  { %5683 = vmatpush1.bf16.msra.mxu0 %v5352_v4  ;;  %6022 = vmatpush1.bf16.msra.mxu1 %v5354_v33  ;;  %v5394_v4 = vld [vmem:[#allocation4 + $0xa50] sm:$0xff]  ;;  %v14082_v33 = vld [vmem:[#allocation84_spill] sm:$0xff] }
 0x940   :  { %5684 = vmatprep.subr.bf16.mxu0 %v5361_v2  ;;  %6023 = vmatprep.subr.bf16.mxu1 %v5363_v52  ;;  %v5401_v2 = vld [vmem:[#allocation4 + $0xa88] sm:$0xff]  ;;  %v5403_v52 = vld [vmem:[#allocation4 + $0xa98] sm:$0xff] }
 0x941   :  { %5623 = vmatprep.mubr.bf16.mxu0 %v14078_v1  ;;  %5962 = vmatprep.mubr.bf16.mxu1 %v14078_v1 }
 0x943   :  { %5685 = vmatpush1.bf16.msra.mxu0 %v5360_v15  ;;  %6024 = vmatpush1.bf16.msra.mxu1 %v5362_v18  ;;  %v5400_v15 = vld [vmem:[#allocation4 + $0xa80] sm:$0xff]  ;;  %v5402_v18 = vld [vmem:[#allocation4 + $0xa90] sm:$0xff] }
 0x944   :  { %5686 = vmatprep.subr.bf16.mxu0 %v5369_v9  ;;  %6025 = vmatprep.subr.bf16.mxu1 %v5371_v32  ;;  %v5409_v9 = vld [vmem:[#allocation4 + $0xac8] sm:$0xff]  ;;  %v5411_v32 = vld [vmem:[#allocation4 + $0xad8] sm:$0xff] }
 0x946   :  { %5624 = vmatmul.mubr.bf16.gmra.mrb[140].mxu0 %v14079_v8  ;;  %5963 = vmatmul.mubr.bf16.gmra.mrb[140].mxu1 %v14079_v8 }
 0x947   :  { %5687 = vmatpush1.bf16.msra.mxu0 %v5368_v21  ;;  %6026 = vmatpush1.bf16.msra.mxu1 %v5370_v7  ;;  %v14083_v21 = vld [vmem:[#allocation57_spill] sm:$0xff] }
 0x948   :  { %5688 = vmatprep.subr.bf16.mxu0 %v5377_v49  ;;  %6027 = vmatprep.subr.bf16.mxu1 %v5379_v61  ;;  %v5408_v7 = vld [vmem:[#allocation4 + $0xac0] sm:$0xff]  ;;  %v5410_v49 = vld [vmem:[#allocation4 + $0xad0] sm:$0xff] }
 0x949   :  { %5633 = vmatprep.mubr.bf16.mxu0 %v14080_v19  ;;  %5972 = vmatprep.mubr.bf16.mxu1 %v14080_v19  ;;  %v14084_v61 = vld [vmem:[#allocation85_spill] sm:$0xff] }
 0x94b   :  { %5689 = vmatpush1.bf16.msra.mxu0 %v5376_v55  ;;  %6028 = vmatpush1.bf16.msra.mxu1 %v5378_v20  ;;  %v5417_v55 = vld [vmem:[#allocation4 + $0xb08] sm:$0xff]  ;;  %v5419_v20 = vld [vmem:[#allocation4 + $0xb18] sm:$0xff] }
 0x94c   :  { %5690 = vmatprep.subr.bf16.mxu0 %v5385_v12  ;;  %6029 = vmatprep.subr.bf16.mxu1 %v5387_v16  ;;  %v5416_v12 = vld [vmem:[#allocation4 + $0xb00] sm:$0xff]  ;;  %v5418_v16 = vld [vmem:[#allocation4 + $0xb10] sm:$0xff] }
 0x94e   :  { %5634 = vmatmul.mubr.bf16.gmra.mrb[144].mxu0 %v14081_v54  ;;  %5973 = vmatmul.mubr.bf16.gmra.mrb[144].mxu1 %v14081_v54 }
 0x94f   :  { %5691 = vmatpush1.bf16.msra.mxu0 %v5384_v26  ;;  %6030 = vmatpush1.bf16.msra.mxu1 %v5386_v45  ;;  %v5425_v26 = vld [vmem:[#allocation4 + $0xb48] sm:$0xff]  ;;  %v5427_v45 = vld [vmem:[#allocation4 + $0xb58] sm:$0xff] }
 0x950   :  { %5692 = vmatprep.subr.bf16.mxu0 %v5393_v37  ;;  %6031 = vmatprep.subr.bf16.mxu1 %v5395_v30  ;;  %v14085_v37 = vld [vmem:[#allocation61_spill] sm:$0xff] }
 0x951   :  { %5643 = vmatprep.mubr.bf16.mxu0 %v14082_v33  ;;  %5982 = vmatprep.mubr.bf16.mxu1 %v14082_v33  ;;  %v5424_v30 = vld [vmem:[#allocation4 + $0xb40] sm:$0xff] }
 0x953   :  { %5693 = vmatpush1.bf16.msra.mxu0 %v5392_v59  ;;  %6032 = vmatpush1.bf16.msra.mxu1 %v5394_v4  ;;  %v5426_v59 = vld [vmem:[#allocation4 + $0xb50] sm:$0xff] }
 0x954   :  { %5694 = vmatprep.subr.bf16.mxu0 %v5401_v2  ;;  %6033 = vmatprep.subr.bf16.mxu1 %v5403_v52  ;;  %v14086_v4 = vld [vmem:[#allocation86_spill] sm:$0xff]  ;;  %v5435_v52 = vld [vmem:[#allocation4 + $0xb98] sm:$0xff] }
 0x955   :  { %v5433_v2 = vld [vmem:[#allocation4 + $0xb88] sm:$0xff] }
 0x956   :  { %5644 = vmatmul.mubr.bf16.gmra.mrb[148].mxu0 %v14083_v21  ;;  %5983 = vmatmul.mubr.bf16.gmra.mrb[148].mxu1 %v14083_v21 }
 0x957   :  { %5695 = vmatpush1.bf16.msra.mxu0 %v5400_v15  ;;  %6034 = vmatpush1.bf16.msra.mxu1 %v5402_v18  ;;  %v5432_v15 = vld [vmem:[#allocation4 + $0xb80] sm:$0xff]  ;;  %v5434_v18 = vld [vmem:[#allocation4 + $0xb90] sm:$0xff] }
 0x958   :  { %5696 = vmatprep.subr.bf16.mxu0 %v5409_v9  ;;  %6035 = vmatprep.subr.bf16.mxu1 %v5411_v32  ;;  %v5441_v9 = vld [vmem:[#allocation4 + $0xbc8] sm:$0xff]  ;;  %v5443_v32 = vld [vmem:[#allocation4 + $0xbd8] sm:$0xff] }
 0x959   :  { %5653 = vmatprep.mubr.bf16.mxu0 %v14084_v61  ;;  %5992 = vmatprep.mubr.bf16.mxu1 %v14084_v61 }
 0x95b   :  { %5697 = vmatpush1.bf16.msra.mxu0 %v5408_v7  ;;  %6036 = vmatpush1.bf16.msra.mxu1 %v5410_v49  ;;  %v14087_v7 = vld [vmem:[#allocation65_spill] sm:$0xff] }
 0x95c   :  { %5698 = vmatprep.subr.bf16.mxu0 %v5417_v55  ;;  %6037 = vmatprep.subr.bf16.mxu1 %v5419_v20  ;;  %v5440_v49 = vld [vmem:[#allocation4 + $0xbc0] sm:$0xff]  ;;  %v5442_v55 = vld [vmem:[#allocation4 + $0xbd0] sm:$0xff] }
 0x95d   :  { %v14088_v20 = vld [vmem:[#allocation97_spill] sm:$0xff] }
 0x95e   :  { %5654 = vmatmul.mubr.bf16.gmra.mrb[152].mxu0 %v14085_v37  ;;  %5993 = vmatmul.mubr.bf16.gmra.mrb[152].mxu1 %v14085_v37 }
 0x95f   :  { %5699 = vmatpush1.bf16.msra.mxu0 %v5416_v12  ;;  %6038 = vmatpush1.bf16.msra.mxu1 %v5418_v16  ;;  %v5069_v12 = vld [vmem:[#allocation4 + $0x28] sm:$0xff]  ;;  %v5071_v16 = vld [vmem:[#allocation4 + $0x38] sm:$0xff] }
 0x960   :  { %5700 = vmatprep.subr.bf16.mxu0 %v5425_v26  ;;  %6039 = vmatprep.subr.bf16.mxu1 %v5427_v45  ;;  %v5068_v26 = vld [vmem:[#allocation4 + $0x20] sm:$0xff]  ;;  %v5070_v45 = vld [vmem:[#allocation4 + $0x30] sm:$0xff] }
 0x961   :  { %5663 = vmatprep.mubr.bf16.mxu0 %v14086_v4  ;;  %6002 = vmatprep.mubr.bf16.mxu1 %v14086_v4 }
 0x963   :  { %5701 = vmatpush1.bf16.msra.mxu0 %v5424_v30  ;;  %6040 = vmatpush1.bf16.msra.mxu1 %v5426_v59  ;;  %v5077_v30 = vld [vmem:[#allocation4 + $0x68] sm:$0xff]  ;;  %v5079_v59 = vld [vmem:[#allocation4 + $0x78] sm:$0xff] }
 0x964   :  { %5702 = vmatprep.subr.bf16.mxu0 %v5433_v2  ;;  %6041 = vmatprep.subr.bf16.mxu1 %v5435_v52  ;;  %v14089_v2 = vld [vmem:[#allocation95_spill] sm:$0xff]  ;;  %v5076_v52 = vld [vmem:[#allocation4 + $0x60] sm:$0xff] }
 0x966   :  { %5664 = vmatmul.mubr.bf16.gmra.mrb[156].mxu0 %v14087_v7  ;;  %6003 = vmatmul.mubr.bf16.gmra.mrb[156].mxu1 %v14087_v7 }
 0x967   :  { %5703 = vmatpush1.bf16.msra.mxu0 %v5432_v15  ;;  %6042 = vmatpush1.bf16.msra.mxu1 %v5434_v18  ;;  %v5078_v15 = vld [vmem:[#allocation4 + $0x70] sm:$0xff] }
 0x968   :  { %5704 = vmatprep.subr.bf16.mxu0 %v5441_v9  ;;  %6043 = vmatprep.subr.bf16.mxu1 %v5443_v32  ;;  %v14090_v18 = vld [vmem:[#allocation119_spill] sm:$0xff]  ;;  %v5085_v9 = vld [vmem:[#allocation4 + $0xa8] sm:$0xff] }
 0x969   :  { %5706 = vmatprep.mubr.bf16.mxu0 %v14088_v20  ;;  %6045 = vmatprep.mubr.bf16.mxu1 %v14088_v20  ;;  %v5087_v32 = vld [vmem:[#allocation4 + $0xb8] sm:$0xff] }
 0x96b   :  { %5705 = vmatpush1.bf16.msra.mxu0 %v5440_v49  ;;  %6044 = vmatpush1.bf16.msra.mxu1 %v5442_v55  ;;  %v5084_v49 = vld [vmem:[#allocation4 + $0xa0] sm:$0xff]  ;;  %v5086_v55 = vld [vmem:[#allocation4 + $0xb0] sm:$0xff] }
 0x96c   :  { %6126 = vmatprep.subr.bf16.mxu0 %v5069_v12  ;;  %6465 = vmatprep.subr.bf16.mxu1 %v5071_v16  ;;  %v5093_v12 = vld [vmem:[#allocation4 + $0xe8] sm:$0xff]  ;;  %v5095_v16 = vld [vmem:[#allocation4 + $0xf8] sm:$0xff] }
 0x96e   :  { %5707 = vmatmul.mubr.bf16.vlgmr.msra.gmra.mrb[128].mxu0 %v14089_v2  ;;  %6046 = vmatmul.mubr.bf16.vlgmr.msra.gmra.mrb[128].mxu1 %v14089_v2 }
 0x96f   :  { %6127 = vmatpush1.bf16.msra.mxu0 %v5068_v26  ;;  %6466 = vmatpush1.bf16.msra.mxu1 %v5070_v45  ;;  %v14091_v26 = vld [vmem:[#allocation99_spill] sm:$0xff]  ;;  %v5092_v45 = vld [vmem:[#allocation4 + $0xe0] sm:$0xff] }
 0x970   :  { %6128 = vmatprep.subr.bf16.mxu0 %v5077_v30  ;;  %6467 = vmatprep.subr.bf16.mxu1 %v5079_v59  ;;  %v5094_v30 = vld [vmem:[#allocation4 + $0xf0] sm:$0xff] }
 0x971   :  { %5716 = vmatprep.mubr.bf16.mxu0 %v14090_v18  ;;  %6055 = vmatprep.mubr.bf16.mxu1 %v14090_v18  ;;  %v14092_v59 = vld [vmem:[#allocation103_spill] sm:$0xff] }
 0x973   :  { %6129 = vmatpush1.bf16.msra.mxu0 %v5076_v52  ;;  %6468 = vmatpush1.bf16.msra.mxu1 %v5078_v15  ;;  %v5101_v52 = vld [vmem:[#allocation4 + $0x128] sm:$0xff]  ;;  %v5103_v15 = vld [vmem:[#allocation4 + $0x138] sm:$0xff] }
 0x974   :  { %6130 = vmatprep.subr.bf16.mxu0 %v5085_v9  ;;  %6469 = vmatprep.subr.bf16.mxu1 %v5087_v32  ;;  %v5100_v9 = vld [vmem:[#allocation4 + $0x120] sm:$0xff]  ;;  %v5102_v32 = vld [vmem:[#allocation4 + $0x130] sm:$0xff] }
 0x976   :  { %5717 = vmatmul.mubr.bf16.gmra.mrb[132].mxu0 %v14091_v26  ;;  %6056 = vmatmul.mubr.bf16.gmra.mrb[132].mxu1 %v14091_v26 }
 0x977   :  { %6131 = vmatpush1.bf16.msra.mxu0 %v5084_v49  ;;  %6470 = vmatpush1.bf16.msra.mxu1 %v5086_v55  ;;  %v14093_v49 = vld [vmem:[#allocation102_spill] sm:$0xff]  ;;  %v5108_v55 = vld [vmem:[#allocation4 + $0x160] sm:$0xff] }
 0x978   :  { %6132 = vmatprep.subr.bf16.mxu0 %v5093_v12  ;;  %6471 = vmatprep.subr.bf16.mxu1 %v5095_v16  ;;  %v5110_v12 = vld [vmem:[#allocation4 + $0x170] sm:$0xff]  ;;  %v14094_v16 = vld [vmem:[#allocation120_spill] sm:$0xff] }
 0x979   :  { %5726 = vmatprep.mubr.bf16.mxu0 %v14092_v59  ;;  %6065 = vmatprep.mubr.bf16.mxu1 %v14092_v59 }
 0x97b   :  { %6133 = vmatpush1.bf16.msra.mxu0 %v5092_v45  ;;  %6472 = vmatpush1.bf16.msra.mxu1 %v5094_v30  ;;  %v5117_v45 = vld [vmem:[#allocation4 + $0x1a8] sm:$0xff]  ;;  %v5119_v30 = vld [vmem:[#allocation4 + $0x1b8] sm:$0xff] }
 0x97c   :  { %6134 = vmatprep.subr.bf16.mxu0 %v5101_v52  ;;  %6473 = vmatprep.subr.bf16.mxu1 %v5103_v15  ;;  %v5116_v52 = vld [vmem:[#allocation4 + $0x1a0] sm:$0xff]  ;;  %v5118_v15 = vld [vmem:[#allocation4 + $0x1b0] sm:$0xff] }
 0x97e   :  { %5727 = vmatmul.mubr.bf16.gmra.mrb[136].mxu0 %v14093_v49  ;;  %6066 = vmatmul.mubr.bf16.gmra.mrb[136].mxu1 %v14093_v49 }
 0x97f   :  { %6135 = vmatpush1.bf16.msra.mxu0 %v5100_v9  ;;  %6474 = vmatpush1.bf16.msra.mxu1 %v5102_v32  ;;  %v14095_v9 = vld [vmem:[#allocation106_spill] sm:$0xff] }
 0x980   :  { %6136 = vmatprep.subr.bf16.mxu0 %v5109_v0  ;;  %6475 = vmatprep.subr.bf16.mxu1 %v5111_v6  ;;  %v5124_v6 = vld [vmem:[#allocation4 + $0x1e0] sm:$0xff]  ;;  %v5126_v0 = vld [vmem:[#allocation4 + $0x1f0] sm:$0xff] }
 0x981   :  { %5736 = vmatprep.mubr.bf16.mxu0 %v14094_v16  ;;  %6075 = vmatprep.mubr.bf16.mxu1 %v14094_v16  ;;  %v14096_v32 = vld [vmem:[#allocation54_spill] sm:$0xff] }
 0x983   :  { %6137 = vmatpush1.bf16.msra.mxu0 %v5108_v55  ;;  %6476 = vmatpush1.bf16.msra.mxu1 %v5110_v12  ;;  %v5133_v55 = vld [vmem:[#allocation4 + $0x228] sm:$0xff]  ;;  %v5135_v12 = vld [vmem:[#allocation4 + $0x238] sm:$0xff] }
 0x984   :  { %6138 = vmatprep.subr.bf16.mxu0 %v5117_v45  ;;  %6477 = vmatprep.subr.bf16.mxu1 %v5119_v30  ;;  %v5132_v45 = vld [vmem:[#allocation4 + $0x220] sm:$0xff]  ;;  %v5134_v30 = vld [vmem:[#allocation4 + $0x230] sm:$0xff] }
 0x986   :  { %5737 = vmatmul.mubr.bf16.gmra.mrb[140].mxu0 %v14095_v9  ;;  %6076 = vmatmul.mubr.bf16.gmra.mrb[140].mxu1 %v14095_v9 }
 0x987   :  { %6139 = vmatpush1.bf16.msra.mxu0 %v5116_v52  ;;  %6478 = vmatpush1.bf16.msra.mxu1 %v5118_v15  ;;  %v14097_v52 = vld [vmem:[#allocation107_spill] sm:$0xff]  ;;  %v14098_v15 = vld [vmem:[#allocation58_spill] sm:$0xff] }
 0x988   :  { %6140 = vmatprep.subr.bf16.mxu0 %v5125_v36  ;;  %6479 = vmatprep.subr.bf16.mxu1 %v5127_v3  ;;  %v5140_v3 = vld [vmem:[#allocation4 + $0x260] sm:$0xff]  ;;  %v5142_v36 = vld [vmem:[#allocation4 + $0x270] sm:$0xff] }
 0x989   :  { %5746 = vmatprep.mubr.bf16.mxu0 %v14096_v32  ;;  %6085 = vmatprep.mubr.bf16.mxu1 %v14096_v32 }
 0x98b   :  { %6141 = vmatpush1.bf16.msra.mxu0 %v5124_v6  ;;  %6480 = vmatpush1.bf16.msra.mxu1 %v5126_v0  ;;  %v5149_v6 = vld [vmem:[#allocation4 + $0x2a8] sm:$0xff]  ;;  %v5151_v0 = vld [vmem:[#allocation4 + $0x2b8] sm:$0xff] }
 0x98c   :  { %6142 = vmatprep.subr.bf16.mxu0 %v5133_v55  ;;  %6481 = vmatprep.subr.bf16.mxu1 %v5135_v12  ;;  %v5148_v55 = vld [vmem:[#allocation4 + $0x2a0] sm:$0xff]  ;;  %v5150_v12 = vld [vmem:[#allocation4 + $0x2b0] sm:$0xff] }
 0x98e   :  { %5747 = vmatmul.mubr.bf16.gmra.mrb[144].mxu0 %v14097_v52  ;;  %6086 = vmatmul.mubr.bf16.gmra.mrb[144].mxu1 %v14097_v52 }
 0x98f   :  { %6143 = vmatpush1.bf16.msra.mxu0 %v5132_v45  ;;  %6482 = vmatpush1.bf16.msra.mxu1 %v5134_v30  ;;  %v14099_v45 = vld [vmem:[#allocation108_spill] sm:$0xff]  ;;  %v14100_v30 = vld [vmem:[#allocation62_spill] sm:$0xff] }
 0x990   :  { %6144 = vmatprep.subr.bf16.mxu0 %v5141_v23  ;;  %6483 = vmatprep.subr.bf16.mxu1 %v5143_v22  ;;  %v5156_v22 = vld [vmem:[#allocation4 + $0x2e0] sm:$0xff]  ;;  %v5158_v23 = vld [vmem:[#allocation4 + $0x2f0] sm:$0xff] }
 0x991   :  { %5756 = vmatprep.mubr.bf16.mxu0 %v14098_v15  ;;  %6095 = vmatprep.mubr.bf16.mxu1 %v14098_v15 }
 0x993   :  { %6145 = vmatpush1.bf16.msra.mxu0 %v5140_v3  ;;  %6484 = vmatpush1.bf16.msra.mxu1 %v5142_v36  ;;  %v5165_v3 = vld [vmem:[#allocation4 + $0x328] sm:$0xff]  ;;  %v5167_v36 = vld [vmem:[#allocation4 + $0x338] sm:$0xff] }
 0x994   :  { %6146 = vmatprep.subr.bf16.mxu0 %v5149_v6  ;;  %6485 = vmatprep.subr.bf16.mxu1 %v5151_v0  ;;  %v5164_v6 = vld [vmem:[#allocation4 + $0x320] sm:$0xff]  ;;  %v5166_v0 = vld [vmem:[#allocation4 + $0x330] sm:$0xff] }
 0x996   :  { %5757 = vmatmul.mubr.bf16.gmra.mrb[148].mxu0 %v14099_v45  ;;  %6096 = vmatmul.mubr.bf16.gmra.mrb[148].mxu1 %v14099_v45 }
 0x997   :  { %6147 = vmatpush1.bf16.msra.mxu0 %v5148_v55  ;;  %6486 = vmatpush1.bf16.msra.mxu1 %v5150_v12  ;;  %v14101_v55 = vld [vmem:[#allocation109_spill] sm:$0xff]  ;;  %v14102_v12 = vld [vmem:[#allocation66_spill] sm:$0xff] }
 0x998   :  { %6148 = vmatprep.subr.bf16.mxu0 %v5157_v11  ;;  %6487 = vmatprep.subr.bf16.mxu1 %v5159_v50  ;;  %v5172_v50 = vld [vmem:[#allocation4 + $0x360] sm:$0xff]  ;;  %v5174_v11 = vld [vmem:[#allocation4 + $0x370] sm:$0xff] }
 0x999   :  { %5766 = vmatprep.mubr.bf16.mxu0 %v14100_v30  ;;  %6105 = vmatprep.mubr.bf16.mxu1 %v14100_v30 }
 0x99b   :  { %6149 = vmatpush1.bf16.msra.mxu0 %v5156_v22  ;;  %6488 = vmatpush1.bf16.msra.mxu1 %v5158_v23  ;;  %v5181_v22 = vld [vmem:[#allocation4 + $0x3a8] sm:$0xff]  ;;  %v5183_v23 = vld [vmem:[#allocation4 + $0x3b8] sm:$0xff] }
 0x99c   :  { %6150 = vmatprep.subr.bf16.mxu0 %v5165_v3  ;;  %6489 = vmatprep.subr.bf16.mxu1 %v5167_v36  ;;  %v5180_v3 = vld [vmem:[#allocation4 + $0x3a0] sm:$0xff]  ;;  %v5182_v36 = vld [vmem:[#allocation4 + $0x3b0] sm:$0xff] }
 0x99e   :  { %5767 = vmatmul.mubr.bf16.gmra.mrb[152].mxu0 %v14101_v55  ;;  %6106 = vmatmul.mubr.bf16.gmra.mrb[152].mxu1 %v14101_v55 }
 0x99f   :  { %6151 = vmatpush1.bf16.msra.mxu0 %v5164_v6  ;;  %6490 = vmatpush1.bf16.msra.mxu1 %v5166_v0  ;;  %v14103_v6 = vld [vmem:[#allocation110_spill] sm:$0xff] }
 0x9a0   :  { %6152 = vmatprep.subr.bf16.mxu0 %v5173_v56  ;;  %6491 = vmatprep.subr.bf16.mxu1 %v5175_v58  ;;  %v5188_v58 = vld [vmem:[#allocation4 + $0x3e0] sm:$0xff]  ;;  %v5190_v56 = vld [vmem:[#allocation4 + $0x3f0] sm:$0xff]  ;;  %v5197_v0 = vld [vmem:[#allocation4 + $0x428] sm:$0xff] }
 0x9a1   :  { %5776 = vmatprep.mubr.bf16.mxu0 %v14102_v12  ;;  %6115 = vmatprep.mubr.bf16.mxu1 %v14102_v12 }
 0x9a3   :  { %6153 = vmatpush1.bf16.msra.mxu0 %v5172_v50  ;;  %6492 = vmatpush1.bf16.msra.mxu1 %v5174_v11  ;;  %v5199_v50 = vld [vmem:[#allocation4 + $0x438] sm:$0xff]  ;;  %v5196_v11 = vld [vmem:[#allocation4 + $0x420] sm:$0xff] }
 0x9a4   :  { %6154 = vmatprep.subr.bf16.mxu0 %v5181_v22  ;;  %6493 = vmatprep.subr.bf16.mxu1 %v5183_v23  ;;  %v5198_v22 = vld [vmem:[#allocation4 + $0x430] sm:$0xff]  ;;  %v5205_v23 = vld [vmem:[#allocation4 + $0x468] sm:$0xff] }
 0x9a6   :  { %5777 = vmatmul.mubr.bf16.gmra.mrb[156].mxu0 %v14103_v6  ;;  %6116 = vmatmul.mubr.bf16.gmra.mrb[156].mxu1 %v14103_v6 }
 0x9a7   :  { %6155 = vmatpush1.bf16.msra.mxu0 %v5180_v3  ;;  %6494 = vmatpush1.bf16.msra.mxu1 %v5182_v36  ;;  %v5215_v3 = vld [vmem:[#allocation4 + $0x4b8] sm:$0xff]  ;;  %v5212_v36 = vld [vmem:[#allocation4 + $0x4a0] sm:$0xff] }
 0x9a8   :  { %6156 = vmatprep.subr.bf16.mxu0 %v5189_v48  ;;  %6495 = vmatprep.subr.bf16.mxu1 %v5191_v60  ;;  %v5204_v60 = vld [vmem:[#allocation4 + $0x460] sm:$0xff]  ;;  %v5213_v48 = vld [vmem:[#allocation4 + $0x4a8] sm:$0xff] }
 0x9a9   :  { %6158 = vmatprep.mubr.bf16.mxu0 %v11316_v57  ;;  %6497 = vmatprep.mubr.bf16.mxu1 %v11316_v57  ;;  %v5206_v57 = vld [vmem:[#allocation4 + $0x470] sm:$0xff] }
 0x9ab   :  { %6157 = vmatpush1.bf16.msra.mxu0 %v5188_v58  ;;  %6496 = vmatpush1.bf16.msra.mxu1 %v5190_v56  ;;  %v5214_v58 = vld [vmem:[#allocation4 + $0x4b0] sm:$0xff]  ;;  %v5221_v56 = vld [vmem:[#allocation4 + $0x4e8] sm:$0xff] }
 0x9ac   :  { %6239 = vmatprep.subr.bf16.mxu0 %v5197_v0  ;;  %6578 = vmatprep.subr.bf16.mxu1 %v5199_v50  ;;  %v5229_v0 = vld [vmem:[#allocation4 + $0x528] sm:$0xff]  ;;  %v5231_v50 = vld [vmem:[#allocation4 + $0x538] sm:$0xff] }
 0x9ae   :  { %6159 = vmatmul.mubr.bf16.vlgmr.msra.gmra.mrb[160].mxu0 %v11314_v42  ;;  %6498 = vmatmul.mubr.bf16.vlgmr.msra.gmra.mrb[160].mxu1 %v11314_v42  ;;  %v5223_v42 = vld [vmem:[#allocation4 + $0x4f8] sm:$0xff] }
 0x9af   :  { %6240 = vmatpush1.bf16.msra.mxu0 %v5196_v11  ;;  %6579 = vmatpush1.bf16.msra.mxu1 %v5198_v22  ;;  %v5228_v11 = vld [vmem:[#allocation4 + $0x520] sm:$0xff]  ;;  %v5230_v22 = vld [vmem:[#allocation4 + $0x530] sm:$0xff] }
 0x9b0   :  { %6241 = vmatprep.subr.bf16.mxu0 %v5205_v23  ;;  %6580 = vmatprep.subr.bf16.mxu1 %v5207_v29  ;;  %v5220_v29 = vld [vmem:[#allocation4 + $0x4e0] sm:$0xff]  ;;  %v5237_v23 = vld [vmem:[#allocation4 + $0x568] sm:$0xff] }
 0x9b1   :  { %6168 = vmatprep.mubr.bf16.mxu0 %v11362_v17  ;;  %6507 = vmatprep.mubr.bf16.mxu1 %v11362_v17  ;;  %v5222_v17 = vld [vmem:[#allocation4 + $0x4f0] sm:$0xff] }
 0x9b3   :  { %6242 = vmatpush1.bf16.msra.mxu0 %v5204_v60  ;;  %6581 = vmatpush1.bf16.msra.mxu1 %v5206_v57  ;;  %v5236_v60 = vld [vmem:[#allocation4 + $0x560] sm:$0xff]  ;;  %v5245_v57 = vld [vmem:[#allocation4 + $0x5a8] sm:$0xff] }
 0x9b4   :  { %6243 = vmatprep.subr.bf16.mxu0 %v5213_v48  ;;  %6582 = vmatprep.subr.bf16.mxu1 %v5215_v3  ;;  %v5247_v48 = vld [vmem:[#allocation4 + $0x5b8] sm:$0xff]  ;;  %v5244_v3 = vld [vmem:[#allocation4 + $0x5a0] sm:$0xff] }
 0x9b6   :  { %6169 = vmatmul.mubr.bf16.gmra.mrb[164].mxu0 %v11360_v34  ;;  %6508 = vmatmul.mubr.bf16.gmra.mrb[164].mxu1 %v11360_v34  ;;  %v5239_v34 = vld [vmem:[#allocation4 + $0x578] sm:$0xff] }
 0x9b7   :  { %6244 = vmatpush1.bf16.msra.mxu0 %v5212_v36  ;;  %6583 = vmatpush1.bf16.msra.mxu1 %v5214_v58  ;;  %v5246_v36 = vld [vmem:[#allocation4 + $0x5b0] sm:$0xff]  ;;  %v5253_v58 = vld [vmem:[#allocation4 + $0x5e8] sm:$0xff] }
 0x9b8   :  { %6245 = vmatprep.subr.bf16.mxu0 %v5221_v56  ;;  %6584 = vmatprep.subr.bf16.mxu1 %v5223_v42  ;;  %v5252_v56 = vld [vmem:[#allocation4 + $0x5e0] sm:$0xff]  ;;  %v5261_v42 = vld [vmem:[#allocation4 + $0x628] sm:$0xff] }
 0x9b9   :  { %6178 = vmatprep.mubr.bf16.mxu0 %v11414_v25  ;;  %6517 = vmatprep.mubr.bf16.mxu1 %v11414_v25  ;;  %v5238_v25 = vld [vmem:[#allocation4 + $0x570] sm:$0xff] }
 0x9bb   :  { %6246 = vmatpush1.bf16.msra.mxu0 %v5220_v29  ;;  %6585 = vmatpush1.bf16.msra.mxu1 %v5222_v17  ;;  %v5263_v29 = vld [vmem:[#allocation4 + $0x638] sm:$0xff]  ;;  %v5260_v17 = vld [vmem:[#allocation4 + $0x620] sm:$0xff] }
 0x9bc   :  { %6247 = vmatprep.subr.bf16.mxu0 %v5229_v0  ;;  %6586 = vmatprep.subr.bf16.mxu1 %v5231_v50  ;;  %v5262_v0 = vld [vmem:[#allocation4 + $0x630] sm:$0xff]  ;;  %v5269_v50 = vld [vmem:[#allocation4 + $0x668] sm:$0xff] }
 0x9be   :  { %6179 = vmatmul.mubr.bf16.gmra.mrb[168].mxu0 %v11412_v39  ;;  %6518 = vmatmul.mubr.bf16.gmra.mrb[168].mxu1 %v11412_v39  ;;  %v5255_v39 = vld [vmem:[#allocation4 + $0x5f8] sm:$0xff] }
 0x9bf   :  { %6248 = vmatpush1.bf16.msra.mxu0 %v5228_v11  ;;  %6587 = vmatpush1.bf16.msra.mxu1 %v5230_v22  ;;  %v5268_v11 = vld [vmem:[#allocation4 + $0x660] sm:$0xff]  ;;  %v5277_v22 = vld [vmem:[#allocation4 + $0x6a8] sm:$0xff] }
 0x9c0   :  { %6249 = vmatprep.subr.bf16.mxu0 %v5237_v23  ;;  %6588 = vmatprep.subr.bf16.mxu1 %v5239_v34  ;;  %v5279_v23 = vld [vmem:[#allocation4 + $0x6b8] sm:$0xff]  ;;  %v5276_v34 = vld [vmem:[#allocation4 + $0x6a0] sm:$0xff] }
 0x9c1   :  { %6188 = vmatprep.mubr.bf16.mxu0 %v14062_v63  ;;  %6527 = vmatprep.mubr.bf16.mxu1 %v14062_v63  ;;  %v5254_v63 = vld [vmem:[#allocation4 + $0x5f0] sm:$0xff] }
 0x9c3   :  { %6250 = vmatpush1.bf16.msra.mxu0 %v5236_v60  ;;  %6589 = vmatpush1.bf16.msra.mxu1 %v5238_v25  ;;  %v5278_v60 = vld [vmem:[#allocation4 + $0x6b0] sm:$0xff]  ;;  %v5285_v25 = vld [vmem:[#allocation4 + $0x6e8] sm:$0xff] }
 0x9c4   :  { %6251 = vmatprep.subr.bf16.mxu0 %v5245_v57  ;;  %6590 = vmatprep.subr.bf16.mxu1 %v5247_v48  ;;  %v5284_v57 = vld [vmem:[#allocation4 + $0x6e0] sm:$0xff]  ;;  %v5293_v48 = vld [vmem:[#allocation4 + $0x728] sm:$0xff] }
 0x9c6   :  { %6189 = vmatmul.mubr.bf16.gmra.mrb[172].mxu0 %v14063_v27  ;;  %6528 = vmatmul.mubr.bf16.gmra.mrb[172].mxu1 %v14063_v27  ;;  %v5271_v27 = vld [vmem:[#allocation4 + $0x678] sm:$0xff] }
 0x9c7   :  { %6252 = vmatpush1.bf16.msra.mxu0 %v5244_v3  ;;  %6591 = vmatpush1.bf16.msra.mxu1 %v5246_v36  ;;  %v5295_v3 = vld [vmem:[#allocation4 + $0x738] sm:$0xff]  ;;  %v5292_v36 = vld [vmem:[#allocation4 + $0x720] sm:$0xff] }
 0x9c8   :  { %6253 = vmatprep.subr.bf16.mxu0 %v5253_v58  ;;  %6592 = vmatprep.subr.bf16.mxu1 %v5255_v39  ;;  %v5294_v58 = vld [vmem:[#allocation4 + $0x730] sm:$0xff]  ;;  %v5301_v39 = vld [vmem:[#allocation4 + $0x768] sm:$0xff] }
 0x9c9   :  { %6198 = vmatprep.mubr.bf16.mxu0 %v14064_v46  ;;  %6537 = vmatprep.mubr.bf16.mxu1 %v14064_v46  ;;  %v5270_v46 = vld [vmem:[#allocation4 + $0x670] sm:$0xff] }
 0x9cb   :  { %6254 = vmatpush1.bf16.msra.mxu0 %v5252_v56  ;;  %6593 = vmatpush1.bf16.msra.mxu1 %v5254_v63  ;;  %v5300_v56 = vld [vmem:[#allocation4 + $0x760] sm:$0xff]  ;;  %v5309_v63 = vld [vmem:[#allocation4 + $0x7a8] sm:$0xff] }
 0x9cc   :  { %6255 = vmatprep.subr.bf16.mxu0 %v5261_v42  ;;  %6594 = vmatprep.subr.bf16.mxu1 %v5263_v29  ;;  %v5311_v42 = vld [vmem:[#allocation4 + $0x7b8] sm:$0xff]  ;;  %v5308_v29 = vld [vmem:[#allocation4 + $0x7a0] sm:$0xff] }
 0x9ce   :  { %6199 = vmatmul.mubr.bf16.gmra.mrb[176].mxu0 %v14065_v14  ;;  %6538 = vmatmul.mubr.bf16.gmra.mrb[176].mxu1 %v14065_v14  ;;  %v5287_v14 = vld [vmem:[#allocation4 + $0x6f8] sm:$0xff] }
 0x9cf   :  { %6256 = vmatpush1.bf16.msra.mxu0 %v5260_v17  ;;  %6595 = vmatpush1.bf16.msra.mxu1 %v5262_v0  ;;  %v5310_v17 = vld [vmem:[#allocation4 + $0x7b0] sm:$0xff]  ;;  %v5317_v0 = vld [vmem:[#allocation4 + $0x7e8] sm:$0xff] }
 0x9d0   :  { %6257 = vmatprep.subr.bf16.mxu0 %v5269_v50  ;;  %6596 = vmatprep.subr.bf16.mxu1 %v5271_v27  ;;  %v5316_v50 = vld [vmem:[#allocation4 + $0x7e0] sm:$0xff]  ;;  %v5325_v27 = vld [vmem:[#allocation4 + $0x828] sm:$0xff] }
 0x9d1   :  { %6208 = vmatprep.mubr.bf16.mxu0 %v14066_v44  ;;  %6547 = vmatprep.mubr.bf16.mxu1 %v14066_v44  ;;  %v5286_v44 = vld [vmem:[#allocation4 + $0x6f0] sm:$0xff] }
 0x9d3   :  { %6258 = vmatpush1.bf16.msra.mxu0 %v5268_v11  ;;  %6597 = vmatpush1.bf16.msra.mxu1 %v5270_v46  ;;  %v5327_v11 = vld [vmem:[#allocation4 + $0x838] sm:$0xff]  ;;  %v5324_v46 = vld [vmem:[#allocation4 + $0x820] sm:$0xff] }
 0x9d4   :  { %6259 = vmatprep.subr.bf16.mxu0 %v5277_v22  ;;  %6598 = vmatprep.subr.bf16.mxu1 %v5279_v23  ;;  %v5326_v22 = vld [vmem:[#allocation4 + $0x830] sm:$0xff]  ;;  %v5333_v23 = vld [vmem:[#allocation4 + $0x868] sm:$0xff] }
 0x9d6   :  { %6209 = vmatmul.mubr.bf16.gmra.mrb[180].mxu0 %v14067_v13  ;;  %6548 = vmatmul.mubr.bf16.gmra.mrb[180].mxu1 %v14067_v13  ;;  %v5303_v13 = vld [vmem:[#allocation4 + $0x778] sm:$0xff] }
 0x9d7   :  { %6260 = vmatpush1.bf16.msra.mxu0 %v5276_v34  ;;  %6599 = vmatpush1.bf16.msra.mxu1 %v5278_v60  ;;  %v5332_v34 = vld [vmem:[#allocation4 + $0x860] sm:$0xff]  ;;  %v5341_v60 = vld [vmem:[#allocation4 + $0x8a8] sm:$0xff] }
 0x9d8   :  { %6261 = vmatprep.subr.bf16.mxu0 %v5285_v25  ;;  %6600 = vmatprep.subr.bf16.mxu1 %v5287_v14  ;;  %v5343_v25 = vld [vmem:[#allocation4 + $0x8b8] sm:$0xff]  ;;  %v5340_v14 = vld [vmem:[#allocation4 + $0x8a0] sm:$0xff] }
 0x9d9   :  { %6218 = vmatprep.mubr.bf16.mxu0 %v14068_v62  ;;  %6557 = vmatprep.mubr.bf16.mxu1 %v14068_v62  ;;  %v5302_v62 = vld [vmem:[#allocation4 + $0x770] sm:$0xff] }
 0x9db   :  { %6262 = vmatpush1.bf16.msra.mxu0 %v5284_v57  ;;  %6601 = vmatpush1.bf16.msra.mxu1 %v5286_v44  ;;  %v5342_v57 = vld [vmem:[#allocation4 + $0x8b0] sm:$0xff]  ;;  %v5349_v44 = vld [vmem:[#allocation4 + $0x8e8] sm:$0xff] }
 0x9dc   :  { %6263 = vmatprep.subr.bf16.mxu0 %v5293_v48  ;;  %6602 = vmatprep.subr.bf16.mxu1 %v5295_v3  ;;  %v5348_v48 = vld [vmem:[#allocation4 + $0x8e0] sm:$0xff]  ;;  %v5357_v3 = vld [vmem:[#allocation4 + $0x928] sm:$0xff] }
 0x9de   :  { %6219 = vmatmul.mubr.bf16.gmra.mrb[184].mxu0 %v14069_v53  ;;  %6558 = vmatmul.mubr.bf16.gmra.mrb[184].mxu1 %v14069_v53  ;;  %v5319_v53 = vld [vmem:[#allocation4 + $0x7f8] sm:$0xff] }
 0x9df   :  { %6264 = vmatpush1.bf16.msra.mxu0 %v5292_v36  ;;  %6603 = vmatpush1.bf16.msra.mxu1 %v5294_v58  ;;  %v5359_v36 = vld [vmem:[#allocation4 + $0x938] sm:$0xff]  ;;  %v5356_v58 = vld [vmem:[#allocation4 + $0x920] sm:$0xff] }
 0x9e0   :  { %6265 = vmatprep.subr.bf16.mxu0 %v5301_v39  ;;  %6604 = vmatprep.subr.bf16.mxu1 %v5303_v13  ;;  %v5358_v39 = vld [vmem:[#allocation4 + $0x930] sm:$0xff]  ;;  %v5365_v13 = vld [vmem:[#allocation4 + $0x968] sm:$0xff] }
 0x9e1   :  { %6228 = vmatprep.mubr.bf16.mxu0 %v14070_v35  ;;  %6567 = vmatprep.mubr.bf16.mxu1 %v14070_v35  ;;  %v5318_v35 = vld [vmem:[#allocation4 + $0x7f0] sm:$0xff] }
 0x9e3   :  { %6266 = vmatpush1.bf16.msra.mxu0 %v5300_v56  ;;  %6605 = vmatpush1.bf16.msra.mxu1 %v5302_v62  ;;  %v5364_v56 = vld [vmem:[#allocation4 + $0x960] sm:$0xff]  ;;  %v5373_v62 = vld [vmem:[#allocation4 + $0x9a8] sm:$0xff] }
 0x9e4   :  { %6267 = vmatprep.subr.bf16.mxu0 %v5309_v63  ;;  %6606 = vmatprep.subr.bf16.mxu1 %v5311_v42  ;;  %v5375_v63 = vld [vmem:[#allocation4 + $0x9b8] sm:$0xff]  ;;  %v5372_v42 = vld [vmem:[#allocation4 + $0x9a0] sm:$0xff] }
 0x9e6   :  { %6229 = vmatmul.mubr.bf16.gmra.mrb[188].mxu0 %v14071_v24  ;;  %6568 = vmatmul.mubr.bf16.gmra.mrb[188].mxu1 %v14071_v24  ;;  %v5335_v24 = vld [vmem:[#allocation4 + $0x878] sm:$0xff] }
 0x9e7   :  { %6268 = vmatpush1.bf16.msra.mxu0 %v5308_v29  ;;  %6607 = vmatpush1.bf16.msra.mxu1 %v5310_v17  ;;  %v5374_v29 = vld [vmem:[#allocation4 + $0x9b0] sm:$0xff]  ;;  %v5381_v17 = vld [vmem:[#allocation4 + $0x9e8] sm:$0xff] }
 0x9e8   :  { %6269 = vmatprep.subr.bf16.mxu0 %v5317_v0  ;;  %6608 = vmatprep.subr.bf16.mxu1 %v5319_v53  ;;  %v5380_v0 = vld [vmem:[#allocation4 + $0x9e0] sm:$0xff]  ;;  %v5389_v53 = vld [vmem:[#allocation4 + $0xa28] sm:$0xff] }
 0x9e9   :  { %6271 = vmatprep.mubr.bf16.mxu0 %v14072_v47  ;;  %6610 = vmatprep.mubr.bf16.mxu1 %v14072_v47  ;;  %v5334_v47 = vld [vmem:[#allocation4 + $0x870] sm:$0xff] }
 0x9eb   :  { %6270 = vmatpush1.bf16.msra.mxu0 %v5316_v50  ;;  %6609 = vmatpush1.bf16.msra.mxu1 %v5318_v35  ;;  %v5391_v50 = vld [vmem:[#allocation4 + $0xa38] sm:$0xff]  ;;  %v5388_v35 = vld [vmem:[#allocation4 + $0xa20] sm:$0xff] }
 0x9ec   :  { %6352 = vmatprep.subr.bf16.mxu0 %v5325_v27  ;;  %6691 = vmatprep.subr.bf16.mxu1 %v5327_v11  ;;  %v5390_v27 = vld [vmem:[#allocation4 + $0xa30] sm:$0xff]  ;;  %v5397_v11 = vld [vmem:[#allocation4 + $0xa68] sm:$0xff] }
 0x9ee   :  { %6272 = vmatmul.mubr.bf16.vlgmr.msra.gmra.mrb[160].mxu0 %v14073_v31  ;;  %6611 = vmatmul.mubr.bf16.vlgmr.msra.gmra.mrb[160].mxu1 %v14073_v31  ;;  %v5351_v31 = vld [vmem:[#allocation4 + $0x8f8] sm:$0xff] }
 0x9ef   :  { %6353 = vmatpush1.bf16.msra.mxu0 %v5324_v46  ;;  %6692 = vmatpush1.bf16.msra.mxu1 %v5326_v22  ;;  %v5396_v46 = vld [vmem:[#allocation4 + $0xa60] sm:$0xff]  ;;  %v5405_v22 = vld [vmem:[#allocation4 + $0xaa8] sm:$0xff] }
 0x9f0   :  { %6354 = vmatprep.subr.bf16.mxu0 %v5333_v23  ;;  %6693 = vmatprep.subr.bf16.mxu1 %v5335_v24  ;;  %v5407_v23 = vld [vmem:[#allocation4 + $0xab8] sm:$0xff]  ;;  %v5404_v24 = vld [vmem:[#allocation4 + $0xaa0] sm:$0xff] }
 0x9f1   :  { %6281 = vmatprep.mubr.bf16.mxu0 %v14074_v41  ;;  %6620 = vmatprep.mubr.bf16.mxu1 %v14074_v41  ;;  %v5350_v41 = vld [vmem:[#allocation4 + $0x8f0] sm:$0xff] }
 0x9f3   :  { %6355 = vmatpush1.bf16.msra.mxu0 %v5332_v34  ;;  %6694 = vmatpush1.bf16.msra.mxu1 %v5334_v47  ;;  %v5406_v34 = vld [vmem:[#allocation4 + $0xab0] sm:$0xff]  ;;  %v5413_v47 = vld [vmem:[#allocation4 + $0xae8] sm:$0xff] }
 0x9f4   :  { %6356 = vmatprep.subr.bf16.mxu0 %v5341_v60  ;;  %6695 = vmatprep.subr.bf16.mxu1 %v5343_v25  ;;  %v5412_v60 = vld [vmem:[#allocation4 + $0xae0] sm:$0xff]  ;;  %v5421_v25 = vld [vmem:[#allocation4 + $0xb28] sm:$0xff] }
 0x9f6   :  { %6282 = vmatmul.mubr.bf16.gmra.mrb[164].mxu0 %v14075_v38  ;;  %6621 = vmatmul.mubr.bf16.gmra.mrb[164].mxu1 %v14075_v38  ;;  %v5367_v38 = vld [vmem:[#allocation4 + $0x978] sm:$0xff] }
 0x9f7   :  { %6357 = vmatpush1.bf16.msra.mxu0 %v5340_v14  ;;  %6696 = vmatpush1.bf16.msra.mxu1 %v5342_v57  ;;  %v5423_v14 = vld [vmem:[#allocation4 + $0xb38] sm:$0xff]  ;;  %v5420_v57 = vld [vmem:[#allocation4 + $0xb20] sm:$0xff] }
 0x9f8   :  { %6358 = vmatprep.subr.bf16.mxu0 %v5349_v44  ;;  %6697 = vmatprep.subr.bf16.mxu1 %v5351_v31  ;;  %v5422_v44 = vld [vmem:[#allocation4 + $0xb30] sm:$0xff]  ;;  %v5429_v31 = vld [vmem:[#allocation4 + $0xb68] sm:$0xff] }
 0x9f9   :  { %6291 = vmatprep.mubr.bf16.mxu0 %v14076_v10  ;;  %6630 = vmatprep.mubr.bf16.mxu1 %v14076_v10  ;;  %v5366_v10 = vld [vmem:[#allocation4 + $0x970] sm:$0xff] }
 0x9fb   :  { %6359 = vmatpush1.bf16.msra.mxu0 %v5348_v48  ;;  %6698 = vmatpush1.bf16.msra.mxu1 %v5350_v41  ;;  %v5428_v48 = vld [vmem:[#allocation4 + $0xb60] sm:$0xff]  ;;  %v5437_v41 = vld [vmem:[#allocation4 + $0xba8] sm:$0xff] }
 0x9fc   :  { %6360 = vmatprep.subr.bf16.mxu0 %v5357_v3  ;;  %6699 = vmatprep.subr.bf16.mxu1 %v5359_v36  ;;  %v5439_v3 = vld [vmem:[#allocation4 + $0xbb8] sm:$0xff]  ;;  %v5436_v36 = vld [vmem:[#allocation4 + $0xba0] sm:$0xff] }
 0x9fe   :  { %6292 = vmatmul.mubr.bf16.gmra.mrb[168].mxu0 %v14077_v51  ;;  %6631 = vmatmul.mubr.bf16.gmra.mrb[168].mxu1 %v14077_v51  ;;  %v5383_v51 = vld [vmem:[#allocation4 + $0x9f8] sm:$0xff] }
 0x9ff   :  { %6361 = vmatpush1.bf16.msra.mxu0 %v5356_v58  ;;  %6700 = vmatpush1.bf16.msra.mxu1 %v5358_v39  ;;  %v5438_v58 = vld [vmem:[#allocation4 + $0xbb0] sm:$0xff]  ;;  %v5445_v39 = vld [vmem:[#allocation4 + $0xbe8] sm:$0xff] }
 0xa00   :  { %6362 = vmatprep.subr.bf16.mxu0 %v5365_v13  ;;  %6701 = vmatprep.subr.bf16.mxu1 %v5367_v38  ;;  %v5444_v13 = vld [vmem:[#allocation4 + $0xbe0] sm:$0xff] }
 0xa01   :  { %6301 = vmatprep.mubr.bf16.mxu0 %v14078_v1  ;;  %6640 = vmatprep.mubr.bf16.mxu1 %v14078_v1  ;;  %v5382_v1 = vld [vmem:[#allocation4 + $0x9f0] sm:$0xff] }
 0xa03   :  { %6363 = vmatpush1.bf16.msra.mxu0 %v5364_v56  ;;  %6702 = vmatpush1.bf16.msra.mxu1 %v5366_v10 }
 0xa04   :  { %6364 = vmatprep.subr.bf16.mxu0 %v5373_v62  ;;  %6703 = vmatprep.subr.bf16.mxu1 %v5375_v63 }
 0xa06   :  { %6302 = vmatmul.mubr.bf16.gmra.mrb[172].mxu0 %v14079_v8  ;;  %6641 = vmatmul.mubr.bf16.gmra.mrb[172].mxu1 %v14079_v8  ;;  %v5399_v8 = vld [vmem:[#allocation4 + $0xa78] sm:$0xff] }
 0xa07   :  { %6365 = vmatpush1.bf16.msra.mxu0 %v5372_v42  ;;  %6704 = vmatpush1.bf16.msra.mxu1 %v5374_v29 }
 0xa08   :  { %6366 = vmatprep.subr.bf16.mxu0 %v5381_v17  ;;  %6705 = vmatprep.subr.bf16.mxu1 %v5383_v51 }
 0xa09   :  { %6311 = vmatprep.mubr.bf16.mxu0 %v14080_v19  ;;  %6650 = vmatprep.mubr.bf16.mxu1 %v14080_v19  ;;  %v5398_v19 = vld [vmem:[#allocation4 + $0xa70] sm:$0xff] }
 0xa0b   :  { %6367 = vmatpush1.bf16.msra.mxu0 %v5380_v0  ;;  %6706 = vmatpush1.bf16.msra.mxu1 %v5382_v1 }
 0xa0c   :  { %6368 = vmatprep.subr.bf16.mxu0 %v5389_v53  ;;  %6707 = vmatprep.subr.bf16.mxu1 %v5391_v50 }
 0xa0e   :  { %6312 = vmatmul.mubr.bf16.gmra.mrb[176].mxu0 %v14081_v54  ;;  %6651 = vmatmul.mubr.bf16.gmra.mrb[176].mxu1 %v14081_v54  ;;  %v5415_v54 = vld [vmem:[#allocation4 + $0xaf8] sm:$0xff] }
 0xa0f   :  { %6369 = vmatpush1.bf16.msra.mxu0 %v5388_v35  ;;  %6708 = vmatpush1.bf16.msra.mxu1 %v5390_v27 }
 0xa10   :  { %6370 = vmatprep.subr.bf16.mxu0 %v5397_v11  ;;  %6709 = vmatprep.subr.bf16.mxu1 %v5399_v8 }
 0xa11   :  { %6321 = vmatprep.mubr.bf16.mxu0 %v14082_v33  ;;  %6660 = vmatprep.mubr.bf16.mxu1 %v14082_v33  ;;  %v5414_v33 = vld [vmem:[#allocation4 + $0xaf0] sm:$0xff] }
 0xa13   :  { %6371 = vmatpush1.bf16.msra.mxu0 %v5396_v46  ;;  %6710 = vmatpush1.bf16.msra.mxu1 %v5398_v19 }
 0xa14   :  { %6372 = vmatprep.subr.bf16.mxu0 %v5405_v22  ;;  %6711 = vmatprep.subr.bf16.mxu1 %v5407_v23 }
 0xa16   :  { %6322 = vmatmul.mubr.bf16.gmra.mrb[180].mxu0 %v14083_v21  ;;  %6661 = vmatmul.mubr.bf16.gmra.mrb[180].mxu1 %v14083_v21  ;;  %v5431_v21 = vld [vmem:[#allocation4 + $0xb78] sm:$0xff] }
 0xa17   :  { %6373 = vmatpush1.bf16.msra.mxu0 %v5404_v24  ;;  %6712 = vmatpush1.bf16.msra.mxu1 %v5406_v34 }
 0xa18   :  { %6374 = vmatprep.subr.bf16.mxu0 %v5413_v47  ;;  %6713 = vmatprep.subr.bf16.mxu1 %v5415_v54 }
 0xa19   :  { %6331 = vmatprep.mubr.bf16.mxu0 %v14084_v61  ;;  %6670 = vmatprep.mubr.bf16.mxu1 %v14084_v61  ;;  %v5430_v61 = vld [vmem:[#allocation4 + $0xb70] sm:$0xff] }
 0xa1b   :  { %6375 = vmatpush1.bf16.msra.mxu0 %v5412_v60  ;;  %6714 = vmatpush1.bf16.msra.mxu1 %v5414_v33 }
 0xa1c   :  { %6376 = vmatprep.subr.bf16.mxu0 %v5421_v25  ;;  %6715 = vmatprep.subr.bf16.mxu1 %v5423_v14 }
 0xa1e   :  { %6332 = vmatmul.mubr.bf16.gmra.mrb[184].mxu0 %v14085_v37  ;;  %6671 = vmatmul.mubr.bf16.gmra.mrb[184].mxu1 %v14085_v37  ;;  %v5447_v37 = vld [vmem:[#allocation4 + $0xbf8] sm:$0xff] }
 0xa1f   :  { %6377 = vmatpush1.bf16.msra.mxu0 %v5420_v57  ;;  %6716 = vmatpush1.bf16.msra.mxu1 %v5422_v44 }
 0xa20   :  { %6378 = vmatprep.subr.bf16.mxu0 %v5429_v31  ;;  %6717 = vmatprep.subr.bf16.mxu1 %v5431_v21 }
 0xa21   :  { %6341 = vmatprep.mubr.bf16.mxu0 %v14086_v4  ;;  %6680 = vmatprep.mubr.bf16.mxu1 %v14086_v4  ;;  %v5446_v4 = vld [vmem:[#allocation4 + $0xbf0] sm:$0xff] }
 0xa23   :  { %6379 = vmatpush1.bf16.msra.mxu0 %v5428_v48  ;;  %6718 = vmatpush1.bf16.msra.mxu1 %v5430_v61 }
 0xa24   :  { %6380 = vmatprep.subr.bf16.mxu0 %v5437_v41  ;;  %6719 = vmatprep.subr.bf16.mxu1 %v5439_v3 }
 0xa26   :  { %6342 = vmatmul.mubr.bf16.gmra.mrb[188].mxu0 %v14087_v7  ;;  %6681 = vmatmul.mubr.bf16.gmra.mrb[188].mxu1 %v14087_v7 }
 0xa27   :  { %6381 = vmatpush1.bf16.msra.mxu0 %v5436_v36  ;;  %6720 = vmatpush1.bf16.msra.mxu1 %v5438_v58 }
 0xa28   :  { %6382 = vmatprep.subr.bf16.mxu0 %v5445_v39  ;;  %6721 = vmatprep.subr.bf16.mxu1 %v5447_v37 }
 0xa29   :  { %6384 = vmatprep.mubr.bf16.mxu0 %v14088_v20  ;;  %6723 = vmatprep.mubr.bf16.mxu1 %v14088_v20 }
 0xa2b   :  { %6383 = vmatpush1.bf16.msra.mxu0 %v5444_v13  ;;  %6722 = vmatpush1.bf16.msra.mxu1 %v5446_v4 }
 0xa2e   :  { %6385 = vmatmul.mubr.bf16.vlgmr.msra.gmra.mrb[160].mxu0 %v14089_v2  ;;  %6724 = vmatmul.mubr.bf16.vlgmr.msra.gmra.mrb[160].mxu1 %v14089_v2 }
 0xa2f   :  { %6394 = vmatprep.mubr.bf16.mxu0 %v14090_v18  ;;  %6733 = vmatprep.mubr.bf16.mxu1 %v14090_v18 }
 0xa36   :  { %6395 = vmatmul.mubr.bf16.gmra.mrb[164].mxu0 %v14091_v26  ;;  %6734 = vmatmul.mubr.bf16.gmra.mrb[164].mxu1 %v14091_v26 }
 0xa37   :  { %6404 = vmatprep.mubr.bf16.mxu0 %v14092_v59  ;;  %6743 = vmatprep.mubr.bf16.mxu1 %v14092_v59 }
 0xa3e   :  { %6405 = vmatmul.mubr.bf16.gmra.mrb[168].mxu0 %v14093_v49  ;;  %6744 = vmatmul.mubr.bf16.gmra.mrb[168].mxu1 %v14093_v49 }
 0xa3f   :  { %6414 = vmatprep.mubr.bf16.mxu0 %v14094_v16  ;;  %6753 = vmatprep.mubr.bf16.mxu1 %v14094_v16 }
 0xa41   :  { %v5708_v7 = vpop.f32.mrb[128].mxu0  ;;  %v12638_v20 = vpop.f32.mrb[128].mxu1 }
 0xa42   :  { %v5710_v2 = vpop.f32.mrb[129].mxu0  ;;  %v12640_v18 = vpop.f32.mrb[129].mxu1  ;;  %v6804_v56 = vrot.slane %v12638_v20, 1  ;;  %v14107_v20 = vld [vmem:[#allocation68_spill] sm:$0xff] }
 0xa43   :  { %v5712_v38 = vpop.f32.mrb[130].mxu0  ;;  %v6051_v26 = vpop.f32.mrb[130].mxu1  ;;  %v6805_v63 = vrot.slane %v12640_v18, 1  ;;  %v7374_v18 = vsel %vm7335_vm0, %v12353_v28, %v12335_v40  ;;  %v14117_v28 = vld [vmem:[#allocation71_spill] sm:$0xff] }
 0xa44   :  { %v6806_v10 = vrot.slane %v6051_v26, 1  ;;  %v5714_v59 = vpop.f32.mrb[131].mxu0  ;;  %v6053_v62 = vpop.f32.mrb[131].mxu1 }
 0xa45   :  { %v6807_v49 = vrot.slane %v6053_v62, 1 }
 0xa46   :  { %v6864_v16 = vsel %vm3043_vm12, %v6804_v56, %v6806_v10  ;;  %6415 = vmatmul.mubr.bf16.gmra.mrb[172].mxu0 %v14095_v9  ;;  %6754 = vmatmul.mubr.bf16.gmra.mrb[172].mxu1 %v14095_v9 }
 0xa47   :  { %v12650_v42 = vadd.f32 %v6864_v16, %v5708_v7  ;;  %v6865_v29 = vsel %vm3043_vm12, %v6805_v63, %v6807_v49  ;;  %6424 = vmatprep.mubr.bf16.mxu0 %v14096_v32  ;;  %6763 = vmatprep.mubr.bf16.mxu1 %v14096_v32 }
 0xa48   :  { %v12658_v17 = vadd.f32 %v6865_v29, %v5710_v2 }
 0xa49   :  { %v5718_v51 = vpop.f32.mrb[132].mxu0  ;;  %v6057_v0 = vpop.f32.mrb[132].mxu1 }
 0xa4a   :  { %v6808_v1 = vrot.slane %v6057_v0, 1  ;;  %v5720_v53 = vpop.f32.mrb[133].mxu0  ;;  %v6059_v50 = vpop.f32.mrb[133].mxu1 }
 0xa4b   :  { %v6809_v35 = vrot.slane %v6059_v50, 1  ;;  %v5722_v9 = vpop.f32.mrb[134].mxu0  ;;  %v6061_v27 = vpop.f32.mrb[134].mxu1 }
 0xa4c   :  { %v6862_v11 = vsel %vm3043_vm12, %v6806_v10, %v6808_v1  ;;  %v6810_v8 = vrot.slane %v6061_v27, 1  ;;  %v5724_v46 = vpop.f32.mrb[135].mxu0  ;;  %v6063_v19 = vpop.f32.mrb[135].mxu1 }
 0xa4d   :  { %v12662_v22 = vadd.f32 %v6862_v11, %v5712_v38  ;;  %v6863_v32 = vsel %vm3043_vm12, %v6807_v49, %v6809_v35  ;;  %v6811_v23 = vrot.slane %v6063_v19, 1 }
 0xa4e   :  { %v12666_v24 = vadd.f32 %v6863_v32, %v5714_v59  ;;  %v6860_v34 = vsel %vm3043_vm12, %v6808_v1, %v6810_v8  ;;  %6425 = vmatmul.mubr.bf16.gmra.mrb[176].mxu0 %v14097_v52  ;;  %6764 = vmatmul.mubr.bf16.gmra.mrb[176].mxu1 %v14097_v52 }
 0xa4f   :  { %v12672_v47 = vadd.f32 %v6860_v34, %v5718_v51  ;;  %v6861_v54 = vsel %vm3043_vm12, %v6809_v35, %v6811_v23  ;;  %6434 = vmatprep.mubr.bf16.mxu0 %v14098_v15  ;;  %6773 = vmatprep.mubr.bf16.mxu1 %v14098_v15 }
 0xa50   :  { %v12678_v60 = vadd.f32 %v6861_v54, %v5720_v53 }
 0xa51   :  { %v5728_v33 = vpop.f32.mrb[136].mxu0  ;;  %v6067_v25 = vpop.f32.mrb[136].mxu1 }
 0xa52   :  { %v6812_v14 = vrot.slane %v6067_v25, 1  ;;  %v5730_v57 = vpop.f32.mrb[137].mxu0  ;;  %v6069_v44 = vpop.f32.mrb[137].mxu1 }
 0xa53   :  { %v6813_v31 = vrot.slane %v6069_v44, 1  ;;  %v5732_v21 = vpop.f32.mrb[138].mxu0  ;;  %v6071_v48 = vpop.f32.mrb[138].mxu1 }
 0xa54   :  { %v6858_v52 = vsel %vm3043_vm12, %v6810_v8, %v6812_v14  ;;  %v6814_v61 = vrot.slane %v6071_v48, 1  ;;  %v5734_v41 = vpop.f32.mrb[139].mxu0  ;;  %v6073_v3 = vpop.f32.mrb[139].mxu1 }
 0xa55   :  { %v12682_v36 = vadd.f32 %v6858_v52, %v5722_v9  ;;  %v6859_v15 = vsel %vm3043_vm12, %v6811_v23, %v6813_v31  ;;  %v6815_v58 = vrot.slane %v6073_v3, 1 }
 0xa56   :  { %v12686_v39 = vadd.f32 %v6859_v15, %v5724_v46  ;;  %v6856_v37 = vsel %vm3043_vm12, %v6812_v14, %v6814_v61  ;;  %6435 = vmatmul.mubr.bf16.gmra.mrb[180].mxu0 %v14099_v45  ;;  %6774 = vmatmul.mubr.bf16.gmra.mrb[180].mxu1 %v14099_v45 }
 0xa57   :  { %v12692_v13 = vadd.f32 %v6856_v37, %v5728_v33  ;;  %v6857_v4 = vsel %vm3043_vm12, %v6813_v31, %v6815_v58  ;;  %6444 = vmatprep.mubr.bf16.mxu0 %v14100_v30  ;;  %6783 = vmatprep.mubr.bf16.mxu1 %v14100_v30 }
 0xa58   :  { %v12698_v7 = vadd.f32 %v6857_v4, %v5730_v57 }
 0xa59   :  { %v5738_v2 = vpop.f32.mrb[140].mxu0  ;;  %v6077_v38 = vpop.f32.mrb[140].mxu1 }
 0xa5a   :  { %v6816_v26 = vrot.slane %v6077_v38, 1  ;;  %v5740_v10 = vpop.f32.mrb[141].mxu0  ;;  %v6079_v59 = vpop.f32.mrb[141].mxu1 }
 0xa5b   :  { %v6817_v62 = vrot.slane %v6079_v59, 1  ;;  %v5742_v49 = vpop.f32.mrb[142].mxu0  ;;  %v6081_v16 = vpop.f32.mrb[142].mxu1 }
 0xa5c   :  { %v6854_v45 = vsel %vm3043_vm12, %v6814_v61, %v6816_v26  ;;  %v6818_v29 = vrot.slane %v6081_v16, 1  ;;  %v5744_v51 = vpop.f32.mrb[143].mxu0  ;;  %v6083_v0 = vpop.f32.mrb[143].mxu1 }
 0xa5d   :  { %v12702_v1 = vadd.f32 %v6854_v45, %v5732_v21  ;;  %v6855_v30 = vsel %vm3043_vm12, %v6815_v58, %v6817_v62  ;;  %v6819_v53 = vrot.slane %v6083_v0, 1 }
 0xa5e   :  { %v12706_v50 = vadd.f32 %v6855_v30, %v5734_v41  ;;  %v6852_v35 = vsel %vm3043_vm12, %v6816_v26, %v6818_v29  ;;  %6445 = vmatmul.mubr.bf16.gmra.mrb[184].mxu0 %v14101_v55  ;;  %6784 = vmatmul.mubr.bf16.gmra.mrb[184].mxu1 %v14101_v55 }
 0xa5f   :  { %v12712_v9 = vadd.f32 %v6852_v35, %v5738_v2  ;;  %v6853_v27 = vsel %vm3043_vm12, %v6817_v62, %v6819_v53  ;;  %6454 = vmatprep.mubr.bf16.mxu0 %v14102_v12  ;;  %6793 = vmatprep.mubr.bf16.mxu1 %v14102_v12 }
 0xa60   :  { %v12718_v11 = vadd.f32 %v6853_v27, %v5740_v10 }
 0xa61   :  { %v5748_v8 = vpop.f32.mrb[144].mxu0  ;;  %v6087_v46 = vpop.f32.mrb[144].mxu1 }
 0xa62   :  { %v6820_v19 = vrot.slane %v6087_v46, 1  ;;  %v5750_v32 = vpop.f32.mrb[145].mxu0  ;;  %v6089_v23 = vpop.f32.mrb[145].mxu1 }
 0xa63   :  { %v6821_v34 = vrot.slane %v6089_v23, 1  ;;  %v5752_v54 = vpop.f32.mrb[146].mxu0  ;;  %v6091_v33 = vpop.f32.mrb[146].mxu1 }
 0xa64   :  { %v6850_v55 = vsel %vm3043_vm12, %v6818_v29, %v6820_v19  ;;  %v6822_v25 = vrot.slane %v6091_v33, 1  ;;  %v5754_v14 = vpop.f32.mrb[147].mxu0  ;;  %v6093_v57 = vpop.f32.mrb[147].mxu1 }
 0xa65   :  { %v12722_v44 = vadd.f32 %v6850_v55, %v5742_v49  ;;  %v6851_v12 = vsel %vm3043_vm12, %v6819_v53, %v6821_v34  ;;  %v6823_v31 = vrot.slane %v6093_v57, 1 }
 0xa66   :  { %v12726_v21 = vadd.f32 %v6851_v12, %v5744_v51  ;;  %v6848_v48 = vsel %vm3043_vm12, %v6820_v19, %v6822_v25  ;;  %6455 = vmatmul.mubr.bf16.gmra.mrb[188].mxu0 %v14103_v6  ;;  %6794 = vmatmul.mubr.bf16.gmra.mrb[188].mxu1 %v14103_v6 }
 0xa67   :  { %v12732_v52 = vadd.f32 %v6848_v48, %v5748_v8  ;;  %v6849_v61 = vsel %vm3043_vm12, %v6821_v34, %v6823_v31 }
 0xa68   :  { %v12736_v41 = vadd.f32 %v6849_v61, %v5750_v32 }
 0xa69   :  { %v5758_v3 = vpop.f32.mrb[148].mxu0  ;;  %v6097_v15 = vpop.f32.mrb[148].mxu1 }
 0xa6a   :  { %v6824_v58 = vrot.slane %v6097_v15, 1  ;;  %v5760_v37 = vpop.f32.mrb[149].mxu0  ;;  %v6099_v4 = vpop.f32.mrb[149].mxu1 }
 0xa6b   :  { %v6825_v2 = vrot.slane %v6099_v4, 1  ;;  %v5762_v38 = vpop.f32.mrb[150].mxu0  ;;  %v6101_v26 = vpop.f32.mrb[150].mxu1 }
 0xa6c   :  { %v6846_v10 = vsel %vm3043_vm12, %v6822_v25, %v6824_v58  ;;  %v6826_v59 = vrot.slane %v6101_v26, 1  ;;  %v5764_v6 = vpop.f32.mrb[151].mxu0  ;;  %v6103_v62 = vpop.f32.mrb[151].mxu1 }
 0xa6d   :  { %v12740_v49 = vadd.f32 %v6846_v10, %v5752_v54  ;;  %v6847_v16 = vsel %vm3043_vm12, %v6823_v31, %v6825_v2  ;;  %v6827_v45 = vrot.slane %v6103_v62, 1 }
 0xa6e   :  { %v12744_v29 = vadd.f32 %v6847_v16, %v5754_v14  ;;  %v6844_v51 = vsel %vm3043_vm12, %v6824_v58, %v6826_v59 }
 0xa6f   :  { %v12748_v0 = vadd.f32 %v6844_v51, %v5758_v3  ;;  %v6845_v30 = vsel %vm3043_vm12, %v6825_v2, %v6827_v45 }
 0xa70   :  { %v12752_v53 = vadd.f32 %v6845_v30, %v5760_v37 }
 0xa71   :  { %v5768_v35 = vpop.f32.mrb[152].mxu0  ;;  %v6107_v27 = vpop.f32.mrb[152].mxu1 }
 0xa72   :  { %v6828_v8 = vrot.slane %v6107_v27, 1  ;;  %v5770_v46 = vpop.f32.mrb[153].mxu0  ;;  %v6109_v19 = vpop.f32.mrb[153].mxu1 }
 0xa73   :  { %v6829_v32 = vrot.slane %v6109_v19, 1  ;;  %v5772_v23 = vpop.f32.mrb[154].mxu0  ;;  %v6111_v34 = vpop.f32.mrb[154].mxu1 }
 0xa74   :  { %v6842_v54 = vsel %vm3043_vm12, %v6826_v59, %v6828_v8  ;;  %v6830_v33 = vrot.slane %v6111_v34, 1  ;;  %v5774_v55 = vpop.f32.mrb[155].mxu0  ;;  %v6113_v25 = vpop.f32.mrb[155].mxu1 }
 0xa75   :  { %v12756_v14 = vadd.f32 %v6842_v54, %v5762_v38  ;;  %v6843_v57 = vsel %vm3043_vm12, %v6827_v45, %v6829_v32  ;;  %v6831_v12 = vrot.slane %v6113_v25, 1  ;;  %v14109_v25 = vld [vmem:[#allocation67_spill] sm:$0xff] }
 0xa76   :  { %v12760_v31 = vadd.f32 %v6843_v57, %v5764_v6  ;;  %v6840_v48 = vsel %vm3043_vm12, %v6828_v8, %v6830_v33  ;;  %v14110_v57 = vld [vmem:[#allocation87_spill] sm:$0xff] }
 0xa77   :  { %v12764_v61 = vadd.f32 %v6840_v48, %v5768_v35  ;;  %v6841_v3 = vsel %vm3043_vm12, %v6829_v32, %v6831_v12  ;;  %v14111_v48 = vld [vmem:[#allocation111_spill] sm:$0xff] }
 0xa78   :  { %v12768_v15 = vadd.f32 %v6841_v3, %v5770_v46  ;;  %v14112_v3 = vld [vmem:[#allocation88_spill] sm:$0xff] }
 0xa79   :  { %v5778_v58 = vpop.f32.mrb[156].mxu0  ;;  %v6117_v37 = vpop.f32.mrb[156].mxu1 }
 0xa7a   :  { %v6832_v4 = vrot.slane %v6117_v37, 1  ;;  %v5780_v2 = vpop.f32.mrb[157].mxu0  ;;  %v6119_v38 = vpop.f32.mrb[157].mxu1  ;;  %v14113_v37 = vld [vmem:[#allocation70_spill] sm:$0xff] }
 0xa7b   :  { %v6833_v26 = vrot.slane %v6119_v38, 1  ;;  %v5782_v10 = vpop.f32.mrb[158].mxu0  ;;  %v6121_v59 = vpop.f32.mrb[158].mxu1 }
 0xa7c   :  { %v6838_v6 = vsel %vm3043_vm12, %v6830_v33, %v6832_v4  ;;  %v6834_v62 = vrot.slane %v6121_v59, 1  ;;  %v5784_v16 = vpop.f32.mrb[159].mxu0  ;;  %v6123_v45 = vpop.f32.mrb[159].mxu1  ;;  %v14116_v59 = vld [vmem:[#allocation72_spill] sm:$0xff] }
 0xa7d   :  { %v12772_v51 = vadd.f32 %v6838_v6, %v5772_v23  ;;  %v6839_v30 = vsel %vm3043_vm12, %v6831_v12, %v6833_v26  ;;  %v6835_v35 = vrot.slane %v6123_v45, 1  ;;  %v7349_v12 = vsel %vm7335_vm0, %v14110_v57, %v14109_v25  ;;  %v14118_v6 = vld [vmem:[#allocation79_spill] sm:$0xff]  ;;  %v14125_v57 = vld [vmem:[#allocation74_spill] sm:$0xff] }
 0xa7e   :  { %v12776_v27 = vadd.f32 %v6839_v30, %v5774_v55  ;;  %v6836_v8 = vsel %vm3043_vm12, %v6832_v4, %v6834_v62  ;;  %v6866_v46 = vsel %vm3043_vm12, %v6834_v62, %v6804_v56  ;;  %v14108_v55 = vld [vmem:[#allocation69_spill] sm:$0xff]  ;;  %v7350_v4 = vsel %vm7337_vm2, %v14113_v37, %v7349_v12 }
 0xa7f   :  { %v12784_v19 = vadd.f32 %v6836_v8, %v5778_v58  ;;  %v12786_v32 = vadd.f32 %v6866_v46, %v5782_v10  ;;  %v6837_v23 = vsel %vm3043_vm12, %v6833_v26, %v6835_v35  ;;  %v6867_v34 = vsel %vm3043_vm12, %v6835_v35, %v6805_v63  ;;  %v14115_v26 = vld [vmem:[#allocation80_spill] sm:$0xff]  ;;  %v14120_v30 = vld [vmem:[#allocation73_spill] sm:$0xff] }
 0xa80   :  { %v12794_v54 = vadd.f32 %v6837_v23, %v5780_v2  ;;  %v12796_v33 = vadd.f32 %v6867_v34, %v5784_v16  ;;  %v7336_v56 = vsel %vm7335_vm0, %v14108_v55, %v14107_v20  ;;  %v7381_v63 = vsel %vm7335_vm0, %v14111_v48, %v12338_v5  ;;  %v14114_v2 = vld [vmem:[#allocation78_spill] sm:$0xff]  ;;  %v14119_v16 = vld [vmem:[#allocation81_spill] sm:$0xff]  ;;  %v14122_v23 = vld [vmem:[#allocation92_spill] sm:$0xff] }
 0xa81   :  { %14104 = vst [vmem:[#allocation105_spill] sm:$0xff] %v12786_v32  ;;  %v7338_v58 = vsel %vm7337_vm2, %v14112_v3, %v7336_v56  ;;  %v7375_v38 = vsel %vm7337_vm2, %v14114_v2, %v7374_v18  ;;  %v7382_v10 = vsel %vm7337_vm2, %v14115_v26, %v7381_v63  ;;  %v7351_v5 = vsel %vm7339_vm3, %v14117_v28, %v7350_v4  ;;  %v14121_v8 = vld [vmem:[#allocation89_spill] sm:$0xff]  ;;  %v14123_v20 = vld [vmem:[#allocation112_spill] sm:$0xff]  ;;  %v14124_v56 = vld [vmem:[#allocation90_spill] sm:$0xff] }
 0xa82   :  { %14105 = vst [vmem:[#allocation104_spill] sm:$0xff] %v12794_v54  ;;  %14106 = vst [vmem:[#allocation51_spill] sm:$0xff] %v12796_v33  ;;  %v7340_v40 = vsel %vm7339_vm3, %v14116_v59, %v7338_v58  ;;  %v7376_v62 = vsel %vm7339_vm3, %v14118_v6, %v7375_v38  ;;  %v7383_v45 = vsel %vm7339_vm3, %v14119_v16, %v7382_v10  ;;  %v14126_v18 = vld [vmem:[#allocation46_spill] sm:$0xff]  ;;  %v14127_v63 = vld [vmem:[#allocation76_spill] sm:$0xff] }
 0xa83   :  { %v7342_v35 = vsel %vm7341_vm4, %v14120_v30, %v7340_v40  ;;  %v7352_v46 = vsel %vm7341_vm4, %v14121_v8, %v7351_v5  ;;  %v7377_v34 = vsel %vm7341_vm4, %v14122_v23, %v7376_v62  ;;  %v7384_v55 = vsel %vm7341_vm4, %v14123_v20, %v7383_v45  ;;  %v14128_v58 = vld [vmem:[#allocation75_spill] sm:$0xff]  ;;  %v14129_v4 = vld [vmem:[#allocation122_spill] sm:$0xff]  ;;  %v14130_v38 = vld [vmem:[#allocation121_spill] sm:$0xff] }
 0xa84   :  { %v7344_v25 = vsel %vm7343_vm6, %v14124_v56, %v7342_v35  ;;  %v7353_v12 = vsel %vm7343_vm6, %v14125_v57, %v7352_v46  ;;  %v7378_v48 = vsel %vm7343_vm6, %v14126_v18, %v7377_v34  ;;  %v7385_v26 = vsel %vm7343_vm6, %v14130_v38, %v7384_v55  ;;  %v14131_v10 = vld [vmem:[#allocation77_spill] sm:$0xff]  ;;  %v14133_v40 = vld [vmem:[#allocation91_spill] sm:$0xff]  ;;  %v14135_v5 = vld [vmem:[#allocation124_spill] sm:$0xff] }
 0xa85   :  { %v7346_v3 = vsel %vm7345_vm7, %v14127_v63, %v7344_v25  ;;  %v7354_v37 = vsel %vm7345_vm7, %v14128_v58, %v7353_v12  ;;  %v7379_v2 = vsel %vm7345_vm7, %v14129_v4, %v7378_v48  ;;  %v14137_v62 = vld [vmem:[#allocation123_spill] sm:$0xff]  ;;  %v14138_v45 = vld [vmem:[#allocation125_spill] sm:$0xff] }
 0xa86   :  { %v12850_v59 = vsel %vm7347_vm8, %v14131_v10, %v7346_v3  ;;  %v12854_v28 = vsel %vm7347_vm8, %v14133_v40, %v7354_v37  ;;  %v12858_v6 = vsel %vm7347_vm8, %v14135_v5, %v7379_v2  ;;  %v7386_v16 = vsel %vm7345_vm7, %v14137_v62, %v7385_v26  ;;  %v7093_v55 = vld [vmem:[#allocation16 + $0x4] sm:$0x3]  ;;  %v14143_v26 = vld [vmem:[#allocation113_spill] sm:$0xff] }
 0xa87   :  { %14132 = vst [vmem:[#allocation52_spill] sm:$0xff] %v12850_v59  ;;  %14134 = vst [vmem:[#allocation55_spill] sm:$0xff] %v12854_v28  ;;  %v12864_v30 = vsel %vm7347_vm8, %v14138_v45, %v7386_v16  ;;  %v12889_v10 = vrot.slane %v7093_v55, %v14143_v26  ;;  %v14144_v16 = vld [vmem:[#allocation114_spill] sm:$0xff]  ;;  %v14145_v26 = vld [vmem:[#allocation47_spill] sm:$0xff] }
 0xa88   :  { %14136 = vst [vmem:[#allocation56_spill] sm:$0xff] %v12858_v6  ;;  %14139 = vst [vmem:[#allocation59_spill] sm:$0xff] %v12864_v30  ;;  %v12901_v45 = vrot.slane %v7093_v55, %v14144_v16  ;;  %vm7170_vm10 = vcmp.le.s32.totalorder %v14145_v26, 12 }
 0xb01   :  { %v12866_v35 = vpop.f32.mrb[160].mxu0  ;;  %v12868_v8 = vpop.f32.mrb[160].mxu1 }
 0xb02   :  { %14140 = vst [vmem:[#allocation60_spill] sm:$0xff] %v12868_v8  ;;  %v12870_v46 = vpop.f32.mrb[161].mxu0  ;;  %v12872_v23 = vpop.f32.mrb[161].mxu1  ;;  %v13677_v56 = vrot.slane %v12866_v35, 2  ;;  %v13676_v25 = vrot.slane %v12868_v8, 3 }
 0xb03   :  { %14141 = vst [vmem:[#allocation63_spill] sm:$0xff] %v12870_v46  ;;  %14142 = vst [vmem:[#allocation64_spill] sm:$0xff] %v12872_v23  ;;  %v6390_v34 = vpop.f32.mrb[162].mxu0  ;;  %v6729_v20 = vpop.f32.mrb[162].mxu1  ;;  %v13678_v63 = vrot.slane %v12870_v46, 2  ;;  %v13681_v3 = vrot.slane %v12872_v23, 3 }
 0xb04   :  { %v6902_v57 = vrot.slane %v6390_v34, 2  ;;  %v6998_v12 = vrot.slane %v6729_v20, 3  ;;  %v6392_v18 = vpop.f32.mrb[163].mxu0  ;;  %v6731_v48 = vpop.f32.mrb[163].mxu1 }
 0xb05   :  { %v6903_v58 = vrot.slane %v6392_v18, 2  ;;  %v6999_v37 = vrot.slane %v6731_v48, 3 }
 0xb06   :  { %v6960_v4 = vsel %vm4770_vm13, %v13677_v56, %v6902_v57  ;;  %v7057_v2 = vsel %vm7028_vm9, %v13676_v25, %v6998_v12 }
 0xb07   :  { %v6964_v38 = vadd.f32 %v6960_v4, %v12650_v42  ;;  %v6961_v40 = vsel %vm4770_vm13, %v13678_v63, %v6903_v58  ;;  %v7058_v5 = vsel %vm7028_vm9, %v13681_v3, %v6999_v37 }
 0xb08   :  { %v6965_v62 = vadd.f32 %v6961_v40, %v12658_v17 }
 0xb09   :  { %v7061_v34 = vadd.f32 %v7057_v2, %v6964_v38  ;;  %v6396_v42 = vpop.f32.mrb[164].mxu0  ;;  %v6735_v20 = vpop.f32.mrb[164].mxu1 }
 0xb0a   :  { %v7062_v18 = vadd.f32 %v7058_v5, %v6965_v62  ;;  %v6904_v48 = vrot.slane %v6396_v42, 2  ;;  %v7000_v4 = vrot.slane %v6735_v20, 3  ;;  %v6398_v25 = vpop.f32.mrb[165].mxu0  ;;  %v6737_v56 = vpop.f32.mrb[165].mxu1 }
 0xb0b   :  { %v7105_v63 = vadd.f32 %v12889_v10, %v7061_v34  ;;  %v6905_v6 = vrot.slane %v6398_v25, 2  ;;  %v7001_v30 = vrot.slane %v6737_v56, 3  ;;  %v6400_v3 = vpop.f32.mrb[166].mxu0  ;;  %v6739_v59 = vpop.f32.mrb[166].mxu1  ;;  %v14146_v25 = vmov 0.0  }
 0xb0c   :  { %v7106_v17 = vadd.f32 %v12901_v45, %v7062_v18  ;;  %v6958_v55 = vsel %vm4770_vm13, %v6902_v57, %v6904_v48  ;;  %v7055_v2 = vsel %vm7028_vm9, %v6998_v12, %v7000_v4  ;;  %v6906_v38 = vrot.slane %v6400_v3, 2  ;;  %v6402_v40 = vpop.f32.mrb[167].mxu0  ;;  %v6741_v5 = vpop.f32.mrb[167].mxu1 }
 0xb0d   :  { %v6966_v62 = vadd.f32 %v6958_v55, %v12662_v22  ;;  %v6959_v26 = vsel %vm4770_vm13, %v6903_v58, %v6905_v6  ;;  %v7056_v56 = vsel %vm7028_vm9, %v6999_v37, %v7001_v30  ;;  %v12916_v34 = vsel %vm7170_vm10, 1.0, %v14146_v25 }
 0xb0e   :  { %v6967_v42 = vadd.f32 %v6959_v26, %v12666_v24  ;;  %v6956_v57 = vsel %vm4770_vm13, %v6904_v48, %v6906_v38  ;;  %v7002_v12 = vrot.slane %v6739_v59, 3  ;;  %v6907_v18 = vrot.slane %v6402_v40, 2 }
 0xb0f   :  { %v7063_v3 = vadd.f32 %v7055_v2, %v6966_v62  ;;  %v6968_v20 = vadd.f32 %v6956_v57, %v12672_v47  ;;  %v7003_v22 = vrot.slane %v6741_v5, 3  ;;  %v7137_v55 = vmax.f32 %v7105_v63, 0.0 }
 0xb10   :  { %v7138_v16 = vmax.f32 %v7106_v17, 0.0  ;;  %v7064_v58 = vadd.f32 %v7056_v56, %v6967_v42  ;;  %v7053_v37 = vsel %vm7028_vm9, %v7000_v4, %v7002_v12  ;;  %v6957_v24 = vsel %vm4770_vm13, %v6905_v6, %v6907_v18 }
 0xb11   :  { %v7107_v25 = vadd.f32 %v12889_v10, %v7063_v3  ;;  %v7065_v28 = vadd.f32 %v7053_v37, %v6968_v20  ;;  %v7054_v59 = vsel %vm7028_vm9, %v7001_v30, %v7003_v22  ;;  %v6406_v48 = vpop.f32.mrb[168].mxu0  ;;  %v6745_v2 = vpop.f32.mrb[168].mxu1  ;;  %v6969_v63 = vadd.f32 %v6957_v24, %v12678_v60 }
 0xb12   :  { %v7108_v47 = vadd.f32 %v12901_v45, %v7064_v58  ;;  %v6908_v17 = vrot.slane %v6406_v48, 2  ;;  %v7004_v40 = vrot.slane %v6745_v2, 3  ;;  %v6408_v5 = vpop.f32.mrb[169].mxu0  ;;  %v6747_v62 = vpop.f32.mrb[169].mxu1 }
 0xb13   :  { %v7139_v4 = vmax.f32 %v7107_v25, 0.0  ;;  %v7109_v26 = vadd.f32 %v12889_v10, %v7065_v28  ;;  %v6909_v56 = vrot.slane %v6408_v5, 2  ;;  %v7005_v42 = vrot.slane %v6747_v62, 3  ;;  %v6410_v57 = vpop.f32.mrb[170].mxu0  ;;  %v6749_v6 = vpop.f32.mrb[170].mxu1 }
 0xb14   :  { %v7140_v3 = vmax.f32 %v7108_v47, 0.0  ;;  %v7066_v20 = vadd.f32 %v7054_v59, %v6969_v63  ;;  %v6954_v30 = vsel %vm4770_vm13, %v6906_v38, %v6908_v17  ;;  %v7051_v58 = vsel %vm7028_vm9, %v7002_v12, %v7004_v40  ;;  %v12936_v60 = vpop.f32.mrb[171].mxu0  ;;  %v12938_v37 = vpop.f32.mrb[171].mxu1 }
 0xb15   :  { %v7177_v25 = vmul.f32 %v12916_v34, %v7139_v4  ;;  %v7141_v24 = vmax.f32 %v7109_v26, 0.0  ;;  %v6970_v28 = vadd.f32 %v6954_v30, %v12682_v36  ;;  %v6955_v48 = vsel %vm4770_vm13, %v6907_v18, %v6909_v56 }
 0xb16   :  { %v7178_v59 = vmul.f32 %v12916_v34, %v7140_v3  ;;  %v7110_v2 = vadd.f32 %v12901_v45, %v7066_v20  ;;  %v6971_v38 = vadd.f32 %v6955_v48, %v12686_v39  ;;  %v7052_v12 = vsel %vm7028_vm9, %v7003_v22, %v7005_v42 }
 0xb17   :  { %v7207_v47 = vmax.f32 %v7137_v55, %v7177_v25  ;;  %v7067_v63 = vadd.f32 %v7051_v58, %v6970_v28  ;;  %v6910_v5 = vrot.slane %v6410_v57, 2  ;;  %v7006_v62 = vrot.slane %v6749_v6, 3 }
 0xb18   :  { %v7214_v4 = vmax.f32 %v7138_v16, %v7178_v59  ;;  %v7142_v26 = vmax.f32 %v7110_v2, 0.0  ;;  %v7068_v23 = vadd.f32 %v7052_v12, %v6971_v38  ;;  %v6911_v36 = vrot.slane %v12936_v60, 2 }
 0xb19   :  { %v7208_v30 = vrot.slane %v7207_v47, 4  ;;  %v7111_v18 = vadd.f32 %v12889_v10, %v7067_v63  ;;  %v6952_v3 = vsel %vm4770_vm13, %v6908_v17, %v6910_v5  ;;  %v7049_v39 = vsel %vm7028_vm9, %v7004_v40, %v7006_v62  ;;  %v12955_v20 = vpop.f32.mrb[172].mxu0  ;;  %v12957_v22 = vpop.f32.mrb[172].mxu1 }
 0xb1a   :  { %v7215_v55 = vrot.slane %v7214_v4, 4  ;;  %v7112_v16 = vadd.f32 %v12901_v45, %v7068_v23  ;;  %v6972_v57 = vadd.f32 %v6952_v3, %v12692_v13  ;;  %v6953_v6 = vsel %vm4770_vm13, %v6909_v56, %v6911_v36  ;;  %v12963_v58 = vpop.f32.mrb[173].mxu0  ;;  %v12965_v60 = vpop.f32.mrb[173].mxu1 }
 0xb1b   :  { %v7209_v17 = vmax.f32 %v7207_v47, %v7208_v30  ;;  %v7143_v25 = vmax.f32 %v7111_v18, 0.0  ;;  %v6973_v40 = vadd.f32 %v6953_v6, %v12698_v7  ;;  %v7007_v28 = vrot.slane %v12938_v37, 3  ;;  %v12969_v48 = vpop.f32.mrb[174].mxu0  ;;  %v12971_v59 = vpop.f32.mrb[174].mxu1 }
 0xb1c   :  { %v7216_v23 = vmax.f32 %v7214_v4, %v7215_v55  ;;  %v7144_v2 = vmax.f32 %v7112_v16, 0.0  ;;  %v7069_v13 = vadd.f32 %v7049_v39, %v6972_v57  ;;  %v6912_v38 = vrot.slane %v12955_v20, 2  ;;  %v12974_v56 = vpop.f32.mrb[175].mxu0  ;;  %v12976_v12 = vpop.f32.mrb[175].mxu1 }
 0xb1d   :  { %v7210_v63 = vrot.slane %v7209_v17, 2  ;;  %v7181_v47 = vmul.f32 %v12916_v34, %v7143_v25  ;;  %v7050_v7 = vsel %vm7028_vm9, %v7005_v42, %v7007_v28  ;;  %v7008_v37 = vrot.slane %v12957_v22, 3 }
 0xb1e   :  { %v7217_v30 = vrot.slane %v7216_v23, 2  ;;  %v7182_v18 = vmul.f32 %v12916_v34, %v7144_v2  ;;  %v12984_v4 = vadd.f32 %v12889_v10, %v7069_v13  ;;  %v7070_v3 = vadd.f32 %v7050_v7, %v6973_v40 }
 0xb1f   :  { %v7211_v39 = vmax.f32 %v7209_v17, %v7210_v63  ;;  %v7221_v20 = vmax.f32 %v7141_v24, %v7181_v47  ;;  %v6950_v55 = vsel %vm4770_vm13, %v6910_v5, %v6912_v38  ;;  %v7047_v16 = vsel %vm7028_vm9, %v7006_v62, %v7008_v37 }
 0xb20   :  { %v7218_v57 = vmax.f32 %v7216_v23, %v7217_v30  ;;  %v7228_v6 = vmax.f32 %v7142_v26, %v7182_v18  ;;  %v7145_v42 = vmax.f32 %v12984_v4, 0.0  ;;  %v12992_v22 = vadd.f32 %v12901_v45, %v7070_v3 }
 0xb21   :  { %v7212_v25 = vrot.slane %v7211_v39, 1  ;;  %v7222_v2 = vrot.slane %v7221_v20, 4  ;;  %v6974_v13 = vadd.f32 %v6950_v55, %v12702_v1  ;;  %v6913_v17 = vrot.slane %v12963_v58, 2  ;;  %v12996_v24 = vpop.f32.mrb[176].mxu0  ;;  %v12998_v40 = vpop.f32.mrb[176].mxu1 }
 0xb22   :  { %v7219_v5 = vrot.slane %v7218_v57, 1  ;;  %v7229_v63 = vrot.slane %v7228_v6, 4  ;;  %v7146_v62 = vmax.f32 %v12992_v22, 0.0  ;;  %v7009_v26 = vrot.slane %v12965_v60, 3  ;;  %v13002_v23 = vpop.f32.mrb[177].mxu0  ;;  %v13004_v47 = vpop.f32.mrb[177].mxu1 }
 0xb23   :  { %v7213_v7 = vmax.f32 %v7211_v39, %v7212_v25  ;;  %v7223_v30 = vmax.f32 %v7221_v20, %v7222_v2  ;;  %v7071_v18 = vadd.f32 %v7047_v16, %v6974_v13  ;;  %v6951_v1 = vsel %vm4770_vm13, %v6911_v36, %v6913_v17  ;;  %v13008_v58 = vpop.f32.mrb[178].mxu0  ;;  %v13010_v4 = vpop.f32.mrb[178].mxu1 }
 0xb24   :  { %v7220_v3 = vmax.f32 %v7218_v57, %v7219_v5  ;;  %v7230_v55 = vmax.f32 %v7228_v6, %v7229_v63  ;;  %v6975_v22 = vadd.f32 %v6951_v1, %v12706_v50  ;;  %v7048_v60 = vsel %vm7028_vm9, %v7007_v28, %v7009_v26  ;;  %v13015_v33 = vpop.f32.mrb[179].mxu0  ;;  %v13017_v54 = vpop.f32.mrb[179].mxu1 }
 0xb25   :  { %v7224_v39 = vrot.slane %v7223_v30, 2  ;;  %v7115_v20 = vadd.f32 %v12889_v10, %v7071_v18  ;;  %v6914_v36 = vrot.slane %v12969_v48, 2  ;;  %v7010_v16 = vrot.slane %v12971_v59, 3 }
 0xb26   :  { %v7231_v25 = vrot.slane %v7230_v55, 2  ;;  %v7072_v2 = vadd.f32 %v7048_v60, %v6975_v22  ;;  %v6915_v57 = vrot.slane %v12974_v56, 2  ;;  %v7011_v50 = vrot.slane %v12976_v12, 3 }
 0xb27   :  { %v7225_v6 = vmax.f32 %v7223_v30, %v7224_v39  ;;  %v7147_v13 = vmax.f32 %v7115_v20, 0.0  ;;  %v6948_v28 = vsel %vm4770_vm13, %v6912_v38, %v6914_v36  ;;  %v7045_v5 = vsel %vm7028_vm9, %v7008_v37, %v7010_v16 }
 0xb28   :  { %v7232_v63 = vmax.f32 %v7230_v55, %v7231_v25  ;;  %v7116_v18 = vadd.f32 %v12901_v45, %v7072_v2  ;;  %v6976_v48 = vadd.f32 %v6948_v28, %v12712_v9  ;;  %v6949_v59 = vsel %vm4770_vm13, %v6913_v17, %v6915_v57 }
 0xb29   :  { %v7226_v1 = vrot.slane %v7225_v6, 1  ;;  %v7185_v56 = vmul.f32 %v12916_v34, %v7147_v13  ;;  %v6977_v12 = vadd.f32 %v6949_v59, %v12718_v11  ;;  %v7046_v30 = vsel %vm7028_vm9, %v7009_v26, %v7011_v50  ;;  %v13036_v38 = vpop.f32.mrb[180].mxu0  ;;  %v13038_v22 = vpop.f32.mrb[180].mxu1 }
 0xb2a   :  { %v7233_v37 = vrot.slane %v7232_v63, 1  ;;  %v7148_v55 = vmax.f32 %v7116_v18, 0.0  ;;  %v7073_v60 = vadd.f32 %v7045_v5, %v6976_v48  ;;  %v6916_v9 = vrot.slane %v12996_v24, 2  ;;  %v13041_v39 = vpop.f32.mrb[181].mxu0  ;;  %v13043_v17 = vpop.f32.mrb[181].mxu1 }
 0xb2b   :  { %v7227_v20 = vmax.f32 %v7225_v6, %v7226_v1  ;;  %v7235_v25 = vmax.f32 %v7145_v42, %v7185_v56  ;;  %v7074_v2 = vadd.f32 %v7046_v30, %v6977_v12  ;;  %v7012_v11 = vrot.slane %v12998_v40, 3  ;;  %v13046_v13 = vpop.f32.mrb[182].mxu0  ;;  %v13048_v26 = vpop.f32.mrb[182].mxu1 }
 0xb2c   :  { %v7234_v28 = vmax.f32 %v7232_v63, %v7233_v37  ;;  %v7186_v59 = vmul.f32 %v12916_v34, %v7148_v55  ;;  %v7117_v5 = vadd.f32 %v12889_v10, %v7073_v60  ;;  %v6946_v24 = vsel %vm4770_vm13, %v6914_v36, %v6916_v9  ;;  %v13054_v18 = vpop.f32.mrb[183].mxu0  ;;  %v13056_v48 = vpop.f32.mrb[183].mxu1 }
 0xb2d   :  { %v7406_v42 = vsel %vm7335_vm0, %v7227_v20, %v7213_v7  ;;  %v7236_v6 = vrot.slane %v7235_v25, 4  ;;  %v13060_v40 = vadd.f32 %v12901_v45, %v7074_v2  ;;  %v6978_v1 = vadd.f32 %v6946_v24, %v12722_v44 }
 0xb2e   :  { %v13064_v63 = vsel %vm7335_vm0, %v7234_v28, %v7220_v3  ;;  %v7242_v56 = vmax.f32 %v7146_v62, %v7186_v59  ;;  %v7149_v12 = vmax.f32 %v7117_v5, 0.0  ;;  %v7043_v36 = vsel %vm7028_vm9, %v7010_v16, %v7012_v11 }
 0xb2f   :  { %v7237_v30 = vmax.f32 %v7235_v25, %v7236_v6  ;;  %v7075_v55 = vadd.f32 %v7043_v36, %v6978_v1  ;;  %v6917_v7 = vrot.slane %v13002_v23, 2  ;;  %v7013_v20 = vrot.slane %v13004_v47, 3 }
 0xb30   :  { %v7243_v60 = vrot.slane %v7242_v56, 4  ;;  %v6918_v2 = vrot.slane %v13008_v58, 2  ;;  %v7014_v44 = vrot.slane %v13010_v4, 3  ;;  %v13685_v16 = vrot.slane %v13015_v33, 2 }
 0xb31   :  { %v7238_v3 = vrot.slane %v7237_v30, 2  ;;  %v7119_v62 = vadd.f32 %v12889_v10, %v7075_v55  ;;  %v6947_v28 = vsel %vm4770_vm13, %v6915_v57, %v6917_v7  ;;  %v13077_v25 = vpop.f32.mrb[184].mxu0  ;;  %v13079_v59 = vpop.f32.mrb[184].mxu1  ;;  %v7044_v47 = vsel %vm7028_vm9, %v7011_v50, %v7013_v20 }
 0xb32   :  { %v7244_v23 = vmax.f32 %v7242_v56, %v7243_v60  ;;  %v6979_v5 = vadd.f32 %v6947_v28, %v12726_v21  ;;  %v6944_v58 = vsel %vm4770_vm13, %v6916_v9, %v6918_v2  ;;  %v13086_v4 = vpop.f32.mrb[185].mxu0  ;;  %v13088_v24 = vpop.f32.mrb[185].mxu1  ;;  %v7041_v36 = vsel %vm7028_vm9, %v7012_v11, %v7014_v44 }
 0xb33   :  { %v7239_v57 = vmax.f32 %v7237_v30, %v7238_v3  ;;  %v7151_v6 = vmax.f32 %v7119_v62, 0.0  ;;  %v6980_v1 = vadd.f32 %v6944_v58, %v12732_v52  ;;  %v13093_v56 = vpop.f32.mrb[186].mxu0  ;;  %v13095_v21 = vpop.f32.mrb[186].mxu1  ;;  %v6945_v9 = vsel %vm4770_vm13, %v6917_v7, %v13685_v16 }
 0xb34   :  { %v7245_v55 = vrot.slane %v7244_v23, 2  ;;  %v7076_v50 = vadd.f32 %v7044_v47, %v6979_v5  ;;  %v7015_v60 = vrot.slane %v13017_v54, 3  ;;  %v13102_v30 = vpop.f32.mrb[187].mxu0  ;;  %v13104_v3 = vpop.f32.mrb[187].mxu1  ;;  %v6981_v28 = vadd.f32 %v6945_v9, %v12736_v41 }
 0xb35   :  { %v7240_v52 = vrot.slane %v7239_v57, 1  ;;  %v7189_v11 = vmul.f32 %v12916_v34, %v7151_v6  ;;  %v7077_v62 = vadd.f32 %v7041_v36, %v6980_v1  ;;  %v6920_v7 = vrot.slane %v13036_v38, 2 }
 0xb36   :  { %v7246_v58 = vmax.f32 %v7244_v23, %v7245_v55  ;;  %v7120_v5 = vadd.f32 %v12901_v45, %v7076_v50  ;;  %v7042_v47 = vsel %vm7028_vm9, %v7013_v20, %v7015_v60  ;;  %v7016_v41 = vrot.slane %v13038_v22, 3 }
 0xb37   :  { %v7241_v16 = vmax.f32 %v7239_v57, %v7240_v52  ;;  %v7249_v54 = vmax.f32 %v7149_v12, %v7189_v11  ;;  %v7121_v37 = vadd.f32 %v12889_v10, %v7077_v62  ;;  %v7078_v46 = vadd.f32 %v7042_v47, %v6981_v28 }
 0xb38   :  { %v7247_v8 = vrot.slane %v7246_v58, 1  ;;  %v7152_v32 = vmax.f32 %v7120_v5, 0.0  ;;  %v6942_v6 = vsel %vm4770_vm13, %v6918_v2, %v6920_v7  ;;  %v7039_v2 = vsel %vm7028_vm9, %v7014_v44, %v7016_v41 }
 0xb39   :  { %v7407_v23 = vsel %vm7337_vm2, %v7241_v16, %v7406_v42  ;;  %v7250_v1 = vrot.slane %v7249_v54, 4  ;;  %v7153_v36 = vmax.f32 %v7121_v37, 0.0  ;;  %v13118_v20 = vadd.f32 %v12901_v45, %v7078_v46  ;;  %v13120_v38 = vpop.f32.mrb[188].mxu0  ;;  %v13122_v12 = vpop.f32.mrb[188].mxu1 }
 0xb3a   :  { %v7248_v57 = vmax.f32 %v7246_v58, %v7247_v8  ;;  %v7190_v55 = vmul.f32 %v12916_v34, %v7152_v32  ;;  %v6982_v50 = vadd.f32 %v6942_v6, %v12740_v49  ;;  %v13128_v22 = vpop.f32.mrb[189].mxu0  ;;  %v13130_v42 = vpop.f32.mrb[189].mxu1  ;;  %v6921_v16 = vrot.slane %v13041_v39, 2 }
 0xb3b   :  { %v7251_v37 = vmax.f32 %v7249_v54, %v7250_v1  ;;  %v7154_v46 = vmax.f32 %v13118_v20, 0.0  ;;  %v7017_v9 = vrot.slane %v13043_v17, 3  ;;  %v13135_v52 = vpop.f32.mrb[190].mxu0  ;;  %v13137_v8 = vpop.f32.mrb[190].mxu1  ;;  %v14147_v32 = vmax.f32 %v13060_v40, 0.0 }
 0xb3c   :  { %v7414_v49 = vsel %vm7337_vm2, %v7248_v57, %v13064_v63  ;;  %v7079_v11 = vadd.f32 %v7039_v2, %v6982_v50  ;;  %v6922_v62 = vrot.slane %v13046_v13, 2  ;;  %v13144_v28 = vpop.f32.mrb[191].mxu0  ;;  %v13146_v58 = vpop.f32.mrb[191].mxu1  ;;  %v14148_v17 = vrot.slane %v13015_v33, 2 }
 0xb3d   :  { %v7256_v44 = vmax.f32 %v14147_v32, %v7190_v55  ;;  %v7252_v39 = vrot.slane %v7251_v37, 2  ;;  %v7040_v47 = vsel %vm7028_vm9, %v7015_v60, %v7017_v9  ;;  %v7018_v63 = vrot.slane %v13048_v26, 3 }
 0xb3e   :  { %v6943_v5 = vsel %vm4770_vm13, %v14148_v17, %v6921_v16  ;;  %v7123_v54 = vadd.f32 %v12889_v10, %v7079_v11  ;;  %v6940_v6 = vsel %vm4770_vm13, %v6920_v7, %v6922_v62  ;;  %v6923_v57 = vrot.slane %v13054_v18, 2 }
 0xb3f   :  { %v7257_v40 = vrot.slane %v7256_v44, 4  ;;  %v6983_v13 = vadd.f32 %v6943_v5, %v12744_v29  ;;  %v7253_v1 = vmax.f32 %v7251_v37, %v7252_v39  ;;  %v6984_v20 = vadd.f32 %v6940_v6, %v12748_v0 }
 0xb40   :  { %v7037_v33 = vsel %vm7028_vm9, %v7016_v41, %v7018_v63  ;;  %v7155_v60 = vmax.f32 %v7123_v54, 0.0  ;;  %v7019_v26 = vrot.slane %v13056_v48, 3  ;;  %v6941_v29 = vsel %vm4770_vm13, %v6921_v16, %v6923_v57 }
 0xb41   :  { %v7258_v55 = vmax.f32 %v7256_v44, %v7257_v40  ;;  %v7080_v50 = vadd.f32 %v7040_v47, %v6983_v13  ;;  %v7254_v2 = vrot.slane %v7253_v1, 1  ;;  %v7081_v32 = vadd.f32 %v7037_v33, %v6984_v20 }
 0xb42   :  { %v6924_v7 = vrot.slane %v13077_v25, 2  ;;  %v7193_v0 = vmul.f32 %v12916_v34, %v7155_v60  ;;  %v6985_v41 = vadd.f32 %v6941_v29, %v12752_v53  ;;  %v7038_v48 = vsel %vm7028_vm9, %v7017_v9, %v7019_v26 }
 0xb43   :  { %v7259_v37 = vrot.slane %v7258_v55, 2  ;;  %v7124_v11 = vadd.f32 %v12901_v45, %v7080_v50  ;;  %v7255_v18 = vmax.f32 %v7253_v1, %v7254_v2  ;;  %v7125_v44 = vadd.f32 %v12889_v10, %v7081_v32 }
 0xb44   :  { %v6938_v39 = vsel %vm4770_vm13, %v6922_v62, %v6924_v7  ;;  %v7263_v16 = vmax.f32 %v7153_v36, %v7193_v0  ;;  %v7082_v25 = vadd.f32 %v7038_v48, %v6985_v41  ;;  %v7020_v53 = vrot.slane %v13079_v59, 3 }
 0xb45   :  { %v7260_v17 = vmax.f32 %v7258_v55, %v7259_v37  ;;  %v7156_v5 = vmax.f32 %v7124_v11, 0.0  ;;  %v7408_v47 = vsel %vm7339_vm3, %v7255_v18, %v7407_v23  ;;  %v7157_v40 = vmax.f32 %v7125_v44, 0.0 }
 0xb46   :  { %v6986_v54 = vadd.f32 %v6938_v39, %v12756_v14  ;;  %v7264_v6 = vrot.slane %v7263_v16, 4  ;;  %v7126_v9 = vadd.f32 %v12901_v45, %v7082_v25  ;;  %v7035_v62 = vsel %vm7028_vm9, %v7018_v63, %v7020_v53 }
 0xb47   :  { %v7261_v13 = vrot.slane %v7260_v17, 1  ;;  %v7194_v1 = vmul.f32 %v12916_v34, %v7156_v5  ;;  %v6925_v36 = vrot.slane %v13086_v4, 2  ;;  %v7021_v20 = vrot.slane %v13088_v24, 3 }
 0xb48   :  { %v6926_v23 = vrot.slane %v13093_v56, 2  ;;  %v7265_v55 = vmax.f32 %v7263_v16, %v7264_v6  ;;  %v7158_v60 = vmax.f32 %v7126_v9, 0.0  ;;  %v7083_v59 = vadd.f32 %v7035_v62, %v6986_v54 }
 0xb49   :  { %v7262_v33 = vmax.f32 %v7260_v17, %v7261_v13  ;;  %v7270_v14 = vmax.f32 %v7154_v46, %v7194_v1  ;;  %v6939_v50 = vsel %vm4770_vm13, %v6923_v57, %v6925_v36  ;;  %v7036_v2 = vsel %vm7028_vm9, %v7019_v26, %v7021_v20 }
 0xb4a   :  { %v6936_v63 = vsel %vm4770_vm13, %v6924_v7, %v6926_v23  ;;  %v7266_v32 = vrot.slane %v7265_v55, 2  ;;  %v6987_v56 = vadd.f32 %v6939_v50, %v12760_v31  ;;  %v7127_v29 = vadd.f32 %v12889_v10, %v7083_v59 }
 0xb4b   :  { %v7415_v4 = vsel %vm7339_vm3, %v7262_v33, %v7414_v49  ;;  %v7271_v24 = vrot.slane %v7270_v14, 4  ;;  %v6988_v46 = vadd.f32 %v6936_v63, %v12764_v61  ;;  %v7022_v37 = vrot.slane %v13095_v21, 3 }
 0xb4c   :  { %v6927_v57 = vrot.slane %v13102_v30, 2  ;;  %v7267_v0 = vmax.f32 %v7265_v55, %v7266_v32  ;;  %v7084_v26 = vadd.f32 %v7036_v2, %v6987_v56  ;;  %v7023_v41 = vrot.slane %v13104_v3, 3 }
 0xb4d   :  { %v7272_v11 = vmax.f32 %v7270_v14, %v7271_v24  ;;  %v7159_v7 = vmax.f32 %v7127_v29, 0.0  ;;  %v7033_v49 = vsel %vm7028_vm9, %v7020_v53, %v7022_v37  ;;  %v6928_v18 = vrot.slane %v13120_v38, 2 }
 0xb4e   :  { %v6937_v31 = vsel %vm4770_vm13, %v6925_v36, %v6927_v57  ;;  %v7268_v44 = vrot.slane %v7267_v0, 1  ;;  %v7128_v21 = vadd.f32 %v12901_v45, %v7084_v26  ;;  %v7085_v48 = vadd.f32 %v7033_v49, %v6988_v46 }
 0xb4f   :  { %v7273_v61 = vrot.slane %v7272_v11, 2  ;;  %v7197_v30 = vmul.f32 %v12916_v34, %v7159_v7  ;;  %v6989_v39 = vadd.f32 %v6937_v31, %v12768_v15  ;;  %v7034_v3 = vsel %vm7028_vm9, %v7021_v20, %v7023_v41 }
 0xb50   :  { %v6934_v17 = vsel %vm4770_vm13, %v6926_v23, %v6928_v18  ;;  %v7269_v16 = vmax.f32 %v7267_v0, %v7268_v44  ;;  %v7160_v25 = vmax.f32 %v7128_v21, 0.0  ;;  %v7129_v38 = vadd.f32 %v12889_v10, %v7085_v48  ;;  %v14150_v0 = vld [vmem:[#allocation105_spill] sm:$0xff]  ;;  %v14151_v44 = vld [vmem:[#allocation60_spill] sm:$0xff] }
 0xb51   :  { %v7274_v5 = vmax.f32 %v7272_v11, %v7273_v61  ;;  %v7277_v54 = vmax.f32 %v7157_v40, %v7197_v30  ;;  %v7086_v53 = vadd.f32 %v7034_v3, %v6989_v39  ;;  %v6990_v13 = vadd.f32 %v6934_v17, %v12772_v51  ;;  %v14153_v17 = vld [vmem:[#allocation63_spill] sm:$0xff] }
 0xb52   :  { %v7024_v6 = vrot.slane %v13122_v12, 3  ;;  %v7409_v1 = vsel %vm7341_vm4, %v7269_v16, %v7408_v47  ;;  %v7198_v9 = vmul.f32 %v12916_v34, %v7160_v25  ;;  %v7161_v62 = vmax.f32 %v7129_v38, 0.0 }
 0xb53   :  { %v7275_v15 = vrot.slane %v7274_v5, 1  ;;  %v7278_v36 = vrot.slane %v7277_v54, 4  ;;  %v7130_v20 = vadd.f32 %v12901_v45, %v7086_v53  ;;  %v6929_v33 = vrot.slane %v13128_v22, 2 }
 0xb54   :  { %v7031_v23 = vsel %vm7028_vm9, %v7022_v37, %v7024_v6  ;;  %v7284_v55 = vmax.f32 %v7158_v60, %v7198_v9  ;;  %v7025_v51 = vrot.slane %v13130_v42, 3  ;;  %v6930_v50 = vrot.slane %v13135_v52, 2  ;;  %v14156_v9 = vld [vmem:[#allocation51_spill] sm:$0xff] }
 0xb55   :  { %v7276_v40 = vmax.f32 %v7274_v5, %v7275_v15  ;;  %v7087_v14 = vadd.f32 %v7031_v23, %v6990_v13  ;;  %v7279_v12 = vmax.f32 %v7277_v54, %v7278_v36  ;;  %v7162_v59 = vmax.f32 %v7130_v20, 0.0  ;;  %v14155_v5 = vld [vmem:[#allocation104_spill] sm:$0xff] }
 0xb56   :  { %v6935_v47 = vsel %vm4770_vm13, %v6927_v57, %v6929_v33  ;;  %v7285_v63 = vrot.slane %v7284_v55, 4  ;;  %v7032_v60 = vsel %vm7028_vm9, %v7023_v41, %v7025_v51  ;;  %v6932_v42 = vsel %vm4770_vm13, %v6928_v18, %v6930_v50 }
 0xb57   :  { %v7416_v2 = vsel %vm7341_vm4, %v7276_v40, %v7415_v4  ;;  %v7131_v32 = vadd.f32 %v12889_v10, %v7087_v14  ;;  %v6991_v24 = vadd.f32 %v6935_v47, %v12776_v27  ;;  %v7280_v22 = vrot.slane %v7279_v12, 2 }
 0xb58   :  { %v14149_v56 = vrot.slane %v12866_v35, 2  ;;  %v7286_v52 = vmax.f32 %v7284_v55, %v7285_v63  ;;  %v6992_v37 = vadd.f32 %v6932_v42, %v12784_v19  ;;  %v7026_v11 = vrot.slane %v13137_v8, 3  ;;  %v14157_v55 = vld [vmem:[#allocation64_spill] sm:$0xff] }
 0xb59   :  { %v7163_v46 = vmax.f32 %v7131_v32, 0.0  ;;  %v7088_v4 = vadd.f32 %v7032_v60, %v6991_v24  ;;  %v7281_v57 = vmax.f32 %v7279_v12, %v7280_v22  ;;  %v6931_v26 = vrot.slane %v13144_v28, 2 }
 0xb5a   :  { %v6962_v29 = vsel %vm4770_vm13, %v6930_v50, %v14149_v56  ;;  %v7287_v41 = vrot.slane %v7286_v52, 2  ;;  %v7027_v49 = vrot.slane %v13146_v58, 3  ;;  %v7029_v18 = vsel %vm7028_vm9, %v7024_v6, %v7026_v11 }
 0xb5b   :  { %v6994_v27 = vadd.f32 %v6962_v29, %v14150_v0  ;;  %v7201_v7 = vmul.f32 %v12916_v34, %v7163_v46  ;;  %v7132_v35 = vadd.f32 %v12901_v45, %v7088_v4  ;;  %v7282_v31 = vrot.slane %v7281_v57, 1 }
 0xb5c   :  { %v14152_v19 = vrot.slane %v14151_v44, 3  ;;  %v6933_v8 = vsel %vm4770_vm13, %v6929_v33, %v6931_v26  ;;  %v7288_v28 = vmax.f32 %v7286_v52, %v7287_v41  ;;  %v7089_v30 = vadd.f32 %v7029_v18, %v6992_v37 }
 0xb5d   :  { %v7291_v21 = vmax.f32 %v7161_v62, %v7201_v7  ;;  %v7164_v48 = vmax.f32 %v7132_v35, 0.0  ;;  %v7283_v39 = vmax.f32 %v7281_v57, %v7282_v31  ;;  %v14154_v58 = vrot.slane %v14153_v17, 2 }
 0xb5e   :  { %v7059_v61 = vsel %vm7028_vm9, %v7026_v11, %v14152_v19  ;;  %v6993_v25 = vadd.f32 %v6933_v8, %v14155_v5  ;;  %v7289_v38 = vrot.slane %v7288_v28, 1  ;;  %v7133_v13 = vadd.f32 %v12889_v10, %v7089_v30 }
 0xb5f   :  { %v7091_v3 = vadd.f32 %v7059_v61, %v6994_v27  ;;  %v6963_v16 = vsel %vm4770_vm13, %v6931_v26, %v14154_v58  ;;  %v7292_v54 = vrot.slane %v7291_v21, 4  ;;  %v7202_v53 = vmul.f32 %v12916_v34, %v7164_v48 }
 0xb60   :  { %v7410_v6 = vsel %vm7343_vm6, %v7283_v39, %v7409_v1  ;;  %v6995_v62 = vadd.f32 %v6963_v16, %v14156_v9  ;;  %v7030_v36 = vsel %vm7028_vm9, %v7025_v51, %v7027_v49  ;;  %v7290_v20 = vmax.f32 %v7288_v28, %v7289_v38 }
 0xb61   :  { %v7135_v15 = vadd.f32 %v12889_v10, %v7091_v3  ;;  %v7293_v23 = vmax.f32 %v7291_v21, %v7292_v54  ;;  %v7298_v33 = vmax.f32 %v7162_v59, %v7202_v53  ;;  %v14158_v14 = vrot.slane %v14157_v55, 3 }
 0xb62   :  { %v7090_v47 = vadd.f32 %v7030_v36, %v6993_v25  ;;  %v7417_v50 = vsel %vm7343_vm6, %v7290_v20, %v7416_v2  ;;  %v7165_v32 = vmax.f32 %v7133_v13, 0.0 }
 0xb63   :  { %v7167_v40 = vmax.f32 %v7135_v15, 0.0  ;;  %v7060_v12 = vsel %vm7028_vm9, %v7027_v49, %v14158_v14  ;;  %v7294_v1 = vrot.slane %v7293_v23, 2  ;;  %v7299_v63 = vrot.slane %v7298_v33, 4 }
 0xb64   :  { %v7092_v10 = vadd.f32 %v7060_v12, %v6995_v62  ;;  %v7134_v60 = vadd.f32 %v12901_v45, %v7090_v47 }
 0xb65   :  { %v7205_v24 = vmul.f32 %v12916_v34, %v7167_v40  ;;  %v7295_v22 = vmax.f32 %v7293_v23, %v7294_v1  ;;  %v7300_v51 = vmax.f32 %v7298_v33, %v7299_v63 }
 0xb66   :  { %v7136_v59 = vadd.f32 %v12901_v45, %v7092_v10  ;;  %v7166_v2 = vmax.f32 %v7134_v60, 0.0 }
 0xb67   :  { %v7305_v42 = vmax.f32 %v7165_v32, %v7205_v24  ;;  %v7296_v56 = vrot.slane %v7295_v22, 1  ;;  %v7301_v29 = vrot.slane %v7300_v51, 2 }
 0xb68   :  { %v7168_v52 = vmax.f32 %v7136_v59, 0.0 }
 0xb69   :  { %v7306_v46 = vrot.slane %v7305_v42, 4  ;;  %v7297_v4 = vmax.f32 %v7295_v22, %v7296_v56  ;;  %v7302_v37 = vmax.f32 %v7300_v51, %v7301_v29 }
 0xb6a   :  { %v7206_v57 = vmul.f32 %v12916_v34, %v7168_v52 }
 0xb6b   :  { %v7307_v0 = vmax.f32 %v7305_v42, %v7306_v46  ;;  %v7411_v27 = vsel %vm7345_vm7, %v7297_v4, %v7410_v6  ;;  %v7303_v11 = vrot.slane %v7302_v37, 1 }
 0xb6c   :  { %v7312_v26 = vmax.f32 %v7166_v2, %v7206_v57 }
 0xb6d   :  { %v7308_v41 = vrot.slane %v7307_v0, 2  ;;  %v7304_v7 = vmax.f32 %v7302_v37, %v7303_v11 }
 0xb6e   :  { %v7313_v35 = vrot.slane %v7312_v26, 4 }
 0xb6f   :  { %v7309_v49 = vmax.f32 %v7307_v0, %v7308_v41  ;;  %v7418_v31 = vsel %vm7345_vm7, %v7304_v7, %v7417_v50 }
 0xb70   :  { %v7314_v45 = vmax.f32 %v7312_v26, %v7313_v35 }
 0xb71   :  { %v7310_v18 = vrot.slane %v7309_v49, 1 }
 0xb72   :  { %v7315_v44 = vrot.slane %v7314_v45, 2 }
 0xb73   :  { %v7311_v19 = vmax.f32 %v7309_v49, %v7310_v18 }
 0xb74   :  { %v7316_v61 = vmax.f32 %v7314_v45, %v7315_v44 }
 0xb75   :  { %v13273_v8 = vsel %vm7347_vm8, %v7311_v19, %v7411_v27 }
 0xb76   :  { %v7317_v34 = vrot.slane %v7316_v61, 1 }
 0xb78   :  { %v7318_v28 = vmax.f32 %v7316_v61, %v7317_v34 }
 0xb7a   :  { %v13276_v21 = vsel %vm7347_vm8, %v7318_v28, %v7418_v31 }
 0xb7b   :  { %9818 = dma.done.wait [#allocation7 + $0x3], 36864 }
 0xb7c   :  { %9819 = vsyncadd [#allocation7 + $0x3], 4294930432  ;;  %v14159_v48 = vld [vmem:[#allocation55_spill] sm:$0xff]  ;;  %v7431_v39 = vld [vmem:[#allocation5 + $0x8] sm:$0xff]  ;;  %vm8234_vm11 = vcmask 1043456   ;;  %vm8230_vm13 = vcmask 64512  }
 0xb7d   :  { %v13280_v30 = vpack.c.bf16 %v14159_v48, %v14159_v48  ;;  %v7430_v3 = vld [vmem:[#allocation5] sm:$0xff]  ;;  %v7433_v17 = vld [vmem:[#allocation5 + $0x18] sm:$0xff]  ;;  %7750 = vmatprep.subr.bf16.mxu0 %v7431_v39  ;;  %v7432_v16 = vld [vmem:[#allocation5 + $0x10] sm:$0xff] }
 0xb7e   :  { %7873 = vmatprep.subr.bf16.mxu1 %v7433_v17  ;;  %v7437_v58 = vld [vmem:[#allocation5 + $0x38] sm:$0xff]  ;;  %7751 = vmatpush1.bf16.msra.mxu0 %v7430_v3  ;;  %v7439_v5 = vld [vmem:[#allocation5 + $0x48] sm:$0xff]  ;;  %v7436_v25 = vld [vmem:[#allocation5 + $0x30] sm:$0xff] }
 0xb7f   :  { %7782 = vmatprep.mubr.bf16.mxu0 %v13280_v30  ;;  %7905 = vmatprep.mubr.bf16.mxu1 %v13280_v30  ;;  %v7438_v38 = vld [vmem:[#allocation5 + $0x40] sm:$0xff]  ;;  %v7443_v54 = vld [vmem:[#allocation5 + $0x68] sm:$0xff]  ;;  %v7445_v53 = vld [vmem:[#allocation5 + $0x78] sm:$0xff] }
 0xb80   :  { %7874 = vmatpush1.bf16.msra.mxu1 %v7432_v16  ;;  %7752 = vmatprep.subr.bf16.mxu0 %v7437_v58  ;;  %v7442_v13 = vld [vmem:[#allocation5 + $0x60] sm:$0xff]  ;;  %v7444_v6 = vld [vmem:[#allocation5 + $0x70] sm:$0xff]  ;;  %v7449_v15 = vld [vmem:[#allocation5 + $0x98] sm:$0xff] }
 0xb81   :  { %7875 = vmatprep.subr.bf16.mxu1 %v7439_v5  ;;  %v7451_v9 = vld [vmem:[#allocation5 + $0xa8] sm:$0xff]  ;;  %v7448_v62 = vld [vmem:[#allocation5 + $0x90] sm:$0xff]  ;;  %v7450_v36 = vld [vmem:[#allocation5 + $0xa0] sm:$0xff] }
 0xb82   :  { %7753 = vmatpush1.bf16.msra.mxu0 %v7436_v25  ;;  %v7455_v20 = vld [vmem:[#allocation5 + $0xc8] sm:$0xff]  ;;  %v7457_v23 = vld [vmem:[#allocation5 + $0xd8] sm:$0xff]  ;;  %v7454_v33 = vld [vmem:[#allocation5 + $0xc0] sm:$0xff] }
 0xb83   :  { %7754 = vmatprep.subr.bf16.mxu0 %v7443_v54  ;;  %v7456_v40 = vld [vmem:[#allocation5 + $0xd0] sm:$0xff]  ;;  %v7461_v55 = vld [vmem:[#allocation5 + $0xf8] sm:$0xff]  ;;  %v7463_v14 = vld [vmem:[#allocation5 + $0x108] sm:$0xff] }
 0xb84   :  { %7876 = vmatpush1.bf16.msra.mxu1 %v7438_v38  ;;  %v7460_v12 = vld [vmem:[#allocation5 + $0xf0] sm:$0xff]  ;;  %v7462_v47 = vld [vmem:[#allocation5 + $0x100] sm:$0xff]  ;;  %v7467_v50 = vld [vmem:[#allocation5 + $0x128] sm:$0xff] }
 0xb85   :  { %7877 = vmatprep.subr.bf16.mxu1 %v7445_v53  ;;  %v7469_v1 = vld [vmem:[#allocation5 + $0x138] sm:$0xff]  ;;  %v7466_v63 = vld [vmem:[#allocation5 + $0x120] sm:$0xff]  ;;  %v7468_v10 = vld [vmem:[#allocation5 + $0x130] sm:$0xff] }
 0xb86   :  { %7755 = vmatpush1.bf16.msra.mxu0 %v7442_v13  ;;  %v7473_v32 = vld [vmem:[#allocation5 + $0x158] sm:$0xff]  ;;  %v7475_v24 = vld [vmem:[#allocation5 + $0x168] sm:$0xff]  ;;  %v7472_v22 = vld [vmem:[#allocation5 + $0x150] sm:$0xff] }
 0xb87   :  { %7756 = vmatprep.subr.bf16.mxu0 %v7449_v15  ;;  %v7474_v51 = vld [vmem:[#allocation5 + $0x160] sm:$0xff]  ;;  %v7479_v60 = vld [vmem:[#allocation5 + $0x188] sm:$0xff]  ;;  %v7481_v59 = vld [vmem:[#allocation5 + $0x198] sm:$0xff] }
 0xb88   :  { %7878 = vmatpush1.bf16.msra.mxu1 %v7444_v6  ;;  %v7478_v42 = vld [vmem:[#allocation5 + $0x180] sm:$0xff]  ;;  %v7480_v56 = vld [vmem:[#allocation5 + $0x190] sm:$0xff]  ;;  %v7485_v29 = vld [vmem:[#allocation5 + $0x1b8] sm:$0xff] }
 0xb89   :  { %7879 = vmatprep.subr.bf16.mxu1 %v7451_v9  ;;  %v7487_v52 = vld [vmem:[#allocation5 + $0x1c8] sm:$0xff]  ;;  %v7484_v46 = vld [vmem:[#allocation5 + $0x1b0] sm:$0xff]  ;;  %v7486_v4 = vld [vmem:[#allocation5 + $0x1c0] sm:$0xff] }
 0xb8a   :  { %7757 = vmatpush1.bf16.msra.mxu0 %v7448_v62  ;;  %v7491_v37 = vld [vmem:[#allocation5 + $0x1e8] sm:$0xff]  ;;  %v7493_v2 = vld [vmem:[#allocation5 + $0x1f8] sm:$0xff]  ;;  %v7490_v57 = vld [vmem:[#allocation5 + $0x1e0] sm:$0xff] }
 0xb8b   :  { %7758 = vmatprep.subr.bf16.mxu0 %v7455_v20  ;;  %v7492_v0 = vld [vmem:[#allocation5 + $0x1f0] sm:$0xff]  ;;  %v7497_v27 = vld [vmem:[#allocation5 + $0x218] sm:$0xff]  ;;  %v7499_v11 = vld [vmem:[#allocation5 + $0x228] sm:$0xff] }
 0xb8c   :  { %7880 = vmatpush1.bf16.msra.mxu1 %v7450_v36  ;;  %v7496_v26 = vld [vmem:[#allocation5 + $0x210] sm:$0xff]  ;;  %v7498_v41 = vld [vmem:[#allocation5 + $0x220] sm:$0xff]  ;;  %v7503_v7 = vld [vmem:[#allocation5 + $0x248] sm:$0xff] }
 0xb8d   :  { %7881 = vmatprep.subr.bf16.mxu1 %v7457_v23  ;;  %v7505_v35 = vld [vmem:[#allocation5 + $0x258] sm:$0xff]  ;;  %v7502_v49 = vld [vmem:[#allocation5 + $0x240] sm:$0xff]  ;;  %v7504_v45 = vld [vmem:[#allocation5 + $0x250] sm:$0xff] }
 0xb8e   :  { %7759 = vmatpush1.bf16.msra.mxu0 %v7454_v33  ;;  %v7509_v31 = vld [vmem:[#allocation5 + $0x278] sm:$0xff]  ;;  %v7511_v18 = vld [vmem:[#allocation5 + $0x288] sm:$0xff]  ;;  %v7508_v44 = vld [vmem:[#allocation5 + $0x270] sm:$0xff] }
 0xb8f   :  { %7760 = vmatprep.subr.bf16.mxu0 %v7461_v55  ;;  %v7510_v19 = vld [vmem:[#allocation5 + $0x280] sm:$0xff]  ;;  %v7515_v61 = vld [vmem:[#allocation5 + $0x2a8] sm:$0xff]  ;;  %v7517_v34 = vld [vmem:[#allocation5 + $0x2b8] sm:$0xff] }
 0xb90   :  { %7882 = vmatpush1.bf16.msra.mxu1 %v7456_v40  ;;  %v7514_v28 = vld [vmem:[#allocation5 + $0x2a0] sm:$0xff]  ;;  %v7516_v39 = vld [vmem:[#allocation5 + $0x2b0] sm:$0xff]  ;;  %v7521_v3 = vld [vmem:[#allocation5 + $0x2d8] sm:$0xff] }
 0xb91   :  { %7883 = vmatprep.subr.bf16.mxu1 %v7463_v14  ;;  %v7523_v17 = vld [vmem:[#allocation5 + $0x2e8] sm:$0xff]  ;;  %v7520_v58 = vld [vmem:[#allocation5 + $0x2d0] sm:$0xff]  ;;  %v7522_v16 = vld [vmem:[#allocation5 + $0x2e0] sm:$0xff] }
 0xb92   :  { %7761 = vmatpush1.bf16.msra.mxu0 %v7460_v12  ;;  %v7527_v5 = vld [vmem:[#allocation5 + $0x308] sm:$0xff]  ;;  %v7529_v25 = vld [vmem:[#allocation5 + $0x318] sm:$0xff]  ;;  %v7526_v53 = vld [vmem:[#allocation5 + $0x300] sm:$0xff] }
 0xb93   :  { %7762 = vmatprep.subr.bf16.mxu0 %v7467_v50  ;;  %v14160_v38 = vld [vmem:[#allocation52_spill] sm:$0xff]  ;;  %v7528_v13 = vld [vmem:[#allocation5 + $0x310] sm:$0xff]  ;;  %v7535_v15 = vld [vmem:[#allocation5 + $0x348] sm:$0xff] }
 0xb94   :  { %7884 = vmatpush1.bf16.msra.mxu1 %v7462_v47  ;;  %v13286_v54 = vpack.c.bf16 %v14160_v38, %v14160_v38  ;;  %v7533_v6 = vld [vmem:[#allocation5 + $0x338] sm:$0xff]  ;;  %v7532_v36 = vld [vmem:[#allocation5 + $0x330] sm:$0xff]  ;;  %v7534_v20 = vld [vmem:[#allocation5 + $0x340] sm:$0xff] }
 0xb95   :  { %7885 = vmatprep.subr.bf16.mxu1 %v7469_v1  ;;  %v14161_v9 = vld [vmem:[#allocation59_spill] sm:$0xff]  ;;  %v7539_v23 = vld [vmem:[#allocation5 + $0x368] sm:$0xff]  ;;  %v7538_v40 = vld [vmem:[#allocation5 + $0x360] sm:$0xff] }
 0xb96   :  { %7763 = vmatpush1.bf16.msra.mxu0 %v7466_v63  ;;  %v13290_v62 = vpack.c.bf16 %v14161_v9, %v14161_v9  ;;  %v7541_v33 = vld [vmem:[#allocation5 + $0x378] sm:$0xff]  ;;  %v7540_v55 = vld [vmem:[#allocation5 + $0x370] sm:$0xff]  ;;  %v7547_v12 = vld [vmem:[#allocation5 + $0x3a8] sm:$0xff] }
 0xb97   :  { %7764 = vmatprep.subr.bf16.mxu0 %v7473_v32  ;;  %v7545_v14 = vld [vmem:[#allocation5 + $0x398] sm:$0xff]  ;;  %v7544_v47 = vld [vmem:[#allocation5 + $0x390] sm:$0xff]  ;;  %v7546_v50 = vld [vmem:[#allocation5 + $0x3a0] sm:$0xff] }
 0xb98   :  { %7886 = vmatpush1.bf16.msra.mxu1 %v7468_v10  ;;  %v7551_v1 = vld [vmem:[#allocation5 + $0x3c8] sm:$0xff]  ;;  %v7553_v63 = vld [vmem:[#allocation5 + $0x3d8] sm:$0xff]  ;;  %v7550_v10 = vld [vmem:[#allocation5 + $0x3c0] sm:$0xff] }
 0xb99   :  { %7887 = vmatprep.subr.bf16.mxu1 %v7475_v24  ;;  %v7552_v32 = vld [vmem:[#allocation5 + $0x3d0] sm:$0xff]  ;;  %v7557_v24 = vld [vmem:[#allocation5 + $0x3f8] sm:$0xff] }
 0xb9a   :  { %7765 = vmatpush1.bf16.msra.mxu0 %v7472_v22  ;;  %v7559_v22 = vld [vmem:[#allocation5 + $0x408] sm:$0xff] }
 0xb9b   :  { %7766 = vmatprep.subr.bf16.mxu0 %v7479_v60  ;;  %v7558_v60 = vld [vmem:[#allocation5 + $0x400] sm:$0xff] }
 0xb9c   :  { %7888 = vmatpush1.bf16.msra.mxu1 %v7474_v51  ;;  %v7556_v51 = vld [vmem:[#allocation5 + $0x3f0] sm:$0xff] }
 0xb9d   :  { %7889 = vmatprep.subr.bf16.mxu1 %v7481_v59  ;;  %v7563_v59 = vld [vmem:[#allocation5 + $0x428] sm:$0xff] }
 0xb9e   :  { %7767 = vmatpush1.bf16.msra.mxu0 %v7478_v42  ;;  %v7565_v42 = vld [vmem:[#allocation5 + $0x438] sm:$0xff] }
 0xb9f   :  { %7768 = vmatprep.subr.bf16.mxu0 %v7485_v29  ;;  %v7564_v29 = vld [vmem:[#allocation5 + $0x430] sm:$0xff] }
 0xba0   :  { %7890 = vmatpush1.bf16.msra.mxu1 %v7480_v56  ;;  %v7562_v56 = vld [vmem:[#allocation5 + $0x420] sm:$0xff] }
 0xba1   :  { %7891 = vmatprep.subr.bf16.mxu1 %v7487_v52  ;;  %v7569_v52 = vld [vmem:[#allocation5 + $0x458] sm:$0xff] }
 0xba2   :  { %7769 = vmatpush1.bf16.msra.mxu0 %v7484_v46  ;;  %v7571_v46 = vld [vmem:[#allocation5 + $0x468] sm:$0xff] }
 0xba3   :  { %7770 = vmatprep.subr.bf16.mxu0 %v7491_v37  ;;  %v7570_v37 = vld [vmem:[#allocation5 + $0x460] sm:$0xff] }
 0xba4   :  { %7892 = vmatpush1.bf16.msra.mxu1 %v7486_v4  ;;  %v7568_v4 = vld [vmem:[#allocation5 + $0x450] sm:$0xff] }
 0xba5   :  { %7893 = vmatprep.subr.bf16.mxu1 %v7493_v2  ;;  %v7575_v2 = vld [vmem:[#allocation5 + $0x488] sm:$0xff] }
 0xba6   :  { %7771 = vmatpush1.bf16.msra.mxu0 %v7490_v57  ;;  %v7577_v57 = vld [vmem:[#allocation5 + $0x498] sm:$0xff] }
 0xba7   :  { %7772 = vmatprep.subr.bf16.mxu0 %v7497_v27  ;;  %v7576_v27 = vld [vmem:[#allocation5 + $0x490] sm:$0xff] }
 0xba8   :  { %7894 = vmatpush1.bf16.msra.mxu1 %v7492_v0  ;;  %v7574_v0 = vld [vmem:[#allocation5 + $0x480] sm:$0xff] }
 0xba9   :  { %7895 = vmatprep.subr.bf16.mxu1 %v7499_v11  ;;  %v7581_v11 = vld [vmem:[#allocation5 + $0x4b8] sm:$0xff] }
 0xbaa   :  { %7773 = vmatpush1.bf16.msra.mxu0 %v7496_v26  ;;  %v7583_v26 = vld [vmem:[#allocation5 + $0x4c8] sm:$0xff] }
 0xbab   :  { %7774 = vmatprep.subr.bf16.mxu0 %v7503_v7  ;;  %v7582_v7 = vld [vmem:[#allocation5 + $0x4c0] sm:$0xff] }
 0xbac   :  { %7896 = vmatpush1.bf16.msra.mxu1 %v7498_v41  ;;  %v7580_v41 = vld [vmem:[#allocation5 + $0x4b0] sm:$0xff] }
 0xbad   :  { %7897 = vmatprep.subr.bf16.mxu1 %v7505_v35  ;;  %v7587_v35 = vld [vmem:[#allocation5 + $0x4e8] sm:$0xff] }
 0xbae   :  { %7775 = vmatpush1.bf16.msra.mxu0 %v7502_v49  ;;  %v7589_v49 = vld [vmem:[#allocation5 + $0x4f8] sm:$0xff] }
 0xbaf   :  { %7776 = vmatprep.subr.bf16.mxu0 %v7509_v31  ;;  %v7588_v31 = vld [vmem:[#allocation5 + $0x4f0] sm:$0xff] }
 0xbb0   :  { %7898 = vmatpush1.bf16.msra.mxu1 %v7504_v45  ;;  %v7586_v45 = vld [vmem:[#allocation5 + $0x4e0] sm:$0xff] }
 0xbb1   :  { %7899 = vmatprep.subr.bf16.mxu1 %v7511_v18  ;;  %v7593_v18 = vld [vmem:[#allocation5 + $0x518] sm:$0xff] }
 0xbb2   :  { %7777 = vmatpush1.bf16.msra.mxu0 %v7508_v44  ;;  %v7595_v44 = vld [vmem:[#allocation5 + $0x528] sm:$0xff] }
 0xbb3   :  { %7778 = vmatprep.subr.bf16.mxu0 %v7515_v61  ;;  %v7594_v61 = vld [vmem:[#allocation5 + $0x520] sm:$0xff] }
 0xbb4   :  { %7900 = vmatpush1.bf16.msra.mxu1 %v7510_v19  ;;  %v7592_v19 = vld [vmem:[#allocation5 + $0x510] sm:$0xff] }
 0xbb5   :  { %7901 = vmatprep.subr.bf16.mxu1 %v7517_v34  ;;  %v7599_v34 = vld [vmem:[#allocation5 + $0x548] sm:$0xff] }
 0xbb6   :  { %7779 = vmatpush1.bf16.msra.mxu0 %v7514_v28  ;;  %v7601_v28 = vld [vmem:[#allocation5 + $0x558] sm:$0xff] }
 0xbb7   :  { %7780 = vmatprep.subr.bf16.mxu0 %v7521_v3  ;;  %v7600_v3 = vld [vmem:[#allocation5 + $0x550] sm:$0xff] }
 0xbb8   :  { %7902 = vmatpush1.bf16.msra.mxu1 %v7516_v39  ;;  %v7598_v39 = vld [vmem:[#allocation5 + $0x540] sm:$0xff] }
 0xbb9   :  { %7903 = vmatprep.subr.bf16.mxu1 %v7523_v17  ;;  %v7605_v17 = vld [vmem:[#allocation5 + $0x578] sm:$0xff] }
 0xbba   :  { %7781 = vmatpush1.bf16.msra.mxu0 %v7520_v58  ;;  %v7607_v58 = vld [vmem:[#allocation5 + $0x588] sm:$0xff] }
 0xbbb   :  { %7791 = vmatprep.subr.bf16.mxu0 %v7527_v5  ;;  %v7606_v5 = vld [vmem:[#allocation5 + $0x580] sm:$0xff] }
 0xbbc   :  { %7904 = vmatpush1.bf16.msra.mxu1 %v7522_v16  ;;  %v7604_v16 = vld [vmem:[#allocation5 + $0x570] sm:$0xff] }
 0xbbd   :  { %7914 = vmatprep.subr.bf16.mxu1 %v7529_v25  ;;  %7783 = vmatmul.mubr.bf16.vlgmr.msra.gmra.mrb[192].mxu0 %v13286_v54  ;;  %v7611_v25 = vld [vmem:[#allocation5 + $0x5a8] sm:$0xff] }
 0xbbe   :  { %7792 = vmatpush1.bf16.msra.mxu0 %v7526_v53  ;;  %7823 = vmatprep.mubr.bf16.mxu0 %v13290_v62  ;;  %v7613_v53 = vld [vmem:[#allocation5 + $0x5b8] sm:$0xff] }
 0xbbf   :  { %7906 = vmatmul.mubr.bf16.vlgmr.msra.gmra.mrb[192].mxu1 %v13286_v54  ;;  %7793 = vmatprep.subr.bf16.mxu0 %v7533_v6  ;;  %v7612_v6 = vld [vmem:[#allocation5 + $0x5b0] sm:$0xff] }
 0xbc0   :  { %7915 = vmatpush1.bf16.msra.mxu1 %v7528_v13  ;;  %7946 = vmatprep.mubr.bf16.mxu1 %v13290_v62  ;;  %v7610_v13 = vld [vmem:[#allocation5 + $0x5a0] sm:$0xff] }
 0xbc1   :  { %7916 = vmatprep.subr.bf16.mxu1 %v7535_v15  ;;  %v7617_v15 = vld [vmem:[#allocation5 + $0x5d8] sm:$0xff] }
 0xbc2   :  { %7794 = vmatpush1.bf16.msra.mxu0 %v7532_v36  ;;  %v7619_v36 = vld [vmem:[#allocation5 + $0x5e8] sm:$0xff] }
 0xbc3   :  { %7795 = vmatprep.subr.bf16.mxu0 %v7539_v23  ;;  %v7618_v23 = vld [vmem:[#allocation5 + $0x5e0] sm:$0xff] }
 0xbc4   :  { %7917 = vmatpush1.bf16.msra.mxu1 %v7534_v20  ;;  %v7616_v20 = vld [vmem:[#allocation5 + $0x5d0] sm:$0xff] }
 0xbc5   :  { %7918 = vmatprep.subr.bf16.mxu1 %v7541_v33  ;;  %v7623_v33 = vld [vmem:[#allocation5 + $0x608] sm:$0xff] }
 0xbc6   :  { %7796 = vmatpush1.bf16.msra.mxu0 %v7538_v40  ;;  %v7625_v40 = vld [vmem:[#allocation5 + $0x618] sm:$0xff] }
 0xbc7   :  { %7797 = vmatprep.subr.bf16.mxu0 %v7545_v14 }
 0xbc8   :  { %7919 = vmatpush1.bf16.msra.mxu1 %v7540_v55  ;;  %v14162_v55 = vld [vmem:[#allocation56_spill] sm:$0xff] }
 0xbc9   :  { %7920 = vmatprep.subr.bf16.mxu1 %v7547_v12  ;;  %v13298_v14 = vpack.c.bf16 %v14162_v55, %v14162_v55  ;;  %v7622_v12 = vld [vmem:[#allocation5 + $0x600] sm:$0xff] }
 0xbca   :  { %7798 = vmatpush1.bf16.msra.mxu0 %v7544_v47  ;;  %v7624_v47 = vld [vmem:[#allocation5 + $0x610] sm:$0xff] }
 0xbcb   :  { %7799 = vmatprep.subr.bf16.mxu0 %v7551_v1  ;;  %v7631_v1 = vld [vmem:[#allocation5 + $0x648] sm:$0xff] }
 0xbcc   :  { %7921 = vmatpush1.bf16.msra.mxu1 %v7546_v50  ;;  %v7629_v50 = vld [vmem:[#allocation5 + $0x638] sm:$0xff] }
 0xbcd   :  { %7922 = vmatprep.subr.bf16.mxu1 %v7553_v63  ;;  %v13302_v63 = vpack.c.bf16 %v13276_v21, %v13276_v21 }
 0xbce   :  { %7800 = vmatpush1.bf16.msra.mxu0 %v7550_v10  ;;  %v7628_v10 = vld [vmem:[#allocation5 + $0x630] sm:$0xff] }
 0xbcf   :  { %7801 = vmatprep.subr.bf16.mxu0 %v7557_v24  ;;  %v7635_v24 = vld [vmem:[#allocation5 + $0x668] sm:$0xff] }
 0xbd0   :  { %7923 = vmatpush1.bf16.msra.mxu1 %v7552_v32  ;;  %v7630_v32 = vld [vmem:[#allocation5 + $0x640] sm:$0xff] }
 0xbd1   :  { %7924 = vmatprep.subr.bf16.mxu1 %v7559_v22  ;;  %v7637_v22 = vld [vmem:[#allocation5 + $0x678] sm:$0xff] }
 0xbd2   :  { %7802 = vmatpush1.bf16.msra.mxu0 %v7556_v51  ;;  %v7634_v51 = vld [vmem:[#allocation5 + $0x660] sm:$0xff] }
 0xbd3   :  { %7803 = vmatprep.subr.bf16.mxu0 %v7563_v59  ;;  %v7641_v59 = vld [vmem:[#allocation5 + $0x698] sm:$0xff] }
 0xbd4   :  { %7925 = vmatpush1.bf16.msra.mxu1 %v7558_v60  ;;  %v7636_v60 = vld [vmem:[#allocation5 + $0x670] sm:$0xff] }
 0xbd5   :  { %7926 = vmatprep.subr.bf16.mxu1 %v7565_v42  ;;  %v7643_v42 = vld [vmem:[#allocation5 + $0x6a8] sm:$0xff] }
 0xbd6   :  { %7804 = vmatpush1.bf16.msra.mxu0 %v7562_v56  ;;  %v7640_v56 = vld [vmem:[#allocation5 + $0x690] sm:$0xff] }
 0xbd7   :  { %7805 = vmatprep.subr.bf16.mxu0 %v7569_v52  ;;  %v7647_v52 = vld [vmem:[#allocation5 + $0x6c8] sm:$0xff] }
 0xbd8   :  { %7927 = vmatpush1.bf16.msra.mxu1 %v7564_v29  ;;  %v7642_v29 = vld [vmem:[#allocation5 + $0x6a0] sm:$0xff] }
 0xbd9   :  { %7928 = vmatprep.subr.bf16.mxu1 %v7571_v46  ;;  %v7649_v46 = vld [vmem:[#allocation5 + $0x6d8] sm:$0xff] }
 0xbda   :  { %7806 = vmatpush1.bf16.msra.mxu0 %v7568_v4  ;;  %v7646_v4 = vld [vmem:[#allocation5 + $0x6c0] sm:$0xff] }
 0xbdb   :  { %7807 = vmatprep.subr.bf16.mxu0 %v7575_v2  ;;  %v7653_v2 = vld [vmem:[#allocation5 + $0x6f8] sm:$0xff] }
 0xbdc   :  { %7929 = vmatpush1.bf16.msra.mxu1 %v7570_v37  ;;  %v7648_v37 = vld [vmem:[#allocation5 + $0x6d0] sm:$0xff] }
 0xbdd   :  { %7930 = vmatprep.subr.bf16.mxu1 %v7577_v57  ;;  %v7655_v57 = vld [vmem:[#allocation5 + $0x708] sm:$0xff] }
 0xbde   :  { %7808 = vmatpush1.bf16.msra.mxu0 %v7574_v0  ;;  %v7652_v0 = vld [vmem:[#allocation5 + $0x6f0] sm:$0xff] }
 0xbdf   :  { %7809 = vmatprep.subr.bf16.mxu0 %v7581_v11  ;;  %v7659_v11 = vld [vmem:[#allocation5 + $0x728] sm:$0xff] }
 0xbe0   :  { %7931 = vmatpush1.bf16.msra.mxu1 %v7576_v27  ;;  %v7654_v27 = vld [vmem:[#allocation5 + $0x700] sm:$0xff] }
 0xbe1   :  { %7932 = vmatprep.subr.bf16.mxu1 %v7583_v26  ;;  %v7661_v26 = vld [vmem:[#allocation5 + $0x738] sm:$0xff] }
 0xbe2   :  { %7810 = vmatpush1.bf16.msra.mxu0 %v7580_v41  ;;  %v7658_v41 = vld [vmem:[#allocation5 + $0x720] sm:$0xff] }
 0xbe3   :  { %7811 = vmatprep.subr.bf16.mxu0 %v7587_v35  ;;  %v7665_v35 = vld [vmem:[#allocation5 + $0x758] sm:$0xff] }
 0xbe4   :  { %7933 = vmatpush1.bf16.msra.mxu1 %v7582_v7  ;;  %v7660_v7 = vld [vmem:[#allocation5 + $0x730] sm:$0xff] }
 0xbe5   :  { %7934 = vmatprep.subr.bf16.mxu1 %v7589_v49  ;;  %v7667_v49 = vld [vmem:[#allocation5 + $0x768] sm:$0xff] }
 0xbe6   :  { %7812 = vmatpush1.bf16.msra.mxu0 %v7586_v45  ;;  %v7664_v45 = vld [vmem:[#allocation5 + $0x750] sm:$0xff] }
 0xbe7   :  { %7813 = vmatprep.subr.bf16.mxu0 %v7593_v18  ;;  %v7671_v18 = vld [vmem:[#allocation5 + $0x788] sm:$0xff] }
 0xbe8   :  { %7935 = vmatpush1.bf16.msra.mxu1 %v7588_v31  ;;  %v7666_v31 = vld [vmem:[#allocation5 + $0x760] sm:$0xff] }
 0xbe9   :  { %7936 = vmatprep.subr.bf16.mxu1 %v7595_v44  ;;  %v7673_v44 = vld [vmem:[#allocation5 + $0x798] sm:$0xff] }
 0xbea   :  { %7814 = vmatpush1.bf16.msra.mxu0 %v7592_v19  ;;  %v7670_v19 = vld [vmem:[#allocation5 + $0x780] sm:$0xff] }
 0xbeb   :  { %7815 = vmatprep.subr.bf16.mxu0 %v7599_v34  ;;  %v7677_v34 = vld [vmem:[#allocation5 + $0x7b8] sm:$0xff] }
 0xbec   :  { %7937 = vmatpush1.bf16.msra.mxu1 %v7594_v61  ;;  %v7672_v61 = vld [vmem:[#allocation5 + $0x790] sm:$0xff] }
 0xbed   :  { %7938 = vmatprep.subr.bf16.mxu1 %v7601_v28  ;;  %v7679_v28 = vld [vmem:[#allocation5 + $0x7c8] sm:$0xff] }
 0xbee   :  { %7816 = vmatpush1.bf16.msra.mxu0 %v7598_v39  ;;  %v7676_v39 = vld [vmem:[#allocation5 + $0x7b0] sm:$0xff] }
 0xbef   :  { %7817 = vmatprep.subr.bf16.mxu0 %v7605_v17  ;;  %v7683_v17 = vld [vmem:[#allocation5 + $0x7e8] sm:$0xff] }
 0xbf0   :  { %7939 = vmatpush1.bf16.msra.mxu1 %v7600_v3  ;;  %v7678_v3 = vld [vmem:[#allocation5 + $0x7c0] sm:$0xff] }
 0xbf1   :  { %7940 = vmatprep.subr.bf16.mxu1 %v7607_v58  ;;  %v7685_v58 = vld [vmem:[#allocation5 + $0x7f8] sm:$0xff] }
 0xbf2   :  { %7818 = vmatpush1.bf16.msra.mxu0 %v7604_v16  ;;  %v7682_v16 = vld [vmem:[#allocation5 + $0x7e0] sm:$0xff] }
 0xbf3   :  { %7819 = vmatprep.subr.bf16.mxu0 %v7611_v25  ;;  %v7689_v25 = vld [vmem:[#allocation5 + $0x818] sm:$0xff] }
 0xbf4   :  { %7941 = vmatpush1.bf16.msra.mxu1 %v7606_v5  ;;  %v7684_v5 = vld [vmem:[#allocation5 + $0x7f0] sm:$0xff] }
 0xbf5   :  { %7942 = vmatprep.subr.bf16.mxu1 %v7613_v53  ;;  %v7691_v53 = vld [vmem:[#allocation5 + $0x828] sm:$0xff] }
 0xbf6   :  { %7820 = vmatpush1.bf16.msra.mxu0 %v7610_v13  ;;  %v7688_v13 = vld [vmem:[#allocation5 + $0x810] sm:$0xff] }
 0xbf7   :  { %7821 = vmatprep.subr.bf16.mxu0 %v7617_v15  ;;  %v7695_v15 = vld [vmem:[#allocation5 + $0x848] sm:$0xff] }
 0xbf8   :  { %7943 = vmatpush1.bf16.msra.mxu1 %v7612_v6  ;;  %v7690_v6 = vld [vmem:[#allocation5 + $0x820] sm:$0xff] }
 0xbf9   :  { %7944 = vmatprep.subr.bf16.mxu1 %v7619_v36  ;;  %v7697_v36 = vld [vmem:[#allocation5 + $0x858] sm:$0xff] }
 0xbfa   :  { %7822 = vmatpush1.bf16.msra.mxu0 %v7616_v20  ;;  %v7694_v20 = vld [vmem:[#allocation5 + $0x840] sm:$0xff] }
 0xbfb   :  { %7832 = vmatprep.subr.bf16.mxu0 %v7623_v33  ;;  %v7701_v33 = vld [vmem:[#allocation5 + $0x878] sm:$0xff] }
 0xbfc   :  { %7945 = vmatpush1.bf16.msra.mxu1 %v7618_v23  ;;  %v7696_v23 = vld [vmem:[#allocation5 + $0x850] sm:$0xff] }
 0xbfd   :  { %7955 = vmatprep.subr.bf16.mxu1 %v7625_v40  ;;  %7824 = vmatmul.mubr.bf16.vlgmr.msra.gmra.mrb[192].mxu0 %v13298_v14  ;;  %v7703_v40 = vld [vmem:[#allocation5 + $0x888] sm:$0xff] }
 0xbfe   :  { %7833 = vmatpush1.bf16.msra.mxu0 %v7622_v12  ;;  %7864 = vmatprep.mubr.bf16.mxu0 %v13302_v63  ;;  %v7700_v12 = vld [vmem:[#allocation5 + $0x870] sm:$0xff] }
 0xbff   :  { %7947 = vmatmul.mubr.bf16.vlgmr.msra.gmra.mrb[192].mxu1 %v13298_v14  ;;  %7834 = vmatprep.subr.bf16.mxu0 %v7629_v50  ;;  %v7707_v50 = vld [vmem:[#allocation5 + $0x8a8] sm:$0xff] }
 0xc00   :  { %7956 = vmatpush1.bf16.msra.mxu1 %v7624_v47  ;;  %7987 = vmatprep.mubr.bf16.mxu1 %v13302_v63  ;;  %v7702_v47 = vld [vmem:[#allocation5 + $0x880] sm:$0xff] }
 0xc01   :  { %7957 = vmatprep.subr.bf16.mxu1 %v7631_v1  ;;  %v7709_v1 = vld [vmem:[#allocation5 + $0x8b8] sm:$0xff] }
 0xc02   :  { %7835 = vmatpush1.bf16.msra.mxu0 %v7628_v10  ;;  %v7706_v10 = vld [vmem:[#allocation5 + $0x8a0] sm:$0xff] }
 0xc03   :  { %7836 = vmatprep.subr.bf16.mxu0 %v7635_v24  ;;  %v7713_v24 = vld [vmem:[#allocation5 + $0x8d8] sm:$0xff] }
 0xc04   :  { %7958 = vmatpush1.bf16.msra.mxu1 %v7630_v32  ;;  %v7708_v32 = vld [vmem:[#allocation5 + $0x8b0] sm:$0xff] }
 0xc05   :  { %7959 = vmatprep.subr.bf16.mxu1 %v7637_v22  ;;  %v7715_v22 = vld [vmem:[#allocation5 + $0x8e8] sm:$0xff] }
 0xc06   :  { %7837 = vmatpush1.bf16.msra.mxu0 %v7634_v51  ;;  %v7712_v51 = vld [vmem:[#allocation5 + $0x8d0] sm:$0xff] }
 0xc07   :  { %7838 = vmatprep.subr.bf16.mxu0 %v7641_v59  ;;  %v7435_v59 = vld [vmem:[#allocation5 + $0x28] sm:$0xff] }
 0xc08   :  { %7960 = vmatpush1.bf16.msra.mxu1 %v7636_v60  ;;  %v7714_v60 = vld [vmem:[#allocation5 + $0x8e0] sm:$0xff] }
 0xc09   :  { %7961 = vmatprep.subr.bf16.mxu1 %v7643_v42  ;;  %v13310_v42 = vpack.c.bf16 %v13273_v8, %v13273_v8 }
 0xc0a   :  { %7839 = vmatpush1.bf16.msra.mxu0 %v7640_v56  ;;  %v7434_v56 = vld [vmem:[#allocation5 + $0x20] sm:$0xff] }
 0xc0b   :  { %7840 = vmatprep.subr.bf16.mxu0 %v7647_v52  ;;  %v7440_v52 = vld [vmem:[#allocation5 + $0x50] sm:$0xff] }
 0xc0c   :  { %7962 = vmatpush1.bf16.msra.mxu1 %v7642_v29  ;;  %v7441_v29 = vld [vmem:[#allocation5 + $0x58] sm:$0xff] }
 0xc0d   :  { %7963 = vmatprep.subr.bf16.mxu1 %v7649_v46  ;;  %v14163_v46 = vmov 0  }
 0xc0e   :  { %7841 = vmatpush1.bf16.msra.mxu0 %v7646_v4  ;;  %v7447_v4 = vld [vmem:[#allocation5 + $0x88] sm:$0xff] }
 0xc0f   :  { %7842 = vmatprep.subr.bf16.mxu0 %v7653_v2  ;;  %v7453_v2 = vld [vmem:[#allocation5 + $0xb8] sm:$0xff] }
 0xc10   :  { %7964 = vmatpush1.bf16.msra.mxu1 %v7648_v37  ;;  %v7446_v37 = vld [vmem:[#allocation5 + $0x80] sm:$0xff] }
 0xc11   :  { %7965 = vmatprep.subr.bf16.mxu1 %v7655_v57  ;;  %v7452_v57 = vld [vmem:[#allocation5 + $0xb0] sm:$0xff] }
 0xc12   :  { %7843 = vmatpush1.bf16.msra.mxu0 %v7652_v0  ;;  %v7459_v0 = vld [vmem:[#allocation5 + $0xe8] sm:$0xff] }
 0xc13   :  { %7844 = vmatprep.subr.bf16.mxu0 %v7659_v11  ;;  %v7465_v11 = vld [vmem:[#allocation5 + $0x118] sm:$0xff] }
 0xc14   :  { %7966 = vmatpush1.bf16.msra.mxu1 %v7654_v27  ;;  %v7458_v27 = vld [vmem:[#allocation5 + $0xe0] sm:$0xff] }
 0xc15   :  { %7967 = vmatprep.subr.bf16.mxu1 %v7661_v26  ;;  %v7471_v26 = vld [vmem:[#allocation5 + $0x148] sm:$0xff] }
 0xc16   :  { %7845 = vmatpush1.bf16.msra.mxu0 %v7658_v41  ;;  %v7470_v41 = vld [vmem:[#allocation5 + $0x140] sm:$0xff] }
 0xc17   :  { %7846 = vmatprep.subr.bf16.mxu0 %v7665_v35  ;;  %v7476_v35 = vld [vmem:[#allocation5 + $0x170] sm:$0xff] }
 0xc18   :  { %7968 = vmatpush1.bf16.msra.mxu1 %v7660_v7  ;;  %v7477_v7 = vld [vmem:[#allocation5 + $0x178] sm:$0xff] }
 0xc19   :  { %7969 = vmatprep.subr.bf16.mxu1 %v7667_v49  ;;  %v7483_v49 = vld [vmem:[#allocation5 + $0x1a8] sm:$0xff] }
 0xc1a   :  { %7847 = vmatpush1.bf16.msra.mxu0 %v7664_v45  ;;  %v7482_v45 = vld [vmem:[#allocation5 + $0x1a0] sm:$0xff] }
 0xc1b   :  { %7848 = vmatprep.subr.bf16.mxu0 %v7671_v18  ;;  %v7488_v18 = vld [vmem:[#allocation5 + $0x1d0] sm:$0xff] }
 0xc1c   :  { %7970 = vmatpush1.bf16.msra.mxu1 %v7666_v31  ;;  %v7489_v31 = vld [vmem:[#allocation5 + $0x1d8] sm:$0xff] }
 0xc1d   :  { %7971 = vmatprep.subr.bf16.mxu1 %v7673_v44  ;;  %v7495_v44 = vld [vmem:[#allocation5 + $0x208] sm:$0xff] }
 0xc1e   :  { %7849 = vmatpush1.bf16.msra.mxu0 %v7670_v19  ;;  %v7494_v19 = vld [vmem:[#allocation5 + $0x200] sm:$0xff] }
 0xc1f   :  { %7850 = vmatprep.subr.bf16.mxu0 %v7677_v34  ;;  %v7500_v34 = vld [vmem:[#allocation5 + $0x230] sm:$0xff] }
 0xc20   :  { %7972 = vmatpush1.bf16.msra.mxu1 %v7672_v61  ;;  %v7501_v61 = vld [vmem:[#allocation5 + $0x238] sm:$0xff] }
 0xc21   :  { %7973 = vmatprep.subr.bf16.mxu1 %v7679_v28  ;;  %v7507_v28 = vld [vmem:[#allocation5 + $0x268] sm:$0xff] }
 0xc22   :  { %7851 = vmatpush1.bf16.msra.mxu0 %v7676_v39  ;;  %v7506_v39 = vld [vmem:[#allocation5 + $0x260] sm:$0xff] }
 0xc23   :  { %7852 = vmatprep.subr.bf16.mxu0 %v7683_v17  ;;  %v7512_v17 = vld [vmem:[#allocation5 + $0x290] sm:$0xff] }
 0xc24   :  { %7974 = vmatpush1.bf16.msra.mxu1 %v7678_v3  ;;  %v7513_v3 = vld [vmem:[#allocation5 + $0x298] sm:$0xff] }
 0xc25   :  { %7975 = vmatprep.subr.bf16.mxu1 %v7685_v58  ;;  %v7519_v58 = vld [vmem:[#allocation5 + $0x2c8] sm:$0xff] }
 0xc26   :  { %7853 = vmatpush1.bf16.msra.mxu0 %v7682_v16  ;;  %v7518_v16 = vld [vmem:[#allocation5 + $0x2c0] sm:$0xff] }
 0xc27   :  { %7854 = vmatprep.subr.bf16.mxu0 %v7689_v25  ;;  %v7524_v25 = vld [vmem:[#allocation5 + $0x2f0] sm:$0xff] }
 0xc28   :  { %7976 = vmatpush1.bf16.msra.mxu1 %v7684_v5  ;;  %v7525_v5 = vld [vmem:[#allocation5 + $0x2f8] sm:$0xff] }
 0xc29   :  { %7977 = vmatprep.subr.bf16.mxu1 %v7691_v53  ;;  %v7531_v53 = vld [vmem:[#allocation5 + $0x328] sm:$0xff] }
 0xc2a   :  { %7855 = vmatpush1.bf16.msra.mxu0 %v7688_v13  ;;  %v7530_v13 = vld [vmem:[#allocation5 + $0x320] sm:$0xff] }
 0xc2b   :  { %7856 = vmatprep.subr.bf16.mxu0 %v7695_v15  ;;  %v7536_v15 = vld [vmem:[#allocation5 + $0x350] sm:$0xff] }
 0xc2c   :  { %7978 = vmatpush1.bf16.msra.mxu1 %v7690_v6  ;;  %v7537_v6 = vld [vmem:[#allocation5 + $0x358] sm:$0xff] }
 0xc2d   :  { %7979 = vmatprep.subr.bf16.mxu1 %v7697_v36  ;;  %v7543_v36 = vld [vmem:[#allocation5 + $0x388] sm:$0xff] }
 0xc2e   :  { %7857 = vmatpush1.bf16.msra.mxu0 %v7694_v20  ;;  %v7542_v20 = vld [vmem:[#allocation5 + $0x380] sm:$0xff] }
 0xc2f   :  { %7858 = vmatprep.subr.bf16.mxu0 %v7701_v33  ;;  %v7548_v33 = vld [vmem:[#allocation5 + $0x3b0] sm:$0xff] }
 0xc30   :  { %7980 = vmatpush1.bf16.msra.mxu1 %v7696_v23  ;;  %v7549_v23 = vld [vmem:[#allocation5 + $0x3b8] sm:$0xff] }
 0xc31   :  { %7981 = vmatprep.subr.bf16.mxu1 %v7703_v40  ;;  %v7555_v40 = vld [vmem:[#allocation5 + $0x3e8] sm:$0xff] }
 0xc32   :  { %7859 = vmatpush1.bf16.msra.mxu0 %v7700_v12  ;;  %v7554_v12 = vld [vmem:[#allocation5 + $0x3e0] sm:$0xff] }
 0xc33   :  { %7860 = vmatprep.subr.bf16.mxu0 %v7707_v50  ;;  %v7567_v50 = vld [vmem:[#allocation5 + $0x448] sm:$0xff] }
 0xc34   :  { %7982 = vmatpush1.bf16.msra.mxu1 %v7702_v47  ;;  %v7561_v47 = vld [vmem:[#allocation5 + $0x418] sm:$0xff] }
 0xc35   :  { %7983 = vmatprep.subr.bf16.mxu1 %v7709_v1  ;;  %v7573_v1 = vld [vmem:[#allocation5 + $0x478] sm:$0xff] }
 0xc36   :  { %7861 = vmatpush1.bf16.msra.mxu0 %v7706_v10  ;;  %v7572_v10 = vld [vmem:[#allocation5 + $0x470] sm:$0xff] }
 0xc37   :  { %7862 = vmatprep.subr.bf16.mxu0 %v7713_v24  ;;  %v7578_v24 = vld [vmem:[#allocation5 + $0x4a0] sm:$0xff] }
 0xc38   :  { %7984 = vmatpush1.bf16.msra.mxu1 %v7708_v32  ;;  %v7579_v32 = vld [vmem:[#allocation5 + $0x4a8] sm:$0xff] }
 0xc39   :  { %7985 = vmatprep.subr.bf16.mxu1 %v7715_v22  ;;  %v7585_v22 = vld [vmem:[#allocation5 + $0x4d8] sm:$0xff] }
 0xc3a   :  { %7863 = vmatpush1.bf16.msra.mxu0 %v7712_v51  ;;  %v7584_v51 = vld [vmem:[#allocation5 + $0x4d0] sm:$0xff] }
 0xc3b   :  { %7996 = vmatprep.subr.bf16.mxu0 %v7435_v59  ;;  %v7590_v59 = vld [vmem:[#allocation5 + $0x500] sm:$0xff] }
 0xc3c   :  { %7986 = vmatpush1.bf16.msra.mxu1 %v7714_v60  ;;  %v7591_v60 = vld [vmem:[#allocation5 + $0x508] sm:$0xff] }
 0xc3d   :  { %7865 = vmatmul.mubr.bf16.vlgmr.msra.gmra.mrb[192].mxu0 %v13310_v42 }
 0xc3e   :  { %7997 = vmatpush1.bf16.msra.mxu0 %v7434_v56  ;;  %8028 = vmatprep.mubr.bf16.mxu0 %v13280_v30  ;;  %v7464_v30 = vld [vmem:[#allocation5 + $0x110] sm:$0xff]  ;;  %v7597_v56 = vld [vmem:[#allocation5 + $0x538] sm:$0xff] }
 0xc3f   :  { %7988 = vmatmul.mubr.bf16.vlgmr.msra.gmra.mrb[192].mxu1 %v13310_v42  ;;  %7998 = vmatprep.subr.bf16.mxu0 %v7441_v29  ;;  %v7596_v29 = vld [vmem:[#allocation5 + $0x530] sm:$0xff] }
 0xc40   :  { %8285 = vmatprep.mubr.bf16.mxu1 %v14163_v46 }
 0xc42   :  { %7999 = vmatpush1.bf16.msra.mxu0 %v7440_v52  ;;  %v7603_v52 = vld [vmem:[#allocation5 + $0x568] sm:$0xff] }
 0xc43   :  { %8000 = vmatprep.subr.bf16.mxu0 %v7447_v4  ;;  %v7602_v4 = vld [vmem:[#allocation5 + $0x560] sm:$0xff] }
 0xc46   :  { %8001 = vmatpush1.bf16.msra.mxu0 %v7446_v37  ;;  %v7609_v37 = vld [vmem:[#allocation5 + $0x598] sm:$0xff] }
 0xc47   :  { %8002 = vmatprep.subr.bf16.mxu0 %v7453_v2  ;;  %v7608_v2 = vld [vmem:[#allocation5 + $0x590] sm:$0xff] }
 0xc4a   :  { %8003 = vmatpush1.bf16.msra.mxu0 %v7452_v57  ;;  %v7615_v57 = vld [vmem:[#allocation5 + $0x5c8] sm:$0xff] }
 0xc4b   :  { %8004 = vmatprep.subr.bf16.mxu0 %v7459_v0  ;;  %v7614_v0 = vld [vmem:[#allocation5 + $0x5c0] sm:$0xff] }
 0xc4e   :  { %8005 = vmatpush1.bf16.msra.mxu0 %v7458_v27  ;;  %v7621_v27 = vld [vmem:[#allocation5 + $0x5f8] sm:$0xff] }
 0xc4f   :  { %8006 = vmatprep.subr.bf16.mxu0 %v7465_v11  ;;  %v7620_v11 = vld [vmem:[#allocation5 + $0x5f0] sm:$0xff] }
 0xc52   :  { %8007 = vmatpush1.bf16.msra.mxu0 %v7464_v30  ;;  %v7627_v30 = vld [vmem:[#allocation5 + $0x628] sm:$0xff] }
 0xc53   :  { %8008 = vmatprep.subr.bf16.mxu0 %v7471_v26  ;;  %v7626_v26 = vld [vmem:[#allocation5 + $0x620] sm:$0xff] }
 0xc56   :  { %8009 = vmatpush1.bf16.msra.mxu0 %v7470_v41  ;;  %v7633_v41 = vld [vmem:[#allocation5 + $0x658] sm:$0xff] }
 0xc57   :  { %8010 = vmatprep.subr.bf16.mxu0 %v7477_v7  ;;  %v7632_v7 = vld [vmem:[#allocation5 + $0x650] sm:$0xff] }
 0xc5a   :  { %8011 = vmatpush1.bf16.msra.mxu0 %v7476_v35  ;;  %v7639_v35 = vld [vmem:[#allocation5 + $0x688] sm:$0xff] }
 0xc5b   :  { %8012 = vmatprep.subr.bf16.mxu0 %v7483_v49  ;;  %v7638_v49 = vld [vmem:[#allocation5 + $0x680] sm:$0xff] }
 0xc5e   :  { %8013 = vmatpush1.bf16.msra.mxu0 %v7482_v45  ;;  %v7645_v45 = vld [vmem:[#allocation5 + $0x6b8] sm:$0xff] }
 0xc5f   :  { %8014 = vmatprep.subr.bf16.mxu0 %v7489_v31  ;;  %v7644_v31 = vld [vmem:[#allocation5 + $0x6b0] sm:$0xff] }
 0xc62   :  { %8015 = vmatpush1.bf16.msra.mxu0 %v7488_v18  ;;  %v7651_v18 = vld [vmem:[#allocation5 + $0x6e8] sm:$0xff] }
 0xc63   :  { %8016 = vmatprep.subr.bf16.mxu0 %v7495_v44  ;;  %v7650_v44 = vld [vmem:[#allocation5 + $0x6e0] sm:$0xff] }
 0xc66   :  { %8017 = vmatpush1.bf16.msra.mxu0 %v7494_v19  ;;  %v7657_v19 = vld [vmem:[#allocation5 + $0x718] sm:$0xff] }
 0xc67   :  { %8018 = vmatprep.subr.bf16.mxu0 %v7501_v61  ;;  %v7663_v61 = vld [vmem:[#allocation5 + $0x748] sm:$0xff] }
 0xc6a   :  { %8019 = vmatpush1.bf16.msra.mxu0 %v7500_v34  ;;  %v7669_v34 = vld [vmem:[#allocation5 + $0x778] sm:$0xff] }
 0xc6b   :  { %8020 = vmatprep.subr.bf16.mxu0 %v7507_v28  ;;  %v7668_v28 = vld [vmem:[#allocation5 + $0x770] sm:$0xff] }
 0xc6e   :  { %8021 = vmatpush1.bf16.msra.mxu0 %v7506_v39  ;;  %v7675_v39 = vld [vmem:[#allocation5 + $0x7a8] sm:$0xff] }
 0xc6f   :  { %8022 = vmatprep.subr.bf16.mxu0 %v7513_v3  ;;  %v7674_v3 = vld [vmem:[#allocation5 + $0x7a0] sm:$0xff] }
 0xc72   :  { %8023 = vmatpush1.bf16.msra.mxu0 %v7512_v17  ;;  %v7681_v17 = vld [vmem:[#allocation5 + $0x7d8] sm:$0xff] }
 0xc73   :  { %8024 = vmatprep.subr.bf16.mxu0 %v7519_v58  ;;  %v7680_v58 = vld [vmem:[#allocation5 + $0x7d0] sm:$0xff] }
 0xc76   :  { %8025 = vmatpush1.bf16.msra.mxu0 %v7518_v16  ;;  %v7687_v16 = vld [vmem:[#allocation5 + $0x808] sm:$0xff] }
 0xc77   :  { %8026 = vmatprep.subr.bf16.mxu0 %v7525_v5  ;;  %v7686_v5 = vld [vmem:[#allocation5 + $0x800] sm:$0xff] }
 0xc7a   :  { %8027 = vmatpush1.bf16.msra.mxu0 %v7524_v25  ;;  %v7693_v25 = vld [vmem:[#allocation5 + $0x838] sm:$0xff] }
 0xc7b   :  { %8037 = vmatprep.subr.bf16.mxu0 %v7531_v53  ;;  %v7692_v53 = vld [vmem:[#allocation5 + $0x830] sm:$0xff] }
 0xc7d   :  { %8029 = vmatmul.mubr.bf16.vlgmr.msra.gmra.mrb[196].mxu0 %v13286_v54  ;;  %v7560_v54 = vld [vmem:[#allocation5 + $0x410] sm:$0xff] }
 0xc7e   :  { %8038 = vmatpush1.bf16.msra.mxu0 %v7530_v13  ;;  %8069 = vmatprep.mubr.bf16.mxu0 %v13290_v62  ;;  %v7566_v62 = vld [vmem:[#allocation5 + $0x440] sm:$0xff]  ;;  %v7699_v13 = vld [vmem:[#allocation5 + $0x868] sm:$0xff] }
 0xc7f   :  { %8039 = vmatprep.subr.bf16.mxu0 %v7537_v6  ;;  %v7698_v6 = vld [vmem:[#allocation5 + $0x860] sm:$0xff] }
 0xc82   :  { %8040 = vmatpush1.bf16.msra.mxu0 %v7536_v15  ;;  %v7705_v15 = vld [vmem:[#allocation5 + $0x898] sm:$0xff] }
 0xc83   :  { %8041 = vmatprep.subr.bf16.mxu0 %v7543_v36  ;;  %v7704_v36 = vld [vmem:[#allocation5 + $0x890] sm:$0xff] }
 0xc86   :  { %8042 = vmatpush1.bf16.msra.mxu0 %v7542_v20  ;;  %v7711_v20 = vld [vmem:[#allocation5 + $0x8c8] sm:$0xff] }
 0xc87   :  { %8043 = vmatprep.subr.bf16.mxu0 %v7549_v23  ;;  %v7710_v23 = vld [vmem:[#allocation5 + $0x8c0] sm:$0xff] }
 0xc8a   :  { %8044 = vmatpush1.bf16.msra.mxu0 %v7548_v33  ;;  %v7717_v33 = vld [vmem:[#allocation5 + $0x8f8] sm:$0xff] }
 0xc8b   :  { %8045 = vmatprep.subr.bf16.mxu0 %v7555_v40  ;;  %v7716_v40 = vld [vmem:[#allocation5 + $0x8f0] sm:$0xff] }
 0xc8e   :  { %8046 = vmatpush1.bf16.msra.mxu0 %v7554_v12  ;;  %v7718_v12 = vld [vmem:[#allocation17] sm:$0x3f] }
 0xc8f   :  { %8047 = vmatprep.subr.bf16.mxu0 %v7561_v47  ;;  %v14164_v47 = vld [vmem:[#allocation113_spill] sm:$0xff] }
 0xc92   :  { %8048 = vmatpush1.bf16.msra.mxu0 %v7560_v54  ;;  %v7723_v54 = vrot.slane %v7718_v12, %v14164_v47 }
 0xc93   :  { %8049 = vmatprep.subr.bf16.mxu0 %v7567_v50  ;;  %v14165_v50 = vld [vmem:[#allocation115_spill] sm:$0xff] }
 0xc96   :  { %8050 = vmatpush1.bf16.msra.mxu0 %v7566_v62  ;;  %v7731_v62 = vrot.slane %v7718_v12, %v14165_v50 }
 0xc97   :  { %8051 = vmatprep.subr.bf16.mxu0 %v7573_v1  ;;  %v14166_v1 = vld [vmem:[#allocation114_spill] sm:$0xff] }
 0xc9a   :  { %8052 = vmatpush1.bf16.msra.mxu0 %v7572_v10  ;;  %v7727_v10 = vrot.slane %v7718_v12, %v14166_v1 }
 0xc9b   :  { %8053 = vmatprep.subr.bf16.mxu0 %v7579_v32  ;;  %v14167_v32 = vld [vmem:[#allocation116_spill] sm:$0xff] }
 0xc9e   :  { %8054 = vmatpush1.bf16.msra.mxu0 %v7578_v24  ;;  %v7735_v24 = vrot.slane %v7718_v12, %v14167_v32 }
 0xc9f   :  { %8055 = vmatprep.subr.bf16.mxu0 %v7585_v22 }
 0xca2   :  { %8056 = vmatpush1.bf16.msra.mxu0 %v7584_v51 }
 0xca3   :  { %8057 = vmatprep.subr.bf16.mxu0 %v7591_v60 }
 0xca6   :  { %8058 = vmatpush1.bf16.msra.mxu0 %v7590_v59 }
 0xca7   :  { %8059 = vmatprep.subr.bf16.mxu0 %v7597_v56 }
 0xcaa   :  { %8060 = vmatpush1.bf16.msra.mxu0 %v7596_v29 }
 0xcab   :  { %8061 = vmatprep.subr.bf16.mxu0 %v7603_v52 }
 0xcae   :  { %8062 = vmatpush1.bf16.msra.mxu0 %v7602_v4 }
 0xcaf   :  { %8063 = vmatprep.subr.bf16.mxu0 %v7609_v37 }
 0xcb2   :  { %8064 = vmatpush1.bf16.msra.mxu0 %v7608_v2 }
 0xcb3   :  { %8065 = vmatprep.subr.bf16.mxu0 %v7615_v57 }
 0xcb6   :  { %8066 = vmatpush1.bf16.msra.mxu0 %v7614_v0  ;;  %v8125_v0 = vld [vmem:[#allocation19] sm:$0x3f] }
 0xcb7   :  { %8067 = vmatprep.subr.bf16.mxu0 %v7621_v27  ;;  %v8130_v27 = vrot.slane %v8125_v0, %v14164_v47 }
 0xcba   :  { %8068 = vmatpush1.bf16.msra.mxu0 %v7620_v11  ;;  %v8134_v11 = vrot.slane %v8125_v0, %v14166_v1 }
 0xcbb   :  { %8078 = vmatprep.subr.bf16.mxu0 %v7627_v30  ;;  %v8138_v30 = vrot.slane %v8125_v0, %v14165_v50 }
 0xcbd   :  { %8070 = vmatmul.mubr.bf16.vlgmr.msra.gmra.mrb[196].mxu0 %v13298_v14  ;;  %v7656_v14 = vld [vmem:[#allocation5 + $0x710] sm:$0xff] }
 0xcbe   :  { %8079 = vmatpush1.bf16.msra.mxu0 %v7626_v26  ;;  %8110 = vmatprep.mubr.bf16.mxu0 %v13302_v63  ;;  %v7662_v63 = vld [vmem:[#allocation5 + $0x740] sm:$0xff] }
 0xcbf   :  { %8080 = vmatprep.subr.bf16.mxu0 %v7633_v41  ;;  %v8142_v41 = vrot.slane %v8125_v0, %v14167_v32 }
 0xcc2   :  { %8081 = vmatpush1.bf16.msra.mxu0 %v7632_v7 }
 0xcc3   :  { %8082 = vmatprep.subr.bf16.mxu0 %v7639_v35 }
 0xcc6   :  { %8083 = vmatpush1.bf16.msra.mxu0 %v7638_v49 }
 0xcc7   :  { %8084 = vmatprep.subr.bf16.mxu0 %v7645_v45 }
 0xcca   :  { %8085 = vmatpush1.bf16.msra.mxu0 %v7644_v31 }
 0xccb   :  { %8086 = vmatprep.subr.bf16.mxu0 %v7651_v18 }
 0xcce   :  { %8087 = vmatpush1.bf16.msra.mxu0 %v7650_v44 }
 0xccf   :  { %8088 = vmatprep.subr.bf16.mxu0 %v7657_v19 }
 0xcd2   :  { %8089 = vmatpush1.bf16.msra.mxu0 %v7656_v14 }
 0xcd3   :  { %8090 = vmatprep.subr.bf16.mxu0 %v7663_v61 }
 0xcd6   :  { %8091 = vmatpush1.bf16.msra.mxu0 %v7662_v63  ;;  %v14168_v63 = vld [vmem:[#allocation117_spill] sm:$0xff] }
 0xcd7   :  { %8092 = vmatprep.subr.bf16.mxu0 %v7669_v34  ;;  %v7739_v34 = vrot.slane %v7718_v12, %v14168_v63 }
 0xcda   :  { %8093 = vmatpush1.bf16.msra.mxu0 %v7668_v28  ;;  %v14169_v28 = vld [vmem:[#allocation118_spill] sm:$0xff] }
 0xcdb   :  { %8094 = vmatprep.subr.bf16.mxu0 %v7675_v39  ;;  %v7743_v39 = vrot.slane %v7718_v12, %v14169_v28  ;;  %v14170_v12 = vld [vmem:[#allocation50_spill] sm:$0xff] }
 0xcdc   :  { %vm8170_vm5 = vcmp.gt.f32.partialorder %v14170_v12, 0.0 }
 0xcde   :  { %8095 = vmatpush1.bf16.msra.mxu0 %v7674_v3 }
 0xcdf   :  { %8096 = vmatprep.subr.bf16.mxu0 %v7681_v17 }
 0xce2   :  { %8097 = vmatpush1.bf16.msra.mxu0 %v7680_v58 }
 0xce3   :  { %8098 = vmatprep.subr.bf16.mxu0 %v7687_v16 }
 0xce6   :  { %8099 = vmatpush1.bf16.msra.mxu0 %v7686_v5 }
 0xce7   :  { %8100 = vmatprep.subr.bf16.mxu0 %v7693_v25 }
 0xcea   :  { %8101 = vmatpush1.bf16.msra.mxu0 %v7692_v53  ;;  %v8146_v53 = vrot.slane %v8125_v0, %v14168_v63 }
 0xceb   :  { %8102 = vmatprep.subr.bf16.mxu0 %v7699_v13  ;;  %v8150_v13 = vrot.slane %v8125_v0, %v14169_v28 }
 0xcee   :  { %8103 = vmatpush1.bf16.msra.mxu0 %v7698_v6 }
 0xcef   :  { %8104 = vmatprep.subr.bf16.mxu0 %v7705_v15 }
 0xcf2   :  { %8105 = vmatpush1.bf16.msra.mxu0 %v7704_v36 }
 0xcf3   :  { %8106 = vmatprep.subr.bf16.mxu0 %v7711_v20 }
 0xcf6   :  { %8107 = vmatpush1.bf16.msra.mxu0 %v7710_v23 }
 0xcf7   :  { %8108 = vmatprep.subr.bf16.mxu0 %v7717_v33 }
 0xcfa   :  { %8109 = vmatpush1.bf16.msra.mxu0 %v7716_v40  ;;  %v8172_v40 = vshra.s32 %v13990_v43, 2 }
 0xcfc   :  { %vm13335_vm1 = vcmp.eq.s32.totalorder %v8172_v40, 0  ;;  %vm13339_vm14 = vcmp.eq.s32.totalorder %v8172_v40, 1 }
 0xcfd   :  { %8111 = vmatmul.mubr.bf16.vlgmr.msra.gmra.mrb[196].mxu0 %v13310_v42 }
 0xd10   :  { %v7866_v22 = vpop.f32.mrb[192].mxu0 }
 0xd11   :  { %v8817_v60 = vadd.f32 %v7866_v22, %v7723_v54  ;;  %v7868_v59 = vpop.f32.mrb[193].mxu0 }
 0xd12   :  { %v7989_v51 = vpop.f32.mrb[192].mxu1  ;;  %v8818_v52 = vadd.f32 %v7868_v59, %v7727_v10  ;;  %v7870_v4 = vpop.f32.mrb[194].mxu0 }
 0xd13   :  { %v8819_v56 = vadd.f32 %v7989_v51, %v7731_v62  ;;  %v7991_v29 = vpop.f32.mrb[193].mxu1  ;;  %9566 = vtanh.f32 %v8817_v60  ;;  %v7871_v42 = vpop.f32.mrb[195].mxu0 }
 0xd14   :  { %v8820_v37 = vadd.f32 %v7991_v29, %v7735_v24  ;;  %v7993_v2 = vpop.f32.mrb[194].mxu1  ;;  %9568 = vtanh.f32 %v8818_v52 }
 0xd15   :  { %v7994_v57 = vpop.f32.mrb[195].mxu1  ;;  %9570 = vtanh.f32 %v8819_v56 }
 0xd16   :  { %9572 = vtanh.f32 %v8820_v37 }
 0xd1d   :  { %v9567_v26 = vpop.eup %9566 }
 0xd1e   :  { %v9569_v7 = vpop.eup %9568  ;;  %v8157_v35 = vmul.f32 %v9567_v26, %v8130_v27 }
 0xd1f   :  { %v9571_v49 = vpop.eup %9570  ;;  %v8158_v45 = vmul.f32 %v9569_v7, %v8134_v11 }
 0xd20   :  { %v9573_v31 = vpop.eup %9572  ;;  %v8159_v18 = vmul.f32 %v9571_v49, %v8138_v30 }
 0xd21   :  { %v8160_v44 = vmul.f32 %v9573_v31, %v8142_v41  ;;  %v8163_v19 = vadd.f32 %v8158_v45, %v8157_v35 }
 0xd23   :  { %v8164_v14 = vadd.f32 %v8163_v19, %v8159_v18 }
 0xd25   :  { %v8165_v61 = vadd.f32 %v8164_v14, %v8160_v44 }
 0xdd0   :  { %v8112_v3 = vpop.f32.mrb[196].mxu0 }
 0xdd1   :  { %v8821_v17 = vadd.f32 %v8112_v3, %v7739_v34  ;;  %v8114_v58 = vpop.f32.mrb[197].mxu0 }
 0xdd2   :  { %v8822_v16 = vadd.f32 %v8114_v58, %v7743_v39  ;;  %v8116_v5 = vpop.f32.mrb[198].mxu0  ;;  %v14175_v39 = vld [vmem:[#allocation48_spill] sm:$0xff] }
 0xdd3   :  { %9574 = vtanh.f32 %v8821_v17  ;;  %v8117_v25 = vpop.f32.mrb[199].mxu0  ;;  %v8213_v3 = vshra.s32 %v14175_v39, 2  ;;  %v14176_v5 = vmov 0.0  }
 0xdd4   :  { %9576 = vtanh.f32 %v8822_v16 }
 0xdd5   :  { %vm8214_vm12 = vcmp.eq.s32.totalorder %v8213_v3, %v13990_v43 }
 0xdd6   :  { %v8738_v25 = vsel %vm8214_vm12, 1.0, %v14176_v5 }
 0xddd   :  { %v9575_v6 = vpop.eup %9574 }
 0xdde   :  { %v9577_v15 = vpop.eup %9576  ;;  %v8161_v36 = vmul.f32 %v9575_v6, %v8146_v53 }
 0xddf   :  { %v8162_v20 = vmul.f32 %v9577_v15, %v8150_v13 }
 0xde0   :  { %v8166_v23 = vadd.f32 %v8165_v61, %v8161_v36 }
 0xde2   :  { %v8167_v33 = vadd.f32 %v8166_v23, %v8162_v20  ;;  %v8217_v23 = vpack.c.bf16 %v8738_v25, %v8738_v25 }
 0xde4   :  { %8168 = vadd.xlane.f32.xlu0 %v8167_v33 }
 0xe71   :  { %v8169_v50 = vpop.xlane.xlu0 %8168 }
 0xe72   :  { %v8171_v62 = vsel %vm8170_vm5, %v8169_v50, -1e+32 }
 0xe73   :  { %v8174_v1 = vsel %vm13335_vm1, %v8171_v62, -1e+32  ;;  %v8183_v10 = vsel %vm13339_vm14, %v8171_v62, -1e+32 }
 0xe74   :  { %v8175_v32 = vrot.slane %v8174_v1, 4  ;;  %v8184_v24 = vrot.slane %v8183_v10, 4 }
 0xe76   :  { %v8176_v22 = vmax.f32 %v8174_v1, %v8175_v32  ;;  %v8185_v51 = vmax.f32 %v8183_v10, %v8184_v24 }
 0xe78   :  { %v8177_v60 = vrot.slane %v8176_v22, 2  ;;  %v8186_v59 = vrot.slane %v8185_v51, 2 }
 0xe7a   :  { %v8178_v56 = vmax.f32 %v8176_v22, %v8177_v60  ;;  %v8187_v29 = vmax.f32 %v8185_v51, %v8186_v59 }
 0xe7c   :  { %v8179_v52 = vrot.slane %v8178_v56, 1  ;;  %v8188_v4 = vrot.slane %v8187_v29, 1 }
 0xe7e   :  { %v8180_v37 = vmax.f32 %v8178_v56, %v8179_v52  ;;  %v8189_v2 = vmax.f32 %v8187_v29, %v8188_v4 }
 0xe80   :  { %v8181_v42 = vsel %vm13335_vm1, %v8180_v37, %v8171_v62 }
 0xe81   :  { %v8190_v57 = vsel %vm13339_vm14, %v8189_v2, %v8181_v42 }
 0xe82   :  { %v8191_v0 = vsub.f32 %v8171_v62, %v8190_v57 }
 0xe84   :  { %v8192_v27 = vmul.f32 1.442695, %v8191_v0 }
 0xe86   :  { %9578 = vpow2.f32 %v8192_v27 }
 0xe90   :  { %v9579_v11 = vpop.eup %9578 }
 0xe91   :  { %v8194_v30 = vsel %vm13335_vm1, %v9579_v11, 0.0  ;;  %v8202_v26 = vsel %vm13339_vm14, %v9579_v11, 0.0 }
 0xe92   :  { %v8195_v41 = vrot.slane %v8194_v30, 4  ;;  %v8203_v7 = vrot.slane %v8202_v26, 4 }
 0xe94   :  { %v8196_v35 = vadd.f32 %v8195_v41, %v8194_v30  ;;  %v8204_v49 = vadd.f32 %v8203_v7, %v8202_v26 }
 0xe96   :  { %v8197_v45 = vrot.slane %v8196_v35, 2  ;;  %v8205_v31 = vrot.slane %v8204_v49, 2 }
 0xe98   :  { %v8198_v18 = vadd.f32 %v8197_v45, %v8196_v35  ;;  %v8206_v44 = vadd.f32 %v8205_v31, %v8204_v49 }
 0xe9a   :  { %v8199_v19 = vrot.slane %v8198_v18, 1  ;;  %v8207_v14 = vrot.slane %v8206_v44, 1 }
 0xe9c   :  { %v8200_v61 = vadd.f32 %v8199_v19, %v8198_v18  ;;  %v8208_v63 = vadd.f32 %v8207_v14, %v8206_v44 }
 0xe9e   :  { %v8201_v34 = vsel %vm13335_vm1, %v8200_v61, %v9579_v11 }
 0xe9f   :  { %v8209_v28 = vsel %vm13339_vm14, %v8208_v63, %v8201_v34 }
 0xea0   :  { %9580 = vrcp.f32 %v8209_v28 }
 0xeaa   :  { %v9581_v17 = vpop.eup %9580 }
 0xeab   :  { %v8211_v58 = vmul.f32 %v9581_v17, %v9579_v11 }
 0xead   :  { %v8212_v16 = vsel %vm8170_vm5, %v8211_v58, 0.0 }
 0xeae   :  { %v8219_v53 = vmul.f32 %v8212_v16, %v14159_v48  ;;  %v8218_v13 = vmul.f32 %v8212_v16, %v14160_v38  ;;  %v8221_v6 = vmul.f32 %v8212_v16, %v14161_v9  ;;  %v8220_v15 = vmul.f32 %v8212_v16, %v14162_v55 }
 0xeaf   :  { %v8223_v12 = vmul.f32 %v8212_v16, %v13276_v21  ;;  %v8222_v9 = vmul.f32 %v8212_v16, %v13273_v8 }
 0xeb0   :  { %v8225_v36 = vpack.c.bf16 %v8219_v53, %v8219_v53  ;;  %v8224_v20 = vpack.c.bf16 %v8218_v13, %v8218_v13  ;;  %v8227_v33 = vpack.c.bf16 %v8221_v6, %v8221_v6  ;;  %v8226_v40 = vpack.c.bf16 %v8220_v15, %v8220_v15 }
 0xeb1   :  { %v8229_v38 = vpack.c.bf16 %v8223_v12, %v8223_v12  ;;  %v8228_v55 = vpack.c.bf16 %v8222_v9, %v8222_v9 }
 0xeb2   :  { %8739 = vmatprep.subr.msk.bf16.mxu1 %vm8234_vm11, %v8225_v36  ;;  %v8236_v43 = vsel %vm8234_vm11, %v8224_v20, 0  ;;  %v8242_v48 = vsel %vm8234_vm11, %v8226_v40, 0 }
 0xeb3   :  { %8254 = vmatpush1.bf16.msra.mxu1 %v8236_v43  ;;  %v8248_v47 = vsel %vm8234_vm11, %v8228_v55, 0 }
 0xeb4   :  { %8741 = vmatprep.subr.msk.bf16.mxu1 %vm8234_vm11, %v8227_v33 }
 0xeb6   :  { %8740 = vmatmul.mubr.msk.bf16.vlgmr.msra.gmra.mrb[196].mxu1 %vm8230_vm13, %v8217_v23 }
 0xeb7   :  { %8295 = vmatpush1.bf16.msra.mxu1 %v8242_v48  ;;  %8326 = vmatprep.mubr.bf16.mxu1 %v14163_v46 }
 0xeb8   :  { %8743 = vmatprep.subr.msk.bf16.mxu1 %vm8234_vm11, %v8229_v38 }
 0xebe   :  { %8742 = vmatmul.mubr.msk.bf16.vlgmr.msra.gmra.mrb[200].mxu1 %vm8230_vm13, %v8217_v23 }
 0xebf   :  { %8336 = vmatpush1.bf16.msra.mxu1 %v8248_v47  ;;  %8367 = vmatprep.mubr.bf16.mxu1 %v14163_v46 }
 0xec6   :  { %8744 = vmatmul.mubr.msk.bf16.vlgmr.msra.gmra.mrb[204].mxu1 %vm8230_vm13, %v8217_v23 }
 0xf89   :  { %v13380_v21 = vpop.f32.mrb[196].mxu1 }
 0xf8a   :  { %v8289_v54 = vpop.f32.mrb[197].mxu1 }
 0xf8b   :  { %v8291_v50 = vpop.f32.mrb[198].mxu1 }
 0xf8c   :  { %v8292_v62 = vpop.f32.mrb[199].mxu1 }
 0xf91   :  { %v13382_v1 = vpop.f32.mrb[200].mxu1 }
 0xf92   :  { %v13384_v8 = vpop.f32.mrb[201].mxu1 }
 0xf93   :  { %v8332_v10 = vpop.f32.mrb[202].mxu1 }
 0xf94   :  { %v8333_v32 = vpop.f32.mrb[203].mxu1 }
 0xf99   :  { %v13386_v24 = vpop.f32.mrb[204].mxu1 }
 0xf9a   :  { %v8371_v22 = vpop.f32.mrb[205].mxu1 }
 0xf9b   :  { %v8373_v51 = vpop.f32.mrb[206].mxu1 }
 0xf9c   :  { %v8374_v60 = vpop.f32.mrb[207].mxu1 }
 0xf9d   :  { %9820 = dma.done.wait [#allocation7 + $0x4], 6144 }
 0xf9e   :  { %9821 = vsyncadd [#allocation7 + $0x4], 4294961152  ;;  %v8380_v46 = vpack.c.bf16 %v8289_v54, %v8289_v54  ;;  %v8384_v59 = vpack.c.bf16 %v8371_v22, %v8371_v22  ;;  %v8393_v56 = vld [vmem:[#allocation6 + $0x40] sm:$0xff]  ;;  %v8394_v52 = vld [vmem:[#allocation6 + $0x48] sm:$0xff]  ;;  %v8379_v16 = vpack.c.bf16 %v13380_v21, %v13380_v21  ;;  %v8382_v25 = vpack.c.bf16 %v13384_v8, %v13384_v8  ;;  %s9860_s14 = smov [#allocation22]  }
 0xf9f   :  { %v8385_v29 = vld [vmem:[#allocation6] sm:$0xff]  ;;  %8751 = vmatprep.subr.bf16.mxu1 %v8393_v56  ;;  %v8386_v4 = vld [vmem:[#allocation6 + $0x8] sm:$0xff]  ;;  %v8395_v37 = vld [vmem:[#allocation6 + $0x50] sm:$0xff]  ;;  %v8383_v15 = vpack.c.bf16 %v13386_v24, %v13386_v24  ;;  %v8381_v54 = vpack.c.bf16 %v13382_v1, %v13382_v1  ;;  %s8567_s11 = sshll.u32 %s9860_s14, 4  ;;  %s8568_s11 = int_to_ptr.vmem [resolvable:$true] %s8567_s11 }
 0xfa0   :  { %8472 = vmatprep.mubr.bf16.mxu1 %v8380_v46  ;;  %8552 = vmatprep.mubr.bf16.mxu0 %v8384_v59  ;;  %v8425_v2 = vld [vmem:[#allocation6 + $0x140] sm:$0xff]  ;;  %v8426_v57 = vld [vmem:[#allocation6 + $0x148] sm:$0xff]  ;;  %v8387_v0 = vld [vmem:[#allocation6 + $0x10] sm:$0xff]  ;;  %s9780_s30 = scalar_lea.vmem %s8568_s11, 32  ;;  %p9785_p3 = scmp.lt.s32.totalorder %s8568_s11, %s8568_s11 }
 0xfa1   :  { %8752 = vmatpush3.bf16.msra.mxu1 %v8385_v29  ;;  %8795 = vmatprep.subr.bf16.mxu0 %v8425_v2  ;;  %v8417_v42 = vld [vmem:[#allocation6 + $0x100] sm:$0xff]  ;;  %v8396_v27 = vld [vmem:[#allocation6 + $0x58] sm:$0xff]  ;;  %v8418_v11 = vld [vmem:[#allocation6 + $0x108] sm:$0xff]  ;;  %p9781_p2 = scmp.ne.s32.totalorder %s8568_s11, %s9780_s30  ;;  %p9786_p4 = scmp.lt.s32.totalorder %s9780_s30, %s9780_s30 }
 0xfa2   :  { %8753 = vmatprep.subr.bf16.mxu1 %v8394_v52  ;;  %8796 = vmatpush3.bf16.msra.mxu0 %v8417_v42  ;;  %v8427_v30 = vld [vmem:[#allocation6 + $0x150] sm:$0xff]  ;;  %v8388_v26 = vld [vmem:[#allocation6 + $0x18] sm:$0xff]  ;;  %v8397_v41 = vld [vmem:[#allocation6 + $0x60] sm:$0xff] }
 0xfa3   :  { %8797 = vmatprep.subr.bf16.mxu0 %v8426_v57  ;;  %v8419_v7 = vld [vmem:[#allocation6 + $0x110] sm:$0xff]  ;;  %v8428_v35 = vld [vmem:[#allocation6 + $0x158] sm:$0xff]  ;;  %v8389_v49 = vld [vmem:[#allocation6 + $0x20] sm:$0xff]  ;;  %p9787_p5 = por %p9786_p4, %p9785_p3 }
 0xfa4   :  { %v8398_v45 = vld [vmem:[#allocation6 + $0x68] sm:$0xff]  ;;  %v8420_v31 = vld [vmem:[#allocation6 + $0x118] sm:$0xff]  ;;  %v8429_v18 = vld [vmem:[#allocation6 + $0x160] sm:$0xff] }
 0xfa5   :  { %8754 = vmatpush3.bf16.msra.mxu1 %v8386_v4  ;;  %v8390_v44 = vld [vmem:[#allocation6 + $0x28] sm:$0xff]  ;;  %v8399_v19 = vld [vmem:[#allocation6 + $0x70] sm:$0xff]  ;;  %v8421_v14 = vld [vmem:[#allocation6 + $0x120] sm:$0xff]  ;;  %p9788_p6 = pnand %p9787_p5, %p9781_p2 }
 0xfa6   :  { %8755 = vmatprep.subr.bf16.mxu1 %v8395_v37  ;;  %8798 = vmatpush3.bf16.msra.mxu0 %v8418_v11  ;;  %v8430_v61 = vld [vmem:[#allocation6 + $0x168] sm:$0xff]  ;;  %v8391_v63 = vld [vmem:[#allocation6 + $0x30] sm:$0xff]  ;;  %v8400_v34 = vld [vmem:[#allocation6 + $0x78] sm:$0xff] }
 0xfa7   :  { %8799 = vmatprep.subr.bf16.mxu0 %v8427_v30  ;;  %v8422_v28 = vld [vmem:[#allocation6 + $0x128] sm:$0xff]  ;;  %v8431_v39 = vld [vmem:[#allocation6 + $0x170] sm:$0xff]  ;;  %v8392_v3 = vld [vmem:[#allocation6 + $0x38] sm:$0xff] }
 0xfa8   :  { %v8409_v17 = vld [vmem:[#allocation6 + $0xc0] sm:$0xff]  ;;  %v8423_v58 = vld [vmem:[#allocation6 + $0x130] sm:$0xff]  ;;  %v8432_v5 = vld [vmem:[#allocation6 + $0x178] sm:$0xff] }
 0xfa9   :  { %8756 = vmatpush3.bf16.msra.mxu1 %v8387_v0  ;;  %v8401_v53 = vld [vmem:[#allocation6 + $0x80] sm:$0xff]  ;;  %v8410_v13 = vld [vmem:[#allocation6 + $0xc8] sm:$0xff]  ;;  %v8424_v6 = vld [vmem:[#allocation6 + $0x138] sm:$0xff] }
 0xfaa   :  { %8757 = vmatprep.subr.bf16.mxu1 %v8396_v27  ;;  %8800 = vmatpush3.bf16.msra.mxu0 %v8419_v7  ;;  %v8402_v36 = vld [vmem:[#allocation6 + $0x88] sm:$0xff]  ;;  %v8411_v20 = vld [vmem:[#allocation6 + $0xd0] sm:$0xff]  ;;  %v8412_v43 = vld [vmem:[#allocation6 + $0xd8] sm:$0xff] }
 0xfab   :  { %8801 = vmatprep.subr.bf16.mxu0 %v8428_v35  ;;  %v8403_v23 = vld [vmem:[#allocation6 + $0x90] sm:$0xff]  ;;  %v8404_v33 = vld [vmem:[#allocation6 + $0x98] sm:$0xff]  ;;  %v8413_v40 = vld [vmem:[#allocation6 + $0xe0] sm:$0xff] }
 0xfac   :  { %v8405_v12 = vld [vmem:[#allocation6 + $0xa0] sm:$0xff]  ;;  %v8414_v48 = vld [vmem:[#allocation6 + $0xe8] sm:$0xff]  ;;  %v8415_v9 = vld [vmem:[#allocation6 + $0xf0] sm:$0xff] }
 0xfad   :  { %8758 = vmatpush3.bf16.msra.mxu1 %v8388_v26  ;;  %v8406_v38 = vld [vmem:[#allocation6 + $0xa8] sm:$0xff]  ;;  %v8407_v55 = vld [vmem:[#allocation6 + $0xb0] sm:$0xff]  ;;  %v8416_v47 = vld [vmem:[#allocation6 + $0xf8] sm:$0xff] }
 0xfae   :  { %8759 = vmatprep.subr.bf16.mxu1 %v8397_v41  ;;  %8802 = vmatpush3.bf16.msra.mxu0 %v8420_v31  ;;  %v8408_v21 = vld [vmem:[#allocation6 + $0xb8] sm:$0xff]  ;;  %v8745_v59 = vld [vmem:[#allocation20] ss:$0 sm:$0xff] }
 0xfaf   :  { %8803 = vmatprep.subr.bf16.mxu0 %v8429_v18 }
 0xfb1   :  { %8760 = vmatpush3.bf16.msra.mxu1 %v8389_v49 }
 0xfb2   :  { %8761 = vmatprep.subr.bf16.mxu1 %v8398_v45  ;;  %8804 = vmatpush3.bf16.msra.mxu0 %v8421_v14 }
 0xfb3   :  { %8805 = vmatprep.subr.bf16.mxu0 %v8430_v61 }
 0xfb5   :  { %8762 = vmatpush3.bf16.msra.mxu1 %v8390_v44 }
 0xfb6   :  { %8763 = vmatprep.subr.bf16.mxu1 %v8399_v19  ;;  %8806 = vmatpush3.bf16.msra.mxu0 %v8422_v28 }
 0xfb7   :  { %8807 = vmatprep.subr.bf16.mxu0 %v8431_v39 }
 0xfb9   :  { %8764 = vmatpush3.bf16.msra.mxu1 %v8391_v63 }
 0xfba   :  { %8765 = vmatprep.subr.bf16.mxu1 %v8400_v34  ;;  %8808 = vmatpush3.bf16.msra.mxu0 %v8423_v58 }
 0xfbb   :  { %8809 = vmatprep.subr.bf16.mxu0 %v8432_v5 }
 0xfbd   :  { %8766 = vmatpush3.bf16.msra.mxu1 %v8392_v3 }
 0xfbe   :  { %8773 = vmatprep.subr.bf16.mxu1 %v8409_v17  ;;  %8810 = vmatpush3.bf16.msra.mxu0 %v8424_v6 }
 0xfc0   :  { %8473 = vmatmul.mubr.bf16.vlgmr.msra.gmra.mrb[208].mxu1 %v8379_v16 }
 0xfc1   :  { %8774 = vmatpush3.bf16.msra.mxu1 %v8401_v53  ;;  %8512 = vmatprep.mubr.bf16.mxu1 %v8382_v25 }
 0xfc2   :  { %8775 = vmatprep.subr.bf16.mxu1 %v8410_v13  ;;  %8553 = vmatmul.mubr.bf16.vlgmr.msra.gmra.mrb[200].mxu0 %v8383_v15 }
 0xfc5   :  { %8776 = vmatpush3.bf16.msra.mxu1 %v8402_v36 }
 0xfc6   :  { %8777 = vmatprep.subr.bf16.mxu1 %v8411_v20 }
 0xfc9   :  { %8778 = vmatpush3.bf16.msra.mxu1 %v8403_v23 }
 0xfca   :  { %8779 = vmatprep.subr.bf16.mxu1 %v8412_v43 }
 0xfcd   :  { %8780 = vmatpush3.bf16.msra.mxu1 %v8404_v33 }
 0xfce   :  { %8781 = vmatprep.subr.bf16.mxu1 %v8413_v40 }
 0xfd1   :  { %8782 = vmatpush3.bf16.msra.mxu1 %v8405_v12 }
 0xfd2   :  { %8783 = vmatprep.subr.bf16.mxu1 %v8414_v48 }
 0xfd5   :  { %8784 = vmatpush3.bf16.msra.mxu1 %v8406_v38 }
 0xfd6   :  { %8785 = vmatprep.subr.bf16.mxu1 %v8415_v9 }
 0xfd9   :  { %8786 = vmatpush3.bf16.msra.mxu1 %v8407_v55 }
 0xfda   :  { %8787 = vmatprep.subr.bf16.mxu1 %v8416_v47 }
 0xfdd   :  { %8788 = vmatpush3.bf16.msra.mxu1 %v8408_v21 }
 0xfe0   :  { %8513 = vmatmul.mubr.bf16.vlgmr.msra.gmra.mrb[212].mxu1 %v8381_v54 }
0x1093   :  { %v8767_v50 = vpop.f32.mrb[208].mxu1 }
0x1094   :  { %v8768_v62 = vpop.f32.mrb[209].mxu1 }
0x1095   :  { %v8769_v8 = vadd.f32 %v8768_v62, %v8767_v50  ;;  %v8770_v10 = vpop.f32.mrb[210].mxu1  ;;  %v8811_v24 = vpop.f32.mrb[200].mxu0 }
0x1096   :  { %v8771_v32 = vpop.f32.mrb[211].mxu1  ;;  %v8812_v22 = vpop.f32.mrb[201].mxu0 }
0x1097   :  { %v8813_v51 = vadd.f32 %v8812_v22, %v8811_v24  ;;  %v8814_v60 = vpop.f32.mrb[202].mxu0  ;;  %v8475_v52 = vadd.f32 %v8769_v8, %v8745_v59 }
0x1098   :  { %v8815_v46 = vpop.f32.mrb[203].mxu0 }
0x10b3   :  { %v8789_v56 = vpop.f32.mrb[212].mxu1 }
0x10b4   :  { %v8790_v29 = vpop.f32.mrb[213].mxu1 }
0x10b5   :  { %v8791_v4 = vadd.f32 %v8790_v29, %v8789_v56  ;;  %v8792_v37 = vpop.f32.mrb[214].mxu1 }
0x10b6   :  { %v8793_v2 = vpop.f32.mrb[215].mxu1 }
0x10b7   :  { %v8515_v1 = vadd.f32 %v8791_v4, %v8475_v52 }
0x10b9   :  { %v8555_v42 = vadd.f32 %v8813_v51, %v8515_v1 }
0x10bb   :  { %8560 = vst [vmem:[#allocation22] sm:$0x3] %v8555_v42 }
0x10bc   :  { %9791 = shalt.err (!%p9788_p6)
}
0x10bd   :  { %s14177_s21 = sld [smem:[#allocation126_spill]] }
0x10c3   :  { %s9792_s22 = scalar_lea.hbm %s14177_s21, 32 }
0x10c4   :  { %p9793_p7 = scmp.ne.s32.totalorder %s14177_s21, %s9792_s22  ;;  %p9796_p8 = scmp.lt.u32.totalorder %s9792_s22, %s14177_s21 }
0x10c6   :  { %p9798_p9 = pnand %p9796_p8, %p9793_p7 }
0x10c8   :  { %9801 = shalt.err (!%p9798_p9)
}
0x10c9   :  { %8570 = dma.vmem_to_hbm [thread:$0]  %s8568_s11, 32, %s14177_s21, [#allocation10]  }
0x10ca   :  { %9822 = dma.done.wait [#allocation10], 32  }
0x10cb   :  { %9823 = vsyncadd [#allocation10], 4294967264 }
0x10cc   :  { %8574 = vsyncpa [#allocation9], 1 }
0x10cd   :  { %8575 = vsyncpa [#allocation12], 1 }
0x10ce   :  { %8576 = vsyncpa [#allocation15], 1 }
0x10cf   :  { %8577 = vsyncpa [#allocation18], 1 }
0x10d0   :  { %8578 = vsyncpa [#allocation21], 1 }
0x10d1   :  { %8579 = vsyncpa [#allocation10], 1 }
0x10d2   :  { %8580 = vsyncmov [#allocation7] }
0x10d5   :  { %s8581_s16 = vpop.sfrf %8580 }
0x10d6   :  { %p8746_p10 = scmp.ne.s32.totalorder %s8581_s16, 0 }
0x10d8   :  { %8585 = shalt.err (%p8746_p10)  }
0x10d9   :  { %8587 = vsyncmov [#allocation7 + $0x1] }
0x10dc   :  { %s8588_s3 = vpop.sfrf %8587 }
0x10dd   :  { %p8747_p11 = scmp.ne.s32.totalorder %s8588_s3, 0 }
0x10df   :  { %8592 = shalt.err (%p8747_p11)  }
0x10e0   :  { %8594 = vsyncmov [#allocation7 + $0x2] }
0x10e3   :  { %s8595_s28 = vpop.sfrf %8594 }
0x10e4   :  { %p8748_p12 = scmp.ne.s32.totalorder %s8595_s28, 0 }
0x10e6   :  { %8599 = shalt.err (%p8748_p12)  }
0x10e7   :  { %8601 = vsyncmov [#allocation7 + $0x3] }
0x10ea   :  { %s8602_s29 = vpop.sfrf %8601 }
0x10eb   :  { %p8749_p13 = scmp.ne.s32.totalorder %s8602_s29, 0 }
0x10ed   :  { %8606 = shalt.err (%p8749_p13)  }
0x10ee   :  { %8608 = vsyncmov [#allocation7 + $0x4] }
0x10f1   :  { %s8609_s9 = vpop.sfrf %8608 }
0x10f2   :  { %p8750_p0 = scmp.ne.s32.totalorder %s8609_s9, 0 }
0x10f4   :  { %8613 = shalt.err (%p8750_p0)  }

</bundles_post_ra>
